<compile_context>
chip_gen: v5e
topology: v5e:2x2
jax: 0.10.0
libtpu: 0.0.40
codegen_flags: <defaults>
</compile_context>

<pallas_src>
import jax
import jax.numpy as jnp
from jax.experimental import pallas as pl
from jax.experimental.pallas import tpu as pltpu

EPS = 1e-5


def bn_relu_kernel(x_ref, gamma_ref, beta_ref, o_ref):
    # x_ref: (block_c, R) where R = N*H*W; gamma/beta: (block_c, 1)
    x = x_ref[...].astype(jnp.float32)
    r = x.shape[-1]
    inv_r = 1.0 / r

    # One-pass batch statistics (biased variance, like torch BN training mode).
    s = jnp.sum(x, axis=-1, keepdims=True)        # (block_c, 1)
    sq = jnp.sum(x * x, axis=-1, keepdims=True)   # (block_c, 1)
    mean = s * inv_r
    # Clamp: E[x^2] - mean^2 can be slightly negative from f32 cancellation.
    var = jnp.maximum(sq * inv_r - mean * mean, 0.0)
    inv_std = jax.lax.rsqrt(var + EPS)

    # Fold affine + normalization into a single scale/shift.
    scale = gamma_ref[...] * inv_std              # (block_c, 1)
    shift = beta_ref[...] - mean * scale          # (block_c, 1)

    # Re-read x_ref (fresh VMEM load) instead of keeping the large `x` value
    # live across the stats computation -> no spill stores at big block_c.
    o_ref[...] = jnp.maximum(
        x_ref[...].astype(jnp.float32) * scale + shift, 0.0
    ).astype(o_ref.dtype)


def _pick_block_c(c, target=None):
    """Largest multiple-of-8 divisor of c that is <= target.

    Default target is c // 2 so the grid has (at least) 2 steps: big blocks
    kill per-step overhead while 2 steps keep DMA/compute double-buffering
    (and map one block per TensorCore on v7x).
    """
    if target is None:
        target = max(c // 2, 8)
    if c % 8 != 0:
        return c
    best = 8
    b = 8
    while b <= min(c, target):
        if c % b == 0:
            best = b
        b += 8
    return best


def batchnorm_relu(x_nchw, gamma, beta):
    """x_nchw: (N, C, H, W) float32; gamma/beta: (C,) float32."""
    n, c, h, w = x_nchw.shape
    r = n * h * w

    # Native-layout reshape: NCHW -> (C, N*H*W).  Free when N == 1.
    if n == 1:
        x2d = x_nchw.reshape(c, r)
    else:
        x2d = jnp.transpose(x_nchw, (1, 0, 2, 3)).reshape(c, r)

    gamma2d = gamma.reshape(c, 1)
    beta2d = beta.reshape(c, 1)

    block_c = _pick_block_c(c)     # C=1232 -> 616 -> grid=(2,)
    grid = (c // block_c,)

    out2d = pl.pallas_call(
        bn_relu_kernel,
        out_shape=jax.ShapeDtypeStruct((c, r), x_nchw.dtype),
        grid_spec=pl.GridSpec(
            grid=grid,
            in_specs=[
                pl.BlockSpec((block_c, r), lambda i: (i, 0)),
                pl.BlockSpec((block_c, 1), lambda i: (i, 0)),
                pl.BlockSpec((block_c, 1), lambda i: (i, 0)),
            ],
            out_specs=pl.BlockSpec((block_c, r), lambda i: (i, 0)),
        ),
        compiler_params=pltpu.CompilerParams(
            dimension_semantics=("parallel",)
        ),
    )(x2d, gamma2d, beta2d)

    if n == 1:
        return out2d.reshape(n, c, h, w)
    return jnp.transpose(out2d.reshape(c, n, h, w), (1, 0, 2, 3))


def reference(x_nchw, gamma, beta):
    mean = jnp.mean(x_nchw, axis=(0, 2, 3), keepdims=True)
    var = jnp.mean((x_nchw - mean) ** 2, axis=(0, 2, 3), keepdims=True)
    y = (x_nchw - mean) / jnp.sqrt(var + EPS)
    y = y * gamma.reshape(1, -1, 1, 1) + beta.reshape(1, -1, 1, 1)
    return jnp.maximum(y, 0.0)


if __name__ == "__main__":
    N, C, H, W = 1, 1232, 14, 14  # matches the module's BatchNorm2d(1232)

    key = jax.random.PRNGKey(0)
    kx, kg, kb = jax.random.split(key, 3)
    x = jax.random.normal(kx, (N, C, H, W), dtype=jnp.float32)
    # Deterministic affine params (torch default is ones/zeros; randomize to
    # exercise the affine path while staying deterministic).
    gamma = 1.0 + 0.1 * jax.random.normal(kg, (C,), dtype=jnp.float32)
    beta = 0.1 * jax.random.normal(kb, (C,), dtype=jnp.float32)

    out = batchnorm_relu(x, gamma, beta)
    out = jax.block_until_ready(out)

    ref = reference(x, gamma, beta)
    assert out.shape == (N, C, H, W)
    assert jnp.max(jnp.abs(out - ref)) < 1e-4, "mismatch vs reference"

    print("KERNEL_OK")
</pallas_src>

<mosaic_0001>
module attributes {stable_mosaic.version = 11 : i64} {
  func.func @bn_relu_kernel(%arg0: i32, %arg1: memref<616x196xf32, #tpu.memory_space<vmem>>, %arg2: memref<616x1xf32, #tpu.memory_space<vmem>>, %arg3: memref<616x1xf32, #tpu.memory_space<vmem>>, %arg4: memref<616x196xf32, #tpu.memory_space<vmem>>) attributes {dimension_semantics = [#tpu.dimension_semantics<parallel>], iteration_bounds = array<i64: 2>, scalar_prefetch = 0 : i64, scratch_operands = 0 : i64, tpu.core_type = #tpu.core_type<tc>, window_params = [{transform_indices = @transform_0, window_bounds = array<i64: 616, 196>}, {transform_indices = @transform_1, window_bounds = array<i64: 616, 1>}, {transform_indices = @transform_2, window_bounds = array<i64: 616, 1>}, {transform_indices = @transform_3, window_bounds = array<i64: 616, 196>}]} {
    %c0 = arith.constant 0 : index
    %c0_0 = arith.constant 0 : index
    %0 = vector.load %arg1[%c0, %c0_0] : memref<616x196xf32, #tpu.memory_space<vmem>>, vector<616x196xf32>
    %cst = arith.constant dense<0.000000e+00> : vector<616xf32>
    %1 = vector.multi_reduction <add>, %0, %cst [1] : vector<616x196xf32> to vector<616xf32>
    %2 = vector.shape_cast %1 : vector<616xf32> to vector<616x1xf32>
    %3 = arith.mulf %0, %0 : vector<616x196xf32>
    %cst_1 = arith.constant dense<0.000000e+00> : vector<616xf32>
    %4 = vector.multi_reduction <add>, %3, %cst_1 [1] : vector<616x196xf32> to vector<616xf32>
    %5 = vector.shape_cast %4 : vector<616xf32> to vector<616x1xf32>
    %cst_2 = arith.constant 0.00510204071 : f32
    %6 = vector.broadcast %cst_2 : f32 to vector<616x1xf32>
    %7 = arith.mulf %2, %6 : vector<616x1xf32>
    %cst_3 = arith.constant 0.00510204071 : f32
    %8 = vector.broadcast %cst_3 : f32 to vector<616x1xf32>
    %9 = arith.mulf %5, %8 : vector<616x1xf32>
    %10 = arith.mulf %7, %7 : vector<616x1xf32>
    %11 = arith.subf %9, %10 : vector<616x1xf32>
    %cst_4 = arith.constant 0.000000e+00 : f32
    %12 = vector.broadcast %cst_4 : f32 to vector<616x1xf32>
    %13 = arith.maximumf %11, %12 : vector<616x1xf32>
    %cst_5 = arith.constant 9.99999974E-6 : f32
    %14 = vector.broadcast %cst_5 : f32 to vector<616x1xf32>
    %15 = arith.addf %13, %14 : vector<616x1xf32>
    %16 = math.rsqrt %15 : vector<616x1xf32>
    %c0_6 = arith.constant 0 : index
    %c0_7 = arith.constant 0 : index
    %17 = vector.load %arg2[%c0_6, %c0_7] : memref<616x1xf32, #tpu.memory_space<vmem>>, vector<616x1xf32>
    %18 = arith.mulf %17, %16 : vector<616x1xf32>
    %c0_8 = arith.constant 0 : index
    %c0_9 = arith.constant 0 : index
    %19 = vector.load %arg3[%c0_8, %c0_9] : memref<616x1xf32, #tpu.memory_space<vmem>>, vector<616x1xf32>
    %20 = arith.mulf %7, %18 : vector<616x1xf32>
    %21 = arith.subf %19, %20 : vector<616x1xf32>
    %c0_10 = arith.constant 0 : index
    %c0_11 = arith.constant 0 : index
    %22 = vector.load %arg1[%c0_10, %c0_11] : memref<616x196xf32, #tpu.memory_space<vmem>>, vector<616x196xf32>
    %23 = vector.broadcast %18 : vector<616x1xf32> to vector<616x196xf32>
    %24 = arith.mulf %22, %23 : vector<616x196xf32>
    %25 = vector.broadcast %21 : vector<616x1xf32> to vector<616x196xf32>
    %26 = arith.addf %24, %25 : vector<616x196xf32>
    %cst_12 = arith.constant 0.000000e+00 : f32
    %27 = vector.broadcast %cst_12 : f32 to vector<616x196xf32>
    %28 = arith.maximumf %26, %27 : vector<616x196xf32>
    %c0_13 = arith.constant 0 : index
    %c0_14 = arith.constant 0 : index
    %29 = vector.load %arg4[%c0_13, %c0_14] : memref<616x196xf32, #tpu.memory_space<vmem>>, vector<616x196xf32>
    tpu.vector_store %arg4[%c0_13, %c0_14], %28 {strides = array<i32>} : memref<616x196xf32, #tpu.memory_space<vmem>>, vector<616x196xf32>,
    return
  }
  func.func @transform_0(%arg0: i32) -> (i32, i32) {
    %c0_i32 = arith.constant 0 : i32
    %c0_i32_0 = arith.constant 0 : i32
    return %arg0, %c0_i32 : i32, i32
  }
  func.func @transform_1(%arg0: i32) -> (i32, i32) {
    %c0_i32 = arith.constant 0 : i32
    %c0_i32_0 = arith.constant 0 : i32
    return %arg0, %c0_i32 : i32, i32
  }
  func.func @transform_2(%arg0: i32) -> (i32, i32) {
    %c0_i32 = arith.constant 0 : i32
    %c0_i32_0 = arith.constant 0 : i32
    return %arg0, %c0_i32 : i32, i32
  }
  func.func @transform_3(%arg0: i32) -> (i32, i32) {
    %c0_i32 = arith.constant 0 : i32
    %c0_i32_0 = arith.constant 0 : i32
    return %arg0, %c0_i32 : i32, i32
  }
}

</mosaic_0001>

<bundles_post_ra>
// kernel: tpu_custom_call.1
= control target key start
LH: loop header
LB: loop body
LE: loop exit
PB: predicated region body
PF: predicated region fallthrough
CT: control target
= control target key end

     0   :  { %s4619_s12 = smov 0   ;;  %s9646_s0 = inlined_call_operand.vmem [shape: f32[1232,196], index: 0, kind: input, shape index: {}]   ;;  %s9647_s1 = inlined_call_operand.vmem [shape: f32[1232,1], index: 1, kind: input, shape index: {}]   ;;  %s9648_s2 = inlined_call_operand.vmem [shape: f32[1232,1], index: 2, kind: input, shape index: {}]   ;;  %s9649_s3 = inlined_call_operand.vmem [shape: f32[1232,196], index: 3, kind: output, shape index: {}]  }
   0x1 LB: > { %s4233_s13 = sadd.s32 4294967295, %s4596_s12   ;;  %p4237_p0 = scmp.ge.s32.totalorder %s4596_s12, 1  ;;  %s4596_s12 = sphi %s4619_s12, %s13_s12  }
   0x2   : > { %p161_p1 = scmp.lt.s32.totalorder %s4596_s12, 3 }
   0x4   : > { %p162_p2 = pnand %p4237_p0, %p161_p1 }
   0x6   : > { %165 = sbr.rel (%p162_p2) target bundleno = 1122 (0x462), region = 32 }
   0xb   : > { %s197_s14 = smul.u32 77, %s4233_s13  ;;  %vm377_vm0 = vcmask 556032  }
   0xd   : > { %p198_p3 = scmp.lt.s32.totalorder %s197_s14, 153 }
   0xf   : > { %s10913_s14 = smov (!%p198_p3, %s197_s14), 153 }
  0x10   : > { %s4246_s15 = sshll.u32 %s10913_s14, 4  ;;  %s4240_s19 = sshll.u32 %s10913_s14, 3 }
  0x11   : > { %s4635_s18 = scalar_lea.vmem %s9646_s0, %s4246_s15  ;;  %s6489_s22 = scalar_lea.vmem %s9647_s1, %s4240_s19 }
  0x12   : > { %v4638_v0 = vld [vmem:[%s4635_s18 + $0x40] sm:$0xff]  ;;  %v4641_v1 = vld [vmem:[%s4635_s18 + $0x48] sm:$0xff]  ;;  %v4663_v10 = vld [vmem:[%s4635_s18 + $0x58] sm:$0xff]  ;;  %s8751_s25 = scalar_lea.vmem %s9648_s2, %s4240_s19  ;;  %s9003_s28 = scalar_lea.vmem %s9649_s3, %s4246_s15 }
  0x13   : > { %v4644_v2 = vld [vmem:[%s4635_s18 + $0x20] sm:$0xff]  ;;  %v394_v3 = vsel %vm377_vm0, %v4641_v1, 0.0  ;;  %v4649_v4 = vld [vmem:[%s4635_s18 + $0x28] sm:$0xff]  ;;  %v4668_v13 = vld [vmem:[%s4635_s18 + $0x38] sm:$0xff]  ;;  %v398_v16 = vsel %vm377_vm0, %v4663_v10, 0.0 }
  0x14   : > { %v4652_v5 = vld [vmem:[%s4635_s18] sm:$0xff]  ;;  %v4655_v6 = vld [vmem:[%s4635_s18 + $0x8] sm:$0xff]  ;;  %v395_v7 = vadd.f32 %v394_v3, %v4638_v0  ;;  %v386_v8 = vsel %vm377_vm0, %v4649_v4, 0.0  ;;  %v4671_v14 = vld [vmem:[%s4635_s18 + $0x18] sm:$0xff]  ;;  %v390_v18 = vsel %vm377_vm0, %v4668_v13, 0.0 }
  0x15   : > { %v378_v9 = vsel %vm377_vm0, %v4655_v6, 0.0  ;;  %v387_v11 = vadd.f32 %v386_v8, %v4644_v2  ;;  %v4674_v15 = vld [vmem:[%s4635_s18 + $0x50] sm:$0xff]  ;;  %v382_v20 = vsel %vm377_vm0, %v4671_v14, 0.0  ;;  %v4692_v24 = vld [vmem:[%s4635_s18 + $0x88] sm:$0xff]  ;;  %v4695_v25 = vld [vmem:[%s4635_s18 + $0x78] sm:$0xff] }
  0x16   : > { %v379_v12 = vadd.f32 %v378_v9, %v4652_v5  ;;  %396 = vadd.xlane.f32.xlu2 %v395_v7  ;;  %v4679_v17 = vld [vmem:[%s4635_s18 + $0x30] sm:$0xff]  ;;  %v399_v21 = vadd.f32 %v398_v16, %v4674_v15  ;;  %v4698_v26 = vld [vmem:[%s4635_s18 + $0x68] sm:$0xff]  ;;  %v4701_v27 = vld [vmem:[%s4635_s18 + $0x80] sm:$0xff]  ;;  %v410_v28 = vsel %vm377_vm0, %v4692_v24, 0.0  ;;  %v406_v30 = vsel %vm377_vm0, %v4695_v25, 0.0 }
  0x17   : > { %388 = vadd.xlane.f32.xlu1 %v387_v11  ;;  %v4684_v19 = vld [vmem:[%s4635_s18 + $0x10] sm:$0xff]  ;;  %v391_v22 = vadd.f32 %v390_v18, %v4679_v17  ;;  %v4711_v31 = vld [vmem:[%s4635_s18 + $0x60] sm:$0xff]  ;;  %v402_v32 = vsel %vm377_vm0, %v4698_v26, 0.0  ;;  %v411_v33 = vadd.f32 %v410_v28, %v4701_v27  ;;  %v4719_v36 = vld [vmem:[%s4635_s18 + $0xb8] sm:$0xff] }
  0x18   : > { %380 = vadd.xlane.f32.xlu0 %v379_v12  ;;  %v383_v23 = vadd.f32 %v382_v20, %v4684_v19  ;;  %v4706_v29 = vld [vmem:[%s4635_s18 + $0x70] sm:$0xff]  ;;  %v403_v35 = vadd.f32 %v402_v32, %v4711_v31  ;;  %v4722_v37 = vld [vmem:[%s4635_s18 + $0xa8] sm:$0xff]  ;;  %v4725_v38 = vld [vmem:[%s4635_s18 + $0x98] sm:$0xff]  ;;  %v422_v40 = vsel %vm377_vm0, %v4719_v36, 0.0 }
  0x19   : > { %v407_v34 = vadd.f32 %v406_v30, %v4706_v29  ;;  %v4728_v39 = vld [vmem:[%s4635_s18 + $0xb0] sm:$0xff]  ;;  %v4733_v41 = vld [vmem:[%s4635_s18 + $0xa0] sm:$0xff]  ;;  %v418_v42 = vsel %vm377_vm0, %v4722_v37, 0.0  ;;  %v414_v44 = vsel %vm377_vm0, %v4725_v38, 0.0  ;;  %v4746_v48 = vld [vmem:[%s4635_s18 + $0xe8] sm:$0xff] }
  0x1a   : > { %v4738_v43 = vld [vmem:[%s4635_s18 + $0x90] sm:$0xff]  ;;  %v423_v45 = vadd.f32 %v422_v40, %v4728_v39  ;;  %v419_v46 = vadd.f32 %v418_v42, %v4733_v41  ;;  %v4749_v49 = vld [vmem:[%s4635_s18 + $0xd8] sm:$0xff]  ;;  %v4752_v50 = vld [vmem:[%s4635_s18 + $0xc8] sm:$0xff]  ;;  %v434_v52 = vsel %vm377_vm0, %v4746_v48, 0.0 }
  0x1b   : > { %v415_v47 = vadd.f32 %v414_v44, %v4738_v43  ;;  %v4755_v51 = vld [vmem:[%s4635_s18 + $0xe0] sm:$0xff]  ;;  %v4760_v53 = vld [vmem:[%s4635_s18 + $0xd0] sm:$0xff]  ;;  %v430_v54 = vsel %vm377_vm0, %v4749_v49, 0.0  ;;  %v426_v56 = vsel %vm377_vm0, %v4752_v50, 0.0  ;;  %v4773_v60 = vld [vmem:[%s4635_s18 + $0x118] sm:$0xff] }
  0x1c   : > { %v4765_v55 = vld [vmem:[%s4635_s18 + $0xc0] sm:$0xff]  ;;  %v435_v57 = vadd.f32 %v434_v52, %v4755_v51  ;;  %v431_v58 = vadd.f32 %v430_v54, %v4760_v53  ;;  %v4776_v61 = vld [vmem:[%s4635_s18 + $0x108] sm:$0xff]  ;;  %v4779_v62 = vld [vmem:[%s4635_s18 + $0xf8] sm:$0xff]  ;;  %v446_v3 = vsel %vm377_vm0, %v4773_v60, 0.0 }
  0x1d   : > { %v427_v59 = vadd.f32 %v426_v56, %v4765_v55  ;;  %v4782_v63 = vld [vmem:[%s4635_s18 + $0x110] sm:$0xff]  ;;  %v4787_v7 = vld [vmem:[%s4635_s18 + $0x100] sm:$0xff]  ;;  %v442_v8 = vsel %vm377_vm0, %v4776_v61, 0.0  ;;  %v438_v11 = vsel %vm377_vm0, %v4779_v62, 0.0  ;;  %v4800_v20 = vld [vmem:[%s4635_s18 + $0x148] sm:$0xff] }
  0x1e   : > { %400 = vadd.xlane.f32.xlu2 %v399_v21  ;;  %v4792_v9 = vld [vmem:[%s4635_s18 + $0xf0] sm:$0xff]  ;;  %v447_v12 = vadd.f32 %v446_v3, %v4782_v63  ;;  %v443_v16 = vadd.f32 %v442_v8, %v4787_v7  ;;  %v4803_v21 = vld [vmem:[%s4635_s18 + $0x138] sm:$0xff]  ;;  %v458_v28 = vsel %vm377_vm0, %v4800_v20, 0.0  ;;  %v4841_v54 = vld [vmem:[%s4635_s18 + $0x160] sm:$0xff] }
  0x1f   : > { %392 = vadd.xlane.f32.xlu1 %v391_v22  ;;  %v439_v18 = vadd.f32 %v438_v11, %v4792_v9  ;;  %v4806_v22 = vld [vmem:[%s4635_s18 + $0x128] sm:$0xff]  ;;  %v4814_v30 = vld [vmem:[%s4635_s18 + $0x130] sm:$0xff]  ;;  %v454_v32 = vsel %vm377_vm0, %v4803_v21, 0.0  ;;  %v4827_v44 = vld [vmem:[%s4635_s18 + $0x178] sm:$0xff]  ;;  %9922 = vst [vmem:[#allocation4_spill] sm:$0xff] %v4841_v54 }
  0x20   : > { %384 = vadd.xlane.f32.xlu0 %v383_v23  ;;  %v4809_v23 = vld [vmem:[%s4635_s18 + $0x140] sm:$0xff]  ;;  %v455_v40 = vadd.f32 %v454_v32, %v4814_v30  ;;  %v470_v52 = vsel %vm377_vm0, %v4827_v44, 0.0  ;;  %v4854_v11 = vld [vmem:[%s4635_s18 + $0x1a8] sm:$0xff]  ;;  %v4868_v32 = vld [vmem:[%s4635_s18 + $0x190] sm:$0xff] }
  0x21   : > { %9923 = vst [vmem:[#allocation5_spill] sm:$0xff] %v4854_v11 }
  0x22   : > { %9926 = vst [vmem:[#allocation8_spill] sm:$0xff] %v4868_v32 }
  0x26   : > { %412 = vadd.xlane.f32.xlu2 %v411_v33  ;;  %v4819_v33 = vld [vmem:[%s4635_s18 + $0x120] sm:$0xff] }
  0x27   : > { %408 = vadd.xlane.f32.xlu1 %v407_v34  ;;  %v450_v34 = vsel %vm377_vm0, %v4806_v22, 0.0 }
  0x28   : > { %404 = vadd.xlane.f32.xlu0 %v403_v35  ;;  %v459_v35 = vadd.f32 %v458_v28, %v4809_v23  ;;  %v451_v42 = vadd.f32 %v450_v34, %v4819_v33  ;;  %v482_v28 = vsel %vm377_vm0, %v4854_v11, 0.0  ;;  %v4917_v11 = vld [vmem:[%s4635_s18 + $0x200] sm:$0xff] }
  0x29   : > { %9937 = vst [vmem:[#allocation19_spill] sm:$0xff] %v4917_v11 }
  0x2e   : > { %424 = vadd.xlane.f32.xlu2 %v423_v45  ;;  %v4830_v45 = vld [vmem:[%s4635_s18 + $0x168] sm:$0xff] }
  0x2f   : > { %420 = vadd.xlane.f32.xlu1 %v419_v46  ;;  %9920 = vst [vmem:[#allocation2_spill] sm:$0xff] %v4830_v45  ;;  %v4833_v46 = vld [vmem:[%s4635_s18 + $0x158] sm:$0xff]  ;;  %v466_v56 = vsel %vm377_vm0, %v4830_v45, 0.0 }
  0x30   : > { %416 = vadd.xlane.f32.xlu0 %v415_v47  ;;  %v4836_v47 = vld [vmem:[%s4635_s18 + $0x170] sm:$0xff]  ;;  %v467_v3 = vadd.f32 %v466_v56, %v4841_v54  ;;  %v5079_v54 = vld [vmem:[%s4635_s18 + $0x318] sm:$0xff] }
  0x31   : > { %9921 = vst [vmem:[#allocation3_spill] sm:$0xff] %v4836_v47 }
  0x32   : > { %9974 = vst [vmem:[#allocation56_spill] sm:$0xff] %v5079_v54 }
  0x36   : > { %436 = vadd.xlane.f32.xlu2 %v435_v57  ;;  %v4846_v57 = vld [vmem:[%s4635_s18 + $0x150] sm:$0xff] }
  0x37   : > { %432 = vadd.xlane.f32.xlu1 %v431_v58  ;;  %v462_v58 = vsel %vm377_vm0, %v4833_v46, 0.0 }
  0x38   : > { %428 = vadd.xlane.f32.xlu0 %v427_v59  ;;  %v471_v59 = vadd.f32 %v470_v52, %v4836_v47  ;;  %v463_v8 = vadd.f32 %v462_v58, %v4846_v57  ;;  %v4881_v58 = vld [vmem:[%s4635_s18 + $0x1d8] sm:$0xff]  ;;  %v5082_v47 = vld [vmem:[%s4635_s18 + $0x308] sm:$0xff] }
  0x39   : > { %9928 = vst [vmem:[#allocation10_spill] sm:$0xff] %v4881_v58 }
  0x3a   : > { %9975 = vst [vmem:[#allocation57_spill] sm:$0xff] %v5082_v47 }
  0x3e   : > { %448 = vadd.xlane.f32.xlu2 %v447_v12  ;;  %v4857_v12 = vld [vmem:[%s4635_s18 + $0x198] sm:$0xff] }
  0x3f   : > { %444 = vadd.xlane.f32.xlu1 %v443_v16  ;;  %9924 = vst [vmem:[#allocation6_spill] sm:$0xff] %v4857_v12  ;;  %v4860_v16 = vld [vmem:[%s4635_s18 + $0x188] sm:$0xff]  ;;  %v478_v34 = vsel %vm377_vm0, %v4857_v12, 0.0  ;;  %v4911_v12 = vld [vmem:[%s4635_s18 + $0x1f8] sm:$0xff] }
  0x40   : > { %440 = vadd.xlane.f32.xlu0 %v439_v18  ;;  %v4863_v18 = vld [vmem:[%s4635_s18 + $0x1a0] sm:$0xff]  ;;  %v479_v52 = vadd.f32 %v478_v34, %v4868_v32  ;;  %v4900_v32 = vld [vmem:[%s4635_s18 + $0x1b0] sm:$0xff]  ;;  %9935 = vst [vmem:[#allocation17_spill] sm:$0xff] %v4911_v12 }
  0x41   : > { %9925 = vst [vmem:[#allocation7_spill] sm:$0xff] %v4863_v18  ;;  %v4895_v34 = vld [vmem:[%s4635_s18 + $0x1c0] sm:$0xff] }
  0x42   : > { %9932 = vst [vmem:[#allocation14_spill] sm:$0xff] %v4895_v34 }
  0x43   : > { %9933 = vst [vmem:[#allocation15_spill] sm:$0xff] %v4900_v32 }
  0x46   : > { %460 = vadd.xlane.f32.xlu2 %v459_v35  ;;  %v4873_v35 = vld [vmem:[%s4635_s18 + $0x180] sm:$0xff] }
  0x47   : > { %456 = vadd.xlane.f32.xlu1 %v455_v40  ;;  %9927 = vst [vmem:[#allocation9_spill] sm:$0xff] %v4873_v35  ;;  %v474_v40 = vsel %vm377_vm0, %v4860_v16, 0.0 }
  0x48   : > { %452 = vadd.xlane.f32.xlu0 %v451_v42  ;;  %v483_v42 = vadd.f32 %v482_v28, %v4863_v18  ;;  %v475_v56 = vadd.f32 %v474_v40, %v4873_v35  ;;  %v494_v28 = vsel %vm377_vm0, %v4881_v58, 0.0  ;;  %v4908_v58 = vld [vmem:[%s4635_s18 + $0x208] sm:$0xff]  ;;  %v363_v35 = vld [vmem:[%s4635_s18 + $0x460] sm:$0xff] }
  0x49   : > { %9934 = vst [vmem:[#allocation16_spill] sm:$0xff] %v4908_v58 }
  0x4e   : > { %472 = vadd.xlane.f32.xlu2 %v471_v59  ;;  %v4884_v59 = vld [vmem:[%s4635_s18 + $0x1c8] sm:$0xff] }
  0x4f   : > { %468 = vadd.xlane.f32.xlu1 %v467_v3  ;;  %9929 = vst [vmem:[#allocation11_spill] sm:$0xff] %v4884_v59  ;;  %v4887_v3 = vld [vmem:[%s4635_s18 + $0x1b8] sm:$0xff]  ;;  %v490_v40 = vsel %vm377_vm0, %v4884_v59, 0.0  ;;  %v4914_v59 = vld [vmem:[%s4635_s18 + $0x1e8] sm:$0xff] }
  0x50   : > { %464 = vadd.xlane.f32.xlu0 %v463_v8  ;;  %9930 = vst [vmem:[#allocation12_spill] sm:$0xff] %v4887_v3  ;;  %v4890_v8 = vld [vmem:[%s4635_s18 + $0x1d0] sm:$0xff] }
  0x51   : > { %9931 = vst [vmem:[#allocation13_spill] sm:$0xff] %v4890_v8 }
  0x52   : > { %9936 = vst [vmem:[#allocation18_spill] sm:$0xff] %v4914_v59 }
  0x56   : > { %484 = vadd.xlane.f32.xlu2 %v483_v42  ;;  %v486_v42 = vsel %vm377_vm0, %v4887_v3, 0.0  ;;  %v5049_v3 = vld [vmem:[%s4635_s18 + $0x2d8] sm:$0xff] }
  0x57   : > { %480 = vadd.xlane.f32.xlu1 %v479_v52  ;;  %v495_v52 = vadd.f32 %v494_v28, %v4890_v8  ;;  %v487_v18 = vadd.f32 %v486_v42, %v4900_v32  ;;  %v506_v28 = vsel %vm377_vm0, %v4908_v58, 0.0  ;;  %v502_v42 = vsel %vm377_vm0, %v4911_v12, 0.0  ;;  %v4935_v58 = vld [vmem:[%s4635_s18 + $0x238] sm:$0xff]  ;;  %v4938_v32 = vld [vmem:[%s4635_s18 + $0x228] sm:$0xff]  ;;  %9966 = vst [vmem:[#allocation48_spill] sm:$0xff] %v5049_v3 }
  0x58   : > { %476 = vadd.xlane.f32.xlu0 %v475_v56  ;;  %v491_v56 = vadd.f32 %v490_v40, %v4895_v34  ;;  %v4922_v40 = vld [vmem:[%s4635_s18 + $0x1f0] sm:$0xff]  ;;  %v4927_v34 = vld [vmem:[%s4635_s18 + $0x1e0] sm:$0xff]  ;;  %9940 = vst [vmem:[#allocation22_spill] sm:$0xff] %v4935_v58  ;;  %v4941_v12 = vld [vmem:[%s4635_s18 + $0x218] sm:$0xff] }
  0x59   : > { %9938 = vst [vmem:[#allocation20_spill] sm:$0xff] %v4922_v40 }
  0x5a   : > { %9939 = vst [vmem:[#allocation21_spill] sm:$0xff] %v4927_v34 }
  0x5b   : > { %9941 = vst [vmem:[#allocation23_spill] sm:$0xff] %v4938_v32 }
  0x5c   : > { %9942 = vst [vmem:[#allocation24_spill] sm:$0xff] %v4941_v12 }
  0x5e   : > { %496 = vadd.xlane.f32.xlu2 %v495_v52  ;;  %v498_v52 = vsel %vm377_vm0, %v4914_v59, 0.0  ;;  %v4944_v59 = vld [vmem:[%s4635_s18 + $0x230] sm:$0xff] }
  0x5f   : > { %492 = vadd.xlane.f32.xlu1 %v491_v56  ;;  %v503_v56 = vadd.f32 %v502_v42, %v4922_v40  ;;  %v499_v8 = vadd.f32 %v498_v52, %v4927_v34  ;;  %9943 = vst [vmem:[#allocation25_spill] sm:$0xff] %v4944_v59  ;;  %v4949_v42 = vld [vmem:[%s4635_s18 + $0x220] sm:$0xff]  ;;  %v514_v52 = vsel %vm377_vm0, %v4938_v32, 0.0  ;;  %v4954_v40 = vld [vmem:[%s4635_s18 + $0x210] sm:$0xff]  ;;  %v4965_v34 = vld [vmem:[%s4635_s18 + $0x258] sm:$0xff] }
  0x60   : > { %488 = vadd.xlane.f32.xlu0 %v487_v18  ;;  %v507_v18 = vadd.f32 %v506_v28, %v4917_v11  ;;  %v518_v28 = vsel %vm377_vm0, %v4935_v58, 0.0  ;;  %9944 = vst [vmem:[#allocation26_spill] sm:$0xff] %v4949_v42  ;;  %v4962_v58 = vld [vmem:[%s4635_s18 + $0x268] sm:$0xff] }
  0x61   : > { %9945 = vst [vmem:[#allocation27_spill] sm:$0xff] %v4954_v40  ;;  %v4968_v32 = vld [vmem:[%s4635_s18 + $0x248] sm:$0xff] }
  0x62   : > { %9946 = vst [vmem:[#allocation28_spill] sm:$0xff] %v4962_v58 }
  0x63   : > { %9947 = vst [vmem:[#allocation29_spill] sm:$0xff] %v4965_v34 }
  0x64   : > { %9948 = vst [vmem:[#allocation30_spill] sm:$0xff] %v4968_v32 }
  0x66   : > { %508 = vadd.xlane.f32.xlu2 %v507_v18  ;;  %v510_v18 = vsel %vm377_vm0, %v4941_v12, 0.0  ;;  %v4971_v12 = vld [vmem:[%s4635_s18 + $0x260] sm:$0xff] }
  0x67   : > { %504 = vadd.xlane.f32.xlu1 %v503_v56  ;;  %v515_v56 = vadd.f32 %v514_v52, %v4949_v42  ;;  %v511_v11 = vadd.f32 %v510_v18, %v4954_v40  ;;  %9949 = vst [vmem:[#allocation31_spill] sm:$0xff] %v4971_v12  ;;  %v4976_v52 = vld [vmem:[%s4635_s18 + $0x250] sm:$0xff]  ;;  %v526_v18 = vsel %vm377_vm0, %v4965_v34, 0.0  ;;  %v4981_v42 = vld [vmem:[%s4635_s18 + $0x240] sm:$0xff]  ;;  %v4992_v40 = vld [vmem:[%s4635_s18 + $0x288] sm:$0xff] }
  0x68   : > { %500 = vadd.xlane.f32.xlu0 %v499_v8  ;;  %v519_v8 = vadd.f32 %v518_v28, %v4944_v59  ;;  %v530_v28 = vsel %vm377_vm0, %v4962_v58, 0.0  ;;  %9950 = vst [vmem:[#allocation32_spill] sm:$0xff] %v4976_v52  ;;  %v4989_v58 = vld [vmem:[%s4635_s18 + $0x298] sm:$0xff] }
  0x69   : > { %9951 = vst [vmem:[#allocation33_spill] sm:$0xff] %v4981_v42  ;;  %v4995_v34 = vld [vmem:[%s4635_s18 + $0x278] sm:$0xff] }
  0x6a   : > { %9952 = vst [vmem:[#allocation34_spill] sm:$0xff] %v4989_v58 }
  0x6b   : > { %9953 = vst [vmem:[#allocation35_spill] sm:$0xff] %v4992_v40 }
  0x6c   : > { %9954 = vst [vmem:[#allocation36_spill] sm:$0xff] %v4995_v34 }
  0x6e   : > { %520 = vadd.xlane.f32.xlu2 %v519_v8  ;;  %v522_v8 = vsel %vm377_vm0, %v4968_v32, 0.0  ;;  %v4998_v32 = vld [vmem:[%s4635_s18 + $0x290] sm:$0xff] }
  0x6f   : > { %516 = vadd.xlane.f32.xlu1 %v515_v56  ;;  %v527_v56 = vadd.f32 %v526_v18, %v4976_v52  ;;  %v523_v59 = vadd.f32 %v522_v8, %v4981_v42  ;;  %9955 = vst [vmem:[#allocation37_spill] sm:$0xff] %v4998_v32  ;;  %v5003_v18 = vld [vmem:[%s4635_s18 + $0x280] sm:$0xff]  ;;  %v538_v8 = vsel %vm377_vm0, %v4992_v40, 0.0  ;;  %v5008_v52 = vld [vmem:[%s4635_s18 + $0x270] sm:$0xff]  ;;  %v5019_v42 = vld [vmem:[%s4635_s18 + $0x2b8] sm:$0xff] }
  0x70   : > { %512 = vadd.xlane.f32.xlu0 %v511_v11  ;;  %v531_v11 = vadd.f32 %v530_v28, %v4971_v12  ;;  %v542_v28 = vsel %vm377_vm0, %v4989_v58, 0.0  ;;  %9956 = vst [vmem:[#allocation38_spill] sm:$0xff] %v5003_v18  ;;  %v5016_v58 = vld [vmem:[%s4635_s18 + $0x2c8] sm:$0xff] }
  0x71   : > { %9957 = vst [vmem:[#allocation39_spill] sm:$0xff] %v5008_v52  ;;  %v5022_v40 = vld [vmem:[%s4635_s18 + $0x2a8] sm:$0xff] }
  0x72   : > { %9958 = vst [vmem:[#allocation40_spill] sm:$0xff] %v5016_v58 }
  0x73   : > { %9959 = vst [vmem:[#allocation41_spill] sm:$0xff] %v5019_v42 }
  0x74   : > { %9960 = vst [vmem:[#allocation42_spill] sm:$0xff] %v5022_v40 }
  0x76   : > { %532 = vadd.xlane.f32.xlu2 %v531_v11  ;;  %v534_v11 = vsel %vm377_vm0, %v4995_v34, 0.0  ;;  %v5025_v34 = vld [vmem:[%s4635_s18 + $0x2c0] sm:$0xff] }
  0x77   : > { %528 = vadd.xlane.f32.xlu1 %v527_v56  ;;  %v539_v56 = vadd.f32 %v538_v8, %v5003_v18  ;;  %v535_v12 = vadd.f32 %v534_v11, %v5008_v52  ;;  %9961 = vst [vmem:[#allocation43_spill] sm:$0xff] %v5025_v34  ;;  %v5030_v8 = vld [vmem:[%s4635_s18 + $0x2b0] sm:$0xff]  ;;  %v550_v11 = vsel %vm377_vm0, %v5019_v42, 0.0  ;;  %v5035_v18 = vld [vmem:[%s4635_s18 + $0x2a0] sm:$0xff]  ;;  %v5043_v52 = vld [vmem:[%s4635_s18 + $0x2f8] sm:$0xff] }
  0x78   : > { %524 = vadd.xlane.f32.xlu0 %v523_v59  ;;  %v543_v59 = vadd.f32 %v542_v28, %v4998_v32  ;;  %v554_v28 = vsel %vm377_vm0, %v5016_v58, 0.0  ;;  %9962 = vst [vmem:[#allocation44_spill] sm:$0xff] %v5030_v8  ;;  %v5046_v58 = vld [vmem:[%s4635_s18 + $0x2e8] sm:$0xff]  ;;  %v5052_v42 = vld [vmem:[%s4635_s18 + $0x2f0] sm:$0xff] }
  0x79   : > { %9963 = vst [vmem:[#allocation45_spill] sm:$0xff] %v5035_v18 }
  0x7a   : > { %9964 = vst [vmem:[#allocation46_spill] sm:$0xff] %v5043_v52 }
  0x7b   : > { %9965 = vst [vmem:[#allocation47_spill] sm:$0xff] %v5046_v58 }
  0x7c   : > { %9967 = vst [vmem:[#allocation49_spill] sm:$0xff] %v5052_v42 }
  0x7e   : > { %544 = vadd.xlane.f32.xlu2 %v543_v59  ;;  %v546_v59 = vsel %vm377_vm0, %v5022_v40, 0.0 }
  0x7f   : > { %540 = vadd.xlane.f32.xlu1 %v539_v56  ;;  %v551_v56 = vadd.f32 %v550_v11, %v5030_v8  ;;  %v547_v32 = vadd.f32 %v546_v59, %v5035_v18  ;;  %v5057_v11 = vld [vmem:[%s4635_s18 + $0x2e0] sm:$0xff]  ;;  %v562_v59 = vsel %vm377_vm0, %v5046_v58, 0.0  ;;  %v5062_v8 = vld [vmem:[%s4635_s18 + $0x2d0] sm:$0xff]  ;;  %v5076_v58 = vld [vmem:[%s4635_s18 + $0x328] sm:$0xff] }
  0x80   : > { %536 = vadd.xlane.f32.xlu0 %v535_v12  ;;  %v555_v12 = vadd.f32 %v554_v28, %v5025_v34  ;;  %v566_v28 = vsel %vm377_vm0, %v5043_v52, 0.0  ;;  %9968 = vst [vmem:[#allocation50_spill] sm:$0xff] %v5057_v11  ;;  %v563_v18 = vadd.f32 %v562_v59, %v5057_v11  ;;  %v5090_v59 = vld [vmem:[%s4635_s18 + $0x310] sm:$0xff] }
  0x81   : > { %9969 = vst [vmem:[#allocation51_spill] sm:$0xff] %v5062_v8  ;;  %v567_v52 = vadd.f32 %v566_v28, %v5052_v42  ;;  %v578_v28 = vsel %vm377_vm0, %v5076_v58, 0.0 }
  0x82   : > { %9973 = vst [vmem:[#allocation55_spill] sm:$0xff] %v5076_v58 }
  0x83   : > { %9977 = vst [vmem:[#allocation59_spill] sm:$0xff] %v5090_v59 }
  0x86   : > { %556 = vadd.xlane.f32.xlu2 %v555_v12  ;;  %v558_v12 = vsel %vm377_vm0, %v5049_v3, 0.0  ;;  %v5115_v3 = vld [vmem:[%s4635_s18 + $0x338] sm:$0xff] }
  0x87   : > { %552 = vadd.xlane.f32.xlu1 %v551_v56  ;;  %v559_v40 = vadd.f32 %v558_v12, %v5062_v8  ;;  %v574_v12 = vsel %vm377_vm0, %v5079_v54, 0.0  ;;  %v5109_v54 = vld [vmem:[%s4635_s18 + $0x358] sm:$0xff]  ;;  %v5112_v8 = vld [vmem:[%s4635_s18 + $0x348] sm:$0xff]  ;;  %9984 = vst [vmem:[#allocation66_spill] sm:$0xff] %v5115_v3 }
  0x88   : > { %548 = vadd.xlane.f32.xlu0 %v547_v32  ;;  %v575_v11 = vadd.f32 %v574_v12, %v5090_v59  ;;  %9982 = vst [vmem:[#allocation64_spill] sm:$0xff] %v5109_v54  ;;  %v5123_v12 = vld [vmem:[%s4635_s18 + $0x340] sm:$0xff] }
  0x89   : > { %v5066_v56 = vpop.xlane.xlu2 %396  ;;  %9983 = vst [vmem:[#allocation65_spill] sm:$0xff] %v5112_v8 }
  0x8a   : > { %9970 = vst [vmem:[#allocation52_spill] sm:$0xff] %v5066_v56  ;;  %v5068_v32 = vpop.xlane.xlu1 %388 }
  0x8b   : > { %9971 = vst [vmem:[#allocation53_spill] sm:$0xff] %v5068_v32  ;;  %v5070_v34 = vpop.xlane.xlu0 %380  ;;  %v5085_v32 = vld [vmem:[%s4635_s18 + $0x320] sm:$0xff] }
  0x8c   : > { %9972 = vst [vmem:[#allocation54_spill] sm:$0xff] %v5070_v34  ;;  %v5095_v34 = vld [vmem:[%s4635_s18 + $0x300] sm:$0xff]  ;;  %v579_v58 = vadd.f32 %v578_v28, %v5085_v32  ;;  %v590_v28 = vsel %vm377_vm0, %v5109_v54, 0.0 }
  0x8d   : > { %9976 = vst [vmem:[#allocation58_spill] sm:$0xff] %v5085_v32 }
  0x8e   : > { %568 = vadd.xlane.f32.xlu2 %v567_v52  ;;  %9978 = vst [vmem:[#allocation60_spill] sm:$0xff] %v5095_v34  ;;  %v570_v52 = vsel %vm377_vm0, %v5082_v47, 0.0  ;;  %v5148_v47 = vld [vmem:[%s4635_s18 + $0x368] sm:$0xff] }
  0x8f   : > { %564 = vadd.xlane.f32.xlu1 %v563_v18  ;;  %v571_v42 = vadd.f32 %v570_v52, %v5095_v34  ;;  %9986 = vst [vmem:[#allocation68_spill] sm:$0xff] %v5123_v12  ;;  %v586_v52 = vsel %vm377_vm0, %v5112_v8, 0.0  ;;  %v5142_v8 = vld [vmem:[%s4635_s18 + $0x388] sm:$0xff]  ;;  %v5145_v34 = vld [vmem:[%s4635_s18 + $0x378] sm:$0xff] }
  0x90   : > { %560 = vadd.xlane.f32.xlu0 %v559_v40  ;;  %v587_v59 = vadd.f32 %v586_v52, %v5123_v12  ;;  %9991 = vst [vmem:[#allocation73_spill] sm:$0xff] %v5142_v8  ;;  %v5156_v52 = vld [vmem:[%s4635_s18 + $0x370] sm:$0xff] }
  0x91   : > { %v5099_v18 = vpop.xlane.xlu2 %400  ;;  %9992 = vst [vmem:[#allocation74_spill] sm:$0xff] %v5145_v34 }
  0x92   : > { %9979 = vst [vmem:[#allocation61_spill] sm:$0xff] %v5099_v18  ;;  %v5101_v40 = vpop.xlane.xlu1 %392 }
  0x93   : > { %9980 = vst [vmem:[#allocation62_spill] sm:$0xff] %v5101_v40  ;;  %v5103_v56 = vpop.xlane.xlu0 %384  ;;  %v5118_v40 = vld [vmem:[%s4635_s18 + $0x350] sm:$0xff] }
  0x94   : > { %9981 = vst [vmem:[#allocation63_spill] sm:$0xff] %v5103_v56  ;;  %v5128_v56 = vld [vmem:[%s4635_s18 + $0x330] sm:$0xff]  ;;  %v591_v54 = vadd.f32 %v590_v28, %v5118_v40  ;;  %v602_v28 = vsel %vm377_vm0, %v5142_v8, 0.0 }
  0x95   : > { %9985 = vst [vmem:[#allocation67_spill] sm:$0xff] %v5118_v40 }
  0x96   : > { %580 = vadd.xlane.f32.xlu2 %v579_v58  ;;  %9987 = vst [vmem:[#allocation69_spill] sm:$0xff] %v5128_v56  ;;  %v582_v58 = vsel %vm377_vm0, %v5115_v3, 0.0  ;;  %v5181_v3 = vld [vmem:[%s4635_s18 + $0x398] sm:$0xff] }
  0x97   : > { %576 = vadd.xlane.f32.xlu1 %v575_v11  ;;  %v583_v32 = vadd.f32 %v582_v58, %v5128_v56  ;;  %9993 = vst [vmem:[#allocation75_spill] sm:$0xff] %v5148_v47  ;;  %v598_v58 = vsel %vm377_vm0, %v5145_v34, 0.0  ;;  %v5175_v34 = vld [vmem:[%s4635_s18 + $0x3b8] sm:$0xff]  ;;  %v5178_v56 = vld [vmem:[%s4635_s18 + $0x3a8] sm:$0xff] }
  0x98   : > { %572 = vadd.xlane.f32.xlu0 %v571_v42  ;;  %9995 = vst [vmem:[#allocation77_spill] sm:$0xff] %v5156_v52  ;;  %v599_v12 = vadd.f32 %v598_v58, %v5156_v52  ;;  %v5189_v58 = vld [vmem:[%s4635_s18 + $0x3a0] sm:$0xff] }
  0x99   : > { %v5132_v11 = vpop.xlane.xlu2 %412  ;;  %10000 = vst [vmem:[#allocation82_spill] sm:$0xff] %v5175_v34 }
  0x9a   : > { %9988 = vst [vmem:[#allocation70_spill] sm:$0xff] %v5132_v11  ;;  %v5134_v42 = vpop.xlane.xlu1 %408 }
  0x9b   : > { %9989 = vst [vmem:[#allocation71_spill] sm:$0xff] %v5134_v42  ;;  %v5136_v18 = vpop.xlane.xlu0 %404  ;;  %v5151_v42 = vld [vmem:[%s4635_s18 + $0x380] sm:$0xff] }
  0x9c   : > { %9990 = vst [vmem:[#allocation72_spill] sm:$0xff] %v5136_v18  ;;  %v5161_v18 = vld [vmem:[%s4635_s18 + $0x360] sm:$0xff]  ;;  %v603_v8 = vadd.f32 %v602_v28, %v5151_v42  ;;  %v614_v28 = vsel %vm377_vm0, %v5175_v34, 0.0 }
  0x9d   : > { %9994 = vst [vmem:[#allocation76_spill] sm:$0xff] %v5151_v42 }
  0x9e   : > { %592 = vadd.xlane.f32.xlu2 %v591_v54  ;;  %9996 = vst [vmem:[#allocation78_spill] sm:$0xff] %v5161_v18  ;;  %v594_v54 = vsel %vm377_vm0, %v5148_v47, 0.0  ;;  %v5214_v47 = vld [vmem:[%s4635_s18 + $0x3c8] sm:$0xff] }
  0x9f   : > { %588 = vadd.xlane.f32.xlu1 %v587_v59  ;;  %v595_v40 = vadd.f32 %v594_v54, %v5161_v18  ;;  %10001 = vst [vmem:[#allocation83_spill] sm:$0xff] %v5178_v56  ;;  %v610_v54 = vsel %vm377_vm0, %v5178_v56, 0.0  ;;  %v5208_v56 = vld [vmem:[%s4635_s18 + $0x3e8] sm:$0xff]  ;;  %v5211_v18 = vld [vmem:[%s4635_s18 + $0x3d8] sm:$0xff] }
  0xa0   : > { %584 = vadd.xlane.f32.xlu0 %v583_v32  ;;  %10002 = vst [vmem:[#allocation84_spill] sm:$0xff] %v5181_v3  ;;  %v611_v52 = vadd.f32 %v610_v54, %v5189_v58  ;;  %v5222_v54 = vld [vmem:[%s4635_s18 + $0x3d0] sm:$0xff] }
  0xa1   : > { %v5165_v59 = vpop.xlane.xlu2 %424  ;;  %10004 = vst [vmem:[#allocation86_spill] sm:$0xff] %v5189_v58 }
  0xa2   : > { %9997 = vst [vmem:[#allocation79_spill] sm:$0xff] %v5165_v59  ;;  %v5167_v32 = vpop.xlane.xlu1 %420 }
  0xa3   : > { %9998 = vst [vmem:[#allocation80_spill] sm:$0xff] %v5167_v32  ;;  %v5169_v11 = vpop.xlane.xlu0 %416  ;;  %v5184_v32 = vld [vmem:[%s4635_s18 + $0x3b0] sm:$0xff] }
  0xa4   : > { %9999 = vst [vmem:[#allocation81_spill] sm:$0xff] %v5169_v11  ;;  %v5194_v11 = vld [vmem:[%s4635_s18 + $0x390] sm:$0xff]  ;;  %v615_v34 = vadd.f32 %v614_v28, %v5184_v32  ;;  %v626_v28 = vsel %vm377_vm0, %v5208_v56, 0.0 }
  0xa5   : > { %10003 = vst [vmem:[#allocation85_spill] sm:$0xff] %v5184_v32 }
  0xa6   : > { %604 = vadd.xlane.f32.xlu2 %v603_v8  ;;  %10005 = vst [vmem:[#allocation87_spill] sm:$0xff] %v5194_v11  ;;  %v606_v8 = vsel %vm377_vm0, %v5181_v3, 0.0  ;;  %v5245_v3 = vld [vmem:[%s4635_s18 + $0x3f8] sm:$0xff] }
  0xa7   : > { %600 = vadd.xlane.f32.xlu1 %v599_v12  ;;  %v607_v42 = vadd.f32 %v606_v8, %v5194_v11  ;;  %10009 = vst [vmem:[#allocation91_spill] sm:$0xff] %v5208_v56  ;;  %v622_v8 = vsel %vm377_vm0, %v5211_v18, 0.0  ;;  %v352_v11 = vld [vmem:[%s4635_s18 + $0x408] sm:$0xff] }
  0xa8   : > { %596 = vadd.xlane.f32.xlu0 %v595_v40  ;;  %10010 = vst [vmem:[#allocation92_spill] sm:$0xff] %v5211_v18  ;;  %v623_v58 = vadd.f32 %v622_v8, %v5222_v54  ;;  %v5241_v18 = vld [vmem:[%s4635_s18 + $0x418] sm:$0xff]  ;;  %v634_v8 = vsel %vm377_vm0, %v352_v11, 0.0 }
  0xa9   : > { %v5198_v12 = vpop.xlane.xlu2 %436  ;;  %10011 = vst [vmem:[#allocation93_spill] sm:$0xff] %v5214_v47  ;;  %v358_v11 = vld [vmem:[%s4635_s18 + $0x438] sm:$0xff] }
  0xaa   : > { %10006 = vst [vmem:[#allocation88_spill] sm:$0xff] %v5198_v12  ;;  %v5200_v40 = vpop.xlane.xlu1 %432 }
  0xab   : > { %10007 = vst [vmem:[#allocation89_spill] sm:$0xff] %v5200_v40  ;;  %v5202_v59 = vpop.xlane.xlu0 %428  ;;  %v5217_v40 = vld [vmem:[%s4635_s18 + $0x3e0] sm:$0xff] }
  0xac   : > { %10008 = vst [vmem:[#allocation90_spill] sm:$0xff] %v5202_v59  ;;  %v5227_v59 = vld [vmem:[%s4635_s18 + $0x3c0] sm:$0xff]  ;;  %v627_v56 = vadd.f32 %v626_v28, %v5217_v40  ;;  %v638_v28 = vsel %vm377_vm0, %v5241_v18, 0.0 }
  0xad   : > { %10012 = vst [vmem:[#allocation94_spill] sm:$0xff] %v5217_v40 }
  0xae   : > { %616 = vadd.xlane.f32.xlu2 %v615_v34  ;;  %10013 = vst [vmem:[#allocation95_spill] sm:$0xff] %v5222_v54  ;;  %v618_v34 = vsel %vm377_vm0, %v5214_v47, 0.0  ;;  %v5270_v47 = vld [vmem:[%s4635_s18 + $0x428] sm:$0xff] }
  0xaf   : > { %612 = vadd.xlane.f32.xlu1 %v611_v52  ;;  %10014 = vst [vmem:[#allocation96_spill] sm:$0xff] %v5227_v59  ;;  %v619_v32 = vadd.f32 %v618_v34, %v5227_v59  ;;  %v5255_v34 = vld [vmem:[%s4635_s18 + $0x3f0] sm:$0xff]  ;;  %v360_v59 = vld [vmem:[%s4635_s18 + $0x448] sm:$0xff] }
  0xb0   : > { %608 = vadd.xlane.f32.xlu0 %v607_v42  ;;  %10018 = vst [vmem:[#allocation100_spill] sm:$0xff] %v5241_v18 }
  0xb1   : > { %v5231_v52 = vpop.xlane.xlu2 %448  ;;  %10019 = vst [vmem:[#allocation101_spill] sm:$0xff] %v5245_v3 }
  0xb2   : > { %10015 = vst [vmem:[#allocation97_spill] sm:$0xff] %v5231_v52  ;;  %v5233_v42 = vpop.xlane.xlu1 %444  ;;  %v630_v52 = vsel %vm377_vm0, %v5245_v3, 0.0  ;;  %v357_v3 = vld [vmem:[%s4635_s18 + $0x430] sm:$0xff] }
  0xb3   : > { %10016 = vst [vmem:[#allocation98_spill] sm:$0xff] %v5233_v42  ;;  %v5235_v12 = vpop.xlane.xlu0 %440  ;;  %v5248_v42 = vld [vmem:[%s4635_s18 + $0x410] sm:$0xff]  ;;  %v631_v40 = vadd.f32 %v630_v52, %v5255_v34  ;;  %v642_v52 = vsel %vm377_vm0, %v5270_v47, 0.0 }
  0xb4   : > { %10017 = vst [vmem:[#allocation99_spill] sm:$0xff] %v5235_v12  ;;  %v351_v12 = vld [vmem:[%s4635_s18 + $0x400] sm:$0xff]  ;;  %v639_v54 = vadd.f32 %v638_v28, %v5248_v42  ;;  %v646_v28 = vsel %vm377_vm0, %v358_v11, 0.0  ;;  %v362_v11 = vld [vmem:[%s4635_s18 + $0x458] sm:$0xff] }
  0xb5   : > { %10020 = vst [vmem:[#allocation102_spill] sm:$0xff] %v5248_v42  ;;  %v635_v18 = vadd.f32 %v634_v8, %v351_v12  ;;  %v5277_v12 = vld [vmem:[%s4635_s18 + $0x420] sm:$0xff]  ;;  %v366_v42 = vld [vmem:[%s4635_s18 + $0x478] sm:$0xff] }
  0xb6   : > { %628 = vadd.xlane.f32.xlu2 %v627_v56  ;;  %10021 = vst [vmem:[#allocation103_spill] sm:$0xff] %v5255_v34  ;;  %v364_v34 = vld [vmem:[%s4635_s18 + $0x468] sm:$0xff] }
  0xb7   : > { %624 = vadd.xlane.f32.xlu1 %v623_v58  ;;  %10025 = vst [vmem:[#allocation107_spill] sm:$0xff] %v5270_v47  ;;  %v365_v47 = vld [vmem:[%s4635_s18 + $0x470] sm:$0xff] }
  0xb8   : > { %620 = vadd.xlane.f32.xlu0 %v619_v32  ;;  %10026 = vst [vmem:[#allocation108_spill] sm:$0xff] %v5277_v12 }
  0xb9   : > { %v5259_v56 = vpop.xlane.xlu2 %460 }
  0xba   : > { %10022 = vst [vmem:[#allocation104_spill] sm:$0xff] %v5259_v56  ;;  %v5261_v58 = vpop.xlane.xlu1 %456  ;;  %v359_v56 = vld [vmem:[%s4635_s18 + $0x440] sm:$0xff] }
  0xbb   : > { %10023 = vst [vmem:[#allocation105_spill] sm:$0xff] %v5261_v58  ;;  %v5263_v32 = vpop.xlane.xlu0 %452  ;;  %v650_v58 = vsel %vm377_vm0, %v360_v59, 0.0  ;;  %v643_v59 = vadd.f32 %v642_v52, %v5277_v12  ;;  %v368_v12 = vld [vmem:[%s4635_s18 + $0x488] sm:$0xff] }
  0xbc   : > { %10024 = vst [vmem:[#allocation106_spill] sm:$0xff] %v5263_v32  ;;  %v647_v32 = vadd.f32 %v646_v28, %v357_v3  ;;  %v654_v3 = vsel %vm377_vm0, %v362_v11, 0.0 }
  0xbe   : > { %640 = vadd.xlane.f32.xlu2 %v639_v54 }
  0xbf   : > { %636 = vadd.xlane.f32.xlu1 %v635_v18 }
  0xc0   : > { %632 = vadd.xlane.f32.xlu0 %v631_v40  ;;  %v651_v40 = vadd.f32 %v650_v58, %v359_v56  ;;  %v361_v56 = vld [vmem:[%s4635_s18 + $0x450] sm:$0xff] }
  0xc1   : > { %v5281_v8 = vpop.xlane.xlu2 %472 }
  0xc2   : > { %10027 = vst [vmem:[#allocation109_spill] sm:$0xff] %v5281_v8  ;;  %v5283_v54 = vpop.xlane.xlu1 %468  ;;  %v662_v8 = vsel %vm377_vm0, %v366_v42, 0.0  ;;  %v370_v42 = vld [vmem:[%s4635_s18 + $0x498] sm:$0xff] }
  0xc3   : > { %10028 = vst [vmem:[#allocation110_spill] sm:$0xff] %v5283_v54  ;;  %v5285_v18 = vpop.xlane.xlu0 %464  ;;  %v372_v54 = vld [vmem:[%s4635_s18 + $0x4a8] sm:$0xff]  ;;  %v670_v45 = vsel %vm377_vm0, %v370_v42, 0.0  ;;  %v686_v42 = vmul.f32 %v4652_v5, %v4652_v5  ;;  %v693_v5 = vmul.f32 %v4668_v13, %v4668_v13  ;;  %v688_v13 = vmul.f32 %v4684_v19, %v4684_v19 }
  0xc4   : > { %10029 = vst [vmem:[#allocation111_spill] sm:$0xff] %v5285_v18  ;;  %v658_v18 = vsel %vm377_vm0, %v364_v34, 0.0  ;;  %v371_v34 = vld [vmem:[%s4635_s18 + $0x4a0] sm:$0xff]  ;;  %v674_v11 = vsel %vm377_vm0, %v372_v54, 0.0  ;;  %v687_v54 = vmul.f32 %v4655_v6, %v4655_v6  ;;  %v695_v19 = vmul.f32 %v4641_v1, %v4641_v1 }
  0xc6   : > { %652 = vadd.xlane.f32.xlu2 %v651_v40  ;;  %v659_v40 = vadd.f32 %v658_v18, %v363_v35 }
  0xc7   : > { %648 = vadd.xlane.f32.xlu1 %v647_v32  ;;  %v663_v32 = vadd.f32 %v662_v8, %v365_v47  ;;  %v666_v47 = vsel %vm377_vm0, %v368_v12, 0.0  ;;  %v840_v12 = vsel %vm377_vm0, %v687_v54, 0.0  ;;  %v690_v54 = vmul.f32 %v4644_v2, %v4644_v2 }
  0xc8   : > { %644 = vadd.xlane.f32.xlu0 %v643_v59  ;;  %v655_v59 = vadd.f32 %v654_v3, %v361_v56  ;;  %v675_v56 = vadd.f32 %v674_v11, %v371_v34  ;;  %v841_v34 = vadd.f32 %v840_v12, %v686_v42  ;;  %v699_v2 = vmul.f32 %v4698_v26, %v4698_v26 }
  0xc9   : > { %v5297_v58 = vpop.xlane.xlu2 %484  ;;  %v697_v12 = vmul.f32 %v4663_v10, %v4663_v10  ;;  %v694_v26 = vmul.f32 %v4638_v0, %v4638_v0  ;;  %v856_v10 = vsel %vm377_vm0, %v695_v19, 0.0  ;;  %v701_v0 = vmul.f32 %v4695_v25, %v4695_v25 }
  0xca   : > { %10030 = vst [vmem:[#allocation112_spill] sm:$0xff] %v5297_v58  ;;  %v5299_v28 = vpop.xlane.xlu1 %480  ;;  %v369_v58 = vld [vmem:[%s4635_s18 + $0x490] sm:$0xff]  ;;  %v710_v19 = vmul.f32 %v4765_v55, %v4765_v55 }
  0xcb   : > { %10031 = vst [vmem:[#allocation113_spill] sm:$0xff] %v5299_v28  ;;  %v5301_v52 = vpop.xlane.xlu0 %476  ;;  %v367_v28 = vld [vmem:[%s4635_s18 + $0x480] sm:$0xff]  ;;  %v671_v3 = vadd.f32 %v670_v45, %v369_v58 }
  0xce   : > { %664 = vadd.xlane.f32.xlu2 %v663_v32  ;;  %v667_v32 = vadd.f32 %v666_v47, %v367_v28 }
  0xcf   : > { %660 = vadd.xlane.f32.xlu1 %v659_v40  ;;  %v376_v40 = vld [vmem:[%s4635_s18 + $0x4c8] sm:$0xff] }
  0xd0   : > { %656 = vadd.xlane.f32.xlu0 %v655_v59  ;;  %v374_v59 = vld [vmem:[%s4635_s18 + $0x4b8] sm:$0xff] }
  0xd1   : > { %v5312_v35 = vpop.xlane.xlu2 %496  ;;  %v678_v45 = vsel %vm377_vm0, %v374_v59, 0.0 }
  0xd2   : > { %10032 = vst [vmem:[#allocation114_spill] sm:$0xff] %v5312_v35  ;;  %v5314_v8 = vpop.xlane.xlu1 %492  ;;  %v375_v35 = vld [vmem:[%s4635_s18 + $0x4c0] sm:$0xff] }
  0xd3   : > { %10033 = vst [vmem:[#allocation115_spill] sm:$0xff] %v5314_v8  ;;  %v5316_v18 = vpop.xlane.xlu0 %488  ;;  %v682_v8 = vsel %vm377_vm0, %v376_v40, 0.0 }
  0xd4   : > { %10034 = vst [vmem:[#allocation116_spill] sm:$0xff] %v5316_v18  ;;  %v373_v18 = vld [vmem:[%s4635_s18 + $0x4b0] sm:$0xff]  ;;  %v683_v11 = vadd.f32 %v682_v8, %v375_v35  ;;  %v852_v35 = vsel %vm377_vm0, %v693_v5, 0.0 }
  0xd5   : > { %v679_v47 = vadd.f32 %v678_v45, %v373_v18  ;;  %v698_v45 = vmul.f32 %v4711_v31, %v4711_v31 }
  0xd6   : > { %676 = vadd.xlane.f32.xlu2 %v675_v56  ;;  %v691_v56 = vmul.f32 %v4649_v4, %v4649_v4 }
  0xd7   : > { %672 = vadd.xlane.f32.xlu1 %v671_v3  ;;  %v689_v3 = vmul.f32 %v4671_v14, %v4671_v14 }
  0xd8   : > { %668 = vadd.xlane.f32.xlu0 %v667_v32  ;;  %v692_v32 = vmul.f32 %v4679_v17, %v4679_v17  ;;  %v848_v8 = vsel %vm377_vm0, %v691_v56, 0.0 }
  0xd9   : > { %v5329_v58 = vpop.xlane.xlu2 %508  ;;  %v844_v4 = vsel %vm377_vm0, %v689_v3, 0.0  ;;  %v849_v59 = vadd.f32 %v848_v8, %v690_v54  ;;  %v703_v54 = vmul.f32 %v4692_v24, %v4692_v24  ;;  %v868_v24 = vsel %vm377_vm0, %v701_v0, 0.0 }
  0xda   : > { %v5331_v28 = vpop.xlane.xlu1 %504  ;;  %v853_v17 = vadd.f32 %v852_v35, %v692_v32  ;;  %v845_v42 = vadd.f32 %v844_v4, %v688_v13  ;;  %v857_v32 = vadd.f32 %v856_v10, %v694_v26  ;;  %v704_v35 = vmul.f32 %v4738_v43, %v4738_v43 }
  0xdb   : > { %v5333_v6 = vpop.xlane.xlu0 %500  ;;  %v702_v13 = vmul.f32 %v4701_v27, %v4701_v27  ;;  %v872_v4 = vsel %vm377_vm0, %v703_v54, 0.0  ;;  %v711_v27 = vmul.f32 %v4752_v50, %v4752_v50  ;;  %v706_v50 = vmul.f32 %v4733_v41, %v4733_v41 }
  0xdc   : > { %v713_v41 = vmul.f32 %v4749_v49, %v4749_v49 }
  0xde   : > { %842 = vadd.xlane.f32.xlu2 %v841_v34  ;;  %v696_v34 = vmul.f32 %v4674_v15, %v4674_v15  ;;  %v705_v15 = vmul.f32 %v4725_v38, %v4725_v38  ;;  %v700_v38 = vmul.f32 %v4706_v29, %v4706_v29  ;;  %v707_v29 = vmul.f32 %v4722_v37, %v4722_v37 }
  0xdf   : > { %684 = vadd.xlane.f32.xlu1 %v683_v11  ;;  %v864_v11 = vsel %vm377_vm0, %v699_v2, 0.0 }
  0xe0   : > { %680 = vadd.xlane.f32.xlu0 %v679_v47  ;;  %v860_v47 = vsel %vm377_vm0, %v697_v12, 0.0  ;;  %v865_v31 = vadd.f32 %v864_v11, %v698_v45  ;;  %v876_v8 = vsel %vm377_vm0, %v705_v15, 0.0  ;;  %v869_v2 = vadd.f32 %v868_v24, %v700_v38 }
  0xe1   : > { %v5350_v18 = vpop.xlane.xlu2 %520  ;;  %v861_v3 = vadd.f32 %v860_v47, %v696_v34  ;;  %v877_v43 = vadd.f32 %v876_v8, %v704_v35  ;;  %v709_v12 = vmul.f32 %v4719_v36, %v4719_v36  ;;  %v708_v45 = vmul.f32 %v4728_v39, %v4728_v39 }
  0xe2   : > { %v5352_v14 = vpop.xlane.xlu1 %516  ;;  %v888_v34 = vsel %vm377_vm0, %v711_v27, 0.0  ;;  %v880_v36 = vsel %vm377_vm0, %v707_v29, 0.0  ;;  %v717_v39 = vmul.f32 %v4779_v62, %v4779_v62  ;;  %v714_v15 = vmul.f32 %v4755_v51, %v4755_v51 }
  0xe3   : > { %v5354_v40 = vpop.xlane.xlu0 %512  ;;  %v884_v11 = vsel %vm377_vm0, %v709_v12, 0.0  ;;  %v889_v55 = vadd.f32 %v888_v34, %v710_v19  ;;  %v712_v62 = vmul.f32 %v4760_v53, %v4760_v53  ;;  %v723_v51 = vmul.f32 %v4806_v22, %v4806_v22 }
  0xe4   : > { %v885_v10 = vadd.f32 %v884_v11, %v708_v45  ;;  %v900_v54 = vsel %vm377_vm0, %v717_v39, 0.0  ;;  %v719_v53 = vmul.f32 %v4776_v61, %v4776_v61  ;;  %v722_v24 = vmul.f32 %v4819_v33, %v4819_v33 }
  0xe5   : > { %v718_v22 = vmul.f32 %v4787_v7, %v4787_v7  ;;  %v727_v45 = vmul.f32 %v4800_v20, %v4800_v20  ;;  %v725_v7 = vmul.f32 %v4803_v21, %v4803_v21  ;;  %v728_v34 = vmul.f32 %v4846_v57, %v4846_v57 }
  0xe6   : > { %854 = vadd.xlane.f32.xlu2 %v853_v17 }
  0xe7   : > { %850 = vadd.xlane.f32.xlu1 %v849_v59  ;;  %v916_v20 = vsel %vm377_vm0, %v725_v7, 0.0 }
  0xe8   : > { %846 = vadd.xlane.f32.xlu0 %v845_v42  ;;  %v873_v42 = vadd.f32 %v872_v4, %v702_v13  ;;  %v721_v4 = vmul.f32 %v4773_v60, %v4773_v60  ;;  %v904_v60 = vsel %vm377_vm0, %v719_v53, 0.0 }
  0xe9   : > { %v5371_v5 = vpop.xlane.xlu2 %532  ;;  %v905_v19 = vadd.f32 %v904_v60, %v718_v22  ;;  %v10040_v22 = vld [vmem:[#allocation5_spill] sm:$0xff]  ;;  %v10041_v60 = vld [vmem:[#allocation6_spill] sm:$0xff] }
  0xea   : > { %v5373_v1 = vpop.xlane.xlu1 %528 }
  0xeb   : > { %v5375_v56 = vpop.xlane.xlu0 %524 }
  0xee   : > { %866 = vadd.xlane.f32.xlu2 %v865_v31  ;;  %v881_v31 = vadd.f32 %v880_v36, %v706_v50  ;;  %v726_v50 = vmul.f32 %v4809_v23, %v4809_v23  ;;  %v920_v36 = vsel %vm377_vm0, %v727_v45, 0.0  ;;  %v735_v23 = vmul.f32 %v4860_v16, %v4860_v16 }
  0xef   : > { %862 = vadd.xlane.f32.xlu1 %v861_v3  ;;  %v715_v3 = vmul.f32 %v4746_v48, %v4746_v48  ;;  %v892_v48 = vsel %vm377_vm0, %v713_v41, 0.0 }
  0xf0   : > { %858 = vadd.xlane.f32.xlu0 %v857_v32  ;;  %v716_v32 = vmul.f32 %v4792_v9, %v4792_v9  ;;  %v893_v38 = vadd.f32 %v892_v48, %v712_v62  ;;  %v10038_v48 = vld [vmem:[#allocation4_spill] sm:$0xff] }
  0xf1   : > { %v5392_v17 = vpop.xlane.xlu2 %544  ;;  %v896_v0 = vsel %vm377_vm0, %v715_v3, 0.0  ;;  %v733_v3 = vmul.f32 %v4827_v44, %v4827_v44  ;;  %v730_v16 = vmul.f32 %v10038_v48, %v10038_v48  ;;  %v10049_v48 = vld [vmem:[#allocation13_spill] sm:$0xff] }
  0xf2   : > { %v5394_v25 = vpop.xlane.xlu1 %540  ;;  %v901_v9 = vadd.f32 %v900_v54, %v716_v32  ;;  %v897_v8 = vadd.f32 %v896_v0, %v714_v15  ;;  %v10036_v32 = vld [vmem:[#allocation9_spill] sm:$0xff]  ;;  %v10037_v54 = vld [vmem:[#allocation3_spill] sm:$0xff]  ;;  %v936_v0 = vsel %vm377_vm0, %v735_v23, 0.0 }
  0xf3   : > { %v5396_v59 = vpop.xlane.xlu0 %536  ;;  %v734_v15 = vmul.f32 %v10036_v32, %v10036_v32  ;;  %v732_v62 = vmul.f32 %v10037_v54, %v10037_v54 }
  0xf6   : > { %878 = vadd.xlane.f32.xlu2 %v877_v43  ;;  %v720_v43 = vmul.f32 %v4782_v63, %v4782_v63  ;;  %v729_v63 = vmul.f32 %v4833_v46, %v4833_v46  ;;  %v724_v46 = vmul.f32 %v4814_v30, %v4814_v30  ;;  %v10035_v30 = vld [vmem:[#allocation2_spill] sm:$0xff] }
  0xf7   : > { %874 = vadd.xlane.f32.xlu1 %v873_v42  ;;  %v912_v42 = vsel %vm377_vm0, %v723_v51, 0.0  ;;  %v731_v41 = vmul.f32 %v10035_v30, %v10035_v30 }
  0xf8   : > { %870 = vadd.xlane.f32.xlu0 %v869_v2  ;;  %v908_v2 = vsel %vm377_vm0, %v721_v4, 0.0  ;;  %v913_v33 = vadd.f32 %v912_v42, %v722_v24  ;;  %v924_v11 = vsel %vm377_vm0, %v729_v63, 0.0  ;;  %v917_v39 = vadd.f32 %v916_v20, %v724_v46  ;;  %v10043_v63 = vld [vmem:[#allocation7_spill] sm:$0xff] }
  0xf9   : > { %v5413_v26 = vpop.xlane.xlu2 %556  ;;  %v909_v29 = vadd.f32 %v908_v2, %v720_v43  ;;  %v925_v57 = vadd.f32 %v924_v11, %v728_v34  ;;  %v928_v44 = vsel %vm377_vm0, %v731_v41, 0.0  ;;  %v937_v4 = vadd.f32 %v936_v0, %v734_v15  ;;  %v10039_v43 = vld [vmem:[#allocation12_spill] sm:$0xff]  ;;  %v10046_v41 = vld [vmem:[#allocation10_spill] sm:$0xff]  ;;  %v10047_v15 = vld [vmem:[#allocation11_spill] sm:$0xff] }
  0xfa   : > { %v5415_v37 = vpop.xlane.xlu1 %552  ;;  %v929_v24 = vadd.f32 %v928_v44, %v730_v16  ;;  %v741_v42 = vmul.f32 %v10039_v43, %v10039_v43  ;;  %v739_v2 = vmul.f32 %v10040_v22, %v10040_v22  ;;  %v738_v45 = vmul.f32 %v10043_v63, %v10043_v63  ;;  %v10044_v34 = vld [vmem:[#allocation8_spill] sm:$0xff]  ;;  %v10050_v44 = vld [vmem:[#allocation14_spill] sm:$0xff] }
  0xfb   : > { %v5417_v47 = vpop.xlane.xlu0 %548  ;;  %v745_v32 = vmul.f32 %v10046_v41, %v10046_v41  ;;  %v743_v54 = vmul.f32 %v10047_v15, %v10047_v15  ;;  %v744_v16 = vmul.f32 %v10049_v48, %v10049_v48  ;;  %v10052_v63 = vld [vmem:[#allocation16_spill] sm:$0xff] }
  0xfc   : > { %v948_v7 = vsel %vm377_vm0, %v741_v42, 0.0  ;;  %v944_v11 = vsel %vm377_vm0, %v739_v2, 0.0 }
  0xfe   : > { %890 = vadd.xlane.f32.xlu2 %v889_v55 }
  0xff   : > { %886 = vadd.xlane.f32.xlu1 %v885_v10 }
 0x100   : > { %882 = vadd.xlane.f32.xlu0 %v881_v31  ;;  %v921_v31 = vadd.f32 %v920_v36, %v726_v50  ;;  %v736_v50 = vmul.f32 %v10044_v34, %v10044_v34 }
 0x101   : > { %v5434_v35 = vpop.xlane.xlu2 %568 }
 0x102   : > { %v5436_v49 = vpop.xlane.xlu1 %564 }
 0x103   : > { %v5438_v13 = vpop.xlane.xlu0 %560 }
 0x106   : > { %902 = vadd.xlane.f32.xlu2 %v901_v9  ;;  %v932_v9 = vsel %vm377_vm0, %v733_v3, 0.0  ;;  %v10045_v3 = vld [vmem:[#allocation18_spill] sm:$0xff] }
 0x107   : > { %898 = vadd.xlane.f32.xlu1 %v897_v8  ;;  %v933_v53 = vadd.f32 %v932_v9, %v732_v62  ;;  %v747_v30 = vmul.f32 %v10045_v3, %v10045_v3  ;;  %v10048_v62 = vld [vmem:[#allocation21_spill] sm:$0xff] }
 0x108   : > { %894 = vadd.xlane.f32.xlu0 %v893_v38  ;;  %v746_v0 = vmul.f32 %v10048_v62, %v10048_v62 }
 0x109   : > { %v5455_v27 = vpop.xlane.xlu2 %580  ;;  %v960_v9 = vsel %vm377_vm0, %v747_v30, 0.0 }
 0x10a   : > { %v5457_v61 = vpop.xlane.xlu1 %576  ;;  %v961_v2 = vadd.f32 %v960_v9, %v746_v0 }
 0x10b   : > { %v5459_v12 = vpop.xlane.xlu0 %572 }
 0x10e   : > { %914 = vadd.xlane.f32.xlu2 %v913_v33  ;;  %v737_v33 = vmul.f32 %v10041_v60, %v10041_v60 }
 0x10f   : > { %910 = vadd.xlane.f32.xlu1 %v909_v29  ;;  %v10042_v29 = vld [vmem:[#allocation15_spill] sm:$0xff] }
 0x110   : > { %906 = vadd.xlane.f32.xlu0 %v905_v19  ;;  %v740_v19 = vmul.f32 %v10042_v29, %v10042_v29  ;;  %v940_v46 = vsel %vm377_vm0, %v737_v33, 0.0  ;;  %v10051_v29 = vld [vmem:[#allocation24_spill] sm:$0xff] }
 0x111   : > { %v5476_v55 = vpop.xlane.xlu2 %592  ;;  %v941_v23 = vadd.f32 %v940_v46, %v736_v50  ;;  %v10054_v50 = vld [vmem:[#allocation27_spill] sm:$0xff] }
 0x112   : > { %v5478_v21 = vpop.xlane.xlu1 %588  ;;  %v10055_v46 = vld [vmem:[#allocation19_spill] sm:$0xff] }
 0x113   : > { %v5480_v10 = vpop.xlane.xlu0 %584 }
 0x116   : > { %926 = vadd.xlane.f32.xlu2 %v925_v57 }
 0x117   : > { %922 = vadd.xlane.f32.xlu1 %v921_v31  ;;  %v949_v31 = vadd.f32 %v948_v7, %v740_v19  ;;  %v753_v19 = vmul.f32 %v10051_v29, %v10051_v29  ;;  %v10053_v7 = vld [vmem:[#allocation17_spill] sm:$0xff] }
 0x118   : > { %918 = vadd.xlane.f32.xlu0 %v917_v39  ;;  %v945_v39 = vadd.f32 %v944_v11, %v738_v45  ;;  %v751_v45 = vmul.f32 %v10052_v63, %v10052_v63  ;;  %v749_v34 = vmul.f32 %v10053_v7, %v10053_v7  ;;  %v752_v11 = vmul.f32 %v10054_v50, %v10054_v50  ;;  %v10063_v63 = vld [vmem:[#allocation26_spill] sm:$0xff] }
 0x119   : > { %v5497_v8 = vpop.xlane.xlu2 %604 }
 0x11a   : > { %v5499_v38 = vpop.xlane.xlu1 %600  ;;  %v968_v30 = vsel %vm377_vm0, %v751_v45, 0.0  ;;  %v964_v41 = vsel %vm377_vm0, %v749_v34, 0.0  ;;  %v754_v45 = vmul.f32 %v10063_v63, %v10063_v63 }
 0x11b   : > { %v5501_v51 = vpop.xlane.xlu0 %596 }
 0x11e   : > { %938 = vadd.xlane.f32.xlu2 %v937_v4  ;;  %v742_v4 = vmul.f32 %v10050_v44, %v10050_v44  ;;  %v10059_v44 = vld [vmem:[#allocation22_spill] sm:$0xff] }
 0x11f   : > { %934 = vadd.xlane.f32.xlu1 %v933_v53  ;;  %v956_v53 = vsel %vm377_vm0, %v745_v32, 0.0 }
 0x120   : > { %930 = vadd.xlane.f32.xlu0 %v929_v24  ;;  %v952_v24 = vsel %vm377_vm0, %v743_v54, 0.0  ;;  %v957_v60 = vadd.f32 %v956_v53, %v744_v16  ;;  %v10058_v16 = vld [vmem:[#allocation30_spill] sm:$0xff]  ;;  %v10060_v53 = vld [vmem:[#allocation23_spill] sm:$0xff] }
 0x121   : > { %v5518_v36 = vpop.xlane.xlu2 %616  ;;  %v953_v33 = vadd.f32 %v952_v24, %v742_v4  ;;  %v759_v9 = vmul.f32 %v10058_v16, %v10058_v16  ;;  %v757_v4 = vmul.f32 %v10059_v44, %v10059_v44  ;;  %v755_v24 = vmul.f32 %v10060_v53, %v10060_v53  ;;  %v10070_v16 = vld [vmem:[#allocation39_spill] sm:$0xff] }
 0x122   : > { %v5520_v20 = vpop.xlane.xlu1 %612  ;;  %v10071_v44 = vld [vmem:[#allocation31_spill] sm:$0xff] }
 0x123   : > { %v5522_v57 = vpop.xlane.xlu0 %608  ;;  %v980_v7 = vsel %vm377_vm0, %v757_v4, 0.0  ;;  %v976_v34 = vsel %vm377_vm0, %v755_v24, 0.0  ;;  %v762_v4 = vmul.f32 %v10071_v44, %v10071_v44  ;;  %v10072_v24 = vld [vmem:[#allocation32_spill] sm:$0xff]  ;;  %v10081_v44 = vld [vmem:[#allocation38_spill] sm:$0xff] }
 0x126   : > { %950 = vadd.xlane.f32.xlu2 %v949_v31  ;;  %v750_v31 = vmul.f32 %v10055_v46, %v10055_v46 }
 0x127   : > { %946 = vadd.xlane.f32.xlu1 %v945_v39  ;;  %v972_v39 = vsel %vm377_vm0, %v753_v19, 0.0  ;;  %v984_v19 = vsel %vm377_vm0, %v759_v9, 0.0  ;;  %v764_v9 = vmul.f32 %v10070_v16, %v10070_v16 }
 0x128   : > { %942 = vadd.xlane.f32.xlu0 %v941_v23  ;;  %v10056_v23 = vld [vmem:[#allocation20_spill] sm:$0xff]  ;;  %v973_v62 = vadd.f32 %v972_v39, %v752_v11  ;;  %v969_v0 = vadd.f32 %v968_v30, %v750_v31 }
 0x129   : > { %v5539_v43 = vpop.xlane.xlu2 %628  ;;  %v748_v3 = vmul.f32 %v10056_v23, %v10056_v23  ;;  %v977_v23 = vadd.f32 %v976_v34, %v754_v45 }
 0x12a   : > { %v5541_v42 = vpop.xlane.xlu1 %624 }
 0x12b   : > { %v5543_v22 = vpop.xlane.xlu0 %620  ;;  %v965_v48 = vadd.f32 %v964_v41, %v748_v3  ;;  %v10067_v3 = vld [vmem:[#allocation36_spill] sm:$0xff] }
 0x12c   : > { %v765_v30 = vmul.f32 %v10067_v3, %v10067_v3  ;;  %v10068_v41 = vld [vmem:[#allocation28_spill] sm:$0xff] }
 0x12e   : > { %962 = vadd.xlane.f32.xlu2 %v961_v2  ;;  %v10061_v2 = vld [vmem:[#allocation33_spill] sm:$0xff]  ;;  %v996_v53 = vsel %vm377_vm0, %v765_v30, 0.0  ;;  %v10078_v30 = vld [vmem:[#allocation35_spill] sm:$0xff] }
 0x12f   : > { %958 = vadd.xlane.f32.xlu1 %v957_v60  ;;  %v758_v60 = vmul.f32 %v10061_v2, %v10061_v2  ;;  %v760_v2 = vmul.f32 %v10072_v24, %v10072_v24  ;;  %v997_v45 = vadd.f32 %v996_v53, %v764_v9 }
 0x130   : > { %954 = vadd.xlane.f32.xlu0 %v953_v33  ;;  %v10062_v33 = vld [vmem:[#allocation25_spill] sm:$0xff] }
 0x131   : > { %v5560_v32 = vpop.xlane.xlu2 %640  ;;  %v756_v29 = vmul.f32 %v10062_v33, %v10062_v33  ;;  %v985_v31 = vadd.f32 %v984_v19, %v758_v60 }
 0x132   : > { %v5562_v15 = vpop.xlane.xlu1 %636 }
 0x133   : > { %v5564_v54 = vpop.xlane.xlu0 %632  ;;  %v981_v39 = vadd.f32 %v980_v7, %v756_v29 }
 0x134   : > { %10057 = vst [vmem:[#allocation2_spill] sm:$0xff] %v5564_v54 }
 0x136   : > { %974 = vadd.xlane.f32.xlu2 %v973_v62  ;;  %v763_v62 = vmul.f32 %v10068_v41, %v10068_v41  ;;  %v767_v41 = vmul.f32 %v10078_v30, %v10078_v30 }
 0x137   : > { %970 = vadd.xlane.f32.xlu1 %v969_v0  ;;  %v10069_v0 = vld [vmem:[#allocation29_spill] sm:$0xff] }
 0x138   : > { %966 = vadd.xlane.f32.xlu0 %v965_v48  ;;  %v761_v48 = vmul.f32 %v10069_v0, %v10069_v0  ;;  %v992_v60 = vsel %vm377_vm0, %v763_v62, 0.0  ;;  %v10079_v62 = vld [vmem:[#allocation45_spill] sm:$0xff]  ;;  %v1000_v24 = vsel %vm377_vm0, %v767_v41, 0.0  ;;  %v10088_v41 = vld [vmem:[#allocation51_spill] sm:$0xff] }
 0x139   : > { %v5581_v50 = vpop.xlane.xlu2 %652  ;;  %v993_v7 = vadd.f32 %v992_v60, %v762_v4  ;;  %v770_v0 = vmul.f32 %v10079_v62, %v10079_v62  ;;  %v766_v4 = vmul.f32 %v10081_v44, %v10081_v44  ;;  %v10087_v62 = vld [vmem:[#allocation41_spill] sm:$0xff]  ;;  %v10089_v44 = vld [vmem:[#allocation43_spill] sm:$0xff] }
 0x13a   : > { %10064 = vst [vmem:[#allocation9_spill] sm:$0xff] %v5581_v50  ;;  %v5583_v11 = vpop.xlane.xlu1 %648  ;;  %v988_v33 = vsel %vm377_vm0, %v761_v48, 0.0  ;;  %v10080_v48 = vld [vmem:[#allocation37_spill] sm:$0xff]  ;;  %v10126_v50 = vld [vmem:[#allocation83_spill] sm:$0xff] }
 0x13b   : > { %10065 = vst [vmem:[#allocation3_spill] sm:$0xff] %v5583_v11  ;;  %v5585_v46 = vpop.xlane.xlu0 %644  ;;  %v989_v34 = vadd.f32 %v988_v33, %v760_v2  ;;  %v768_v16 = vmul.f32 %v10080_v48, %v10080_v48  ;;  %v776_v48 = vmul.f32 %v10088_v41, %v10088_v41  ;;  %v10093_v41 = vld [vmem:[#allocation57_spill] sm:$0xff]  ;;  %v10118_v11 = vld [vmem:[#allocation74_spill] sm:$0xff] }
 0x13c   : > { %10066 = vst [vmem:[#allocation4_spill] sm:$0xff] %v5585_v46 }
 0x13e   : > { %986 = vadd.xlane.f32.xlu2 %v985_v31  ;;  %v10076_v31 = vld [vmem:[#allocation42_spill] sm:$0xff] }
 0x13f   : > { %982 = vadd.xlane.f32.xlu1 %v981_v39  ;;  %v771_v39 = vmul.f32 %v10076_v31, %v10076_v31  ;;  %v10085_v31 = vld [vmem:[#allocation48_spill] sm:$0xff] }
 0x140   : > { %978 = vadd.xlane.f32.xlu0 %v977_v23  ;;  %v10077_v23 = vld [vmem:[#allocation34_spill] sm:$0xff] }
 0x141   : > { %v5602_v29 = vpop.xlane.xlu2 %664  ;;  %v769_v3 = vmul.f32 %v10077_v23, %v10077_v23  ;;  %v1008_v9 = vsel %vm377_vm0, %v771_v39, 0.0  ;;  %v777_v23 = vmul.f32 %v10085_v31, %v10085_v31  ;;  %v10086_v39 = vld [vmem:[#allocation40_spill] sm:$0xff] }
 0x142   : > { %10073 = vst [vmem:[#allocation12_spill] sm:$0xff] %v5602_v29  ;;  %v5604_v19 = vpop.xlane.xlu1 %660  ;;  %v775_v30 = vmul.f32 %v10086_v39, %v10086_v39 }
 0x143   : > { %10074 = vst [vmem:[#allocation5_spill] sm:$0xff] %v5604_v19  ;;  %v5606_v63 = vpop.xlane.xlu0 %656  ;;  %v1004_v53 = vsel %vm377_vm0, %v769_v3, 0.0  ;;  %v773_v3 = vmul.f32 %v10087_v62, %v10087_v62  ;;  %v10109_v19 = vld [vmem:[#allocation65_spill] sm:$0xff] }
 0x144   : > { %10075 = vst [vmem:[#allocation6_spill] sm:$0xff] %v5606_v63 }
 0x146   : > { %998 = vadd.xlane.f32.xlu2 %v997_v45  ;;  %v1009_v45 = vadd.f32 %v1008_v9, %v770_v0  ;;  %v774_v0 = vmul.f32 %v10089_v44, %v10089_v44  ;;  %v10090_v9 = vld [vmem:[#allocation44_spill] sm:$0xff]  ;;  %v783_v44 = vmul.f32 %v10093_v41, %v10093_v41 }
 0x147   : > { %994 = vadd.xlane.f32.xlu1 %v993_v7  ;;  %v1005_v7 = vadd.f32 %v1004_v53, %v768_v16  ;;  %v1020_v16 = vsel %vm377_vm0, %v777_v23, 0.0  ;;  %v1016_v53 = vsel %vm377_vm0, %v775_v30, 0.0  ;;  %v10094_v23 = vld [vmem:[#allocation46_spill] sm:$0xff] }
 0x148   : > { %990 = vadd.xlane.f32.xlu0 %v989_v34  ;;  %v1001_v34 = vadd.f32 %v1000_v24, %v766_v4  ;;  %v772_v4 = vmul.f32 %v10090_v9, %v10090_v9  ;;  %v1012_v24 = vsel %vm377_vm0, %v773_v3, 0.0  ;;  %v1021_v39 = vadd.f32 %v1020_v16, %v776_v48  ;;  %v10095_v9 = vld [vmem:[#allocation47_spill] sm:$0xff]  ;;  %v10096_v3 = vld [vmem:[#allocation60_spill] sm:$0xff]  ;;  %v10097_v48 = vld [vmem:[#allocation49_spill] sm:$0xff] }
 0x149   : > { %v5623_v2 = vpop.xlane.xlu2 %676  ;;  %v779_v30 = vmul.f32 %v10095_v9, %v10095_v9  ;;  %v780_v16 = vmul.f32 %v10097_v48, %v10097_v48  ;;  %v10100_v48 = vld [vmem:[#allocation55_spill] sm:$0xff] }
 0x14a   : > { %10082 = vst [vmem:[#allocation15_spill] sm:$0xff] %v5623_v2  ;;  %v5625_v60 = vpop.xlane.xlu1 %672 }
 0x14b   : > { %10083 = vst [vmem:[#allocation7_spill] sm:$0xff] %v5625_v60  ;;  %v5627_v33 = vpop.xlane.xlu0 %668  ;;  %v782_v60 = vmul.f32 %v10096_v3, %v10096_v3  ;;  %v1024_v41 = vsel %vm377_vm0, %v779_v30, 0.0 }
 0x14c   : > { %10084 = vst [vmem:[#allocation8_spill] sm:$0xff] %v5627_v33  ;;  %v781_v33 = vmul.f32 %v10094_v23, %v10094_v23 }
 0x14e   : > { %1010 = vadd.xlane.f32.xlu2 %v1009_v45 }
 0x14f   : > { %1006 = vadd.xlane.f32.xlu1 %v1005_v7  ;;  %v1017_v7 = vadd.f32 %v1016_v53, %v774_v0  ;;  %v1032_v0 = vsel %vm377_vm0, %v783_v44, 0.0  ;;  %v787_v44 = vmul.f32 %v10100_v48, %v10100_v48 }
 0x150   : > { %1002 = vadd.xlane.f32.xlu0 %v1001_v34  ;;  %v1013_v34 = vadd.f32 %v1012_v24, %v772_v4  ;;  %v10098_v4 = vld [vmem:[#allocation50_spill] sm:$0xff]  ;;  %v1028_v24 = vsel %vm377_vm0, %v781_v33, 0.0  ;;  %v1033_v9 = vadd.f32 %v1032_v0, %v782_v60  ;;  %v10102_v33 = vld [vmem:[#allocation69_spill] sm:$0xff] }
 0x151   : > { %v5644_v31 = vpop.xlane.xlu2 %842  ;;  %v778_v53 = vmul.f32 %v10098_v4, %v10098_v4  ;;  %v1029_v3 = vadd.f32 %v1028_v24, %v780_v16  ;;  %v788_v30 = vmul.f32 %v10102_v33, %v10102_v33  ;;  %v10103_v60 = vld [vmem:[#allocation58_spill] sm:$0xff] }
 0x152   : > { %v5648_v62 = vpop.xlane.xlu1 %684  ;;  %v786_v16 = vmul.f32 %v10103_v60, %v10103_v60  ;;  %v10108_v60 = vld [vmem:[#allocation64_spill] sm:$0xff] }
 0x153   : > { %v5646_v45 = vpop.xlane.xlu0 %680  ;;  %10092 = vst [vmem:[#allocation10_spill] sm:$0xff] %v5648_v62  ;;  %v10101_v62 = vld [vmem:[#allocation56_spill] sm:$0xff] }
 0x154   : > { %10091 = vst [vmem:[#allocation18_spill] sm:$0xff] %v5646_v45  ;;  %v785_v4 = vmul.f32 %v10101_v62, %v10101_v62 }
 0x156   : > { %1022 = vadd.xlane.f32.xlu2 %v1021_v39  ;;  %v1036_v62 = vsel %vm377_vm0, %v785_v4, 0.0 }
 0x157   : > { %1018 = vadd.xlane.f32.xlu1 %v1017_v7  ;;  %v1025_v7 = vadd.f32 %v1024_v41, %v778_v53  ;;  %v10104_v53 = vld [vmem:[#allocation59_spill] sm:$0xff]  ;;  %v1040_v41 = vsel %vm377_vm0, %v787_v44, 0.0  ;;  %v10110_v44 = vld [vmem:[#allocation78_spill] sm:$0xff] }
 0x158   : > { %1014 = vadd.xlane.f32.xlu0 %v1013_v34  ;;  %v10099_v34 = vld [vmem:[#allocation66_spill] sm:$0xff]  ;;  %v784_v24 = vmul.f32 %v10104_v53, %v10104_v53  ;;  %v1041_v33 = vadd.f32 %v1040_v41, %v786_v16  ;;  %v791_v53 = vmul.f32 %v10109_v19, %v10109_v19  ;;  %v794_v4 = vmul.f32 %v10110_v44, %v10110_v44 }
 0x159   : > { %v5665_v23 = vpop.xlane.xlu2 %854  ;;  %v789_v45 = vmul.f32 %v10099_v34, %v10099_v34 }
 0x15a   : > { %v5675_v2 = vpop.xlane.xlu1 %850  ;;  %v1048_v19 = vsel %vm377_vm0, %v791_v53, 0.0 }
 0x15b   : > { %v5667_v39 = vpop.xlane.xlu0 %846  ;;  %v1044_v0 = vsel %vm377_vm0, %v789_v45, 0.0  ;;  %v793_v45 = vmul.f32 %v10108_v60, %v10108_v60 }
 0x15c   : > { %v1045_v48 = vadd.f32 %v1044_v0, %v788_v30  ;;  %v10112_v30 = vld [vmem:[#allocation67_spill] sm:$0xff] }
 0x15d   : > { %v792_v16 = vmul.f32 %v10112_v30, %v10112_v30  ;;  %v10117_v30 = vld [vmem:[#allocation73_spill] sm:$0xff] }
 0x15e   : > { %1034 = vadd.xlane.f32.xlu2 %v1033_v9 }
 0x15f   : > { %1030 = vadd.xlane.f32.xlu1 %v1029_v3  ;;  %v1037_v3 = vadd.f32 %v1036_v62, %v784_v24  ;;  %v10113_v24 = vld [vmem:[#allocation68_spill] sm:$0xff]  ;;  %v1052_v62 = vsel %vm377_vm0, %v793_v45, 0.0  ;;  %v10119_v45 = vld [vmem:[#allocation87_spill] sm:$0xff] }
 0x160   : > { %1026 = vadd.xlane.f32.xlu0 %v1025_v7  ;;  %v10107_v7 = vld [vmem:[#allocation75_spill] sm:$0xff]  ;;  %v790_v41 = vmul.f32 %v10113_v24, %v10113_v24  ;;  %v1053_v44 = vadd.f32 %v1052_v62, %v792_v16  ;;  %v797_v24 = vmul.f32 %v10118_v11, %v10118_v11  ;;  %v800_v53 = vmul.f32 %v10119_v45, %v10119_v45 }
 0x161   : > { %v5686_v34 = vpop.xlane.xlu2 %866  ;;  %v795_v63 = vmul.f32 %v10107_v7, %v10107_v7 }
 0x162   : > { %10105 = vst [vmem:[#allocation11_spill] sm:$0xff] %v5686_v34  ;;  %v5698_v29 = vpop.xlane.xlu1 %862 }
 0x163   : > { %v5688_v9 = vpop.xlane.xlu0 %858  ;;  %10111 = vst [vmem:[#allocation13_spill] sm:$0xff] %v5698_v29  ;;  %v1056_v0 = vsel %vm377_vm0, %v795_v63, 0.0  ;;  %v799_v63 = vmul.f32 %v10117_v30, %v10117_v30 }
 0x164   : > { %10106 = vst [vmem:[#allocation21_spill] sm:$0xff] %v5688_v9  ;;  %v1057_v7 = vadd.f32 %v1056_v0, %v794_v4  ;;  %v10120_v4 = vld [vmem:[#allocation76_spill] sm:$0xff] }
 0x165   : > { %v798_v0 = vmul.f32 %v10120_v4, %v10120_v4  ;;  %v10125_v4 = vld [vmem:[#allocation82_spill] sm:$0xff] }
 0x166   : > { %1046 = vadd.xlane.f32.xlu2 %v1045_v48 }
 0x167   : > { %1042 = vadd.xlane.f32.xlu1 %v1041_v33  ;;  %v1049_v33 = vadd.f32 %v1048_v19, %v790_v41  ;;  %v10121_v41 = vld [vmem:[#allocation77_spill] sm:$0xff]  ;;  %v1064_v19 = vsel %vm377_vm0, %v799_v63, 0.0  ;;  %v10128_v63 = vld [vmem:[#allocation96_spill] sm:$0xff] }
 0x168   : > { %1038 = vadd.xlane.f32.xlu0 %v1037_v3  ;;  %v10116_v3 = vld [vmem:[#allocation84_spill] sm:$0xff]  ;;  %v796_v62 = vmul.f32 %v10121_v41, %v10121_v41  ;;  %v1065_v45 = vadd.f32 %v1064_v19, %v798_v0  ;;  %v803_v41 = vmul.f32 %v10126_v50, %v10126_v50 }
 0x169   : > { %v5707_v48 = vpop.xlane.xlu2 %878  ;;  %v801_v46 = vmul.f32 %v10116_v3, %v10116_v3  ;;  %v1060_v3 = vsel %vm377_vm0, %v797_v24, 0.0  ;;  %v806_v24 = vmul.f32 %v10128_v63, %v10128_v63 }
 0x16a   : > { %10114 = vst [vmem:[#allocation14_spill] sm:$0xff] %v5707_v48  ;;  %v5726_v30 = vpop.xlane.xlu1 %874  ;;  %v1072_v50 = vsel %vm377_vm0, %v803_v41, 0.0 }
 0x16b   : > { %v5709_v60 = vpop.xlane.xlu0 %870  ;;  %v1068_v16 = vsel %vm377_vm0, %v801_v46, 0.0  ;;  %10122 = vst [vmem:[#allocation16_spill] sm:$0xff] %v5726_v30  ;;  %v805_v46 = vmul.f32 %v10125_v4, %v10125_v4 }
 0x16c   : > { %10115 = vst [vmem:[#allocation24_spill] sm:$0xff] %v5709_v60 }
 0x16e   : > { %1058 = vadd.xlane.f32.xlu2 %v1057_v7  ;;  %v1069_v7 = vadd.f32 %v1068_v16, %v800_v53  ;;  %v10129_v53 = vld [vmem:[#allocation85_spill] sm:$0xff] }
 0x16f   : > { %1054 = vadd.xlane.f32.xlu1 %v1053_v44  ;;  %v1061_v44 = vadd.f32 %v1060_v3, %v796_v62  ;;  %v804_v0 = vmul.f32 %v10129_v53, %v10129_v53  ;;  %v10130_v62 = vld [vmem:[#allocation86_spill] sm:$0xff]  ;;  %v1076_v3 = vsel %vm377_vm0, %v805_v46, 0.0 }
 0x170   : > { %1050 = vadd.xlane.f32.xlu0 %v1049_v33  ;;  %v10124_v33 = vld [vmem:[#allocation93_spill] sm:$0xff]  ;;  %v802_v19 = vmul.f32 %v10130_v62, %v10130_v62 }
 0x171   : > { %v5728_v11 = vpop.xlane.xlu2 %890  ;;  %v807_v60 = vmul.f32 %v10124_v33, %v10124_v33  ;;  %v1077_v63 = vadd.f32 %v1076_v3, %v804_v0  ;;  %v10136_v62 = vld [vmem:[#allocation101_spill] sm:$0xff] }
 0x172   : > { %10123 = vst [vmem:[#allocation17_spill] sm:$0xff] %v5728_v11  ;;  %v5749_v4 = vpop.xlane.xlu1 %886 }
 0x173   : > { %v5736_v48 = vpop.xlane.xlu0 %882  ;;  %v1080_v16 = vsel %vm377_vm0, %v807_v60, 0.0  ;;  %10132 = vst [vmem:[#allocation20_spill] sm:$0xff] %v5749_v4  ;;  %v10135_v60 = vld [vmem:[#allocation94_spill] sm:$0xff] }
 0x174   : > { %10127 = vst [vmem:[#allocation27_spill] sm:$0xff] %v5736_v48  ;;  %v810_v46 = vmul.f32 %v10135_v60, %v10135_v60 }
 0x176   : > { %1070 = vadd.xlane.f32.xlu2 %v1069_v7  ;;  %v1081_v7 = vadd.f32 %v1080_v16, %v806_v24  ;;  %v813_v24 = vmul.f32 %v10136_v62, %v10136_v62 }
 0x177   : > { %1066 = vadd.xlane.f32.xlu1 %v1065_v45  ;;  %v1073_v45 = vadd.f32 %v1072_v50, %v802_v19 }
 0x178   : > { %1062 = vadd.xlane.f32.xlu0 %v1061_v44  ;;  %v10133_v44 = vld [vmem:[#allocation91_spill] sm:$0xff]  ;;  %v1092_v3 = vsel %vm377_vm0, %v813_v24, 0.0  ;;  %v10147_v24 = vld [vmem:[#allocation54_spill] sm:$0xff] }
 0x179   : > { %v5747_v33 = vpop.xlane.xlu2 %902  ;;  %v811_v48 = vmul.f32 %v10133_v44, %v10133_v44  ;;  %v10142_v44 = vld [vmem:[#allocation92_spill] sm:$0xff] }
 0x17a   : > { %10131 = vst [vmem:[#allocation19_spill] sm:$0xff] %v5747_v33  ;;  %v10137_v33 = vld [vmem:[#allocation103_spill] sm:$0xff]  ;;  %v5765_v50 = vpop.xlane.xlu1 %898  ;;  %v809_v60 = vmul.f32 %v10142_v44, %v10142_v44  ;;  %v10155_v44 = vld [vmem:[#allocation70_spill] sm:$0xff] }
 0x17b   : > { %v5753_v53 = vpop.xlane.xlu0 %894  ;;  %v1088_v41 = vsel %vm377_vm0, %v811_v48, 0.0  ;;  %v812_v0 = vmul.f32 %v10137_v33, %v10137_v33  ;;  %10139 = vst [vmem:[#allocation23_spill] sm:$0xff] %v5765_v50  ;;  %v10145_v33 = vld [vmem:[#allocation53_spill] sm:$0xff] }
 0x17c   : > { %10134 = vst [vmem:[#allocation30_spill] sm:$0xff] %v5753_v53  ;;  %v1089_v16 = vadd.f32 %v1088_v41, %v810_v46  ;;  %v10143_v46 = vld [vmem:[#allocation52_spill] sm:$0xff]  ;;  %v5777_v62 = vmul.f32 0.0051020407, %v10145_v33 }
 0x17d   : > { %v5774_v41 = vmul.f32 0.0051020407, %v10143_v46  ;;  %v5793_v46 = vmul.f32 0.0051020407, %v10155_v44  ;;  %v10164_v44 = vld [vmem:[#allocation79_spill] sm:$0xff] }
 0x17e   : > { %1082 = vadd.xlane.f32.xlu2 %v1081_v7  ;;  %v1093_v7 = vadd.f32 %v1092_v3, %v812_v0  ;;  %10146 = vst [vmem:[#allocation26_spill] sm:$0xff] %v5777_v62  ;;  %v10149_v0 = vld [vmem:[#allocation61_spill] sm:$0xff] }
 0x17f   : > { %1078 = vadd.xlane.f32.xlu1 %v1077_v63  ;;  %10144 = vst [vmem:[#allocation25_spill] sm:$0xff] %v5774_v41  ;;  %v5784_v3 = vmul.f32 0.0051020407, %v10149_v0  ;;  %v10159_v0 = vld [vmem:[#allocation71_spill] sm:$0xff] }
 0x180   : > { %1074 = vadd.xlane.f32.xlu0 %v1073_v45  ;;  %v10141_v45 = vld [vmem:[#allocation95_spill] sm:$0xff]  ;;  %10156 = vst [vmem:[#allocation31_spill] sm:$0xff] %v5793_v46 }
 0x181   : > { %v5762_v19 = vpop.xlane.xlu2 %914  ;;  %v808_v48 = vmul.f32 %v10141_v45, %v10141_v45  ;;  %10150 = vst [vmem:[#allocation28_spill] sm:$0xff] %v5784_v3  ;;  %v10153_v45 = vld [vmem:[#allocation63_spill] sm:$0xff] }
 0x182   : > { %10138 = vst [vmem:[#allocation22_spill] sm:$0xff] %v5762_v19  ;;  %v5780_v19 = vmul.f32 0.0051020407, %v10147_v24  ;;  %v5790_v53 = vmul.f32 0.0051020407, %v10153_v45  ;;  %v5799_v24 = vmul.f32 %v5774_v41, %v5774_v41  ;;  %v5808_v4 = vpop.xlane.xlu1 %910  ;;  %v10166_v41 = vld [vmem:[#allocation80_spill] sm:$0xff] }
 0x183   : > { %v5767_v63 = vpop.xlane.xlu0 %906  ;;  %10161 = vst [vmem:[#allocation35_spill] sm:$0xff] %v5808_v4  ;;  %v5821_v11 = vmul.f32 0.0051020407, %v10166_v41  ;;  %v10175_v41 = vld [vmem:[#allocation89_spill] sm:$0xff] }
 0x184   : > { %10140 = vst [vmem:[#allocation33_spill] sm:$0xff] %v5767_v63  ;;  %v5812_v45 = vmul.f32 %v5780_v19, %v5780_v19 }
 0x185   : > { %10148 = vst [vmem:[#allocation36_spill] sm:$0xff] %v5780_v19  ;;  %v10170_v19 = vld [vmem:[#allocation81_spill] sm:$0xff] }
 0x186   : > { %1094 = vadd.xlane.f32.xlu2 %v1093_v7  ;;  %v10151_v7 = vld [vmem:[#allocation62_spill] sm:$0xff]  ;;  %10154 = vst [vmem:[#allocation39_spill] sm:$0xff] %v5790_v53  ;;  %v5832_v4 = vmul.f32 0.0051020407, %v10170_v19 }
 0x187   : > { %1090 = vadd.xlane.f32.xlu1 %v1089_v16  ;;  %v1084_v16 = vsel %vm377_vm0, %v809_v60, 0.0  ;;  %v5787_v63 = vmul.f32 0.0051020407, %v10151_v7  ;;  %10158 = vst [vmem:[#allocation42_spill] sm:$0xff] %v5799_v24  ;;  %v5803_v60 = vmul.f32 %v5777_v62, %v5777_v62  ;;  %v5806_v7 = vmul.f32 0.0051020407, %v10159_v0 }
 0x188   : > { %v1085_v50 = vadd.f32 %v1084_v16, %v808_v48  ;;  %v10162_v48 = vld [vmem:[#allocation72_spill] sm:$0xff]  ;;  %10167 = vst [vmem:[#allocation38_spill] sm:$0xff] %v5821_v11  ;;  %v5825_v0 = vmul.f32 %v5784_v3, %v5784_v3  ;;  %v5846_v3 = vmul.f32 0.0051020407, %v10175_v41 }
 0x189   : > { %10152 = vst [vmem:[#allocation29_spill] sm:$0xff] %v5787_v63  ;;  %v5795_v33 = vpop.xlane.xlu2 %926  ;;  %v5815_v16 = vmul.f32 0.0051020407, %v10162_v48  ;;  %v5829_v62 = vmul.f32 %v5787_v63, %v5787_v63  ;;  %v10172_v48 = vld [vmem:[#allocation88_spill] sm:$0xff]  ;;  %v5853_v19 = vmul.f32 %v5806_v7, %v5806_v7 }
 0x18a   : > { %10157 = vst [vmem:[#allocation32_spill] sm:$0xff] %v5795_v33  ;;  %v5818_v33 = vmul.f32 0.0051020407, %v10164_v44  ;;  %1086 = vadd.xlane.f32.xlu0 %v1085_v50  ;;  %v5835_v30 = vmul.f32 0.0051020407, %v10172_v48  ;;  %v5839_v44 = vmul.f32 %v5790_v53, %v5790_v53  ;;  %v5843_v50 = vmul.f32 %v5793_v46, %v5793_v46  ;;  %v10180_v48 = vld [vmem:[#allocation97_spill] sm:$0xff]  ;;  %v5932_v34 = vpop.xlane.xlu1 %922 }
 0x18b   : > { %10160 = vst [vmem:[#allocation34_spill] sm:$0xff] %v5806_v7  ;;  %v5856_v24 = vmul.f32 0.0051020407, %v10180_v48  ;;  %v5858_v54 = vpop.xlane.xlu0 %918  ;;  %v10183_v53 = vld [vmem:[#allocation102_spill] sm:$0xff]  ;;  %v10184_v46 = vld [vmem:[#allocation100_spill] sm:$0xff]  ;;  %v5866_v41 = vmul.f32 %v5815_v16, %v5815_v16  ;;  %v5874_v48 = vmul.f32 %v5821_v11, %v5821_v11  ;;  %v5892_v11 = vmul.f32 %v5846_v3, %v5846_v3 }
 0x18c   : > { %10163 = vst [vmem:[#allocation45_spill] sm:$0xff] %v5815_v16  ;;  %v816_v29 = vmul.f32 %v10183_v53, %v10183_v53  ;;  %v10188_v7 = vld [vmem:[#allocation98_spill] sm:$0xff]  ;;  %v5881_v53 = vmul.f32 %v5832_v4, %v5832_v4 }
 0x18d   : > { %10165 = vst [vmem:[#allocation37_spill] sm:$0xff] %v5818_v33 }
 0x18e   : > { %10168 = vst [vmem:[#allocation48_spill] sm:$0xff] %v5825_v0  ;;  %v10177_v0 = vld [vmem:[#allocation90_spill] sm:$0xff] }
 0x18f   : > { %10169 = vst [vmem:[#allocation40_spill] sm:$0xff] %v5829_v62  ;;  %v5849_v63 = vmul.f32 0.0051020407, %v10177_v0  ;;  %v5870_v0 = vmul.f32 %v5818_v33, %v5818_v33  ;;  %v10192_v33 = vld [vmem:[#allocation107_spill] sm:$0xff] }
 0x190   : > { %10171 = vst [vmem:[#allocation41_spill] sm:$0xff] %v5832_v4  ;;  %v10195_v4 = vld [vmem:[#allocation99_spill] sm:$0xff] }
 0x191   : > { %10173 = vst [vmem:[#allocation51_spill] sm:$0xff] %v5835_v30 }
 0x192   : > { %10174 = vst [vmem:[#allocation43_spill] sm:$0xff] %v5843_v50  ;;  %v817_v50 = vmul.f32 %v10184_v46, %v10184_v46  ;;  %v5885_v46 = vmul.f32 %v5835_v30, %v5835_v30  ;;  %v5903_v30 = vmul.f32 %v5856_v24, %v5856_v24 }
 0x193   : > { %10176 = vst [vmem:[#allocation44_spill] sm:$0xff] %v5846_v3  ;;  %v10202_v3 = vld [vmem:[#allocation106_spill] sm:$0xff] }
 0x194   : > { %10178 = vst [vmem:[#allocation57_spill] sm:$0xff] %v5849_v63  ;;  %v1100_v16 = vsel %vm377_vm0, %v817_v50, 0.0  ;;  %v10198_v50 = vld [vmem:[#allocation104_spill] sm:$0xff] }
 0x195   : > { %10179 = vst [vmem:[#allocation46_spill] sm:$0xff] %v5853_v19  ;;  %v1101_v19 = vadd.f32 %v1100_v16, %v816_v29  ;;  %v10207_v16 = vld [vmem:[#allocation108_spill] sm:$0xff] }
 0x196   : > { %10181 = vst [vmem:[#allocation47_spill] sm:$0xff] %v5856_v24  ;;  %v818_v24 = vmul.f32 %v10207_v16, %v10207_v16  ;;  %v10214_v16 = vld [vmem:[#allocation112_spill] sm:$0xff] }
 0x197   : > { %10182 = vst [vmem:[#allocation60_spill] sm:$0xff] %v5858_v54  ;;  %v5877_v54 = vmul.f32 0.0051020407, %v10188_v7  ;;  %v5896_v7 = vmul.f32 %v5849_v63, %v5849_v63  ;;  %1102 = vadd.xlane.f32.xlu1 %v1101_v19 }
 0x198   : > { %10185 = vst [vmem:[#allocation49_spill] sm:$0xff] %v5866_v41 }
 0x199   : > { %10186 = vst [vmem:[#allocation50_spill] sm:$0xff] %v5870_v0  ;;  %v819_v0 = vmul.f32 %v10192_v33, %v10192_v33  ;;  %v10200_v33 = vld [vmem:[#allocation105_spill] sm:$0xff]  ;;  %v5916_v63 = vmul.f32 %v5877_v54, %v5877_v54 }
 0x19a   : > { %10187 = vst [vmem:[#allocation66_spill] sm:$0xff] %v5874_v48  ;;  %v5899_v48 = vmul.f32 0.0051020407, %v10195_v4  ;;  %v10205_v4 = vld [vmem:[#allocation109_spill] sm:$0xff] }
 0x19b   : > { %10189 = vst [vmem:[#allocation55_spill] sm:$0xff] %v5877_v54  ;;  %v5919_v29 = vmul.f32 0.0051020407, %v10205_v4  ;;  %v1104_v54 = vsel %vm377_vm0, %v819_v0, 0.0  ;;  %v4415_v4 = vld [vmem:[%s4635_s18 + $0x400] sm:$0xff] }
 0x19c   : > { %10190 = vst [vmem:[#allocation56_spill] sm:$0xff] %v5881_v53  ;;  %v5909_v53 = vmul.f32 0.0051020407, %v10200_v33  ;;  %v10209_v33 = vld [vmem:[#allocation110_spill] sm:$0xff]  ;;  %v5938_v19 = vmul.f32 %v5899_v48, %v5899_v48 }
 0x19d   : > { %10191 = vst [vmem:[#allocation69_spill] sm:$0xff] %v5885_v46  ;;  %v5906_v46 = vmul.f32 0.0051020407, %v10198_v50  ;;  %v5927_v41 = vmul.f32 0.0051020407, %v10209_v33 }
 0x19e   : > { %10193 = vst [vmem:[#allocation58_spill] sm:$0xff] %v5892_v11  ;;  %v5912_v11 = vmul.f32 0.0051020407, %v10202_v3  ;;  %v10211_v3 = vld [vmem:[#allocation111_spill] sm:$0xff]  ;;  %v5947_v33 = vmul.f32 0.0051020407, %v5301_v52  ;;  %v5955_v0 = vmul.f32 %v5909_v53, %v5909_v53 }
 0x19f   : > { %10194 = vst [vmem:[#allocation59_spill] sm:$0xff] %v5896_v7  ;;  %v5924_v7 = vpop.xlane.xlu2 %938  ;;  %v5930_v62 = vmul.f32 0.0051020407, %v10211_v3  ;;  %v5951_v3 = vmul.f32 %v5906_v46, %v5906_v46  ;;  %v10224_v52 = vld [vmem:[#allocation115_spill] sm:$0xff] }
 0x1a0   : > { %10196 = vst [vmem:[#allocation75_spill] sm:$0xff] %v5899_v48 }
 0x1a1   : > { %10197 = vst [vmem:[#allocation64_spill] sm:$0xff] %v5903_v30  ;;  %v4414_v30 = vld [vmem:[%s4635_s18 + $0x408] sm:$0xff] }
 0x1a2   : > { %10199 = vst [vmem:[#allocation65_spill] sm:$0xff] %v5906_v46  ;;  %v815_v50 = vmul.f32 %v4414_v30, %v4414_v30  ;;  %v5941_v30 = vmul.f32 0.0051020407, %v10214_v16  ;;  %v10221_v16 = vld [vmem:[#allocation114_spill] sm:$0xff]  ;;  %v1105_v46 = vadd.f32 %v1104_v54, %v818_v24 }
 0x1a3   : > { %10201 = vst [vmem:[#allocation78_spill] sm:$0xff] %v5909_v53  ;;  %v5962_v48 = vmul.f32 0.0051020407, %v10221_v16  ;;  %v5974_v53 = vmul.f32 %v5927_v41, %v5927_v41  ;;  %v10226_v16 = vld [vmem:[#allocation116_spill] sm:$0xff] }
 0x1a4   : > { %10203 = vst [vmem:[#allocation67_spill] sm:$0xff] %v5912_v11  ;;  %v5987_v54 = vmul.f32 %v5941_v30, %v5941_v30  ;;  %1106 = vadd.xlane.f32.xlu2 %v1105_v46  ;;  %v6019_v46 = vmul.f32 0.0051020407, %v5352_v14 }
 0x1a5   : > { %10204 = vst [vmem:[#allocation68_spill] sm:$0xff] %v5916_v63  ;;  %v814_v63 = vmul.f32 %v4415_v4, %v4415_v4  ;;  %v5959_v4 = vmul.f32 %v5912_v11, %v5912_v11  ;;  %v5978_v11 = vmul.f32 %v5930_v62, %v5930_v62 }
 0x1a6   : > { %10206 = vst [vmem:[#allocation84_spill] sm:$0xff] %v5919_v29 }
 0x1a7   : > { %10208 = vst [vmem:[#allocation73_spill] sm:$0xff] %v5924_v7  ;;  %v10216_v7 = vld [vmem:[#allocation113_spill] sm:$0xff] }
 0x1a8   : > { %10210 = vst [vmem:[#allocation74_spill] sm:$0xff] %v5927_v41  ;;  %v5944_v9 = vmul.f32 0.0051020407, %v10216_v7  ;;  %v5966_v7 = vmul.f32 %v5919_v29, %v5919_v29  ;;  %v6068_v41 = vmul.f32 %v6019_v46, %v6019_v46 }
 0x1a9   : > { %10212 = vst [vmem:[#allocation87_spill] sm:$0xff] %v5930_v62 }
 0x1aa   : > { %10213 = vst [vmem:[#allocation76_spill] sm:$0xff] %v5932_v34  ;;  %v5969_v34 = vmul.f32 0.0051020407, %v10224_v52  ;;  %v5991_v24 = vmul.f32 %v5944_v9, %v5944_v9  ;;  %v5998_v52 = vmul.f32 0.0051020407, %v5329_v58 }
 0x1ab   : > { %10215 = vst [vmem:[#allocation77_spill] sm:$0xff] %v5941_v30  ;;  %v4416_v30 = vld [vmem:[%s4635_s18 + $0x448] sm:$0xff]  ;;  %v6016_v58 = vmul.f32 0.0051020407, %v5350_v18 }
 0x1ac   : > { %10217 = vst [vmem:[#allocation93_spill] sm:$0xff] %v5944_v9  ;;  %v823_v62 = vmul.f32 %v4416_v30, %v4416_v30  ;;  %v6030_v30 = vmul.f32 0.0051020407, %v5371_v5  ;;  %v6035_v14 = vmul.f32 %v5998_v52, %v5998_v52 }
 0x1ad   : > { %10218 = vst [vmem:[#allocation82_spill] sm:$0xff] %v5947_v33 }
 0x1ae   : > { %10219 = vst [vmem:[#allocation83_spill] sm:$0xff] %v5951_v3  ;;  %v1096_v3 = vsel %vm377_vm0, %v815_v50, 0.0  ;;  %v5995_v50 = vmul.f32 %v5947_v33, %v5947_v33  ;;  %v6013_v33 = vmul.f32 %v5969_v34, %v5969_v34  ;;  %v1112_v18 = vsel %vm377_vm0, %v823_v62, 0.0 }
 0x1af   : > { %10220 = vst [vmem:[#allocation96_spill] sm:$0xff] %v5955_v0  ;;  %v5981_v0 = vmul.f32 0.0051020407, %v10226_v16  ;;  %v1097_v29 = vadd.f32 %v1096_v3, %v814_v63  ;;  %v6002_v63 = vmul.f32 %v5962_v48, %v5962_v48  ;;  %v6005_v3 = vmul.f32 0.0051020407, %v5331_v28 }
 0x1b0   : > { %10222 = vst [vmem:[#allocation85_spill] sm:$0xff] %v5962_v48  ;;  %v6008_v16 = vmul.f32 0.0051020407, %v5333_v6  ;;  %v4417_v48 = vld [vmem:[%s4635_s18 + $0x440] sm:$0xff] }
 0x1b1   : > { %10223 = vst [vmem:[#allocation86_spill] sm:$0xff] %v5966_v7  ;;  %v5983_v7 = vpop.xlane.xlu0 %930  ;;  %1098 = vadd.xlane.f32.xlu0 %v1097_v29  ;;  %v822_v28 = vmul.f32 %v4417_v48, %v4417_v48  ;;  %v6024_v6 = vmul.f32 %v5981_v0, %v5981_v0  ;;  %v6027_v29 = vmul.f32 0.0051020407, %v5354_v40  ;;  %v6041_v48 = vmul.f32 0.0051020407, %v5375_v56  ;;  %v6046_v40 = vpop.xlane.xlu2 %950  ;;  %v4418_v56 = vld [vmem:[%s4635_s18 + $0x458] sm:$0xff] }
 0x1b2   : > { %10225 = vst [vmem:[#allocation91_spill] sm:$0xff] %v5969_v34  ;;  %v6038_v34 = vmul.f32 0.0051020407, %v5373_v1  ;;  %v6050_v5 = vmul.f32 %v6005_v3, %v6005_v3  ;;  %v6054_v62 = vmul.f32 %v6008_v16, %v6008_v16  ;;  %v6059_v1 = vpop.xlane.xlu1 %934  ;;  %v825_v9 = vmul.f32 %v4418_v56, %v4418_v56 }
 0x1b3   : > { %10227 = vst [vmem:[#allocation94_spill] sm:$0xff] %v5981_v0  ;;  %v6044_v0 = vmul.f32 0.0051020407, %v5392_v17  ;;  %v6064_v17 = vmul.f32 %v6016_v58, %v6016_v58  ;;  %v6079_v56 = vmul.f32 0.0051020407, %v5413_v26 }
 0x1b4   : > { %10228 = vst [vmem:[#allocation101_spill] sm:$0xff] %v5998_v52  ;;  %v6057_v52 = vmul.f32 0.0051020407, %v5394_v25  ;;  %v6073_v25 = vmul.f32 %v6027_v29, %v6027_v29 }
 0x1b5   : > { %10229 = vst [vmem:[#allocation103_spill] sm:$0xff] %v6005_v3  ;;  %v1113_v3 = vadd.f32 %v1112_v18, %v822_v28  ;;  %v6090_v28 = vmul.f32 %v6038_v34, %v6038_v34  ;;  %v6094_v18 = vmul.f32 %v6041_v48, %v6041_v48 }
 0x1b6   : > { %10230 = vst [vmem:[#allocation95_spill] sm:$0xff] %v6008_v16  ;;  %v6102_v26 = vmul.f32 %v6057_v52, %v6057_v52 }
 0x1b7   : > { %10231 = vst [vmem:[#allocation92_spill] sm:$0xff] %v6016_v58  ;;  %v6082_v58 = vmul.f32 0.0051020407, %v5415_v37  ;;  %1114 = vadd.xlane.f32.xlu1 %v1113_v3  ;;  %v6105_v37 = vmul.f32 0.0051020407, %v5417_v47 }
 0x1b8   : > { %10232 = vst [vmem:[#allocation52_spill] sm:$0xff] %v6019_v46  ;;  %v6086_v46 = vmul.f32 %v6030_v30, %v6030_v30 }
 0x1b9   : > { %10233 = vst [vmem:[#allocation53_spill] sm:$0xff] %v6027_v29 }
 0x1ba   : > { %10234 = vst [vmem:[#allocation54_spill] sm:$0xff] %v6030_v30  ;;  %v4420_v30 = vld [vmem:[%s4635_s18 + $0x430] sm:$0xff] }
 0x1bb   : > { %10235 = vst [vmem:[#allocation61_spill] sm:$0xff] %v6035_v14  ;;  %v6076_v14 = vmul.f32 0.0051020407, %v5396_v59  ;;  %v6098_v59 = vmul.f32 %v6044_v0, %v6044_v0  ;;  %v820_v29 = vmul.f32 %v4420_v30, %v4420_v30  ;;  %v6126_v30 = vmul.f32 %v6082_v58, %v6082_v58 }
 0x1bc   : > { %10236 = vst [vmem:[#allocation62_spill] sm:$0xff] %v6038_v34  ;;  %v6109_v34 = vpop.xlane.xlu0 %942 }
 0x1bd   : > { %10237 = vst [vmem:[#allocation63_spill] sm:$0xff] %v6041_v48  ;;  %v6112_v48 = vmul.f32 0.0051020407, %v5434_v35  ;;  %v6118_v47 = vmul.f32 %v6076_v14, %v6076_v14  ;;  %v1225_v35 = vmul.f32 0.0051020407, %v5644_v31  ;;  %v4423_v31 = vld [vmem:[%s4635_s18 + $0x470] sm:$0xff] }
 0x1be   : > { %10238 = vst [vmem:[#allocation70_spill] sm:$0xff] %v6044_v0  ;;  %v1226_v0 = vmul.f32 0.0051020407, %v5667_v39  ;;  %v6130_v39 = vmul.f32 0.0051020407, %v5436_v49  ;;  %v828_v49 = vmul.f32 %v4423_v31, %v4423_v31 }
 0x1bf   : > { %10239 = vst [vmem:[#allocation71_spill] sm:$0xff] %v6050_v5  ;;  %v4419_v5 = vld [vmem:[%s4635_s18 + $0x450] sm:$0xff]  ;;  %v1379_v31 = vsub.f32 %v1225_v35, %v5812_v45  ;;  %v6185_v45 = vmul.f32 0.0051020407, %v5497_v8  ;;  %v4425_v35 = vld [vmem:[%s4635_s18 + $0x480] sm:$0xff] }
 0x1c0   : > { %10240 = vst [vmem:[#allocation72_spill] sm:$0xff] %v6057_v52  ;;  %v824_v16 = vmul.f32 %v4419_v5, %v4419_v5  ;;  %v1116_v5 = vsel %vm377_vm0, %v825_v9, 0.0  ;;  %v6122_v9 = vmul.f32 %v6079_v56, %v6079_v56 }
 0x1c1   : > { %10241 = vst [vmem:[#allocation79_spill] sm:$0xff] %v6064_v17 }
 0x1c2   : > { %10242 = vst [vmem:[#allocation80_spill] sm:$0xff] %v6068_v41  ;;  %v1117_v3 = vadd.f32 %v1116_v5, %v824_v16  ;;  %v6133_v16 = vmul.f32 0.0051020407, %v5438_v13  ;;  %v4422_v5 = vld [vmem:[%s4635_s18 + $0x478] sm:$0xff]  ;;  %v6147_v13 = vmul.f32 %v6112_v48, %v6112_v48  ;;  %v10358_v41 = vld [vmem:[#allocation66_spill] sm:$0xff] }
 0x1c3   : > { %10243 = vst [vmem:[#allocation81_spill] sm:$0xff] %v6073_v25 }
 0x1c4   : > { %10244 = vst [vmem:[#allocation88_spill] sm:$0xff] %v6076_v14  ;;  %1118 = vadd.xlane.f32.xlu2 %v1117_v3  ;;  %v829_v14 = vmul.f32 %v4422_v5, %v4422_v5  ;;  %v6150_v3 = vmul.f32 0.0051020407, %v5457_v61  ;;  %v6166_v61 = vpop.xlane.xlu1 %946 }
 0x1c5   : > { %10245 = vst [vmem:[#allocation89_spill] sm:$0xff] %v6079_v56  ;;  %v6139_v56 = vmul.f32 %v6105_v37, %v6105_v37 }
 0x1c6   : > { %10246 = vst [vmem:[#allocation90_spill] sm:$0xff] %v6082_v58  ;;  %v6142_v58 = vmul.f32 0.0051020407, %v5455_v27  ;;  %v1124_v5 = vsel %vm377_vm0, %v829_v14, 0.0  ;;  %v6157_v27 = vmul.f32 0.0051020407, %v5459_v12 }
 0x1c7   : > { %10247 = vst [vmem:[#allocation97_spill] sm:$0xff] %v6086_v46  ;;  %v6177_v12 = vmul.f32 0.0051020407, %v5480_v10  ;;  %v6193_v10 = vmul.f32 0.0051020407, %v5499_v38  ;;  %v6210_v38 = vpop.xlane.xlu0 %954 }
 0x1c8   : > { %10248 = vst [vmem:[#allocation102_spill] sm:$0xff] %v6090_v28  ;;  %v6200_v8 = vmul.f32 %v6157_v27, %v6157_v27 }
 0x1c9   : > { %10249 = vst [vmem:[#allocation100_spill] sm:$0xff] %v6094_v18 }
 0x1ca   : > { %10250 = vst [vmem:[#allocation98_spill] sm:$0xff] %v6098_v59  ;;  %v4421_v59 = vld [vmem:[%s4635_s18 + $0x438] sm:$0xff] }
 0x1cb   : > { %10251 = vst [vmem:[#allocation107_spill] sm:$0xff] %v6102_v26  ;;  %v821_v52 = vmul.f32 %v4421_v59, %v4421_v59 }
 0x1cc   : > { %10252 = vst [vmem:[#allocation99_spill] sm:$0xff] %v6105_v37  ;;  %v6154_v37 = vpop.xlane.xlu2 %962 }
 0x1cd   : > { %10253 = vst [vmem:[#allocation104_spill] sm:$0xff] %v6112_v48  ;;  %v1108_v59 = vsel %vm377_vm0, %v821_v52, 0.0  ;;  %v1380_v52 = vsub.f32 %v1226_v0, %v5839_v44  ;;  %v6170_v44 = vmul.f32 %v6130_v39, %v6130_v39  ;;  %v6174_v0 = vmul.f32 %v6133_v16, %v6133_v16 }
 0x1ce   : > { %10254 = vst [vmem:[#allocation105_spill] sm:$0xff] %v6118_v47  ;;  %v830_v48 = vmul.f32 %v4425_v35, %v4425_v35  ;;  %v1456_v35 = vmax.f32 %v1379_v31, 0.0  ;;  %v4426_v31 = vld [vmem:[%s4635_s18 + $0x460] sm:$0xff] }
 0x1cf   : > { %10255 = vst [vmem:[#allocation106_spill] sm:$0xff] %v6122_v9 }
 0x1d0   : > { %10256 = vst [vmem:[#allocation109_spill] sm:$0xff] %v6126_v30  ;;  %v1109_v30 = vadd.f32 %v1108_v59, %v820_v29  ;;  %v6160_v29 = vmul.f32 0.0051020407, %v5476_v55  ;;  %v6163_v59 = vmul.f32 0.0051020407, %v5478_v21  ;;  %v4424_v55 = vld [vmem:[%s4635_s18 + $0x488] sm:$0xff]  ;;  %v6182_v21 = vmul.f32 %v6142_v58, %v6142_v58 }
 0x1d1   : > { %10257 = vst [vmem:[#allocation108_spill] sm:$0xff] %v6130_v39  ;;  %v831_v14 = vmul.f32 %v4424_v55, %v4424_v55  ;;  %v6190_v39 = vmul.f32 %v6150_v3, %v6150_v3  ;;  %v6196_v55 = vmul.f32 0.0051020407, %v5501_v51  ;;  %v6214_v51 = vmul.f32 %v6177_v12, %v6177_v12 }
 0x1d2   : > { %10258 = vst [vmem:[#allocation110_spill] sm:$0xff] %v6133_v16  ;;  %1110 = vadd.xlane.f32.xlu0 %v1109_v30  ;;  %v1125_v30 = vadd.f32 %v1124_v5, %v828_v49  ;;  %v6204_v49 = vmul.f32 %v6160_v29, %v6160_v29  ;;  %v6208_v5 = vmul.f32 %v6163_v59, %v6163_v59  ;;  %v6222_v16 = vmul.f32 0.0051020407, %v5520_v20 }
 0x1d3   : > { %10259 = vst [vmem:[#allocation111_spill] sm:$0xff] %v6139_v56  ;;  %v10338_v56 = vld [vmem:[#allocation10_spill] sm:$0xff] }
 0x1d4   : > { %10260 = vst [vmem:[#allocation112_spill] sm:$0xff] %v6142_v58  ;;  %v1457_v58 = vmax.f32 %v1380_v52, 0.0  ;;  %1126 = vadd.xlane.f32.xlu1 %v1125_v30  ;;  %v6217_v52 = vmul.f32 0.0051020407, %v5518_v36  ;;  %v826_v30 = vmul.f32 %v4426_v31, %v4426_v31  ;;  %v6232_v36 = vmul.f32 %v6193_v10, %v6193_v10 }
 0x1d5   : > { %10261 = vst [vmem:[#allocation113_spill] sm:$0xff] %v6147_v13  ;;  %v10331_v13 = vld [vmem:[#allocation17_spill] sm:$0xff] }
 0x1d6   : > { %10262 = vst [vmem:[#allocation114_spill] sm:$0xff] %v6150_v3  ;;  %v4427_v3 = vld [vmem:[%s4635_s18 + $0x468] sm:$0xff]  ;;  %v6238_v20 = vadd.f32 1e-05, %v1457_v58  ;;  %v4429_v58 = vld [vmem:[%s4635_s18 + $0x4a0] sm:$0xff] }
 0x1d7   : > { %10263 = vst [vmem:[#allocation115_spill] sm:$0xff] %v6157_v27  ;;  %v1227_v27 = vmul.f32 0.0051020407, %v5675_v2  ;;  %v6236_v2 = vmul.f32 %v6196_v55, %v6196_v55 }
 0x1d8   : > { %10264 = vst [vmem:[#allocation116_spill] sm:$0xff] %v6160_v29  ;;  %v1128_v29 = vsel %vm377_vm0, %v831_v14, 0.0  ;;  %v4428_v14 = vld [vmem:[%s4635_s18 + $0x4a8] sm:$0xff]  ;;  %4260 = vrsqrt.f32 %v6238_v20  ;;  %vm1626_vm4 = vweird.f32 %v6238_v20 }
 0x1d9   : > { %10265 = vst [vmem:[#allocation117_spill] sm:$0xff] %v6163_v59  ;;  %v1129_v59 = vadd.f32 %v1128_v29, %v830_v48  ;;  %v6241_v48 = vmul.f32 0.0051020407, %v5522_v57  ;;  %v6243_v29 = vadd.f32 1e-05, %v1456_v35  ;;  %v835_v31 = vmul.f32 %v4428_v14, %v4428_v14  ;;  %v4430_v14 = vld [vmem:[%s4635_s18 + $0x4b8] sm:$0xff] }
 0x1da   : > { %10266 = vst [vmem:[#allocation118_spill] sm:$0xff] %v6170_v44  ;;  %v6257_v57 = vmul.f32 %v6222_v16, %v6222_v16 }
 0x1db   : > { %10267 = vst [vmem:[#allocation119_spill] sm:$0xff] %v6174_v0  ;;  %1130 = vadd.xlane.f32.xlu2 %v1129_v59  ;;  %v1228_v59 = vmul.f32 0.0051020407, %v5665_v23  ;;  %v1136_v35 = vsel %vm377_vm0, %v835_v31, 0.0  ;;  %v6275_v23 = vmul.f32 0.0051020407, %v5560_v32  ;;  %4262 = vrsqrt.f32 %v6243_v29 }
 0x1dc   : > { %10268 = vst [vmem:[#allocation120_spill] sm:$0xff] %v6177_v12  ;;  %v6228_v12 = vmul.f32 %v6185_v45, %v6185_v45  ;;  %v10291_v31 = vld [vmem:[#allocation21_spill] sm:$0xff]  ;;  %v10332_v0 = vld [vmem:[#allocation15_spill] sm:$0xff]  ;;  %vm1616_vm1 = vweird.f32 %v6243_v29 }
 0x1dd   : > { %10269 = vst [vmem:[#allocation121_spill] sm:$0xff] %v6182_v21  ;;  %v6402_v9 = vmul.f32 0.0051020407, %v10332_v0 }
 0x1de   : > { %10270 = vst [vmem:[#allocation122_spill] sm:$0xff] %v6185_v45  ;;  %v6249_v45 = vmul.f32 %v6217_v52, %v6217_v52 }
 0x1df   : > { %10271 = vst [vmem:[#allocation123_spill] sm:$0xff] %v6190_v39  ;;  %v6291_v39 = vpop.xlane.xlu0 %966 }
 0x1e0   : > { %10272 = vst [vmem:[#allocation124_spill] sm:$0xff] %v6193_v10 }
 0x1e1   : > { %10273 = vst [vmem:[#allocation125_spill] sm:$0xff] %v6196_v55  ;;  %v1381_v55 = vsub.f32 %v1227_v27, %v5803_v60  ;;  %v6265_v60 = vmul.f32 0.0051020407, %v5539_v43  ;;  %v6268_v27 = vmul.f32 0.0051020407, %v5541_v42 }
 0x1e2   : > { %10274 = vst [vmem:[#allocation126_spill] sm:$0xff] %v6200_v8  ;;  %v1229_v43 = vmul.f32 0.0051020407, %v10291_v31  ;;  %v10301_v31 = vld [vmem:[#allocation14_spill] sm:$0xff] }
 0x1e3   : > { %10275 = vst [vmem:[#allocation127_spill] sm:$0xff] %v6204_v49 }
 0x1e4   : > { %10276 = vst [vmem:[#allocation128_spill] sm:$0xff] %v6208_v5  ;;  %v827_v5 = vmul.f32 %v4427_v3, %v4427_v3 }
 0x1e5   : > { %10277 = vst [vmem:[#allocation129_spill] sm:$0xff] %v6214_v51 }
 0x1e6   : > { %10278 = vst [vmem:[#allocation130_spill] sm:$0xff] %v6217_v52  ;;  %v1120_v3 = vsel %vm377_vm0, %v827_v5, 0.0  ;;  %v6260_v5 = vpop.xlane.xlu1 %958  ;;  %v837_v52 = vmul.f32 %v4430_v14, %v4430_v14  ;;  %v10292_v14 = vld [vmem:[#allocation11_spill] sm:$0xff] }
 0x1e7   : > { %10279 = vst [vmem:[#allocation131_spill] sm:$0xff] %v6222_v16  ;;  %v1121_v10 = vadd.f32 %v1120_v3, %v826_v30  ;;  %v6271_v30 = vmul.f32 0.0051020407, %v5543_v22  ;;  %v6278_v3 = vmul.f32 0.0051020407, %v5562_v15 }
 0x1e8   : > { %10280 = vst [vmem:[#allocation132_spill] sm:$0xff] %v6228_v12  ;;  %v6253_v12 = vpop.xlane.xlu2 %974  ;;  %v1231_v42 = vmul.f32 0.0051020407, %v10292_v14  ;;  %v1140_v15 = vsel %vm377_vm0, %v837_v52, 0.0 }
 0x1e9   : > { %10281 = vst [vmem:[#allocation133_spill] sm:$0xff] %v6232_v36  ;;  %v834_v36 = vmul.f32 %v4429_v58, %v4429_v58  ;;  %1122 = vadd.xlane.f32.xlu0 %v1121_v10  ;;  %v1458_v58 = vmax.f32 %v1381_v55, 0.0  ;;  %v10294_v10 = vld [vmem:[#allocation40_spill] sm:$0xff]  ;;  %v6295_v55 = vmul.f32 %v6265_v60, %v6265_v60  ;;  %v6307_v52 = vmul.f32 %v6271_v30, %v6271_v30 }
 0x1ea   : > { %10282 = vst [vmem:[#allocation134_spill] sm:$0xff] %v6236_v2  ;;  %v1382_v32 = vsub.f32 %v1228_v59, %v10294_v10  ;;  %v10295_v2 = vld [vmem:[#allocation13_spill] sm:$0xff]  ;;  %v1234_v59 = vmul.f32 0.0051020407, %v10301_v31  ;;  %v6315_v14 = vmul.f32 %v6278_v3, %v6278_v3  ;;  %v10305_v10 = vld [vmem:[#allocation42_spill] sm:$0xff] }
 0x1eb   : > { %10283 = vst [vmem:[#allocation135_spill] sm:$0xff] %v6241_v48  ;;  %v1137_v16 = vadd.f32 %v1136_v35, %v834_v36  ;;  %v1230_v49 = vmul.f32 0.0051020407, %v10295_v2  ;;  %v6299_v36 = vmul.f32 %v6268_v27, %v6268_v27  ;;  %v6311_v2 = vmul.f32 %v6275_v23, %v6275_v23  ;;  %v10306_v31 = vld [vmem:[#allocation49_spill] sm:$0xff] }
 0x1ec   : > { %10284 = vst [vmem:[#allocation136_spill] sm:$0xff] %v6249_v45  ;;  %v6286_v45 = vmul.f32 %v6241_v48, %v6241_v48  ;;  %v6320_v48 = vadd.f32 1e-05, %v1458_v58 }
 0x1ed   : > { %10285 = vst [vmem:[#allocation137_spill] sm:$0xff] %v6257_v57  ;;  %v4431_v57 = vld [vmem:[%s4635_s18 + $0x4b0] sm:$0xff]  ;;  %1138 = vadd.xlane.f32.xlu1 %v1137_v16  ;;  %v1385_v16 = vsub.f32 %v1231_v42, %v10306_v31 }
 0x1ee   : > { %10286 = vst [vmem:[#allocation138_spill] sm:$0xff] %v6265_v60  ;;  %v836_v22 = vmul.f32 %v4431_v57, %v4431_v57  ;;  %v10299_v57 = vld [vmem:[#allocation2_spill] sm:$0xff]  ;;  %v1383_v60 = vsub.f32 %v1229_v43, %v10305_v10  ;;  %v10311_v10 = vld [vmem:[#allocation3_spill] sm:$0xff]  ;;  %4264 = vrsqrt.f32 %v6320_v48  ;;  %vm1636_vm7 = vweird.f32 %v6320_v48 }
 0x1ef   : > { %10287 = vst [vmem:[#allocation139_spill] sm:$0xff] %v6268_v27  ;;  %v6302_v35 = vmul.f32 0.0051020407, %v10299_v57  ;;  %v6318_v57 = vpop.eup %4260  ;;  %v6336_v42 = vmul.f32 0.0051020407, %v10311_v10 }
 0x1f0   : > { %10288 = vst [vmem:[#allocation140_spill] sm:$0xff] %v6271_v30  ;;  %v1141_v27 = vadd.f32 %v1140_v15, %v836_v22  ;;  %v10313_v22 = vld [vmem:[#allocation4_spill] sm:$0xff]  ;;  %vm1627_vm3 = vweird.f32 %v6318_v57 }
 0x1f1   : > { %10289 = vst [vmem:[#allocation141_spill] sm:$0xff] %v6275_v23  ;;  %v6333_v58 = vmul.f32 %v6302_v35, %v6302_v35  ;;  %v6339_v15 = vmul.f32 0.0051020407, %v10313_v22  ;;  %v6362_v21 = vmul.f32 %v6336_v42, %v6336_v42  ;;  %vm1628_vm5 = vmor %vm1626_vm4, %vm1627_vm3 }
 0x1f2   : > { %10290 = vst [vmem:[#allocation142_spill] sm:$0xff] %v6278_v3  ;;  %v10309_v3 = vld [vmem:[#allocation48_spill] sm:$0xff]  ;;  %1142 = vadd.xlane.f32.xlu2 %v1141_v27 }
 0x1f3   : > { %10293 = vst [vmem:[#allocation21_spill] sm:$0xff] %v6286_v45  ;;  %v4433_v45 = vld [vmem:[%s4635_s18 + $0x498] sm:$0xff] }
 0x1f4   : > { %10296 = vst [vmem:[#allocation11_spill] sm:$0xff] %v6291_v39  ;;  %v833_v43 = vmul.f32 %v4433_v45, %v4433_v45 }
 0x1f5   : > { %10297 = vst [vmem:[#allocation40_spill] sm:$0xff] %v6295_v55  ;;  %v6324_v55 = vpop.eup %4262 }
 0x1f6   : > { %10298 = vst [vmem:[#allocation13_spill] sm:$0xff] %v6299_v36  ;;  %v4432_v36 = vld [vmem:[%s4635_s18 + $0x490] sm:$0xff]  ;;  %v1132_v45 = vsel %vm377_vm0, %v833_v43, 0.0  ;;  %v1611_v22 = vmul.f32 %v6324_v55, %v6243_v29  ;;  %vm1617_vm2 = vweird.f32 %v6324_v55 }
 0x1f7   : > { %10300 = vst [vmem:[#allocation2_spill] sm:$0xff] %v6302_v35  ;;  %v832_v30 = vmul.f32 %v4432_v36, %v4432_v36  ;;  %v10315_v36 = vld [vmem:[#allocation56_spill] sm:$0xff]  ;;  %v4434_v35 = vld [vmem:[%s4635_s18 + $0x4c8] sm:$0xff]  ;;  %vm6509_vm6 = vmor %vm1616_vm1, %vm1617_vm2 }
 0x1f8   : > { %10302 = vst [vmem:[#allocation14_spill] sm:$0xff] %v6307_v52  ;;  %v10307_v52 = vld [vmem:[#allocation9_spill] sm:$0xff]  ;;  %v1388_v31 = vsub.f32 %v1234_v59, %v10315_v36  ;;  %v839_v10 = vmul.f32 %v4434_v35, %v4434_v35  ;;  %v1462_v59 = vmax.f32 %v1385_v16, 0.0  ;;  %v10318_v43 = vld [vmem:[#allocation16_spill] sm:$0xff]  ;;  %v4435_v16 = vld [vmem:[%s4635_s18 + $0x4c0] sm:$0xff] }
 0x1f9   : > { %10303 = vst [vmem:[#allocation143_spill] sm:$0xff] %v6311_v2  ;;  %v6327_v23 = vmul.f32 0.0051020407, %v10307_v52  ;;  %v1459_v2 = vmax.f32 %v1382_v32, 0.0  ;;  %v6342_v52 = vpop.xlane.xlu2 %986  ;;  %v6347_v32 = vpop.xlane.xlu1 %970  ;;  %v1133_v27 = vadd.f32 %v1132_v45, %v832_v30  ;;  %v1233_v51 = vmul.f32 0.0051020407, %v10318_v43 }
 0x1fa   : > { %10304 = vst [vmem:[#allocation144_spill] sm:$0xff] %v6315_v14  ;;  %v1384_v14 = vsub.f32 %v1230_v49, %v10309_v3  ;;  %v1621_v49 = vmul.f32 %v6318_v57, %v6238_v20  ;;  %v1460_v3 = vmax.f32 %v1383_v60, 0.0  ;;  %v10320_v35 = vld [vmem:[#allocation12_spill] sm:$0xff]  ;;  %v1465_v8 = vmax.f32 %v1388_v31, 0.0  ;;  %v10357_v20 = vld [vmem:[#allocation50_spill] sm:$0xff] }
 0x1fb   : > { %10308 = vst [vmem:[#allocation42_spill] sm:$0xff] %v6327_v23  ;;  %v6355_v36 = vmul.f32 %v6327_v23, %v6327_v23  ;;  %v6365_v44 = vmul.f32 0.0051020407, %v10320_v35  ;;  %1134 = vadd.xlane.f32.xlu0 %v1133_v27  ;;  %v838_v30 = vmul.f32 %v4435_v16, %v4435_v16  ;;  %v6370_v45 = vmul.f32 %v6339_v15, %v6339_v15  ;;  %v6376_v23 = vpop.xlane.xlu0 %978  ;;  %v10326_v35 = vld [vmem:[#allocation6_spill] sm:$0xff] }
 0x1fc   : > { %10310 = vst [vmem:[#allocation49_spill] sm:$0xff] %v6333_v58  ;;  %v6357_v58 = vadd.f32 1e-05, %v1459_v2  ;;  %v1461_v60 = vmax.f32 %v1384_v14, 0.0  ;;  %v1622_v2 = vmul.f32 %v6318_v57, %v1621_v49  ;;  %v6373_v14 = vadd.f32 1e-05, %v1460_v3 }
 0x1fd   : > { %10312 = vst [vmem:[#allocation9_spill] sm:$0xff] %v6336_v42  ;;  %v1144_v43 = vsel %vm377_vm0, %v839_v10, 0.0  ;;  %v10324_v42 = vld [vmem:[#allocation5_spill] sm:$0xff]  ;;  %v6382_v31 = vmul.f32 0.0051020407, %v10326_v35  ;;  %v1612_v27 = vmul.f32 %v6324_v55, %v1611_v22  ;;  %v10328_v49 = vld [vmem:[#allocation43_spill] sm:$0xff] }
 0x1fe   : > { %10314 = vst [vmem:[#allocation48_spill] sm:$0xff] %v6339_v15  ;;  %v6385_v16 = vadd.f32 1e-05, %v1462_v59  ;;  %4266 = vrsqrt.f32 %v6357_v58  ;;  %v6388_v15 = vadd.f32 1e-05, %v1461_v60  ;;  %v1387_v3 = vsub.f32 %v1233_v51, %v10328_v49  ;;  %v10334_v60 = vld [vmem:[#allocation7_spill] sm:$0xff] }
 0x1ff   : > { %10316 = vst [vmem:[#allocation3_spill] sm:$0xff] %v6342_v52  ;;  %v6398_v35 = vadd.f32 1e-05, %v1465_v8  ;;  %v1237_v22 = vmul.f32 0.0051020407, %v10331_v13  ;;  %v1145_v59 = vadd.f32 %v1144_v43, %v838_v30  ;;  %v1623_v51 = vmul.f32 0.5, %v1622_v2 }
 0x200   : > { %10317 = vst [vmem:[#allocation4_spill] sm:$0xff] %v6355_v36  ;;  %v10329_v36 = vld [vmem:[#allocation24_spill] sm:$0xff]  ;;  %v6405_v26 = vmul.f32 0.0051020407, %v10334_v60  ;;  %4268 = vrsqrt.f32 %v6373_v14  ;;  %v1613_v8 = vmul.f32 0.5, %v1612_v27  ;;  %v1464_v30 = vmax.f32 %v1387_v3, 0.0 }
 0x201   : > { %10319 = vst [vmem:[#allocation56_spill] sm:$0xff] %v6362_v21  ;;  %v6379_v21 = vmul.f32 0.0051020407, %v10324_v42  ;;  %v1232_v10 = vmul.f32 0.0051020407, %v10329_v36  ;;  %v6396_v42 = vmul.f32 %v6365_v44, %v6365_v44  ;;  %v10336_v36 = vld [vmem:[#allocation8_spill] sm:$0xff]  ;;  %4270 = vrsqrt.f32 %v6385_v16  ;;  %v6415_v13 = vpop.xlane.xlu2 %998  ;;  %v6421_v60 = vpop.xlane.xlu1 %982 }
 0x202   : > { %10321 = vst [vmem:[#allocation16_spill] sm:$0xff] %v6365_v44  ;;  %v6409_v49 = vmul.f32 0.0051020407, %v10336_v36  ;;  %v6412_v44 = vmul.f32 0.0051020407, %v10338_v56  ;;  %4272 = vrsqrt.f32 %v6388_v15  ;;  %v10341_v2 = vld [vmem:[#allocation46_spill] sm:$0xff]  ;;  %v6436_v3 = vmul.f32 %v6382_v31, %v6382_v31 }
 0x203   : > { %10322 = vst [vmem:[#allocation12_spill] sm:$0xff] %v6370_v45  ;;  %v6392_v45 = vpop.eup %4264  ;;  %v1386_v43 = vsub.f32 %v1232_v10, %v10341_v2  ;;  %v6425_v36 = vmul.f32 %v6379_v21, %v6379_v21  ;;  %v10344_v56 = vld [vmem:[#allocation18_spill] sm:$0xff]  ;;  %4274 = vrsqrt.f32 %v6398_v35  ;;  %1146 = vadd.xlane.f32.xlu0 %v1145_v59  ;;  %v6440_v10 = vmul.f32 %v6402_v9, %v6402_v9 }
 0x204   : > { %10323 = vst [vmem:[#allocation145_spill] sm:$0xff] %v6376_v23  ;;  %v1631_v0 = vmul.f32 %v6392_v45, %v6320_v48  ;;  %v6428_v27 = vmul.f32 0.0051020407, %v10344_v56  ;;  %v6432_v47 = vpop.eup %4266  ;;  %v1624_v2 = vsub.f32 1.5, %v1623_v51  ;;  %v6444_v56 = vmul.f32 %v6405_v26, %v6405_v26 }
 0x205   : > { %10325 = vst [vmem:[#allocation5_spill] sm:$0xff] %v6379_v21  ;;  %v1614_v59 = vsub.f32 1.5, %v1613_v8  ;;  %vm1646_vm8 = vweird.f32 %v6357_v58  ;;  %vm1637_vm9 = vweird.f32 %v6392_v45  ;;  %vm1647_vm10 = vweird.f32 %v6432_v47 }
 0x206   : > { %10327 = vst [vmem:[#allocation6_spill] sm:$0xff] %v6382_v31  ;;  %v4598_v31 = vmov 0   ;;  %v6454_v21 = vpop.eup %4268  ;;  %v1632_v51 = vmul.f32 %v6392_v45, %v1631_v0  ;;  %v6467_v8 = vmul.f32 %v6428_v27, %v6428_v27  ;;  %vm1656_vm11 = vweird.f32 %v6373_v14  ;;  %vm6568_vm12 = vmor %vm1636_vm7, %vm1637_vm9 }
 0x207   : > { %10330 = vst [vmem:[#allocation43_spill] sm:$0xff] %v6396_v42  ;;  %v10346_v42 = vld [vmem:[#allocation59_spill] sm:$0xff]  ;;  %4258 = vset.pattern.permute.xlu2 %v4598_v31  ;;  %4257 = vset.pattern.permute.xlu1 %v4598_v31  ;;  %vm1657_vm13 = vweird.f32 %v6454_v21  ;;  %vm6601_vm14 = vmor %vm1646_vm8, %vm1647_vm10  ;;  %vm1666_vm2 = vweird.f32 %v6388_v15  ;;  %vm1676_vm3 = vweird.f32 %v6385_v16 }
 0x208   : > { %10333 = vst [vmem:[#allocation24_spill] sm:$0xff] %v6402_v9  ;;  %v1391_v28 = vsub.f32 %v1237_v22, %v10346_v42  ;;  %v6448_v42 = vmul.f32 %v6409_v49, %v6409_v49  ;;  %v6452_v22 = vmul.f32 %v6412_v44, %v6412_v44  ;;  %v6457_v9 = vadd.f32 1e-05, %v1464_v30  ;;  %4259 = vset.pattern.permute.xlu0 %v4598_v31  ;;  %v10355_v30 = vld [vmem:[#allocation27_spill] sm:$0xff]  ;;  %vm1658_vm15 = vmor %vm1656_vm11, %vm1657_vm13 }
 0x209   : > { %10335 = vst [vmem:[#allocation17_spill] sm:$0xff] %v6405_v26  ;;  %v1463_v26 = vmax.f32 %v1386_v43, 0.0  ;;  %v1625_v31 = vmul.f32 %v6318_v57, %v1624_v2 }
 0x20a   : > { %10337 = vst [vmem:[#allocation15_spill] sm:$0xff] %v6409_v49  ;;  %v6463_v49 = vpop.eup %4270  ;;  %v1468_v0 = vmax.f32 %v1391_v28, 0.0  ;;  %v10356_v28 = vld [vmem:[#allocation19_spill] sm:$0xff]  ;;  %4276 = vrsqrt.f32 %v6457_v9 }
 0x20b   : > { %10339 = vst [vmem:[#allocation7_spill] sm:$0xff] %v6412_v44  ;;  %v1641_v44 = vmul.f32 %v6432_v47, %v6357_v58  ;;  %v6472_v43 = vpop.eup %4272  ;;  %v6493_v2 = vadd.f32 1e-05, %v1463_v26  ;;  %v1671_v46 = vmul.f32 %v6463_v49, %v6385_v16  ;;  %vm1677_vm4 = vweird.f32 %v6463_v49 }
 0x20c   : > { %10340 = vst [vmem:[#allocation8_spill] sm:$0xff] %v6415_v13  ;;  %v6500_v13 = vadd.f32 1e-05, %v1468_v0 }
 0x20d   : > { %10342 = vst [vmem:[#allocation10_spill] sm:$0xff] %v6421_v60  ;;  %4278 = vrsqrt.f32 %v6493_v2  ;;  %vm1686_vm10 = vweird.f32 %v6493_v2 }
 0x20e   : > { %10343 = vst [vmem:[#allocation46_spill] sm:$0xff] %v6425_v36  ;;  %v6460_v36 = vpop.xlane.xlu0 %990  ;;  %4280 = vrsqrt.f32 %v6500_v13  ;;  %vm1736_vm8 = vweird.f32 %v6500_v13 }
 0x20f   : > { %10345 = vst [vmem:[#allocation18_spill] sm:$0xff] %v6428_v27  ;;  %v1651_v27 = vmul.f32 %v6454_v21, %v6373_v14 }
 0x210   : > { %10347 = vst [vmem:[#allocation59_spill] sm:$0xff] %v6436_v3 }
 0x211   : > { %10348 = vst [vmem:[#allocation146_spill] sm:$0xff] %v6440_v10  ;;  %v10352_v10 = vld [vmem:[#allocation20_spill] sm:$0xff] }
 0x212   : > { %10349 = vst [vmem:[#allocation147_spill] sm:$0xff] %v6444_v56  ;;  %v1236_v56 = vmul.f32 0.0051020407, %v10352_v10  ;;  %v6478_v10 = vpop.eup %4274 }
 0x213   : > { %10350 = vst [vmem:[#allocation148_spill] sm:$0xff] %v6448_v42  ;;  %v1633_v42 = vmul.f32 0.5, %v1632_v51  ;;  %v10362_v51 = vld [vmem:[#allocation23_spill] sm:$0xff]  ;;  %vm1707_vm1 = vweird.f32 %v6478_v10 }
 0x214   : > { %10351 = vst [vmem:[#allocation149_spill] sm:$0xff] %v6452_v22  ;;  %v1235_v22 = vmul.f32 0.0051020407, %v10355_v30  ;;  %v1615_v30 = vmul.f32 %v6324_v55, %v1614_v59  ;;  %v1390_v3 = vsub.f32 %v1236_v56, %v10357_v20  ;;  %v6503_v59 = vpop.xlane.xlu2 %1010  ;;  %v1701_v56 = vmul.f32 %v6478_v10, %v6398_v35  ;;  %v6518_v20 = vpop.xlane.xlu1 %994 }
 0x215   : > { %10353 = vst [vmem:[#allocation20_spill] sm:$0xff] %v6460_v36  ;;  %v2381_v36 = vld [vmem:[%s6489_s22 + $0x8] sm:$0xff]  ;;  %v1239_v0 = vmul.f32 0.0051020407, %v10362_v51  ;;  %v1634_v52 = vsub.f32 1.5, %v1633_v42  ;;  %v10365_v51 = vld [vmem:[#allocation30_spill] sm:$0xff] }
 0x216   : > { %10354 = vst [vmem:[#allocation150_spill] sm:$0xff] %v6467_v8  ;;  %v1240_v8 = vmul.f32 0.0051020407, %v10356_v28  ;;  %v1642_v28 = vmul.f32 %v6432_v47, %v1641_v44  ;;  %v1389_v23 = vsub.f32 %v1235_v22, %v10358_v41  ;;  %v1661_v44 = vmul.f32 %v6472_v43, %v6388_v15  ;;  %v2380_v22 = vld [vmem:[%s6489_s22] sm:$0xff]  ;;  %v10367_v42 = vld [vmem:[#allocation69_spill] sm:$0xff] }
 0x217   : > { %10359 = vst [vmem:[#allocation27_spill] sm:$0xff] %v6503_v59  ;;  %v1629_v41 = vsel %vm1628_vm5, %v6318_v57, %v1625_v31  ;;  %v1652_v59 = vmul.f32 %v6454_v21, %v1651_v27  ;;  %v1619_v17 = vsel %vm6509_vm6, %v6324_v55, %v1615_v30  ;;  %v1467_v60 = vmax.f32 %v1390_v3, 0.0  ;;  %v6542_v31 = vpop.xlane.xlu0 %1002 }
 0x218   : > { %10363 = vst [vmem:[#allocation19_spill] sm:$0xff] %v6518_v20  ;;  %v1394_v29 = vsub.f32 %v1240_v8, %v5938_v19  ;;  %v6524_v18 = vmul.f32 %v2381_v36, %v1629_v41  ;;  %v1238_v39 = vmul.f32 0.0051020407, %v10365_v51  ;;  %v1466_v57 = vmax.f32 %v1389_v23, 0.0  ;;  %v6536_v36 = vpop.eup %4276 }
 0x219   : > { %v6534_v19 = vmul.f32 %v2380_v22, %v1619_v17  ;;  %v1643_v27 = vmul.f32 0.5, %v1642_v28  ;;  %v1672_v55 = vmul.f32 %v6463_v49, %v1671_v46  ;;  %v1702_v3 = vmul.f32 %v6478_v10, %v1701_v56  ;;  %10368 = vst [vmem:[#allocation23_spill] sm:$0xff] %v6542_v31  ;;  %v10369_v28 = vld [vmem:[#allocation58_spill] sm:$0xff] }
 0x21a   : > { %10364 = vst [vmem:[#allocation50_spill] sm:$0xff] %v6524_v18  ;;  %2772 = vperm.xlu2 %4258, %v6524_v18   ;;  %v1393_v8 = vsub.f32 %v1239_v0, %v10367_v42  ;;  %v1662_v23 = vmul.f32 %v6472_v43, %v1661_v44  ;;  %v1653_v30 = vmul.f32 0.5, %v1652_v59  ;;  %v1471_v17 = vmax.f32 %v1394_v29, 0.0  ;;  %v10370_v22 = vld [vmem:[#allocation22_spill] sm:$0xff]  ;;  %v6558_v59 = vpop.eup %4278 }
 0x21b   : > { %10366 = vst [vmem:[#allocation66_spill] sm:$0xff] %v6534_v19  ;;  %2767 = vperm.xlu1 %4257, %v6534_v19   ;;  %v6547_v26 = vadd.f32 1e-05, %v1467_v60  ;;  %v1392_v41 = vsub.f32 %v1238_v39, %v10369_v28  ;;  %v1243_v46 = vmul.f32 0.0051020407, %v10370_v22  ;;  %v1635_v56 = vmul.f32 %v6392_v45, %v1634_v52  ;;  %v6562_v42 = vpop.eup %4280  ;;  %v10375_v19 = vld [vmem:[#allocation35_spill] sm:$0xff] }
 0x21c   : > { %v1691_v0 = vmul.f32 %v6536_v36, %v6457_v9  ;;  %v6556_v44 = vadd.f32 1e-05, %v1466_v57  ;;  %v1644_v29 = vsub.f32 1.5, %v1643_v27  ;;  %v6560_v60 = vmul.f32 0.5, %v1672_v55  ;;  %v6577_v55 = vpop.xlane.xlu2 %1022  ;;  %v6581_v48 = vpop.xlane.xlu1 %1006 }
 0x21d   : > { %v1703_v39 = vmul.f32 0.5, %v1702_v3  ;;  %v1470_v51 = vmax.f32 %v1393_v8, 0.0  ;;  %v6572_v57 = vmul.f32 0.5, %v1662_v23  ;;  %v1654_v28 = vsub.f32 1.5, %v1653_v30  ;;  %10373 = vst [vmem:[#allocation30_spill] sm:$0xff] %v6577_v55  ;;  %v2382_v30 = vld [vmem:[%s6489_s22 + $0x10] sm:$0xff] }
 0x21e   : > { %v6575_v27 = vadd.f32 1e-05, %v1471_v17  ;;  %4282 = vrsqrt.f32 %v6547_v26  ;;  %v1469_v3 = vmax.f32 %v1392_v41, 0.0  ;;  %v1397_v8 = vsub.f32 %v1243_v46, %v5959_v4  ;;  %10374 = vst [vmem:[#allocation69_spill] sm:$0xff] %v6581_v48  ;;  %v10376_v55 = vld [vmem:[#allocation33_spill] sm:$0xff] }
 0x21f   : > { %v1639_v23 = vsel %vm6568_vm12, %v6392_v45, %v1635_v56  ;;  %v1692_v22 = vmul.f32 %v6536_v36, %v1691_v0  ;;  %v1681_v17 = vmul.f32 %v6558_v59, %v6493_v2  ;;  %4284 = vrsqrt.f32 %v6556_v44  ;;  %v2383_v0 = vld [vmem:[%s6489_s22 + $0x18] sm:$0xff] }
 0x220   : > { %v1242_v41 = vmul.f32 0.0051020407, %v10375_v19  ;;  %v1704_v18 = vsub.f32 1.5, %v1703_v39  ;;  %v1731_v4 = vmul.f32 %v6562_v42, %v6500_v13  ;;  %v6594_v46 = vadd.f32 1e-05, %v1470_v51  ;;  %v2384_v51 = vld [vmem:[%s6489_s22 + $0x20] sm:$0xff] }
 0x221   : > { %v1241_v52 = vmul.f32 0.0051020407, %v10376_v55  ;;  %4286 = vrsqrt.f32 %v6575_v27  ;;  %v6606_v56 = vmul.f32 %v2382_v30, %v1639_v23  ;;  %v1645_v19 = vmul.f32 %v6432_v47, %v1644_v29  ;;  %v6620_v23 = vpop.xlane.xlu0 %1014 }
 0x222   : > { %v1655_v39 = vmul.f32 %v6454_v21, %v1654_v28  ;;  %v1664_v55 = vsub.f32 1.5, %v6572_v57  ;;  %v6618_v58 = vadd.f32 1e-05, %v1469_v3  ;;  %v1474_v31 = vmax.f32 %v1397_v8, 0.0  ;;  %10380 = vst [vmem:[#allocation22_spill] sm:$0xff] %v6620_v23  ;;  %v10381_v28 = vld [vmem:[#allocation64_spill] sm:$0xff] }
 0x223   : > { %10379 = vst [vmem:[#allocation58_spill] sm:$0xff] %v6606_v56  ;;  %v1682_v29 = vmul.f32 %v6558_v59, %v1681_v17  ;;  %v1396_v30 = vsub.f32 %v1242_v41, %v10381_v28  ;;  %2777 = vperm.xlu0 %4259, %v6606_v56   ;;  %v1649_v14 = vsel %vm6601_vm14, %v6432_v47, %v1645_v19  ;;  %v10382_v8 = vld [vmem:[#allocation68_spill] sm:$0xff]  ;;  %v6641_v41 = vmul.f32 0.5, %v1692_v22  ;;  %vm1678_vm14 = vmor %vm1676_vm3, %vm1677_vm4 }
 0x224   : > { %v1659_v57 = vsel %vm1658_vm15, %v6454_v21, %v1655_v39  ;;  %v6630_v48 = vpop.eup %4282  ;;  %v1732_v3 = vmul.f32 %v6562_v42, %v1731_v4  ;;  %v1395_v23 = vsub.f32 %v1241_v52, %v10382_v8  ;;  %v6634_v20 = vmul.f32 %v2383_v0, %v1649_v14  ;;  %v10385_v47 = vld [vmem:[#allocation32_spill] sm:$0xff]  ;;  %v6664_v0 = vpop.xlane.xlu2 %1034 }
 0x225   : > { %v6636_v25 = vmul.f32 %v2384_v51, %v1659_v57  ;;  %v6638_v17 = vpop.eup %4284  ;;  %4288 = vrsqrt.f32 %v6594_v46  ;;  %v1246_v21 = vmul.f32 0.0051020407, %v10385_v47  ;;  %v1705_v45 = vmul.f32 %v6478_v10, %v1704_v18  ;;  %10388 = vst [vmem:[#allocation64_spill] sm:$0xff] %v6664_v0  ;;  %v6669_v14 = vpop.xlane.xlu1 %1018 }
 0x226   : > { %10383 = vst [vmem:[#allocation35_spill] sm:$0xff] %v6634_v20  ;;  %vm1706_vm5 = vweird.f32 %v6398_v35  ;;  %4290 = vrsqrt.f32 %v6618_v58  ;;  %v6649_v4 = vadd.f32 1e-05, %v1474_v31  ;;  %2782 = vperm.xlu2 %4258, %v6634_v20   ;;  %vm1667_vm6 = vweird.f32 %v6472_v43  ;;  %v2389_v31 = vld [vmem:[%s6489_s22 + $0x48] sm:$0xff] }
 0x227   : > { %10384 = vst [vmem:[#allocation33_spill] sm:$0xff] %v6636_v25  ;;  %2787 = vperm.xlu1 %4257, %v6636_v25   ;;  %v6653_v22 = vpop.eup %4286  ;;  %v1674_v52 = vsub.f32 1.5, %v6560_v60  ;;  %vm6659_vm7 = vmor %vm1706_vm5, %vm1707_vm1  ;;  %v1683_v35 = vmul.f32 0.5, %v1682_v29  ;;  %v1473_v19 = vmax.f32 %v1396_v30, 0.0  ;;  %v1721_v39 = vmul.f32 %v6630_v48, %v6547_v26  ;;  %v10394_v25 = vld [vmem:[#allocation73_spill] sm:$0xff] }
 0x228   : > { %v1733_v51 = vmul.f32 0.5, %v1732_v3  ;;  %v1472_v28 = vmax.f32 %v1395_v23, 0.0  ;;  %v1709_v60 = vsel %vm6659_vm7, %v6478_v10, %v1705_v45  ;;  %vm1687_vm9 = vweird.f32 %v6558_v59  ;;  %v2385_v45 = vld [vmem:[%s6489_s22 + $0x28] sm:$0xff]  ;;  %vm6699_vm12 = vmor %vm1666_vm2, %vm1667_vm6 }
 0x229   : > { %v1400_v30 = vsub.f32 %v1246_v21, %v5978_v11  ;;  %v1665_v57 = vmul.f32 %v6472_v43, %v1664_v55  ;;  %v1711_v3 = vmul.f32 %v6638_v17, %v6556_v44  ;;  %v1761_v23 = vmul.f32 %v6653_v22, %v6575_v27  ;;  %v10390_v55 = vld [vmem:[#allocation76_spill] sm:$0xff]  ;;  %vm6775_vm3 = vmor %vm1686_vm10, %vm1687_vm9 }
 0x22a   : > { %4292 = vrsqrt.f32 %v6649_v4  ;;  %v6683_v8 = vmul.f32 %v2389_v31, %v1709_v60  ;;  %v1684_v10 = vsub.f32 1.5, %v1683_v35  ;;  %vm1737_vm11 = vweird.f32 %v6562_v42  ;;  %v10397_v31 = vld [vmem:[#allocation96_spill] sm:$0xff] }
 0x22b   : > { %v6685_v47 = vpop.eup %4288  ;;  %v6689_v11 = vadd.f32 1e-05, %v1473_v19  ;;  %v1245_v21 = vmul.f32 0.0051020407, %v10390_v55  ;;  %v1722_v35 = vmul.f32 %v6630_v48, %v1721_v39  ;;  %v1734_v60 = vsub.f32 1.5, %v1733_v51  ;;  %v10393_v19 = vld [vmem:[#allocation60_spill] sm:$0xff]  ;;  %v6708_v55 = vpop.xlane.xlu0 %1026  ;;  %vm6745_vm1 = vmor %vm1736_vm8, %vm1737_vm11 }
 0x22c   : > { %10389 = vst [vmem:[#allocation68_spill] sm:$0xff] %v6683_v8  ;;  %v6693_v18 = vpop.eup %4290  ;;  %v6704_v29 = vadd.f32 1e-05, %v1472_v28  ;;  %v1244_v20 = vmul.f32 0.0051020407, %v10393_v19  ;;  %2812 = vperm.xlu0 %4259, %v6683_v8   ;;  %vm1697_vm13 = vweird.f32 %v6536_v36  ;;  %v1477_v56 = vmax.f32 %v1400_v30, 0.0 }
 0x22d   : > { %v1249_v15 = vmul.f32 0.0051020407, %v10394_v25  ;;  %v1669_v0 = vsel %vm6699_vm12, %v6472_v43, %v1665_v57  ;;  %v1675_v39 = vmul.f32 %v6463_v49, %v1674_v52  ;;  %v2386_v51 = vld [vmem:[%s6489_s22 + $0x30] sm:$0xff]  ;;  %v1712_v28 = vmul.f32 %v6638_v17, %v1711_v3  ;;  %v10396_v52 = vld [vmem:[#allocation83_spill] sm:$0xff]  ;;  %v6761_v13 = vpop.xlane.xlu1 %1030 }
 0x22e   : > { %v1751_v19 = vmul.f32 %v6685_v47, %v6594_v46  ;;  %v1762_v30 = vmul.f32 %v6653_v22, %v1761_v23  ;;  %v6725_v25 = vmul.f32 %v2385_v45, %v1669_v0  ;;  %vm1696_vm15 = vweird.f32 %v6457_v9 }
 0x22f   : > { %v1741_v43 = vmul.f32 %v6693_v18, %v6618_v58  ;;  %4294 = vrsqrt.f32 %v6689_v11  ;;  %v1399_v16 = vsub.f32 %v1245_v21, %v10396_v52  ;;  %v1679_v57 = vsel %vm1678_vm14, %v6463_v49, %v1675_v39  ;;  %v2387_v21 = vld [vmem:[%s6489_s22 + $0x38] sm:$0xff]  ;;  %vm1698_vm9 = vmor %vm1696_vm15, %vm1697_vm13 }
 0x230   : > { %10395 = vst [vmem:[#allocation32_spill] sm:$0xff] %v6725_v25  ;;  %v6733_v3 = vpop.eup %4292  ;;  %v1398_v8 = vsub.f32 %v1244_v20, %v10397_v31  ;;  %v1248_v23 = vmul.f32 0.0051020407, %v6059_v1  ;;  %2792 = vperm.xlu2 %4258, %v6725_v25   ;;  %v6738_v0 = vmul.f32 %v2386_v51, %v1679_v57  ;;  %v1735_v45 = vmul.f32 %v6562_v42, %v1734_v60  ;;  %v2392_v20 = vld [vmem:[%s6489_s22 + $0x60] sm:$0xff]  ;;  %v6755_v51 = vpop.xlane.xlu2 %1046 }
 0x231   : > { %4296 = vrsqrt.f32 %v6704_v29  ;;  %v6750_v49 = vadd.f32 1e-05, %v1477_v56  ;;  %v1403_v1 = vsub.f32 %v1249_v15, %v5995_v50  ;;  %v1685_v39 = vmul.f32 %v6558_v59, %v1684_v10  ;;  %v10403_v57 = vld [vmem:[#allocation86_spill] sm:$0xff] }
 0x232   : > { %10398 = vst [vmem:[#allocation76_spill] sm:$0xff] %v6738_v0  ;;  %v6757_v60 = vmul.f32 0.5, %v1722_v35  ;;  %v1763_v52 = vmul.f32 0.5, %v1762_v30  ;;  %vm1766_vm2 = vweird.f32 %v6575_v27  ;;  %2797 = vperm.xlu1 %4257, %v6738_v0   ;;  %v1739_v56 = vsel %vm6745_vm1, %v6562_v42, %v1735_v45  ;;  %v2397_v0 = vld [vmem:[%s6489_s22 + $0x88] sm:$0xff] }
 0x233   : > { %v6766_v50 = vmul.f32 0.5, %v1712_v28  ;;  %v1752_v10 = vmul.f32 %v6685_v47, %v1751_v19  ;;  %v1791_v35 = vmul.f32 %v6733_v3, %v6649_v4  ;;  %v1476_v15 = vmax.f32 %v1399_v16, 0.0 }
 0x234   : > { %vm1727_vm4 = vweird.f32 %v6630_v48  ;;  %v1742_v42 = vmul.f32 %v6693_v18, %v1741_v43  ;;  %v1475_v28 = vmax.f32 %v1398_v8, 0.0  ;;  %v1402_v31 = vsub.f32 %v1248_v23, %v10403_v57 }
 0x235   : > { %v6782_v19 = vmul.f32 %v2392_v20, %v1739_v56  ;;  %v6784_v45 = vpop.eup %4294  ;;  %vm1717_vm5 = vweird.f32 %v6638_v17  ;;  %4298 = vrsqrt.f32 %v6750_v49  ;;  %v1480_v2 = vmax.f32 %v1403_v1, 0.0  ;;  %v6800_v1 = vpop.xlane.xlu0 %1038 }
 0x236   : > { %v1689_v16 = vsel %vm6775_vm3, %v6558_v59, %v1685_v39  ;;  %v10405_v43 = vsub.f32 1.5, %v6641_v41  ;;  %v1724_v23 = vsub.f32 1.5, %v6757_v60  ;;  %vm1726_vm6 = vweird.f32 %v6547_v26  ;;  %v6853_v27 = vpop.xlane.xlu1 %1042 }
 0x237   : > { %10404 = vst [vmem:[#allocation60_spill] sm:$0xff] %v6782_v19  ;;  %v1764_v20 = vsub.f32 1.5, %v1763_v52  ;;  %vm1767_vm7 = vweird.f32 %v6653_v22  ;;  %v1247_v56 = vmul.f32 0.0051020407, %v5983_v7  ;;  %2827 = vperm.xlu0 %4259, %v6782_v19   ;;  %v6802_v59 = vpop.eup %4296  ;;  %v1714_v39 = vsub.f32 1.5, %v6766_v50  ;;  %v2388_v52 = vld [vmem:[%s6489_s22 + $0x40] sm:$0xff]  ;;  %vm6870_vm14 = vmor %vm1726_vm6, %vm1727_vm4 }
 0x238   : > { %v1695_v8 = vmul.f32 %v6536_v36, %v10405_v43  ;;  %vm1716_vm8 = vweird.f32 %v6556_v44  ;;  %v6806_v41 = vmul.f32 0.5, %v1752_v10  ;;  %v1792_v60 = vmul.f32 %v6733_v3, %v1791_v35  ;;  %vm1768_vm10 = vmor %vm1766_vm2, %vm1767_vm7 }
 0x239   : > { %v6809_v30 = vadd.f32 1e-05, %v1476_v15  ;;  %v6816_v7 = vadd.f32 1e-05, %v1475_v28  ;;  %v1479_v57 = vmax.f32 %v1402_v31, 0.0  ;;  %v6819_v43 = vmul.f32 %v2387_v21, %v1689_v16  ;;  %v6845_v21 = vpop.xlane.xlu2 %1058  ;;  %vm6883_vm15 = vmor %vm1716_vm8, %vm1717_vm5 }
 0x23a   : > { %v1252_v50 = vmul.f32 0.0051020407, %v6046_v40  ;;  %v6821_v10 = vmul.f32 0.5, %v1742_v42  ;;  %v1781_v35 = vmul.f32 %v6784_v45, %v6689_v11  ;;  %v6825_v15 = vadd.f32 1e-05, %v1480_v2  ;;  %v2395_v42 = vld [vmem:[%s6489_s22 + $0x78] sm:$0xff] }
 0x23b   : > { %10406 = vst [vmem:[#allocation73_spill] sm:$0xff] %v6819_v43  ;;  %v1699_v19 = vsel %vm1698_vm9, %v6536_v36, %v1695_v8  ;;  %v1771_v9 = vmul.f32 %v6802_v59, %v6704_v29  ;;  %v1401_v28 = vsub.f32 %v1247_v56, %v5974_v53  ;;  %2802 = vperm.xlu2 %4258, %v6819_v43   ;;  %v6836_v16 = vpop.eup %4298  ;;  %v1793_v36 = vmul.f32 0.5, %v1792_v60 }
 0x23c   : > { %v6832_v31 = vmul.f32 %v2388_v52, %v1699_v19  ;;  %v1765_v40 = vmul.f32 %v6653_v22, %v1764_v20  ;;  %4300 = vrsqrt.f32 %v6809_v30  ;;  %v1251_v2 = vmul.f32 0.0051020407, %v6166_v61 }
 0x23d   : > { %v1250_v53 = vmul.f32 0.0051020407, %v6109_v34  ;;  %vm1747_vm11 = vweird.f32 %v6693_v18  ;;  %4302 = vrsqrt.f32 %v6816_v7  ;;  %v6849_v19 = vadd.f32 1e-05, %v1479_v57 }
 0x23e   : > { %10407 = vst [vmem:[#allocation83_spill] sm:$0xff] %v6832_v31  ;;  %v1406_v8 = vsub.f32 %v1252_v50, %v6024_v6  ;;  %2807 = vperm.xlu1 %4257, %v6832_v31   ;;  %v1769_v20 = vsel %vm1768_vm10, %v6653_v22, %v1765_v40  ;;  %4304 = vrsqrt.f32 %v6825_v15  ;;  %v1715_v34 = vmul.f32 %v6638_v17, %v1714_v39  ;;  %v2396_v31 = vld [vmem:[%s6489_s22 + $0x80] sm:$0xff] }
 0x23f   : > { %v6857_v61 = vmul.f32 %v2395_v42, %v1769_v20  ;;  %v1725_v56 = vmul.f32 %v6630_v48, %v1724_v23  ;;  %vm1746_vm12 = vweird.f32 %v6618_v58  ;;  %v1782_v60 = vmul.f32 %v6784_v45, %v1781_v35  ;;  %v6892_v35 = vpop.xlane.xlu0 %1050  ;;  %v2391_v42 = vld [vmem:[%s6489_s22 + $0x58] sm:$0xff] }
 0x240   : > { %vm1796_vm13 = vweird.f32 %v6649_v4  ;;  %v1821_v6 = vmul.f32 %v6836_v16, %v6750_v49  ;;  %v1478_v52 = vmax.f32 %v1401_v28, 0.0  ;;  %v1754_v23 = vsub.f32 1.5, %v6806_v41  ;;  %vm6953_vm6 = vmor %vm1746_vm12, %vm1747_vm11 }
 0x241   : > { %10408 = vst [vmem:[#allocation96_spill] sm:$0xff] %v6857_v61  ;;  %v1405_v39 = vsub.f32 %v1251_v2, %v5987_v54  ;;  %v1404_v57 = vsub.f32 %v1250_v53, %v5991_v24  ;;  %v1254_v50 = vmul.f32 0.0051020407, %v6260_v5  ;;  %2842 = vperm.xlu0 %4259, %v6857_v61   ;;  %vm1757_vm1 = vweird.f32 %v6685_v47  ;;  %v2390_v5 = vld [vmem:[%s6489_s22 + $0x50] sm:$0xff] }
 0x242   : > { %v1744_v41 = vsub.f32 1.5, %v6821_v10  ;;  %vm1797_vm2 = vweird.f32 %v6733_v3  ;;  %v1772_v54 = vmul.f32 %v6802_v59, %v1771_v9  ;;  %v1483_v24 = vmax.f32 %v1406_v8, 0.0  ;;  %v6894_v28 = vpop.eup %4300 }
 0x243   : > { %v1794_v40 = vsub.f32 1.5, %v1793_v36  ;;  %4306 = vrsqrt.f32 %v6849_v19  ;;  %v1719_v44 = vsel %vm6883_vm15, %v6638_v17, %v1715_v34  ;;  %v1729_v10 = vsel %vm6870_vm14, %v6630_v48, %v1725_v56  ;;  %v6904_v2 = vpop.eup %4302  ;;  %vm1798_vm5 = vmor %vm1796_vm13, %vm1797_vm2 }
 0x244   : > { %vm1756_vm3 = vweird.f32 %v6594_v46  ;;  %v6907_v9 = vmul.f32 0.5, %v1782_v60  ;;  %v1822_v53 = vmul.f32 %v6836_v16, %v1821_v6  ;;  %v6910_v36 = vadd.f32 1e-05, %v1478_v52  ;;  %v6913_v20 = vpop.eup %4304 }
 0x245   : > { %v1255_v8 = vmul.f32 0.0051020407, %v6154_v37  ;;  %v1482_v17 = vmax.f32 %v1405_v39, 0.0  ;;  %v1481_v34 = vmax.f32 %v1404_v57, 0.0  ;;  %v1408_v48 = vsub.f32 %v1254_v50, %v6002_v63  ;;  %v2398_v39 = vld [vmem:[%s6489_s22 + $0x90] sm:$0xff]  ;;  %v6934_v50 = vpop.xlane.xlu2 %1070  ;;  %vm6986_vm10 = vmor %vm1756_vm3, %vm1757_vm1 }
 0x246   : > { %v6916_v56 = vmul.f32 %v2390_v5, %v1719_v44  ;;  %v6918_v22 = vmul.f32 0.5, %v1772_v54  ;;  %v1811_v60 = vmul.f32 %v6894_v28, %v6809_v30  ;;  %v6922_v26 = vadd.f32 1e-05, %v1483_v24  ;;  %v6945_v5 = vpop.xlane.xlu1 %1054 }
 0x247   : > { %v6924_v6 = vmul.f32 %v2391_v42, %v1729_v10  ;;  %vm1787_vm4 = vweird.f32 %v6784_v45  ;;  %v1801_v37 = vmul.f32 %v6904_v2, %v6816_v7  ;;  %v1253_v52 = vmul.f32 0.0051020407, %v6210_v38 }
 0x248   : > { %10413 = vst [vmem:[#allocation86_spill] sm:$0xff] %v6916_v56  ;;  %2817 = vperm.xlu2 %4258, %v6916_v56   ;;  %v1795_v63 = vmul.f32 %v6733_v3, %v1794_v40  ;;  %v1745_v57 = vmul.f32 %v6693_v18, %v1744_v41  ;;  %v1823_v54 = vmul.f32 0.5, %v1822_v53  ;;  %v1851_v24 = vmul.f32 %v6913_v20, %v6825_v15  ;;  %v2393_v53 = vld [vmem:[%s6489_s22 + $0x68] sm:$0xff] }
 0x249   : > { %10414 = vst [vmem:[#allocation151_spill] sm:$0xff] %v6924_v6  ;;  %4308 = vrsqrt.f32 %v6910_v36  ;;  %v1409_v38 = vsub.f32 %v1255_v8, %v6054_v62  ;;  %2822 = vperm.xlu1 %4257, %v6924_v6   ;;  %v6947_v41 = vpop.eup %4306  ;;  %vm1786_vm7 = vweird.f32 %v6689_v11  ;;  %v6958_v40 = vadd.f32 1e-05, %v1482_v17 }
 0x24a   : > { %v6960_v44 = vadd.f32 1e-05, %v1481_v34  ;;  %v1485_v62 = vmax.f32 %v1408_v48, 0.0  ;;  %v1799_v10 = vsel %vm1798_vm5, %v6733_v3, %v1795_v63  ;;  %4310 = vrsqrt.f32 %v6922_v26  ;;  %vm7030_vm14 = vmor %vm1786_vm7, %vm1787_vm4 }
 0x24b   : > { %v6964_v42 = vmul.f32 %v2398_v39, %v1799_v10  ;;  %v1749_v58 = vsel %vm6953_vm6, %v6693_v18, %v1745_v57  ;;  %v1755_v8 = vmul.f32 %v6685_v47, %v1754_v23  ;;  %v1784_v61 = vsub.f32 1.5, %v6907_v9  ;;  %v6980_v23 = vpop.xlane.xlu0 %1062 }
 0x24c   : > { %vm1776_vm8 = vweird.f32 %v6704_v29  ;;  %vm1777_vm9 = vweird.f32 %v6802_v59  ;;  %v1812_v3 = vmul.f32 %v6894_v28, %v1811_v60  ;;  %v1407_v17 = vsub.f32 %v1253_v52, %v6013_v33  ;;  %v2394_v52 = vld [vmem:[%s6489_s22 + $0x70] sm:$0xff] }
 0x24d   : > { %10417 = vst [vmem:[#allocation152_spill] sm:$0xff] %v6964_v42  ;;  %v1824_v34 = vsub.f32 1.5, %v1823_v54  ;;  %v1802_v48 = vmul.f32 %v6904_v2, %v1801_v37  ;;  %v1841_v18 = vmul.f32 %v6947_v41, %v6849_v19  ;;  %v1486_v63 = vmax.f32 %v1409_v38, 0.0  ;;  %2857 = vperm.xlu0 %4259, %v6964_v42   ;;  %vm7061_vm2 = vmor %vm1776_vm8, %vm1777_vm9 }
 0x24e   : > { %4312 = vrsqrt.f32 %v6958_v40  ;;  %v6991_v33 = vadd.f32 1e-05, %v1485_v62  ;;  %v1257_v60 = vmul.f32 0.0051020407, %v6347_v32  ;;  %v6994_v37 = vmul.f32 %v2393_v53, %v1749_v58 }
 0x24f   : > { %v6997_v39 = vpop.eup %4308  ;;  %v1774_v57 = vsub.f32 1.5, %v6918_v22  ;;  %v1852_v54 = vmul.f32 %v6913_v20, %v1851_v24  ;;  %4314 = vrsqrt.f32 %v6960_v44  ;;  %v1759_v46 = vsel %vm6986_vm10, %v6685_v47, %v1755_v8  ;;  %v7024_v8 = vpop.xlane.xlu2 %1082 }
 0x250   : > { %10420 = vst [vmem:[#allocation153_spill] sm:$0xff] %v6994_v37  ;;  %vm1826_vm11 = vweird.f32 %v6750_v49  ;;  %vm1827_vm12 = vweird.f32 %v6836_v16  ;;  %v1484_v32 = vmax.f32 %v1407_v17, 0.0  ;;  %v1258_v38 = vmul.f32 0.0051020407, %v6253_v12  ;;  %2832 = vperm.xlu2 %4258, %v6994_v37   ;;  %v7009_v4 = vpop.eup %4310  ;;  %v10422_v12 = vld [vmem:[#allocation61_spill] sm:$0xff] }
 0x251   : > { %v7011_v22 = vmul.f32 0.5, %v1812_v3  ;;  %v7013_v24 = vmul.f32 0.5, %v1802_v48  ;;  %v7015_v62 = vadd.f32 1e-05, %v1486_v63  ;;  %v7017_v10 = vmul.f32 %v2394_v52, %v1759_v46  ;;  %10423 = vst [vmem:[#allocation61_spill] sm:$0xff] %v7024_v8  ;;  %v2401_v63 = vld [vmem:[%s6489_s22 + $0xa8] sm:$0xff]  ;;  %vm1828_vm15 = vmor %vm1826_vm11, %vm1827_vm12 }
 0x252   : > { %vm1807_vm13 = vweird.f32 %v6904_v2  ;;  %v1842_v47 = vmul.f32 %v6947_v41, %v1841_v18  ;;  %4316 = vrsqrt.f32 %v6991_v33  ;;  %v1411_v58 = vsub.f32 %v1257_v60, %v10422_v12  ;;  %v7037_v18 = vpop.xlane.xlu1 %1066  ;;  %v10427_v46 = vld [vmem:[#allocation11_spill] sm:$0xff] }
 0x253   : > { %10421 = vst [vmem:[#allocation154_spill] sm:$0xff] %v7017_v10  ;;  %v1825_v53 = vmul.f32 %v6836_v16, %v1824_v34  ;;  %v1853_v17 = vmul.f32 0.5, %v1852_v54  ;;  %v1831_v48 = vmul.f32 %v6997_v39, %v6910_v36  ;;  %2837 = vperm.xlu1 %4257, %v7017_v10   ;;  %v1775_v34 = vmul.f32 %v6802_v59, %v1774_v57  ;;  %v10426_v54 = vld [vmem:[#allocation81_spill] sm:$0xff]  ;;  %v10431_v10 = vld [vmem:[#allocation3_spill] sm:$0xff] }
 0x254   : > { %v1785_v9 = vmul.f32 %v6784_v45, %v1784_v61  ;;  %v7042_v60 = vpop.eup %4312  ;;  %vm1806_vm1 = vweird.f32 %v6816_v7  ;;  %v1881_v11 = vmul.f32 %v7009_v4, %v6922_v26  ;;  %v7051_v52 = vadd.f32 1e-05, %v1484_v32  ;;  %v10430_v32 = vld [vmem:[#allocation10_spill] sm:$0xff] }
 0x255   : > { %v1412_v57 = vsub.f32 %v1258_v38, %v10426_v54  ;;  %v1256_v61 = vmul.f32 0.0051020407, %v10427_v46  ;;  %v7055_v12 = vpop.eup %4314  ;;  %vm1856_vm3 = vweird.f32 %v6825_v15  ;;  %4318 = vrsqrt.f32 %v7015_v62  ;;  %vm7127_vm7 = vmor %vm1806_vm1, %vm1807_vm13 }
 0x256   : > { %v1260_v42 = vmul.f32 0.0051020407, %v10430_v32  ;;  %v1261_v38 = vmul.f32 0.0051020407, %v10431_v10  ;;  %v1829_v54 = vsel %vm1828_vm15, %v6836_v16, %v1825_v53  ;;  %v1488_v46 = vmax.f32 %v1411_v58, 0.0  ;;  %v7084_v58 = vpop.xlane.xlu0 %1074 }
 0x257   : > { %v7070_v6 = vmul.f32 %v2401_v63, %v1829_v54  ;;  %v1779_v29 = vsel %vm7061_vm2, %v6802_v59, %v1775_v34  ;;  %v1789_v37 = vsel %vm7030_vm14, %v6784_v45, %v1785_v9  ;;  %v1804_v25 = vsub.f32 1.5, %v7013_v24  ;;  %10433 = vst [vmem:[#allocation11_spill] sm:$0xff] %v7084_v58  ;;  %v10434_v45 = vld [vmem:[#allocation71_spill] sm:$0xff] }
 0x258   : > { %v7081_v32 = vmul.f32 0.5, %v1842_v47  ;;  %v1854_v10 = vsub.f32 1.5, %v1853_v17  ;;  %v1832_v16 = vmul.f32 %v6997_v39, %v1831_v48  ;;  %v7086_v53 = vpop.eup %4316  ;;  %v1871_v59 = vmul.f32 %v7042_v60, %v6958_v40  ;;  %v10435_v24 = vld [vmem:[#allocation79_spill] sm:$0xff] }
 0x259   : > { %10432 = vst [vmem:[#allocation81_spill] sm:$0xff] %v7070_v6  ;;  %v1861_v63 = vmul.f32 %v7055_v12, %v6960_v44  ;;  %v1489_v3 = vmax.f32 %v1412_v57, 0.0  ;;  %v1410_v34 = vsub.f32 %v1256_v61, %v10434_v45  ;;  %2872 = vperm.xlu0 %4259, %v7070_v6   ;;  %vm1817_vm4 = vweird.f32 %v6894_v28  ;;  %v10438_v57 = vld [vmem:[#allocation100_spill] sm:$0xff]  ;;  %v2399_v6 = vld [vmem:[%s6489_s22 + $0x98] sm:$0xff] }
 0x25a   : > { %4320 = vrsqrt.f32 %v7051_v52  ;;  %v1414_v47 = vsub.f32 %v1260_v42, %v10435_v24  ;;  %v7097_v17 = vmul.f32 %v2396_v31, %v1779_v29  ;;  %v7099_v48 = vmul.f32 %v2397_v0, %v1789_v37  ;;  %v7133_v24 = vpop.xlane.xlu1 %1078 }
 0x25b   : > { %v1814_v9 = vsub.f32 1.5, %v7011_v22  ;;  %v1882_v49 = vmul.f32 %v7009_v4, %v1881_v11  ;;  %v7103_v54 = vadd.f32 1e-05, %v1488_v46  ;;  %v1415_v61 = vsub.f32 %v1261_v38, %v10438_v57  ;;  %v7106_v45 = vpop.eup %4318  ;;  %v10439_v22 = vld [vmem:[#allocation145_spill] sm:$0xff]  ;;  %v7121_v46 = vpop.xlane.xlu2 %1094  ;;  %10443 = vst [vmem:[#allocation79_spill] sm:$0xff] %v7133_v24  ;;  %v2404_v57 = vld [vmem:[%s6489_s22 + $0xc0] sm:$0xff] }
 0x25c   : > { %10436 = vst [vmem:[#allocation10_spill] sm:$0xff] %v7097_v17  ;;  %vm1816_vm5 = vweird.f32 %v6809_v30  ;;  %vm1857_vm6 = vweird.f32 %v6913_v20  ;;  %v7111_v31 = vmul.f32 0.5, %v1832_v16  ;;  %v1901_v0 = vmul.f32 %v7086_v53, %v6991_v33  ;;  %2847 = vperm.xlu2 %4258, %v7097_v17   ;;  %2852 = vperm.xlu1 %4257, %v7099_v48  }
 0x25d   : > { %10437 = vst [vmem:[#allocation3_spill] sm:$0xff] %v7099_v48  ;;  %v7117_v42 = vadd.f32 1e-05, %v1489_v3  ;;  %v1487_v37 = vmax.f32 %v1410_v34, 0.0  ;;  %v1259_v11 = vmul.f32 0.0051020407, %v10439_v22  ;;  %v1855_v38 = vmul.f32 %v6913_v20, %v1854_v10  ;;  %vm7141_vm8 = vmor %vm1856_vm3, %vm1857_vm6 }
 0x25e   : > { %10440 = vst [vmem:[#allocation71_spill] sm:$0xff] %v7121_v46  ;;  %v1872_v16 = vmul.f32 %v7042_v60, %v1871_v59  ;;  %v1862_v3 = vmul.f32 %v7055_v12, %v1861_v63  ;;  %v1491_v34 = vmax.f32 %v1414_v47, 0.0  ;;  %v1805_v10 = vmul.f32 %v6904_v2, %v1804_v25  ;;  %v10446_v63 = vld [vmem:[#allocation19_spill] sm:$0xff]  ;;  %v10449_v46 = vld [vmem:[#allocation8_spill] sm:$0xff]  ;;  %vm1818_vm13 = vmor %vm1816_vm5, %vm1817_vm4 }
 0x25f   : > { %vm1837_vm9 = vweird.f32 %v6997_v39  ;;  %v1883_v22 = vmul.f32 0.5, %v1882_v49  ;;  %4322 = vrsqrt.f32 %v7103_v54  ;;  %v1492_v59 = vmax.f32 %v1415_v61, 0.0 }
 0x260   : > { %v1263_v47 = vmul.f32 0.0051020407, %v10446_v63  ;;  %v7149_v48 = vpop.eup %4320  ;;  %vm1886_vm10 = vweird.f32 %v6922_v26  ;;  %v1902_v25 = vmul.f32 %v7086_v53, %v1901_v0  ;;  %v1911_v15 = vmul.f32 %v7106_v45, %v7015_v62  ;;  %v10447_v63 = vld [vmem:[#allocation80_spill] sm:$0xff] }
 0x261   : > { %v1859_v17 = vsel %vm7141_vm8, %v6913_v20, %v1855_v38  ;;  %v1809_v49 = vsel %vm7127_vm7, %v6904_v2, %v1805_v10  ;;  %vm1836_vm11 = vweird.f32 %v6910_v36  ;;  %4324 = vrsqrt.f32 %v7117_v42  ;;  %v7174_v2 = vpop.xlane.xlu0 %1086 }
 0x262   : > { %v7163_v61 = vadd.f32 1e-05, %v1487_v37  ;;  %v1413_v56 = vsub.f32 %v1259_v11, %v10447_v63  ;;  %v7166_v0 = vmul.f32 %v2404_v57, %v1859_v17  ;;  %v7168_v43 = vadd.f32 1e-05, %v1491_v34  ;;  %10451 = vst [vmem:[#allocation19_spill] sm:$0xff] %v7174_v2  ;;  %v10452_v17 = vld [vmem:[#allocation97_spill] sm:$0xff]  ;;  %vm7239_vm2 = vmor %vm1836_vm11, %vm1837_vm9 }
 0x263   : > { %v1264_v7 = vmul.f32 0.0051020407, %v10449_v46  ;;  %v7171_v20 = vmul.f32 %v2399_v6, %v1809_v49  ;;  %v1815_v38 = vmul.f32 %v6894_v28, %v1814_v9  ;;  %v1834_v29 = vsub.f32 1.5, %v7111_v31  ;;  %v10453_v6 = vld [vmem:[#allocation20_spill] sm:$0xff]  ;;  %v2400_v57 = vld [vmem:[%s6489_s22 + $0xa0] sm:$0xff]  ;;  %v10454_v49 = vld [vmem:[#allocation105_spill] sm:$0xff] }
 0x264   : > { %10448 = vst [vmem:[#allocation100_spill] sm:$0xff] %v7166_v0  ;;  %v1891_v37 = vmul.f32 %v7149_v48, %v7051_v52  ;;  %v7179_v10 = vadd.f32 1e-05, %v1492_v59  ;;  %v1417_v11 = vsub.f32 %v1263_v47, %v10452_v17  ;;  %2887 = vperm.xlu0 %4259, %v7166_v0   ;;  %v7183_v34 = vmul.f32 0.5, %v1872_v16 }
 0x265   : > { %10450 = vst [vmem:[#allocation145_spill] sm:$0xff] %v7171_v20  ;;  %v1884_v46 = vsub.f32 1.5, %v1883_v22  ;;  %vm1887_vm12 = vweird.f32 %v7009_v4  ;;  %v1262_v9 = vmul.f32 0.0051020407, %v10453_v6  ;;  %2862 = vperm.xlu2 %4258, %v7171_v20   ;;  %v7189_v31 = vpop.eup %4322  ;;  %vm1847_vm14 = vweird.f32 %v6947_v41 }
 0x266   : > { %v7196_v59 = vmul.f32 0.5, %v1862_v3  ;;  %v1912_v16 = vmul.f32 %v7106_v45, %v1911_v15  ;;  %4326 = vrsqrt.f32 %v7163_v61  ;;  %v1490_v22 = vmax.f32 %v1413_v56, 0.0  ;;  %v7212_v56 = vpop.xlane.xlu2 %1106  ;;  %vm7226_vm1 = vmor %vm1886_vm10, %vm1887_vm12 }
 0x267   : > { %v7200_v47 = vmul.f32 0.5, %v1902_v25  ;;  %4328 = vrsqrt.f32 %v7168_v43  ;;  %v1418_v63 = vsub.f32 %v1264_v7, %v10454_v49  ;;  %v1819_v17 = vsel %vm1818_vm13, %v6894_v28, %v1815_v38  ;;  %v7205_v6 = vpop.eup %4324  ;;  %10456 = vst [vmem:[#allocation8_spill] sm:$0xff] %v7212_v56  ;;  %v10457_v7 = vld [vmem:[#allocation102_spill] sm:$0xff]  ;;  %v7217_v28 = vpop.xlane.xlu1 %1090 }
 0x268   : > { %vm1846_vm15 = vweird.f32 %v6849_v19  ;;  %v1892_v30 = vmul.f32 %v7149_v48, %v1891_v37  ;;  %4330 = vrsqrt.f32 %v7179_v10  ;;  %v1494_v3 = vmax.f32 %v1417_v11, 0.0  ;;  %10458 = vst [vmem:[#allocation97_spill] sm:$0xff] %v7217_v28  ;;  %v2403_v28 = vld [vmem:[%s6489_s22 + $0xb8] sm:$0xff]  ;;  %v10472_v19 = vld [vmem:[#allocation30_spill] sm:$0xff] }
 0x269   : > { %v7210_v15 = vmul.f32 %v2400_v57, %v1819_v17  ;;  %v1931_v25 = vmul.f32 %v7189_v31, %v7103_v54  ;;  %v1416_v49 = vsub.f32 %v1262_v9, %v10457_v7  ;;  %v1885_v38 = vmul.f32 %v7009_v4, %v1884_v46  ;;  %v2407_v46 = vld [vmem:[%s6489_s22 + $0xd8] sm:$0xff]  ;;  %vm1848_vm8 = vmor %vm1846_vm15, %vm1847_vm14 }
 0x26a   : > { %v1835_v0 = vmul.f32 %v6997_v39, %v1834_v29  ;;  %v1913_v17 = vmul.f32 0.5, %v1912_v16  ;;  %v7231_v9 = vadd.f32 1e-05, %v1490_v22  ;;  %vm1917_vm3 = vweird.f32 %v7106_v45  ;;  %v10463_v7 = vld [vmem:[#allocation69_spill] sm:$0xff] }
 0x26b   : > { %10455 = vst [vmem:[#allocation80_spill] sm:$0xff] %v7210_v15  ;;  %2867 = vperm.xlu1 %4257, %v7210_v15   ;;  %v1495_v26 = vmax.f32 %v1418_v63, 0.0  ;;  %v1266_v37 = vmul.f32 0.0051020407, %v10463_v7  ;;  %v1889_v16 = vsel %vm7226_vm1, %v7009_v4, %v1885_v38  ;;  %vm1867_vm4 = vweird.f32 %v7055_v12  ;;  %v2402_v7 = vld [vmem:[%s6489_s22 + $0xb0] sm:$0xff] }
 0x26c   : > { %v7248_v22 = vpop.eup %4326  ;;  %vm1916_vm5 = vweird.f32 %v7015_v62  ;;  %v7252_v36 = vmul.f32 0.5, %v1892_v30  ;;  %v1941_v57 = vmul.f32 %v7205_v6, %v7117_v42  ;;  %v7256_v15 = vadd.f32 1e-05, %v1494_v3  ;;  %v7268_v30 = vpop.xlane.xlu0 %1098 }
 0x26d   : > { %v1839_v63 = vsel %vm7239_vm2, %v6997_v39, %v1835_v0  ;;  %v7262_v11 = vpop.eup %4328  ;;  %v1932_v38 = vmul.f32 %v7189_v31, %v1931_v25  ;;  %v1493_v20 = vmax.f32 %v1416_v49, 0.0  ;;  %v7266_v2 = vmul.f32 %v2407_v46, %v1889_v16  ;;  %10465 = vst [vmem:[#allocation105_spill] sm:$0xff] %v7268_v30  ;;  %v10466_v39 = vld [vmem:[#allocation27_spill] sm:$0xff]  ;;  %v10468_v46 = vld [vmem:[#allocation98_spill] sm:$0xff]  ;;  %vm7331_vm11 = vmor %vm1916_vm5, %vm1917_vm3 }
 0x26e   : > { %v7270_v56 = vpop.eup %4330  ;;  %vm1866_vm6 = vweird.f32 %v6960_v44  ;;  %v1914_v3 = vsub.f32 1.5, %v1913_v17  ;;  %4332 = vrsqrt.f32 %v7231_v9  ;;  %v1267_v0 = vmul.f32 0.0051020407, %v10466_v39 }
 0x26f   : > { %10464 = vst [vmem:[#allocation20_spill] sm:$0xff] %v7266_v2  ;;  %v10467_v29 = vsub.f32 1.5, %v7081_v32  ;;  %vm1877_vm7 = vweird.f32 %v7042_v60  ;;  %v1921_v25 = vmul.f32 %v7248_v22, %v7163_v61  ;;  %v7281_v49 = vadd.f32 1e-05, %v1495_v26  ;;  %2902 = vperm.xlu0 %4259, %v7266_v2   ;;  %v10470_v32 = vld [vmem:[#allocation23_spill] sm:$0xff]  ;;  %vm7355_vm14 = vmor %vm1866_vm6, %vm1867_vm4 }
 0x270   : > { %v1420_v16 = vsub.f32 %v1266_v37, %v10468_v46  ;;  %v7285_v17 = vmul.f32 %v2402_v7, %v1839_v63  ;;  %v1942_v39 = vmul.f32 %v7205_v6, %v1941_v57  ;;  %4334 = vrsqrt.f32 %v7256_v15  ;;  %v10471_v46 = vld [vmem:[#allocation111_spill] sm:$0xff] }
 0x271   : > { %v1845_v4 = vmul.f32 %v6947_v41, %v10467_v29  ;;  %v1265_v29 = vmul.f32 0.0051020407, %v10470_v32  ;;  %vm1876_vm9 = vweird.f32 %v6958_v40  ;;  %v7297_v37 = vmul.f32 0.5, %v1932_v38  ;;  %v7310_v38 = vpop.xlane.xlu2 %1118 }
 0x272   : > { %10469 = vst [vmem:[#allocation102_spill] sm:$0xff] %v7285_v17  ;;  %v1971_v26 = vmul.f32 %v7270_v56, %v7179_v10  ;;  %v7301_v63 = vadd.f32 1e-05, %v1493_v20  ;;  %v1269_v57 = vmul.f32 0.0051020407, %v6669_v14  ;;  %2877 = vperm.xlu2 %4258, %v7285_v17   ;;  %v1961_v7 = vmul.f32 %v7262_v11, %v7168_v43  ;;  %v7316_v17 = vpop.xlane.xlu1 %1102  ;;  %vm7391_vm3 = vmor %vm1876_vm9, %vm1877_vm7 }
 0x273   : > { %v1421_v32 = vsub.f32 %v1267_v0, %v10471_v46  ;;  %v1270_v30 = vmul.f32 0.0051020407, %v10472_v19  ;;  %v1849_v2 = vsel %vm1848_vm8, %v6947_v41, %v1845_v4  ;;  %10473 = vst [vmem:[#allocation69_spill] sm:$0xff] %v7310_v38  ;;  %v1922_v58 = vmul.f32 %v7248_v22, %v1921_v25  ;;  %v10476_v0 = vld [vmem:[#allocation107_spill] sm:$0xff]  ;;  %v10477_v19 = vld [vmem:[#allocation22_spill] sm:$0xff] }
 0x274   : > { %4336 = vrsqrt.f32 %v7281_v49  ;;  %v1497_v20 = vmax.f32 %v1420_v16, 0.0  ;;  %v7314_v14 = vmul.f32 %v2403_v28, %v1849_v2  ;;  %10475 = vst [vmem:[#allocation98_spill] sm:$0xff] %v7316_v17  ;;  %v7318_v24 = vpop.eup %4332  ;;  %vm1897_vm10 = vweird.f32 %v7149_v48  ;;  %v7369_v44 = vpop.xlane.xlu0 %1110  ;;  %v2405_v17 = vld [vmem:[%s6489_s22 + $0xc8] sm:$0xff] }
 0x275   : > { %v1419_v46 = vsub.f32 %v1265_v29, %v10476_v0  ;;  %v1268_v41 = vmul.f32 0.0051020407, %v10477_v19  ;;  %v1915_v4 = vmul.f32 %v7106_v45, %v1914_v3  ;;  %v10478_v25 = vsub.f32 1.5, %v7196_v59  ;;  %v10481_v3 = vld [vmem:[#allocation106_spill] sm:$0xff]  ;;  %v2410_v29 = vld [vmem:[%s6489_s22 + $0xf0] sm:$0xff]  ;;  %v10482_v19 = vld [vmem:[#allocation119_spill] sm:$0xff] }
 0x276   : > { %10474 = vst [vmem:[#allocation27_spill] sm:$0xff] %v7314_v14  ;;  %v7335_v28 = vmul.f32 0.5, %v1942_v39  ;;  %vm1947_vm12 = vweird.f32 %v7205_v6  ;;  %v1972_v16 = vmul.f32 %v7270_v56, %v1971_v26  ;;  %4338 = vrsqrt.f32 %v7301_v63  ;;  %2882 = vperm.xlu1 %4257, %v7314_v14   ;;  %v7343_v0 = vpop.eup %4334 }
 0x277   : > { %v1865_v38 = vmul.f32 %v7055_v12, %v10478_v25  ;;  %v1423_v59 = vsub.f32 %v1269_v57, %v10481_v3  ;;  %vm1896_vm13 = vweird.f32 %v7051_v52  ;;  %v1962_v62 = vmul.f32 %v7262_v11, %v1961_v7  ;;  %v10486_v3 = vld [vmem:[#allocation109_spill] sm:$0xff] }
 0x278   : > { %v1498_v39 = vmax.f32 %v1421_v32, 0.0  ;;  %v1424_v25 = vsub.f32 %v1270_v30, %v10482_v19  ;;  %v1919_v26 = vsel %vm7331_vm11, %v7106_v45, %v1915_v4  ;;  %vm1907_vm15 = vweird.f32 %v7086_v53  ;;  %vm7437_vm4 = vmor %vm1896_vm13, %vm1897_vm10 }
 0x279   : > { %vm1946_vm1 = vweird.f32 %v7117_v42  ;;  %v1951_v30 = vmul.f32 %v7318_v24, %v7231_v9  ;;  %v7364_v32 = vadd.f32 1e-05, %v1497_v20  ;;  %v10485_v45 = vsub.f32 1.5, %v7183_v34 }
 0x27a   : > { %v1496_v2 = vmax.f32 %v1419_v46, 0.0  ;;  %v1422_v19 = vsub.f32 %v1268_v41, %v10486_v3  ;;  %v7372_v14 = vmul.f32 %v2410_v29, %v1919_v26  ;;  %v1869_v7 = vsel %vm7355_vm14, %v7055_v12, %v1865_v38  ;;  %v7378_v8 = vpop.eup %4336  ;;  %v2406_v26 = vld [vmem:[%s6489_s22 + $0xd0] sm:$0xff]  ;;  %vm7456_vm6 = vmor %vm1946_vm1, %vm1947_vm12 }
 0x27b   : > { %v1875_v4 = vmul.f32 %v7042_v60, %v10485_v45  ;;  %vm1906_vm2 = vweird.f32 %v6991_v33  ;;  %v7381_v34 = vmul.f32 0.5, %v1922_v58  ;;  %v7383_v20 = vmul.f32 0.5, %v1972_v16 }
 0x27c   : > { %10487 = vst [vmem:[#allocation23_spill] sm:$0xff] %v7372_v14  ;;  %v1991_v46 = vmul.f32 %v7343_v0, %v7256_v15  ;;  %v1500_v41 = vmax.f32 %v1423_v59, 0.0  ;;  %v1944_v12 = vsub.f32 1.5, %v7335_v28  ;;  %v7396_v38 = vmul.f32 0.5, %v1962_v62  ;;  %2917 = vperm.xlu0 %4259, %v7372_v14   ;;  %v7402_v57 = vpop.eup %4338  ;;  %v7415_v14 = vpop.xlane.xlu2 %1130  ;;  %vm7484_vm8 = vmor %vm1906_vm2, %vm1907_vm15 }
 0x27d   : > { %v7398_v58 = vadd.f32 1e-05, %v1498_v39  ;;  %v1501_v16 = vmax.f32 %v1424_v25, 0.0  ;;  %v1952_v59 = vmul.f32 %v7318_v24, %v1951_v30  ;;  %v1272_v40 = vmul.f32 0.0051020407, %v6761_v13  ;;  %v10491_v25 = vld [vmem:[#allocation64_spill] sm:$0xff] }
 0x27e   : > { %v7406_v45 = vmul.f32 %v2405_v17, %v1869_v7  ;;  %v1879_v28 = vsel %vm7391_vm3, %v7042_v60, %v1875_v4  ;;  %4340 = vrsqrt.f32 %v7364_v32  ;;  %v7412_v62 = vadd.f32 1e-05, %v1496_v2  ;;  %v7424_v60 = vpop.xlane.xlu1 %1114 }
 0x27f   : > { %v1499_v39 = vmax.f32 %v1422_v19, 0.0  ;;  %v1273_v3 = vmul.f32 0.0051020407, %v10491_v25  ;;  %v1992_v13 = vmul.f32 %v7343_v0, %v1991_v46  ;;  %v7419_v17 = vadd.f32 1e-05, %v1500_v41  ;;  %v10495_v41 = vld [vmem:[#allocation113_spill] sm:$0xff] }
 0x280   : > { %10490 = vst [vmem:[#allocation111_spill] sm:$0xff] %v7406_v45  ;;  %2892 = vperm.xlu2 %4258, %v7406_v45   ;;  %v7422_v7 = vmul.f32 %v2406_v26, %v1879_v28  ;;  %v2001_v4 = vmul.f32 %v7378_v8, %v7281_v49  ;;  %v1981_v2 = vmul.f32 %v7402_v57, %v7301_v63  ;;  %4342 = vrsqrt.f32 %v7398_v58  ;;  %v2413_v28 = vld [vmem:[%s6489_s22 + $0x108] sm:$0xff] }
 0x281   : > { %v7431_v19 = vadd.f32 1e-05, %v1501_v16  ;;  %vm1976_vm5 = vweird.f32 %v7179_v10  ;;  %v1426_v29 = vsub.f32 %v1272_v40, %v10495_v41  ;;  %v1945_v26 = vmul.f32 %v7205_v6, %v1944_v12  ;;  %v2408_v41 = vld [vmem:[%s6489_s22 + $0xe0] sm:$0xff] }
 0x282   : > { %10492 = vst [vmem:[#allocation30_spill] sm:$0xff] %v7422_v7  ;;  %2897 = vperm.xlu1 %4257, %v7422_v7   ;;  %v10496_v16 = vsub.f32 1.5, %v7252_v36  ;;  %v10497_v30 = vsub.f32 1.5, %v7200_v47  ;;  %vm1927_vm7 = vweird.f32 %v7248_v22  ;;  %4344 = vrsqrt.f32 %v7412_v62  ;;  %v10500_v36 = vld [vmem:[#allocation126_spill] sm:$0xff] }
 0x283   : > { %v7462_v12 = vadd.f32 1e-05, %v1499_v39  ;;  %v1427_v40 = vsub.f32 %v1273_v3, %v10500_v36  ;;  %v1271_v47 = vmul.f32 0.0051020407, %v6708_v55  ;;  %4346 = vrsqrt.f32 %v7419_v17  ;;  %v7476_v39 = vpop.xlane.xlu0 %1122 }
 0x284   : > { %v1895_v25 = vmul.f32 %v7149_v48, %v10496_v16  ;;  %v1905_v52 = vmul.f32 %v7086_v53, %v10497_v30  ;;  %v7467_v30 = vmul.f32 0.5, %v1952_v59  ;;  %v1949_v42 = vsel %vm7456_vm6, %v7205_v6, %v1945_v26  ;;  %10501 = vst [vmem:[#allocation107_spill] sm:$0xff] %v7476_v39  ;;  %v7478_v7 = vpop.eup %4340  ;;  %v2409_v26 = vld [vmem:[%s6489_s22 + $0xe8] sm:$0xff]  ;;  %v2416_v39 = vld [vmem:[%s6489_s22 + $0x120] sm:$0xff] }
 0x285   : > { %vm1926_vm9 = vweird.f32 %v7163_v61  ;;  %v7489_v59 = vmul.f32 0.5, %v1992_v13  ;;  %4348 = vrsqrt.f32 %v7431_v19  ;;  %v7493_v6 = vmul.f32 %v2413_v28, %v1949_v42 }
 0x286   : > { %v1899_v16 = vsel %vm7437_vm4, %v7149_v48, %v1895_v25  ;;  %v1275_v48 = vmul.f32 0.0051020407, %v6853_v27  ;;  %v2002_v45 = vmul.f32 %v7378_v8, %v2001_v4  ;;  %v1503_v3 = vmax.f32 %v1426_v29, 0.0  ;;  %v7502_v25 = vpop.eup %4342  ;;  %v10506_v27 = vld [vmem:[#allocation118_spill] sm:$0xff]  ;;  %vm7568_vm15 = vmor %vm1926_vm9, %vm1927_vm7 }
 0x287   : > { %10504 = vst [vmem:[#allocation22_spill] sm:$0xff] %v7493_v6  ;;  %v7496_v46 = vmul.f32 %v2408_v41, %v1899_v16  ;;  %v1909_v33 = vsel %vm7484_vm8, %v7086_v53, %v1905_v52  ;;  %v1982_v13 = vmul.f32 %v7402_v57, %v1981_v2  ;;  %4350 = vrsqrt.f32 %v7462_v12  ;;  %2932 = vperm.xlu0 %4259, %v7493_v6   ;;  %v7514_v2 = vpop.xlane.xlu2 %1142  ;;  %v7530_v6 = vpop.xlane.xlu1 %1126 }
 0x288   : > { %v1504_v36 = vmax.f32 %v1427_v40, 0.0  ;;  %v1425_v28 = vsub.f32 %v1271_v47, %v10506_v27  ;;  %v1924_v4 = vsub.f32 1.5, %v7381_v34  ;;  %vm1977_vm10 = vweird.f32 %v7270_v56  ;;  %10507 = vst [vmem:[#allocation119_spill] sm:$0xff] %v7514_v2  ;;  %v7516_v52 = vpop.eup %4344  ;;  %v10508_v47 = vld [vmem:[#allocation121_spill] sm:$0xff] }
 0x289   : > { %10505 = vst [vmem:[#allocation106_spill] sm:$0xff] %v7496_v46  ;;  %v2021_v53 = vmul.f32 %v7478_v7, %v7364_v32  ;;  %2907 = vperm.xlu2 %4258, %v7496_v46   ;;  %vm1937_vm11 = vweird.f32 %v7189_v31  ;;  %v1429_v34 = vsub.f32 %v1275_v48, %v10508_v47  ;;  %v1276_v41 = vmul.f32 0.0051020407, %v6755_v51  ;;  %v7524_v16 = vpop.eup %4346  ;;  %vm1978_vm13 = vmor %vm1976_vm5, %vm1977_vm10 }
 0x28a   : > { %v7522_v42 = vmul.f32 %v2409_v26, %v1909_v33  ;;  %v7527_v27 = vadd.f32 1e-05, %v1503_v3  ;;  %v1274_v29 = vmul.f32 0.0051020407, %v6800_v1  ;;  %10510 = vst [vmem:[#allocation64_spill] sm:$0xff] %v7530_v6  ;;  %v10511_v46 = vsub.f32 1.5, %v7383_v20 }
 0x28b   : > { %v7536_v48 = vpop.eup %4348  ;;  %vm1936_vm12 = vweird.f32 %v7103_v54  ;;  %v7543_v51 = vmul.f32 0.5, %v2002_v45  ;;  %v7545_v1 = vmul.f32 0.5, %v1982_v13  ;;  %v7547_v3 = vadd.f32 1e-05, %v1504_v36  ;;  %v10512_v36 = vld [vmem:[#allocation129_spill] sm:$0xff] }
 0x28c   : > { %10509 = vst [vmem:[#allocation109_spill] sm:$0xff] %v7522_v42  ;;  %v1975_v40 = vmul.f32 %v7270_v56, %v10511_v46  ;;  %v1502_v20 = vmax.f32 %v1425_v28, 0.0  ;;  %2912 = vperm.xlu1 %4257, %v7522_v42   ;;  %vm2007_vm14 = vweird.f32 %v7378_v8  ;;  %v2022_v46 = vmul.f32 %v7478_v7, %v2021_v53  ;;  %v2411_v42 = vld [vmem:[%s6489_s22 + $0xf8] sm:$0xff]  ;;  %vm1938_vm6 = vmor %vm1936_vm12, %vm1937_vm11 }
 0x28d   : > { %v2031_v33 = vmul.f32 %v7502_v25, %v7398_v58  ;;  %v2011_v10 = vmul.f32 %v7516_v52, %v7412_v62  ;;  %v7557_v26 = vpop.eup %4350  ;;  %v1506_v13 = vmax.f32 %v1429_v34, 0.0  ;;  %v1430_v47 = vsub.f32 %v1276_v41, %v10512_v36  ;;  %v7579_v34 = vpop.xlane.xlu0 %1134 }
 0x28e   : > { %v1979_v45 = vsel %vm1978_vm13, %v7270_v56, %v1975_v40  ;;  %v1925_v55 = vmul.f32 %v7248_v22, %v1924_v4  ;;  %vm2006_vm1 = vweird.f32 %v7281_v49  ;;  %v2051_v56 = vmul.f32 %v7524_v16, %v7419_v17  ;;  %v10516_v4 = vld [vmem:[#allocation123_spill] sm:$0xff]  ;;  %10517 = vst [vmem:[#allocation126_spill] sm:$0xff] %v7579_v34 }
 0x28f   : > { %v7560_v28 = vmul.f32 %v2416_v39, %v1979_v45  ;;  %v2061_v39 = vmul.f32 %v7536_v48, %v7431_v19  ;;  %4352 = vrsqrt.f32 %v7527_v27  ;;  %v1428_v40 = vsub.f32 %v1274_v29, %v10516_v4  ;;  %vm7648_vm7 = vmor %vm2006_vm1, %vm2007_vm14 }
 0x290   : > { %4354 = vrsqrt.f32 %v7547_v3  ;;  %v7582_v61 = vadd.f32 1e-05, %v1502_v20  ;;  %v1278_v41 = vmul.f32 0.0051020407, %v6945_v5  ;;  %v1929_v45 = vsel %vm7568_vm15, %v7248_v22, %v1925_v55  ;;  %v7597_v20 = vpop.permute.xlu2 %2772 }
 0x291   : > { %10513 = vst [vmem:[#allocation113_spill] sm:$0xff] %v7560_v28  ;;  %2947 = vperm.xlu0 %4259, %v7560_v28   ;;  %vm1967_vm2 = vweird.f32 %v7262_v11  ;;  %v7590_v36 = vmul.f32 0.5, %v2022_v46  ;;  %v2032_v29 = vmul.f32 %v7502_v25, %v2031_v33  ;;  %v2041_v4 = vmul.f32 %v7557_v26, %v7462_v12 }
 0x292   : > { %v7595_v34 = vmul.f32 %v2411_v42, %v1929_v45  ;;  %10519 = vst [vmem:[#allocation121_spill] sm:$0xff] %v7597_v20  ;;  %vm1957_vm3 = vweird.f32 %v7318_v24  ;;  %v2012_v5 = vmul.f32 %v7516_v52, %v2011_v10  ;;  %v7601_v53 = vadd.f32 1e-05, %v1506_v13 }
 0x293   : > { %v1507_v22 = vmax.f32 %v1430_v47, 0.0  ;;  %v10520_v55 = vsub.f32 1.5, %v7297_v37  ;;  %vm1966_vm4 = vweird.f32 %v7168_v43  ;;  %v2004_v33 = vsub.f32 1.5, %v7543_v51  ;;  %v10521_v37 = vld [vmem:[#allocation127_spill] sm:$0xff] }
 0x294   : > { %10518 = vst [vmem:[#allocation118_spill] sm:$0xff] %v7595_v34  ;;  %v1505_v45 = vmax.f32 %v1428_v40, 0.0  ;;  %v1279_v20 = vmul.f32 0.0051020407, %v6845_v21  ;;  %2922 = vperm.xlu2 %4258, %v7595_v34   ;;  %vm1956_vm5 = vweird.f32 %v7231_v9  ;;  %v2052_v10 = vmul.f32 %v7524_v16, %v2051_v56  ;;  %v7628_v40 = vpop.xlane.xlu1 %1138  ;;  %vm7697_vm13 = vmor %vm1966_vm4, %vm1967_vm2  ;;  %v10538_v9 = vld [vmem:[#allocation132_spill] sm:$0xff] }
 0x295   : > { %v1935_v46 = vmul.f32 %v7189_v31, %v10520_v55  ;;  %v2062_v13 = vmul.f32 %v7536_v48, %v2061_v39  ;;  %4356 = vrsqrt.f32 %v7582_v61  ;;  %v1432_v47 = vsub.f32 %v1278_v41, %v10521_v37  ;;  %v2412_v55 = vld [vmem:[%s6489_s22 + $0x100] sm:$0xff]  ;;  %v7617_v28 = vpop.eup %4352  ;;  %10522 = vst [vmem:[#allocation129_spill] sm:$0xff] %v7628_v40  ;;  %vm7711_vm15 = vmor %vm1956_vm5, %vm1957_vm3 }
 0x296   : > { %v7624_v51 = vmul.f32 0.5, %v2032_v29  ;;  %v2042_v56 = vmul.f32 %v7557_v26, %v2041_v4  ;;  %v1277_v39 = vmul.f32 0.0051020407, %v6892_v35  ;;  %v7630_v41 = vpop.eup %4354  ;;  %v7632_v37 = vmul.f32 0.5, %v2012_v5  ;;  %v10523_v29 = vld [vmem:[#allocation134_spill] sm:$0xff] }
 0x297   : > { %4358 = vrsqrt.f32 %v7601_v53  ;;  %v7635_v42 = vadd.f32 1e-05, %v1507_v22  ;;  %v1939_v54 = vsel %vm1938_vm6, %v7189_v31, %v1935_v46  ;;  %v7638_v21 = vadd.f32 1e-05, %v1505_v45  ;;  %v2419_v45 = vld [vmem:[%s6489_s22 + $0x138] sm:$0xff] }
 0x298   : > { %v1433_v34 = vsub.f32 %v1279_v20, %v10523_v29  ;;  %v7641_v4 = vmul.f32 %v2412_v55, %v1939_v54  ;;  %v2005_v35 = vmul.f32 %v7378_v8, %v2004_v33  ;;  %vm2037_vm8 = vweird.f32 %v7502_v25  ;;  %v10527_v55 = vld [vmem:[#allocation128_spill] sm:$0xff]  ;;  %v7672_v29 = vpop.permute.xlu2 %2782 }
 0x299   : > { %v7653_v22 = vmul.f32 0.5, %v2052_v10  ;;  %v7655_v31 = vmul.f32 0.5, %v2062_v13  ;;  %v2081_v20 = vmul.f32 %v7617_v28, %v7527_v27  ;;  %v1509_v46 = vmax.f32 %v1432_v47, 0.0  ;;  %v7670_v13 = vpop.xlane.xlu0 %1146  ;;  %10529 = vst [vmem:[#allocation134_spill] sm:$0xff] %v7672_v29 }
 0x29a   : > { %10524 = vst [vmem:[#allocation123_spill] sm:$0xff] %v7641_v4  ;;  %vm1987_vm9 = vweird.f32 %v7402_v57  ;;  %v7661_v33 = vmul.f32 0.5, %v2042_v56  ;;  %v2091_v49 = vmul.f32 %v7630_v41, %v7547_v3  ;;  %v1431_v54 = vsub.f32 %v1277_v39, %v10527_v55  ;;  %2927 = vperm.xlu1 %4257, %v7641_v4  }
 0x29b   : > { %v2009_v10 = vsel %vm7648_vm7, %v7378_v8, %v2005_v35  ;;  %10528 = vst [vmem:[#allocation127_spill] sm:$0xff] %v7670_v13  ;;  %v7674_v47 = vpop.eup %4356  ;;  %vm1997_vm10 = vweird.f32 %v7343_v0  ;;  %vm2036_vm11 = vweird.f32 %v7398_v58  ;;  %4360 = vrsqrt.f32 %v7635_v42 }
 0x29c   : > { %v1281_v56 = vmul.f32 0.0051020407, %v7037_v18  ;;  %v10530_v39 = vsub.f32 1.5, %v7467_v30  ;;  %v10531_v8 = vsub.f32 1.5, %v7396_v38  ;;  %vm1986_vm12 = vweird.f32 %v7301_v63  ;;  %vm7776_vm5 = vmor %vm2036_vm11, %vm2037_vm8 }
 0x29d   : > { %4362 = vrsqrt.f32 %v7638_v21  ;;  %v1510_v5 = vmax.f32 %v1433_v34, 0.0  ;;  %v1282_v29 = vmul.f32 0.0051020407, %v6934_v50  ;;  %v7689_v4 = vmul.f32 %v2419_v45, %v2009_v10  ;;  %v7691_v13 = vpop.eup %4358  ;;  %vm7789_vm7 = vmor %vm1986_vm12, %vm1987_vm9 }
 0x29e   : > { %v1955_v55 = vmul.f32 %v7318_v24, %v10530_v39  ;;  %v1965_v35 = vmul.f32 %v7262_v11, %v10531_v8  ;;  %vm1996_vm14 = vweird.f32 %v7256_v15  ;;  %v2034_v38 = vsub.f32 1.5, %v7624_v51 }
 0x29f   : > { %10532 = vst [vmem:[#allocation128_spill] sm:$0xff] %v7689_v4  ;;  %v2082_v50 = vmul.f32 %v7617_v28, %v2081_v20  ;;  %v7705_v34 = vadd.f32 1e-05, %v1509_v46  ;;  %v2092_v10 = vmul.f32 %v7630_v41, %v2091_v49  ;;  %v2071_v51 = vmul.f32 %v7674_v47, %v7582_v61  ;;  %2962 = vperm.xlu0 %4259, %v7689_v4   ;;  %v2414_v20 = vld [vmem:[%s6489_s22 + $0x110] sm:$0xff]  ;;  %v7721_v46 = vpop.permute.xlu1 %2767  ;;  %vm7806_vm9 = vmor %vm1996_vm14, %vm1997_vm10 }
 0x2a0   : > { %v1508_v39 = vmax.f32 %v1431_v54, 0.0  ;;  %10537 = vst [vmem:[#allocation155_spill] sm:$0xff] %v7721_v46  ;;  %v2064_v8 = vsub.f32 1.5, %v7655_v31  ;;  %vm2067_vm1 = vweird.f32 %v7536_v48  ;;  %v1435_v30 = vsub.f32 %v1281_v56, %v10538_v9  ;;  %v2415_v54 = vld [vmem:[%s6489_s22 + $0x118] sm:$0xff]  ;;  %v7758_v18 = vpop.permute.xlu2 %2792  ;;  %v2417_v9 = vld [vmem:[%s6489_s22 + $0x128] sm:$0xff] }
 0x2a1   : > { %v1959_v45 = vsel %vm7711_vm15, %v7318_v24, %v1955_v55  ;;  %v1969_v49 = vsel %vm7697_vm13, %v7262_v11, %v1965_v35  ;;  %v7734_v40 = vadd.f32 1e-05, %v1510_v5  ;;  %v10539_v46 = vld [vmem:[#allocation21_spill] sm:$0xff]  ;;  %v1280_v31 = vmul.f32 0.0051020407, %v6980_v23  ;;  %v7738_v2 = vpop.eup %4360  ;;  %10540 = vst [vmem:[#allocation132_spill] sm:$0xff] %v7758_v18 }
 0x2a2   : > { %v1436_v6 = vsub.f32 %v1282_v29, %v10539_v46  ;;  %vm2066_vm2 = vweird.f32 %v7431_v19  ;;  %v7741_v56 = vmul.f32 0.5, %v2082_v50  ;;  %v2111_v24 = vmul.f32 %v7691_v13, %v7601_v53  ;;  %v7760_v50 = vpop.permute.xlu0 %2777  ;;  %v10561_v19 = vld [vmem:[#allocation11_spill] sm:$0xff] }
 0x2a3   : > { %4364 = vrsqrt.f32 %v7705_v34  ;;  %v7746_v11 = vmul.f32 %v2414_v20, %v1959_v45  ;;  %v7748_v55 = vpop.eup %4362  ;;  %vm2017_vm3 = vweird.f32 %v7516_v52  ;;  %v7751_v29 = vmul.f32 0.5, %v2092_v10  ;;  %v2422_v20 = vld [vmem:[%s6489_s22 + $0x150] sm:$0xff]  ;;  %vm7850_vm12 = vmor %vm2066_vm2, %vm2067_vm1 }
 0x2a4   : > { %v2072_v23 = vmul.f32 %v7674_v47, %v2071_v51  ;;  %v7754_v35 = vadd.f32 1e-05, %v1508_v39  ;;  %v7756_v5 = vmul.f32 %v2415_v54, %v1969_v49  ;;  %vm2027_vm4 = vweird.f32 %v7478_v7  ;;  %v10546_v49 = vld [vmem:[#allocation61_spill] sm:$0xff] }
 0x2a5   : > { %v1512_v43 = vmax.f32 %v1435_v30, 0.0  ;;  %2937 = vperm.xlu2 %4258, %v7746_v11   ;;  %v2035_v45 = vmul.f32 %v7502_v25, %v2034_v38  ;;  %v10541_v10 = vsub.f32 1.5, %v7545_v1  ;;  %v10542_v39 = vsub.f32 1.5, %v7489_v59  ;;  %v10545_v38 = vld [vmem:[#allocation133_spill] sm:$0xff] }
 0x2a6   : > { %vm2016_vm6 = vweird.f32 %v7412_v62  ;;  %4366 = vrsqrt.f32 %v7734_v40  ;;  %v1513_v1 = vmax.f32 %v1436_v6, 0.0  ;;  %v1434_v30 = vsub.f32 %v1280_v31, %v10545_v38  ;;  %2942 = vperm.xlu1 %4257, %v7756_v5  }
 0x2a7   : > { %v1985_v51 = vmul.f32 %v7402_v57, %v10541_v10  ;;  %v1995_v46 = vmul.f32 %v7343_v0, %v10542_v39  ;;  %v1285_v59 = vmul.f32 0.0051020407, %v10546_v49  ;;  %vm2026_vm8 = vweird.f32 %v7364_v32  ;;  %vm7888_vm1 = vmor %vm2016_vm6, %vm2017_vm3 }
 0x2a8   : > { %v2112_v54 = vmul.f32 %v7691_v13, %v2111_v24  ;;  %v2121_v6 = vmul.f32 %v7738_v2, %v7635_v42  ;;  %v2101_v31 = vmul.f32 %v7748_v55, %v7638_v21  ;;  %v2039_v10 = vsel %vm7776_vm5, %v7502_v25, %v2035_v45  ;;  %v10551_v24 = vld [vmem:[#allocation79_spill] sm:$0xff]  ;;  %vm7905_vm3 = vmor %vm2026_vm8, %vm2027_vm4 }
 0x2a9   : > { %v7810_v39 = vmul.f32 0.5, %v2072_v23  ;;  %v1284_v38 = vmul.f32 0.0051020407, %v10551_v24  ;;  %v7813_v49 = vmul.f32 %v2422_v20, %v2039_v10  ;;  %v1989_v4 = vsel %vm7789_vm7, %v7402_v57, %v1985_v51  ;;  %v7819_v25 = vpop.eup %4364  ;;  %v2418_v24 = vld [vmem:[%s6489_s22 + $0x130] sm:$0xff]  ;;  %v10553_v51 = vld [vmem:[#allocation14_spill] sm:$0xff] }
 0x2aa   : > { %v2094_v45 = vsub.f32 1.5, %v7751_v29  ;;  %vm2097_vm10 = vweird.f32 %v7630_v41  ;;  %v7823_v15 = vadd.f32 1e-05, %v1512_v43  ;;  %v1999_v23 = vsel %vm7806_vm9, %v7343_v0, %v1995_v46  ;;  %v7835_v29 = vpop.permute.xlu1 %2787 }
 0x2ab   : > { %10552 = vst [vmem:[#allocation21_spill] sm:$0xff] %v7813_v49  ;;  %v2065_v20 = vmul.f32 %v7536_v48, %v2064_v8  ;;  %4368 = vrsqrt.f32 %v7754_v35  ;;  %v7831_v58 = vadd.f32 1e-05, %v1513_v1  ;;  %v1511_v57 = vmax.f32 %v1434_v30, 0.0  ;;  %2977 = vperm.xlu0 %4259, %v7813_v49   ;;  %v10570_v49 = vld [vmem:[#allocation137_spill] sm:$0xff] }
 0x2ac   : > { %v1439_v10 = vsub.f32 %v1285_v59, %v10553_v51  ;;  %10554 = vst [vmem:[#allocation133_spill] sm:$0xff] %v7835_v29  ;;  %vm2096_vm11 = vweird.f32 %v7547_v3  ;;  %v7838_v43 = vmul.f32 0.5, %v2112_v54  ;;  %v2122_v0 = vmul.f32 %v7738_v2, %v2121_v6  ;;  %v7844_v1 = vpop.eup %4366  ;;  %v10557_v54 = vld [vmem:[#allocation136_spill] sm:$0xff]  ;;  %v7882_v29 = vpop.permute.xlu0 %2812 }
 0x2ad   : > { %v2102_v8 = vmul.f32 %v7748_v55, %v2101_v31  ;;  %v7842_v46 = vmul.f32 %v2417_v9, %v1989_v4  ;;  %vm2047_vm13 = vweird.f32 %v7557_v26  ;;  %v2141_v59 = vmul.f32 %v7819_v25, %v7705_v34  ;;  %v7863_v9 = vpop.permute.xlu2 %2802  ;;  %10564 = vst [vmem:[#allocation14_spill] sm:$0xff] %v7882_v29  ;;  %vm7946_vm6 = vmor %vm2096_vm11, %vm2097_vm10 }
 0x2ae   : > { %v1438_v6 = vsub.f32 %v1284_v38, %v10557_v54  ;;  %v7858_v31 = vmul.f32 %v2418_v24, %v1999_v23  ;;  %v10559_v4 = vsub.f32 1.5, %v7632_v37  ;;  %10560 = vst [vmem:[#allocation79_spill] sm:$0xff] %v7863_v9  ;;  %vm2057_vm14 = vweird.f32 %v7524_v16  ;;  %v2425_v23 = vld [vmem:[%s6489_s22 + $0x168] sm:$0xff] }
 0x2af   : > { %4370 = vrsqrt.f32 %v7823_v15  ;;  %v1283_v51 = vmul.f32 0.0051020407, %v10561_v19  ;;  %2952 = vperm.xlu2 %4258, %v7842_v46   ;;  %v2069_v38 = vsel %vm7850_vm12, %v7536_v48, %v2065_v20  ;;  %v10562_v24 = vsub.f32 1.5, %v7590_v36  ;;  %v10563_v9 = vld [vmem:[#allocation71_spill] sm:$0xff]  ;;  %v2420_v20 = vld [vmem:[%s6489_s22 + $0x140] sm:$0xff] }
 0x2b0   : > { %10558 = vst [vmem:[#allocation61_spill] sm:$0xff] %v7858_v31  ;;  %v2015_v63 = vmul.f32 %v7516_v52, %v10559_v4  ;;  %vm2046_vm15 = vweird.f32 %v7462_v12  ;;  %4372 = vrsqrt.f32 %v7831_v58  ;;  %v7878_v54 = vadd.f32 1e-05, %v1511_v57  ;;  %2957 = vperm.xlu1 %4257, %v7858_v31   ;;  %v2421_v31 = vld [vmem:[%s6489_s22 + $0x148] sm:$0xff] }
 0x2b1   : > { %v2025_v37 = vmul.f32 %v7478_v7, %v10562_v24  ;;  %v1516_v4 = vmax.f32 %v1439_v10, 0.0  ;;  %v1288_v19 = vmul.f32 0.0051020407, %v10563_v9  ;;  %vm2056_vm2 = vweird.f32 %v7419_v17  ;;  %v7899_v30 = vpop.eup %4368  ;;  %vm7984_vm10 = vmor %vm2046_vm15, %vm2047_vm13 }
 0x2b2   : > { %v7895_v57 = vmul.f32 0.5, %v2122_v0  ;;  %v2151_v10 = vmul.f32 %v7844_v1, %v7734_v40  ;;  %v2142_v9 = vmul.f32 %v7819_v25, %v2141_v59  ;;  %v1515_v24 = vmax.f32 %v1438_v6, 0.0  ;;  %vm8001_vm12 = vmor %vm2056_vm2, %vm2057_vm14 }
 0x2b3   : > { %v7910_v36 = vmul.f32 %v2425_v23, %v2069_v38  ;;  %v2019_v0 = vsel %vm7888_vm1, %v7516_v52, %v2015_v63  ;;  %vm2127_vm5 = vweird.f32 %v7738_v2  ;;  %v1437_v32 = vsub.f32 %v1283_v51, %v10570_v49  ;;  %v10571_v52 = vld [vmem:[#allocation49_spill] sm:$0xff] }
 0x2b4   : > { %v2029_v18 = vsel %vm7905_vm3, %v7478_v7, %v2025_v37  ;;  %v2095_v59 = vmul.f32 %v7630_v41, %v2094_v45  ;;  %v7924_v6 = vmul.f32 0.5, %v2102_v8  ;;  %4374 = vrsqrt.f32 %v7878_v54 }
 0x2b5   : > { %10569 = vst [vmem:[#allocation136_spill] sm:$0xff] %v7910_v36  ;;  %v7927_v38 = vadd.f32 1e-05, %v1516_v4  ;;  %v1442_v63 = vsub.f32 %v1288_v19, %v10571_v52  ;;  %2992 = vperm.xlu0 %4259, %v7910_v36   ;;  %v7931_v23 = vpop.eup %4370  ;;  %v2124_v49 = vsub.f32 1.5, %v7895_v57  ;;  %vm2126_vm4 = vweird.f32 %v7635_v42  ;;  %v7962_v62 = vpop.permute.xlu2 %2817 }
 0x2b6   : > { %v2152_v7 = vmul.f32 %v7844_v1, %v2151_v10  ;;  %v2131_v45 = vmul.f32 %v7899_v30, %v7754_v35  ;;  %v7938_v8 = vmul.f32 %v2420_v20, %v2019_v0  ;;  %v7940_v51 = vpop.eup %4372  ;;  %vm2077_vm7 = vweird.f32 %v7674_v47  ;;  %v7960_v10 = vpop.permute.xlu1 %2797  ;;  %10577 = vst [vmem:[#allocation137_spill] sm:$0xff] %v7962_v62  ;;  %v10578_v0 = vld [vmem:[#allocation97_spill] sm:$0xff]  ;;  %v10588_v62 = vld [vmem:[#allocation40_spill] sm:$0xff]  ;;  %vm8044_vm15 = vmor %vm2126_vm4, %vm2127_vm5 }
 0x2b7   : > { %v7951_v4 = vmul.f32 0.5, %v2142_v9  ;;  %v7953_v19 = vadd.f32 1e-05, %v1515_v24  ;;  %v7955_v48 = vmul.f32 %v2421_v31, %v2029_v18  ;;  %v10575_v20 = vsub.f32 1.5, %v7661_v33  ;;  %10576 = vst [vmem:[#allocation71_spill] sm:$0xff] %v7960_v10  ;;  %v2428_v31 = vld [vmem:[%s6489_s22 + $0x180] sm:$0xff]  ;;  %v8013_v10 = vpop.permute.xlu0 %2827 }
 0x2b8   : > { %vm2087_vm8 = vweird.f32 %v7617_v28  ;;  %v1514_v3 = vmax.f32 %v1437_v32, 0.0  ;;  %v1287_v52 = vmul.f32 0.0051020407, %v10578_v0  ;;  %2967 = vperm.xlu2 %4258, %v7938_v8   ;;  %v2099_v18 = vsel %vm7946_vm6, %v7630_v41, %v2095_v59  ;;  %10587 = vst [vmem:[#allocation97_spill] sm:$0xff] %v8013_v10  ;;  %v10589_v41 = vld [vmem:[#allocation12_spill] sm:$0xff] }
 0x2b9   : > { %10574 = vst [vmem:[#allocation11_spill] sm:$0xff] %v7955_v48  ;;  %v2045_v57 = vmul.f32 %v7557_v26, %v10575_v20  ;;  %v10579_v33 = vsub.f32 1.5, %v7653_v22  ;;  %vm2076_vm9 = vweird.f32 %v7582_v61  ;;  %v2171_v24 = vmul.f32 %v7931_v23, %v7823_v15  ;;  %v10580_v20 = vld [vmem:[#allocation8_spill] sm:$0xff]  ;;  %2972 = vperm.xlu1 %4257, %v7955_v48   ;;  %v2423_v22 = vld [vmem:[%s6489_s22 + $0x158] sm:$0xff] }
 0x2ba   : > { %4376 = vrsqrt.f32 %v7927_v38  ;;  %v1519_v32 = vmax.f32 %v1442_v63, 0.0  ;;  %v1291_v0 = vmul.f32 0.0051020407, %v10580_v20  ;;  %vm2086_vm11 = vweird.f32 %v7527_v27  ;;  %v10585_v20 = vld [vmem:[#allocation19_spill] sm:$0xff]  ;;  %vm8082_vm5 = vmor %vm2076_vm9, %vm2077_vm7 }
 0x2bb   : > { %v2055_v9 = vmul.f32 %v7524_v16, %v10579_v33  ;;  %v7990_v59 = vmul.f32 0.5, %v2152_v7  ;;  %v2132_v63 = vmul.f32 %v7899_v30, %v2131_v45  ;;  %v2181_v37 = vmul.f32 %v7940_v51, %v7831_v58  ;;  %v7995_v33 = vpop.eup %4374  ;;  %vm8096_vm6 = vmor %vm2086_vm11, %vm2087_vm8 }
 0x2bc   : > { %4378 = vrsqrt.f32 %v7953_v19  ;;  %v1286_v7 = vmul.f32 0.0051020407, %v10585_v20  ;;  %v8007_v29 = vmul.f32 %v2428_v31, %v2099_v18  ;;  %v2049_v45 = vsel %vm7984_vm10, %v7557_v26, %v2045_v57  ;;  %v2424_v20 = vld [vmem:[%s6489_s22 + $0x160] sm:$0xff] }
 0x2bd   : > { %vm2157_vm13 = vweird.f32 %v7844_v1  ;;  %v8016_v17 = vadd.f32 1e-05, %v1514_v3  ;;  %v1441_v36 = vsub.f32 %v1287_v52, %v10588_v62  ;;  %v2059_v48 = vsel %vm8001_vm12, %v7524_v16, %v2055_v9  ;;  %v8056_v12 = vpop.permute.xlu2 %2832  ;;  %v10600_v9 = vld [vmem:[#allocation69_spill] sm:$0xff] }
 0x2be   : > { %10586 = vst [vmem:[#allocation49_spill] sm:$0xff] %v8007_v29  ;;  %v2125_v18 = vmul.f32 %v7738_v2, %v2124_v49  ;;  %v2172_v26 = vmul.f32 %v7931_v23, %v2171_v24  ;;  %v8026_v57 = vadd.f32 1e-05, %v1519_v32  ;;  %v1445_v10 = vsub.f32 %v1291_v0, %v10589_v41  ;;  %3007 = vperm.xlu0 %4259, %v8007_v29   ;;  %v10592_v32 = vld [vmem:[#allocation13_spill] sm:$0xff] }
 0x2bf   : > { %v2154_v3 = vsub.f32 1.5, %v7990_v59  ;;  %vm2156_vm14 = vweird.f32 %v7734_v40  ;;  %v8032_v62 = vmul.f32 0.5, %v2132_v63  ;;  %v2161_v16 = vmul.f32 %v7995_v33, %v7878_v54  ;;  %10595 = vst [vmem:[#allocation19_spill] sm:$0xff] %v8056_v12  ;;  %v10603_v12 = vld [vmem:[#allocation105_spill] sm:$0xff]  ;;  %v10611_v40 = vld [vmem:[#allocation144_spill] sm:$0xff] }
 0x2c0   : > { %v8036_v49 = vmul.f32 %v2423_v22, %v2049_v45  ;;  %v8038_v52 = vpop.eup %4376  ;;  %vm2107_vm1 = vweird.f32 %v7748_v55  ;;  %v2182_v24 = vmul.f32 %v7940_v51, %v2181_v37  ;;  %v1440_v0 = vsub.f32 %v1286_v7, %v10592_v32  ;;  %v2431_v7 = vld [vmem:[%s6489_s22 + $0x198] sm:$0xff]  ;;  %vm8139_vm9 = vmor %vm2156_vm14, %vm2157_vm13 }
 0x2c1   : > { %v8051_v59 = vmul.f32 %v2424_v20, %v2059_v48  ;;  %v10594_v22 = vsub.f32 1.5, %v7810_v39  ;;  %vm2117_vm2 = vweird.f32 %v7691_v13  ;;  %4380 = vrsqrt.f32 %v8016_v17 }
 0x2c2   : > { %v1518_v42 = vmax.f32 %v1441_v36, 0.0  ;;  %2982 = vperm.xlu2 %4258, %v8036_v49   ;;  %v2129_v37 = vsel %vm8044_vm15, %v7738_v2, %v2125_v18  ;;  %v10596_v48 = vsub.f32 1.5, %v7741_v56  ;;  %v8068_v45 = vpop.eup %4378  ;;  %vm2106_vm3 = vweird.f32 %v7638_v21  ;;  %v10597_v36 = vld [vmem:[#allocation98_spill] sm:$0xff]  ;;  %v8076_v2 = vpop.permute.xlu1 %2807  ;;  %v2426_v18 = vld [vmem:[%s6489_s22 + $0x170] sm:$0xff] }
 0x2c3   : > { %10593 = vst [vmem:[#allocation8_spill] sm:$0xff] %v8051_v59  ;;  %v2075_v63 = vmul.f32 %v7674_v47, %v10594_v22  ;;  %v8071_v20 = vmul.f32 0.5, %v2172_v26  ;;  %4382 = vrsqrt.f32 %v8026_v57  ;;  %v1290_v41 = vmul.f32 0.0051020407, %v10597_v36  ;;  %2987 = vperm.xlu1 %4257, %v8051_v59   ;;  %v2427_v59 = vld [vmem:[%s6489_s22 + $0x178] sm:$0xff]  ;;  %vm8174_vm13 = vmor %vm2106_vm3, %vm2107_vm1 }
 0x2c4   : > { %v2085_v39 = vmul.f32 %v7617_v28, %v10596_v48  ;;  %v1522_v32 = vmax.f32 %v1445_v10, 0.0  ;;  %vm2116_vm4 = vweird.f32 %v7601_v53  ;;  %v2162_v26 = vmul.f32 %v7995_v33, %v2161_v16 }
 0x2c5   : > { %v2211_v10 = vmul.f32 %v8038_v52, %v7927_v38  ;;  %v1294_v22 = vmul.f32 0.0051020407, %v10600_v9  ;;  %v2183_v48 = vmul.f32 0.5, %v2182_v24  ;;  %v1517_v36 = vmax.f32 %v1440_v0, 0.0  ;;  %vm8188_vm15 = vmor %vm2116_vm4, %vm2117_vm2 }
 0x2c6   : > { %v8100_v31 = vmul.f32 %v2431_v7, %v2129_v37  ;;  %v2079_v16 = vsel %vm8082_vm5, %v7674_v47, %v2075_v63  ;;  %vm2187_vm7 = vweird.f32 %v7940_v51  ;;  %v8107_v9 = vadd.f32 1e-05, %v1518_v42  ;;  %v10604_v47 = vld [vmem:[#allocation143_spill] sm:$0xff]  ;;  %v8122_v42 = vpop.permute.xlu0 %2842 }
 0x2c7   : > { %v1289_v29 = vmul.f32 0.0051020407, %v10603_v12  ;;  %v2089_v27 = vsel %vm8096_vm6, %v7617_v28, %v2085_v39  ;;  %v2155_v24 = vmul.f32 %v7844_v1, %v2154_v3  ;;  %v2201_v37 = vmul.f32 %v8068_v45, %v7953_v19  ;;  %10605 = vst [vmem:[#allocation40_spill] sm:$0xff] %v8122_v42  ;;  %v8124_v12 = vpop.eup %4380  ;;  %v10606_v39 = vld [vmem:[#allocation59_spill] sm:$0xff]  ;;  %v2430_v42 = vld [vmem:[%s6489_s22 + $0x190] sm:$0xff] }
 0x2c8   : > { %v1444_v63 = vsub.f32 %v1290_v41, %v10604_v47  ;;  %v8119_v7 = vadd.f32 1e-05, %v1522_v32  ;;  %3022 = vperm.xlu0 %4259, %v8100_v31   ;;  %vm2186_vm8 = vweird.f32 %v7831_v58  ;;  %v8127_v28 = vmul.f32 0.5, %v2162_v26 }
 0x2c9   : > { %v2212_v3 = vmul.f32 %v8038_v52, %v2211_v10  ;;  %v1448_v56 = vsub.f32 %v1294_v22, %v10606_v39  ;;  %v8131_v61 = vmul.f32 %v2426_v18, %v2079_v16  ;;  %v8133_v41 = vpop.eup %4382  ;;  %vm2137_vm10 = vweird.f32 %v7899_v30  ;;  %v8151_v16 = vpop.permute.xlu2 %2847  ;;  %vm8230_vm2 = vmor %vm2186_vm8, %vm2187_vm7 }
 0x2ca   : > { %v2184_v26 = vsub.f32 1.5, %v2183_v48  ;;  %v8144_v47 = vadd.f32 1e-05, %v1517_v36  ;;  %v8146_v10 = vmul.f32 %v2427_v59, %v2089_v27  ;;  %v10609_v18 = vsub.f32 1.5, %v7924_v6  ;;  %10610 = vst [vmem:[#allocation12_spill] sm:$0xff] %v8151_v16  ;;  %v2434_v59 = vld [vmem:[%s6489_s22 + $0x1b0] sm:$0xff] }
 0x2cb   : > { %vm2147_vm11 = vweird.f32 %v7819_v25  ;;  %4384 = vrsqrt.f32 %v8107_v9  ;;  %v1443_v39 = vsub.f32 %v1289_v29, %v10611_v40  ;;  %2997 = vperm.xlu2 %4258, %v8131_v61   ;;  %v2159_v48 = vsel %vm8139_vm9, %v7844_v1, %v2155_v24 }
 0x2cc   : > { %v2105_v22 = vmul.f32 %v7748_v55, %v10609_v18  ;;  %v10612_v36 = vsub.f32 1.5, %v7838_v43  ;;  %vm2136_vm12 = vweird.f32 %v7754_v35  ;;  %v2202_v27 = vmul.f32 %v8068_v45, %v2201_v37  ;;  %3002 = vperm.xlu1 %4257, %v8146_v10   ;;  %v10621_v43 = vld [vmem:[#allocation148_spill] sm:$0xff] }
 0x2cd   : > { %v2191_v18 = vmul.f32 %v8124_v12, %v8016_v17  ;;  %v1521_v29 = vmax.f32 %v1444_v63, 0.0  ;;  %4386 = vrsqrt.f32 %v8119_v7  ;;  %vm2146_vm14 = vweird.f32 %v7705_v34  ;;  %vm8271_vm7 = vmor %vm2136_vm12, %vm2137_vm10 }
 0x2ce   : > { %v2115_v6 = vmul.f32 %v7691_v13, %v10612_v36  ;;  %v8179_v1 = vmul.f32 0.5, %v2212_v3  ;;  %v2241_v24 = vmul.f32 %v8133_v41, %v8026_v57  ;;  %v1293_v37 = vmul.f32 0.0051020407, %v7424_v60  ;;  %v2429_v60 = vld [vmem:[%s6489_s22 + $0x188] sm:$0xff]  ;;  %vm8285_vm9 = vmor %vm2146_vm14, %vm2147_vm11 }
 0x2cf   : > { %v1525_v63 = vmax.f32 %v1448_v56, 0.0  ;;  %4388 = vrsqrt.f32 %v8144_v47  ;;  %v1297_v32 = vmul.f32 0.0051020407, %v7415_v14  ;;  %v8194_v3 = vmul.f32 %v2434_v59, %v2159_v48  ;;  %v8200_v56 = vpop.permute.xlu1 %2822  ;;  %v2433_v14 = vld [vmem:[%s6489_s22 + $0x1a8] sm:$0xff] }
 0x2d0   : > { %v2109_v40 = vsel %vm8174_vm13, %v7748_v55, %v2105_v22  ;;  %v1520_v36 = vmax.f32 %v1443_v39, 0.0  ;;  %v1292_v53 = vmul.f32 0.0051020407, %v7369_v44  ;;  %v2119_v0 = vsel %vm8188_vm15, %v7691_v13, %v2115_v6  ;;  %v10618_v13 = vld [vmem:[#allocation4_spill] sm:$0xff] }
 0x2d1   : > { %10617 = vst [vmem:[#allocation13_spill] sm:$0xff] %v8194_v3  ;;  %v2185_v16 = vmul.f32 %v7940_v51, %v2184_v26  ;;  %v8209_v48 = vmul.f32 0.5, %v2202_v27  ;;  %v2192_v59 = vmul.f32 %v8124_v12, %v2191_v18  ;;  %v8212_v55 = vadd.f32 1e-05, %v1521_v29  ;;  %3037 = vperm.xlu0 %4259, %v8194_v3   ;;  %v8215_v22 = vpop.eup %4384 }
 0x2d2   : > { %vm2216_vm1 = vweird.f32 %v7927_v38  ;;  %v2242_v44 = vmul.f32 %v8133_v41, %v2241_v24  ;;  %v1447_v39 = vsub.f32 %v1293_v37, %v10618_v13  ;;  %v8220_v26 = vadd.f32 1e-05, %v1525_v63 }
 0x2d3   : > { %v8222_v6 = vmul.f32 %v2429_v60, %v2109_v40  ;;  %v8224_v27 = vpop.eup %4386  ;;  %vm2167_vm3 = vweird.f32 %v7995_v33  ;;  %v2214_v29 = vsub.f32 1.5, %v8179_v1  ;;  %v1451_v24 = vsub.f32 %v1297_v32, %v10621_v43  ;;  %v8242_v40 = vpop.permute.xlu0 %2857  ;;  %v10624_v60 = vld [vmem:[#allocation56_spill] sm:$0xff] }
 0x2d4   : > { %v8237_v37 = vmul.f32 %v2430_v42, %v2119_v0  ;;  %v10622_v63 = vsub.f32 1.5, %v8032_v62  ;;  %10623 = vst [vmem:[#allocation98_spill] sm:$0xff] %v8242_v40  ;;  %vm2177_vm5 = vweird.f32 %v7931_v23  ;;  %v8245_v58 = vadd.f32 1e-05, %v1520_v36  ;;  %v2437_v0 = vld [vmem:[%s6489_s22 + $0x1c8] sm:$0xff]  ;;  %v8256_v32 = vpop.permute.xlu2 %2862 }
 0x2d5   : > { %v1446_v13 = vsub.f32 %v1292_v53, %v10624_v60  ;;  %3012 = vperm.xlu2 %4258, %v8222_v6   ;;  %v2189_v1 = vsel %vm8230_vm2, %v7940_v51, %v2185_v16  ;;  %v10625_v42 = vsub.f32 1.5, %v7951_v4  ;;  %10626 = vst [vmem:[#allocation69_spill] sm:$0xff] %v8256_v32  ;;  %v8258_v43 = vpop.eup %4388  ;;  %vm2166_vm4 = vweird.f32 %v7878_v54 }
 0x2d6   : > { %v2135_v21 = vmul.f32 %v7899_v30, %v10622_v63  ;;  %vm2217_vm6 = vweird.f32 %v8038_v52  ;;  %v8263_v53 = vmul.f32 0.5, %v2192_v59  ;;  %4390 = vrsqrt.f32 %v8212_v55  ;;  %3017 = vperm.xlu1 %4257, %v8237_v37   ;;  %v10631_v63 = vld [vmem:[#allocation119_spill] sm:$0xff] }
 0x2d7   : > { %v2145_v62 = vmul.f32 %v7819_v25, %v10625_v42  ;;  %vm2176_vm8 = vweird.f32 %v7823_v15  ;;  %v8276_v4 = vmul.f32 0.5, %v2242_v44  ;;  %v2271_v16 = vmul.f32 %v8224_v27, %v8119_v7  ;;  %vm8324_vm11 = vmor %vm2216_vm1, %vm2217_vm6 }
 0x2d8   : > { %v1524_v59 = vmax.f32 %v1447_v39, 0.0  ;;  %4392 = vrsqrt.f32 %v8220_v26  ;;  %v1528_v18 = vmax.f32 %v1451_v24, 0.0  ;;  %v1300_v60 = vmul.f32 0.0051020407, %v10631_v63  ;;  %v2432_v39 = vld [vmem:[%s6489_s22 + $0x1a0] sm:$0xff]  ;;  %vm8365_vm1 = vmor %vm2166_vm4, %vm2167_vm3 }
 0x2d9   : > { %v8290_v42 = vmul.f32 %v2437_v0, %v2189_v1  ;;  %v2139_v44 = vsel %vm8271_vm7, %v7899_v30, %v2135_v21  ;;  %4394 = vrsqrt.f32 %v8245_v58  ;;  %v1523_v36 = vmax.f32 %v1446_v13, 0.0  ;;  %v10633_v30 = vld [vmem:[#allocation64_spill] sm:$0xff]  ;;  %v8309_v13 = vpop.permute.xlu1 %2837  ;;  %vm8382_vm3 = vmor %vm2176_vm8, %vm2177_vm5 }
 0x2da   : > { %v2149_v34 = vsel %vm8285_vm9, %v7819_v25, %v2145_v62  ;;  %v2215_v40 = vmul.f32 %v8038_v52, %v2214_v29  ;;  %v2231_v1 = vmul.f32 %v8215_v22, %v8107_v9  ;;  %v2221_v0 = vmul.f32 %v8258_v43, %v8144_v47  ;;  %v10634_v29 = vld [vmem:[#allocation107_spill] sm:$0xff] }
 0x2db   : > { %10632 = vst [vmem:[#allocation105_spill] sm:$0xff] %v8290_v42  ;;  %v1296_v21 = vmul.f32 0.0051020407, %v10633_v30  ;;  %3052 = vperm.xlu0 %4259, %v8290_v42   ;;  %vm2246_vm10 = vweird.f32 %v8026_v57  ;;  %v2272_v25 = vmul.f32 %v8224_v27, %v2271_v16  ;;  %v8313_v62 = vadd.f32 1e-05, %v1524_v59  ;;  %v10637_v59 = vld [vmem:[#allocation150_spill] sm:$0xff]  ;;  %v8357_v30 = vpop.permute.xlu0 %2872 }
 0x2dc   : > { %v1295_v51 = vmul.f32 0.0051020407, %v10634_v29  ;;  %v8316_v35 = vmul.f32 %v2432_v39, %v2139_v44  ;;  %v8318_v63 = vpop.eup %4390  ;;  %vm2197_vm12 = vweird.f32 %v8124_v12  ;;  %v8329_v16 = vadd.f32 1e-05, %v1528_v18  ;;  %10641 = vst [vmem:[#allocation143_spill] sm:$0xff] %v8357_v30  ;;  %v2436_v30 = vld [vmem:[%s6489_s22 + $0x1c0] sm:$0xff] }
 0x2dd   : > { %v1454_v24 = vsub.f32 %v1300_v60, %v10637_v59  ;;  %v8332_v32 = vmul.f32 %v2433_v14, %v2149_v34  ;;  %v10638_v44 = vsub.f32 1.5, %v8127_v28  ;;  %vm2207_vm13 = vweird.f32 %v8068_v45  ;;  %v2440_v14 = vld [vmem:[%s6489_s22 + $0x1e0] sm:$0xff] }
 0x2de   : > { %v8337_v29 = vpop.eup %4392  ;;  %v2244_v38 = vsub.f32 1.5, %v8276_v4  ;;  %v8341_v42 = vadd.f32 1e-05, %v1523_v36  ;;  %3027 = vperm.xlu2 %4258, %v8316_v35   ;;  %v2219_v18 = vsel %vm8324_vm11, %v8038_v52, %v2215_v40  ;;  %v10639_v60 = vsub.f32 1.5, %v8071_v20  ;;  %v10640_v4 = vld [vmem:[#allocation43_spill] sm:$0xff] }
 0x2df   : > { %v2165_v39 = vmul.f32 %v7995_v33, %v10638_v44  ;;  %vm2196_vm14 = vweird.f32 %v8016_v17  ;;  %v2232_v34 = vmul.f32 %v8215_v22, %v2231_v1  ;;  %vm2247_vm15 = vweird.f32 %v8133_v41  ;;  %3032 = vperm.xlu1 %4257, %v8332_v32   ;;  %v8359_v52 = vpop.eup %4394  ;;  %v8376_v44 = vpop.permute.xlu2 %2877 }
 0x2e0   : > { %v2175_v28 = vmul.f32 %v7931_v23, %v10639_v60  ;;  %v2222_v36 = vmul.f32 %v8258_v43, %v2221_v0  ;;  %v1450_v59 = vsub.f32 %v1296_v21, %v10640_v4  ;;  %vm2206_vm2 = vweird.f32 %v7953_v19  ;;  %v10644_v0 = vld [vmem:[#allocation46_spill] sm:$0xff]  ;;  %10645 = vst [vmem:[#allocation59_spill] sm:$0xff] %v8376_v44  ;;  %vm8417_vm4 = vmor %vm2246_vm10, %vm2247_vm15 }
 0x2e1   : > { %v2261_v40 = vmul.f32 %v8318_v63, %v8212_v55  ;;  %v8372_v1 = vmul.f32 0.5, %v2272_v25  ;;  %4396 = vrsqrt.f32 %v8313_v62  ;;  %v1449_v21 = vsub.f32 %v1295_v51, %v10644_v0  ;;  %v2435_v51 = vld [vmem:[%s6489_s22 + $0x1b8] sm:$0xff]  ;;  %vm8458_vm7 = vmor %vm2196_vm14, %vm2197_vm12 }
 0x2e2   : > { %4398 = vrsqrt.f32 %v8329_v16  ;;  %v1531_v60 = vmax.f32 %v1454_v24, 0.0  ;;  %v8387_v4 = vmul.f32 %v2440_v14, %v2219_v18  ;;  %v2169_v25 = vsel %vm8365_vm1, %v7995_v33, %v2165_v39  ;;  %vm8473_vm10 = vmor %vm2206_vm2, %vm2207_vm13 }
 0x2e3   : > { %v2301_v0 = vmul.f32 %v8337_v29, %v8220_v26  ;;  %4400 = vrsqrt.f32 %v8341_v42  ;;  %v2179_v15 = vsel %vm8382_vm3, %v7931_v23, %v2175_v28  ;;  %v2245_v44 = vmul.f32 %v8133_v41, %v2244_v38  ;;  %v10649_v23 = vld [vmem:[#allocation126_spill] sm:$0xff] }
 0x2e4   : > { %10648 = vst [vmem:[#allocation144_spill] sm:$0xff] %v8387_v4  ;;  %v8401_v24 = vmul.f32 0.5, %v2232_v34  ;;  %v8403_v18 = vmul.f32 0.5, %v2222_v36  ;;  %v2251_v33 = vmul.f32 %v8359_v52, %v8245_v58  ;;  %v1527_v39 = vmax.f32 %v1450_v59, 0.0  ;;  %3067 = vperm.xlu0 %4259, %v8387_v4   ;;  %v10652_v34 = vld [vmem:[#allocation129_spill] sm:$0xff] }
 0x2e5   : > { %v2262_v14 = vmul.f32 %v8318_v63, %v2261_v40  ;;  %vm2276_vm5 = vweird.f32 %v8119_v7  ;;  %v1526_v20 = vmax.f32 %v1449_v21, 0.0  ;;  %v1298_v28 = vmul.f32 0.0051020407, %v10649_v23 }
 0x2e6   : > { %v8411_v54 = vmul.f32 %v2435_v51, %v2169_v25  ;;  %v1299_v36 = vmul.f32 0.0051020407, %v10652_v34  ;;  %v8422_v59 = vadd.f32 1e-05, %v1531_v60  ;;  %v8424_v40 = vmul.f32 %v2436_v30, %v2179_v15  ;;  %v8429_v25 = vpop.permute.xlu1 %2852  ;;  %v2443_v60 = vld [vmem:[%s6489_s22 + $0x1f8] sm:$0xff] }
 0x2e7   : > { %v10654_v21 = vsub.f32 1.5, %v8263_v53  ;;  %v8431_v51 = vpop.eup %4396  ;;  %vm2237_vm6 = vweird.f32 %v8215_v22  ;;  %v2274_v57 = vsub.f32 1.5, %v8372_v1  ;;  %v2302_v4 = vmul.f32 %v8337_v29, %v2301_v0 }
 0x2e8   : > { %10653 = vst [vmem:[#allocation4_spill] sm:$0xff] %v8424_v40  ;;  %3042 = vperm.xlu2 %4258, %v8411_v54   ;;  %v2249_v30 = vsel %vm8417_vm4, %v8133_v41, %v2245_v44  ;;  %v10655_v53 = vsub.f32 1.5, %v8209_v48  ;;  %v8444_v34 = vpop.eup %4398  ;;  %v2224_v3 = vsub.f32 1.5, %v8403_v18  ;;  %v2252_v1 = vmul.f32 %v8359_v52, %v2251_v33  ;;  %3047 = vperm.xlu1 %4257, %v8424_v40   ;;  %v10661_v33 = vld [vmem:[#allocation146_spill] sm:$0xff] }
 0x2e9   : > { %v2195_v23 = vmul.f32 %v8124_v12, %v10654_v21  ;;  %v2234_v21 = vsub.f32 1.5, %v8401_v24  ;;  %v8449_v0 = vadd.f32 1e-05, %v1527_v39  ;;  %v8452_v38 = vpop.eup %4400  ;;  %vm2236_vm8 = vweird.f32 %v8107_v9  ;;  %v10658_v24 = vld [vmem:[#allocation147_spill] sm:$0xff] }
 0x2ea   : > { %v2205_v15 = vmul.f32 %v8068_v45, %v10655_v53  ;;  %v8463_v48 = vmul.f32 0.5, %v2262_v14  ;;  %vm2277_vm9 = vweird.f32 %v8224_v27  ;;  %v8466_v44 = vadd.f32 1e-05, %v1526_v20  ;;  %v2438_v53 = vld [vmem:[%s6489_s22 + $0x1d0] sm:$0xff]  ;;  %vm8550_vm1 = vmor %vm2236_vm8, %vm2237_vm6 }
 0x2eb   : > { %v1452_v18 = vsub.f32 %v1298_v28, %v10658_v24  ;;  %v1453_v39 = vsub.f32 %v1299_v36, %v10661_v33  ;;  %4402 = vrsqrt.f32 %v8422_v59  ;;  %v8479_v14 = vmul.f32 %v2443_v60, %v2249_v30  ;;  %v8485_v28 = vpop.permute.xlu0 %2887  ;;  %v2439_v36 = vld [vmem:[%s6489_s22 + $0x1d8] sm:$0xff]  ;;  %v8494_v30 = vpop.permute.xlu2 %2892  ;;  %vm8511_vm12 = vmor %vm2276_vm5, %vm2277_vm9 }
 0x2ec   : > { %v2199_v20 = vsel %vm8458_vm7, %v8124_v12, %v2195_v23  ;;  %10663 = vst [vmem:[#allocation56_spill] sm:$0xff] %v8485_v28  ;;  %v2303_v24 = vmul.f32 0.5, %v2302_v4  ;;  %v2331_v19 = vmul.f32 %v8444_v34, %v8329_v16  ;;  %v2209_v40 = vsel %vm8473_vm10, %v8068_v45, %v2205_v15  ;;  %v10665_v4 = vld [vmem:[#allocation127_spill] sm:$0xff] }
 0x2ed   : > { %10662 = vst [vmem:[#allocation148_spill] sm:$0xff] %v8479_v14  ;;  %v2275_v33 = vmul.f32 %v8224_v27, %v2274_v57  ;;  %v2253_v60 = vmul.f32 0.5, %v2252_v1  ;;  %v2291_v12 = vmul.f32 %v8431_v51, %v8313_v62  ;;  %v2281_v23 = vmul.f32 %v8452_v38, %v8341_v42  ;;  %3082 = vperm.xlu0 %4259, %v8479_v14   ;;  %v2442_v14 = vld [vmem:[%s6489_s22 + $0x1f0] sm:$0xff] }
 0x2ee   : > { %10664 = vst [vmem:[#allocation119_spill] sm:$0xff] %v8494_v30  ;;  %4404 = vrsqrt.f32 %v8449_v0  ;;  %v1529_v45 = vmax.f32 %v1452_v18, 0.0  ;;  %v1301_v15 = vmul.f32 0.0051020407, %v10665_v4  ;;  %v8504_v57 = vmul.f32 %v2438_v53, %v2199_v20  ;;  %v2446_v53 = vld [vmem:[%s6489_s22 + $0x210] sm:$0xff] }
 0x2ef   : > { %4406 = vrsqrt.f32 %v8466_v44  ;;  %vm2227_vm11 = vweird.f32 %v8258_v43  ;;  %v1530_v41 = vmax.f32 %v1453_v39, 0.0  ;;  %v8515_v17 = vmul.f32 %v2439_v36, %v2209_v40  ;;  %v8532_v39 = vpop.permute.xlu1 %2867 }
 0x2f0   : > { %v2225_v28 = vmul.f32 %v8258_v43, %v2224_v3  ;;  %v2304_v18 = vsub.f32 1.5, %v2303_v24  ;;  %v2332_v4 = vmul.f32 %v8444_v34, %v2331_v19  ;;  %3057 = vperm.xlu2 %4258, %v8504_v57   ;;  %v2279_v20 = vsel %vm8511_vm12, %v8224_v27, %v2275_v33  ;;  %v10670_v19 = vld [vmem:[#allocation149_spill] sm:$0xff] }
 0x2f1   : > { %v2235_v7 = vmul.f32 %v8215_v22, %v2234_v21  ;;  %v8525_v30 = vpop.eup %4402  ;;  %vm2226_vm13 = vweird.f32 %v8144_v47  ;;  %vm2267_vm14 = vweird.f32 %v8318_v63  ;;  %v2292_v3 = vmul.f32 %v8431_v51, %v2291_v12  ;;  %3062 = vperm.xlu1 %4257, %v8515_v17  }
 0x2f2   : > { %v2282_v40 = vmul.f32 %v8452_v38, %v2281_v23  ;;  %vm8536_vm15 = vmor %vm2226_vm13, %vm2227_vm11  ;;  %v2264_v47 = vsub.f32 1.5, %v8463_v48  ;;  %v2254_v21 = vsub.f32 1.5, %v2253_v60  ;;  %v8541_v24 = vadd.f32 1e-05, %v1529_v45  ;;  %v2441_v45 = vld [vmem:[%s6489_s22 + $0x1e8] sm:$0xff] }
 0x2f3   : > { %v1455_v36 = vsub.f32 %v1301_v15, %v10670_v19  ;;  %vm2307_vm2 = vweird.f32 %v8337_v29  ;;  %v8555_v23 = vadd.f32 1e-05, %v1530_v41  ;;  %v8557_v48 = vmul.f32 %v2446_v53, %v2279_v20 }
 0x2f4   : > { %v8544_v33 = vpop.eup %4404  ;;  %v2229_v60 = vsel %vm8536_vm15, %v8258_v43, %v2225_v28  ;;  %v2333_v1 = vmul.f32 0.5, %v2332_v4  ;;  %v2361_v9 = vmul.f32 %v8525_v30, %v8422_v59  ;;  %v2239_v19 = vsel %vm8550_vm1, %v8215_v22, %v2235_v7  ;;  %v8575_v28 = vpop.permute.xlu0 %2902 }
 0x2f5   : > { %v8563_v15 = vpop.eup %4406  ;;  %v2305_v41 = vmul.f32 %v8337_v29, %v2304_v18  ;;  %vm2257_vm3 = vweird.f32 %v8359_v52  ;;  %v2293_v20 = vmul.f32 0.5, %v2292_v3  ;;  %vm2306_vm5 = vweird.f32 %v8220_v26  ;;  %3097 = vperm.xlu0 %4259, %v8557_v48   ;;  %v8582_v18 = vpop.permute.xlu2 %2907  ;;  %v2445_v26 = vld [vmem:[%s6489_s22 + $0x208] sm:$0xff] }
 0x2f6   : > { %v2283_v43 = vmul.f32 0.5, %v2282_v40  ;;  %v2321_v4 = vmul.f32 %v8544_v33, %v8449_v0  ;;  %4408 = vrsqrt.f32 %v8541_v24  ;;  %v1532_v22 = vmax.f32 %v1455_v36, 0.0  ;;  %vm8586_vm4 = vmor %vm2306_vm5, %vm2307_vm2 }
 0x2f7   : > { %v8580_v53 = vmul.f32 %v2441_v45, %v2229_v60  ;;  %v2311_v7 = vmul.f32 %v8563_v15, %v8466_v44  ;;  %4410 = vrsqrt.f32 %v8555_v23  ;;  %v8593_v3 = vmul.f32 %v2442_v14, %v2239_v19  ;;  %v2449_v60 = vld [vmem:[%s6489_s22 + $0x228] sm:$0xff] }
 0x2f8   : > { %v2255_v40 = vmul.f32 %v8359_v52, %v2254_v21  ;;  %v2334_v27 = vsub.f32 1.5, %v2333_v1  ;;  %v2362_v36 = vmul.f32 %v8525_v30, %v2361_v9  ;;  %v2309_v12 = vsel %vm8586_vm4, %v8337_v29, %v2305_v41  ;;  %v2444_v41 = vld [vmem:[%s6489_s22 + $0x200] sm:$0xff] }
 0x2f9   : > { %3072 = vperm.xlu2 %4258, %v8580_v53   ;;  %v2265_v45 = vmul.f32 %v8318_v63, %v2264_v47  ;;  %vm2256_vm6 = vweird.f32 %v8245_v58  ;;  %3077 = vperm.xlu1 %4257, %v8593_v3   ;;  %vm2266_vm7 = vweird.f32 %v8212_v55  ;;  %v2294_v21 = vsub.f32 1.5, %v2293_v20  ;;  %v8628_v20 = vpop.permute.xlu1 %2882 }
 0x2fa   : > { %vm8608_vm8 = vmor %vm2256_vm6, %vm2257_vm3  ;;  %v2322_v1 = vmul.f32 %v8544_v33, %v2321_v4  ;;  %v8613_v29 = vadd.f32 1e-05, %v1532_v22  ;;  %v2284_v47 = vsub.f32 1.5, %v2283_v43  ;;  %v2312_v55 = vmul.f32 %v8563_v15, %v2311_v7 }
 0x2fb   : > { %vm8617_vm9 = vmor %vm2266_vm7, %vm2267_vm14  ;;  %v8622_v9 = vmul.f32 %v2449_v60, %v2309_v12  ;;  %v2259_v19 = vsel %vm8608_vm8, %v8359_v52, %v2255_v40  ;;  %vm2337_vm10 = vweird.f32 %v8444_v34  ;;  %v2363_v22 = vmul.f32 0.5, %v2362_v36 }
 0x2fc   : > { %v8630_v4 = vpop.eup %4408  ;;  %v2269_v43 = vsel %vm8617_vm9, %v8318_v63, %v2265_v45  ;;  %v2335_v7 = vmul.f32 %v8444_v34, %v2334_v27  ;;  %vm2297_vm11 = vweird.f32 %v8431_v51  ;;  %vm2287_vm12 = vweird.f32 %v8452_v38  ;;  %v8655_v45 = vpop.permute.xlu0 %2917 }
 0x2fd   : > { %v8638_v12 = vpop.eup %4410  ;;  %3112 = vperm.xlu0 %4259, %v8622_v9   ;;  %v2323_v52 = vmul.f32 0.5, %v2322_v1  ;;  %vm2336_vm13 = vweird.f32 %v8329_v16  ;;  %4412 = vrsqrt.f32 %v8613_v29  ;;  %v8645_v40 = vmul.f32 %v2444_v41, %v2259_v19  ;;  %v8666_v41 = vpop.permute.xlu2 %2922 }
 0x2fe   : > { %vm8647_vm14 = vmor %vm2336_vm13, %vm2337_vm10  ;;  %v2313_v27 = vmul.f32 0.5, %v2312_v55  ;;  %v2341_v36 = vmul.f32 %v8630_v4, %v8541_v24  ;;  %v8653_v60 = vmul.f32 %v2445_v26, %v2269_v43  ;;  %v2285_v14 = vmul.f32 %v8452_v38, %v2284_v47  ;;  %v2452_v55 = vld [vmem:[%s6489_s22 + $0x240] sm:$0xff]  ;;  %v2447_v26 = vld [vmem:[%s6489_s22 + $0x218] sm:$0xff] }
 0x2ff   : > { %v2351_v16 = vmul.f32 %v8638_v12, %v8555_v23  ;;  %v2364_v1 = vsub.f32 1.5, %v2363_v22  ;;  %v2339_v58 = vsel %vm8647_vm14, %v8444_v34, %v2335_v7  ;;  %v2295_v19 = vmul.f32 %v8431_v51, %v2294_v21  ;;  %v2455_v47 = vld [vmem:[%s6489_s22 + $0x258] sm:$0xff] }
 0x300   : > { %vm2286_vm15 = vweird.f32 %v8341_v42  ;;  %vm2296_vm1 = vweird.f32 %v8313_v62  ;;  %v2324_v22 = vsub.f32 1.5, %v2323_v52  ;;  %v2314_v21 = vsub.f32 1.5, %v2313_v27  ;;  %v2448_v27 = vld [vmem:[%s6489_s22 + $0x220] sm:$0xff] }
 0x301   : > { %3087 = vperm.xlu2 %4258, %v8645_v40   ;;  %3092 = vperm.xlu1 %4257, %v8653_v60   ;;  %vm8673_vm2 = vmor %vm2286_vm15, %vm2287_vm12  ;;  %v2342_v42 = vmul.f32 %v8630_v4, %v2341_v36  ;;  %v8684_v43 = vmul.f32 %v2452_v55, %v2339_v58  ;;  %v2352_v52 = vmul.f32 %v8638_v12, %v2351_v16  ;;  %vm2367_vm5 = vweird.f32 %v8525_v30  ;;  %v8700_v58 = vpop.permute.xlu1 %2897 }
 0x302   : > { %vm8679_vm3 = vmor %vm2296_vm1, %vm2297_vm11  ;;  %v2289_v62 = vsel %vm8673_vm2, %v8452_v38, %v2285_v14  ;;  %v2365_v36 = vmul.f32 %v8525_v30, %v2364_v1  ;;  %vm2317_vm4 = vweird.f32 %v8563_v15  ;;  %vm2366_vm6 = vweird.f32 %v8422_v59 }
 0x303   : > { %v8690_v7 = vpop.eup %4412  ;;  %v2299_v63 = vsel %vm8679_vm3, %v8431_v51, %v2295_v19  ;;  %v8704_v38 = vmul.f32 %v2447_v26, %v2289_v62  ;;  %vm8706_vm7 = vmor %vm2366_vm6, %vm2367_vm5  ;;  %v2343_v16 = vmul.f32 0.5, %v2342_v42  ;;  %v2315_v1 = vmul.f32 %v8563_v15, %v2314_v21 }
 0x304   : > { %v2371_v51 = vmul.f32 %v8690_v7, %v8613_v29  ;;  %v8712_v55 = vmul.f32 %v2448_v27, %v2299_v63  ;;  %vm2327_vm8 = vweird.f32 %v8544_v33  ;;  %v2353_v19 = vmul.f32 0.5, %v2352_v52  ;;  %v8724_v42 = vpop.permute.xlu0 %2932  ;;  %v2451_v27 = vld [vmem:[%s6489_s22 + $0x238] sm:$0xff] }
 0x305   : > { %3127 = vperm.xlu0 %4259, %v8684_v43   ;;  %v2369_v59 = vsel %vm8706_vm7, %v8525_v30, %v2365_v36  ;;  %v2325_v34 = vmul.f32 %v8544_v33, %v2324_v22  ;;  %vm2316_vm9 = vweird.f32 %v8466_v44  ;;  %10687 = vst [vmem:[#allocation64_spill] sm:$0xff] %v8724_v42  ;;  %vm2326_vm10 = vweird.f32 %v8449_v0  ;;  %v8729_v21 = vpop.permute.xlu2 %2937  ;;  %v2450_v22 = vld [vmem:[%s6489_s22 + $0x230] sm:$0xff]  ;;  %v10708_v42 = vld [vmem:[#allocation86_spill] sm:$0xff] }
 0x306   : > { %vm2318_vm11 = vmor %vm2316_vm9, %vm2317_vm4  ;;  %v2344_v30 = vsub.f32 1.5, %v2343_v16  ;;  %v2372_v62 = vmul.f32 %v8690_v7, %v2371_v51  ;;  %v8732_v26 = vmul.f32 %v2455_v47, %v2369_v59  ;;  %v2354_v52 = vsub.f32 1.5, %v2353_v19  ;;  %v2535_v19 = vld [vmem:[%s8751_s25 + $0x8] sm:$0xff] }
 0x307   : > { %vm2328_vm12 = vmor %vm2326_vm10, %vm2327_vm8  ;;  %v2319_v44 = vsel %vm2318_vm11, %v8563_v15, %v2315_v1  ;;  %vm2347_vm13 = vweird.f32 %v8630_v4  ;;  %v10689_v15 = vld [vmem:[#allocation39_spill] sm:$0xff]  ;;  %vm2357_vm14 = vweird.f32 %v8638_v12  ;;  %vm2346_vm15 = vweird.f32 %v8541_v24 }
 0x308   : > { %10688 = vst [vmem:[#allocation107_spill] sm:$0xff] %v8732_v26  ;;  %v2329_v63 = vsel %vm2328_vm12, %v8544_v33, %v2325_v34  ;;  %v8740_v0 = vmul.f32 %v2450_v22, %v2319_v44  ;;  %v2373_v36 = vmul.f32 0.5, %v2372_v62  ;;  %v10690_v33 = vld [vmem:[#allocation50_spill] sm:$0xff]  ;;  %v2345_v1 = vmul.f32 %v8630_v4, %v2344_v30  ;;  %vm2348_vm2 = vmor %vm2346_vm15, %vm2347_vm13  ;;  %v2453_v22 = vld [vmem:[%s6489_s22 + $0x248] sm:$0xff] }
 0x309   : > { %3102 = vperm.xlu2 %4258, %v8704_v38   ;;  %3107 = vperm.xlu1 %4257, %v8712_v55   ;;  %v8742_v14 = vmul.f32 %v2451_v27, %v2329_v63  ;;  %v8744_v16 = vpop.permute.xlu1 %2912  ;;  %v2612_v51 = vmul.f32 %v10690_v33, %v10689_v15  ;;  %v2355_v59 = vmul.f32 %v8638_v12, %v2354_v52  ;;  %vm2356_vm1 = vweird.f32 %v8555_v23  ;;  %v2454_v52 = vld [vmem:[%s6489_s22 + $0x250] sm:$0xff]  ;;  %v10693_v27 = vld [vmem:[#allocation25_spill] sm:$0xff] }
 0x30a   : > { %vm2358_vm3 = vmor %vm2356_vm1, %vm2357_vm14  ;;  %v2374_v34 = vsub.f32 1.5, %v2373_v36  ;;  %v2349_v44 = vsel %vm2348_vm2, %v8630_v4, %v2345_v1  ;;  %vm2377_vm5 = vweird.f32 %v8690_v7  ;;  %v10694_v36 = vld [vmem:[#allocation33_spill] sm:$0xff]  ;;  %v2538_v4 = vld [vmem:[%s8751_s25 + $0x20] sm:$0xff]  ;;  %vm2376_vm4 = vweird.f32 %v8613_v29 }
 0x30b   : > { %v2689_v30 = vsub.f32 %v2535_v19, %v2612_v51  ;;  %v2359_v24 = vsel %vm2358_vm3, %v8638_v12, %v2355_v59  ;;  %v8773_v23 = vmul.f32 %v2453_v22, %v2349_v44  ;;  %v2615_v15 = vmul.f32 %v10694_v36, %v10693_v27  ;;  %vm2378_vm6 = vmor %vm2376_vm4, %vm2377_vm5  ;;  %v2456_v59 = vld [vmem:[%s6489_s22 + $0x260] sm:$0xff]  ;;  %v10700_v36 = vld [vmem:[#allocation73_spill] sm:$0xff] }
 0x30c   : > { %v8767_v62 = vpop.permute.xlu0 %2947  ;;  %v8776_v63 = vmul.f32 %v2454_v52, %v2359_v24  ;;  %v2375_v33 = vmul.f32 %v8690_v7, %v2374_v34  ;;  %v10697_v34 = vld [vmem:[#allocation66_spill] sm:$0xff] }
 0x30d   : > { %3142 = vperm.xlu0 %4259, %v8732_v26   ;;  %v8765_v47 = vpop.permute.xlu2 %2952  ;;  %10692 = vst [vmem:[#allocation43_spill] sm:$0xff] %v8767_v62  ;;  %v2692_v1 = vsub.f32 %v2538_v4, %v2615_v15  ;;  %v2534_v22 = vld [vmem:[%s8751_s25] sm:$0xff] }
 0x30e   : > { %10691 = vst [vmem:[#allocation150_spill] sm:$0xff] %v8765_v47  ;;  %v2379_v19 = vsel %vm2378_vm6, %v8690_v7, %v2375_v33  ;;  %v10699_v27 = vld [vmem:[#allocation34_spill] sm:$0xff]  ;;  %v2541_v7 = vld [vmem:[%s8751_s25 + $0x38] sm:$0xff] }
 0x30f   : > { %v8796_v24 = vmul.f32 %v2456_v59, %v2379_v19  ;;  %v2618_v62 = vmul.f32 %v10700_v36, %v10699_v27  ;;  %v10701_v15 = vld [vmem:[#allocation26_spill] sm:$0xff]  ;;  %v2536_v19 = vld [vmem:[%s8751_s25 + $0x10] sm:$0xff]  ;;  %v10704_v59 = vld [vmem:[#allocation29_spill] sm:$0xff] }
 0x310   : > { %v10702_v33 = vld [vmem:[#allocation58_spill] sm:$0xff]  ;;  %v2537_v27 = vld [vmem:[%s8751_s25 + $0x18] sm:$0xff] }
 0x311   : > { %3117 = vperm.xlu2 %4258, %v8740_v0   ;;  %3122 = vperm.xlu1 %4257, %v8742_v14   ;;  %v8785_v12 = vpop.permute.xlu1 %2927  ;;  %v2613_v4 = vmul.f32 %v10702_v33, %v10701_v15  ;;  %v2544_v33 = vld [vmem:[%s8751_s25 + $0x50] sm:$0xff] }
 0x313   : > { %v2690_v36 = vsub.f32 %v2536_v19, %v2613_v4  ;;  %v2539_v4 = vld [vmem:[%s8751_s25 + $0x28] sm:$0xff]  ;;  %v10713_v19 = vld [vmem:[#allocation76_spill] sm:$0xff] }
 0x314   : > { %v8794_v29 = vpop.permute.xlu0 %2962 }
 0x315   : > { %3311 = vperm.xlu0 %4259, %v2689_v30   ;;  %v8787_v51 = vpop.permute.xlu2 %2967  ;;  %v10696_v30 = vld [vmem:[#allocation36_spill] sm:$0xff]  ;;  %10698 = vst [vmem:[#allocation126_spill] sm:$0xff] %v8794_v29 }
 0x316   : > { %10695 = vst [vmem:[#allocation46_spill] sm:$0xff] %v8787_v51  ;;  %v2611_v44 = vmul.f32 %v10697_v34, %v10696_v30  ;;  %v10707_v51 = vld [vmem:[#allocation38_spill] sm:$0xff] }
 0x317   : > { %v2621_v15 = vmul.f32 %v10708_v42, %v10707_v51 }
 0x318   : > { %v2688_v52 = vsub.f32 %v2534_v22, %v2611_v44  ;;  %v10705_v44 = vld [vmem:[#allocation35_spill] sm:$0xff] }
 0x319   : > { %3132 = vperm.xlu2 %4258, %v8773_v23   ;;  %3137 = vperm.xlu1 %4257, %v8776_v63   ;;  %v8806_v34 = vpop.permute.xlu1 %2942  ;;  %v2614_v22 = vmul.f32 %v10705_v44, %v10704_v59  ;;  %v2698_v44 = vsub.f32 %v2544_v33, %v2621_v15  ;;  %v10717_v15 = vld [vmem:[#allocation31_spill] sm:$0xff] }
 0x31a   : > { %v10718_v33 = vld [vmem:[#allocation83_spill] sm:$0xff] }
 0x31d   : > { %3326 = vperm.xlu0 %4259, %v2692_v1   ;;  %v8804_v30 = vpop.permute.xlu2 %2982  ;;  %v2695_v1 = vsub.f32 %v2541_v7, %v2618_v62  ;;  %v8812_v29 = vpop.permute.xlu0 %2977  ;;  %v10709_v62 = vld [vmem:[#allocation28_spill] sm:$0xff] }
 0x31e   : > { %10703 = vst [vmem:[#allocation129_spill] sm:$0xff] %v8804_v30  ;;  %v10710_v7 = vld [vmem:[#allocation32_spill] sm:$0xff] }
 0x31f   : > { %10706 = vst [vmem:[#allocation147_spill] sm:$0xff] %v8812_v29  ;;  %v2616_v30 = vmul.f32 %v10710_v7, %v10709_v62  ;;  %v10716_v29 = vld [vmem:[#allocation153_spill] sm:$0xff]  ;;  %v2547_v7 = vld [vmem:[%s8751_s25 + $0x68] sm:$0xff] }
 0x321   : > { %3147 = vperm.xlu2 %4258, %v8796_v24   ;;  %3306 = vperm.xlu1 %4257, %v2688_v52   ;;  %v2691_v52 = vsub.f32 %v2537_v27, %v2614_v22  ;;  %v2540_v27 = vld [vmem:[%s8751_s25 + $0x30] sm:$0xff]  ;;  %v2693_v42 = vsub.f32 %v2539_v4, %v2616_v30  ;;  %v2542_v30 = vld [vmem:[%s8751_s25 + $0x40] sm:$0xff] }
 0x322   : > { %v8821_v59 = vpop.permute.xlu1 %2957  ;;  %v10722_v4 = vld [vmem:[#allocation68_spill] sm:$0xff] }
 0x325   : > { %3341 = vperm.xlu0 %4259, %v2695_v1   ;;  %v8819_v47 = vpop.permute.xlu2 %2997  ;;  %v10712_v1 = vld [vmem:[#allocation45_spill] sm:$0xff] }
 0x326   : > { %10711 = vst [vmem:[#allocation146_spill] sm:$0xff] %v8819_v47  ;;  %v2617_v22 = vmul.f32 %v10713_v19, %v10712_v1  ;;  %v2619_v47 = vmul.f32 %v10718_v33, %v10717_v15  ;;  %v2550_v33 = vld [vmem:[%s8751_s25 + $0x80] sm:$0xff] }
 0x327   : > { %v8827_v51 = vpop.permute.xlu0 %2992 }
 0x328   : > { %10714 = vst [vmem:[#allocation127_spill] sm:$0xff] %v8827_v51  ;;  %v10725_v51 = vld [vmem:[#allocation10_spill] sm:$0xff] }
 0x329   : > { %3316 = vperm.xlu2 %4258, %v2690_v36   ;;  %3321 = vperm.xlu1 %4257, %v2691_v52   ;;  %v2694_v36 = vsub.f32 %v2540_v27, %v2617_v22  ;;  %v10715_v52 = vld [vmem:[#allocation44_spill] sm:$0xff]  ;;  %v2543_v27 = vld [vmem:[%s8751_s25 + $0x48] sm:$0xff] }
 0x32a   : > { %v2624_v62 = vmul.f32 %v10716_v29, %v10715_v52  ;;  %v2696_v29 = vsub.f32 %v2542_v30, %v2619_v47  ;;  %v10724_v52 = vld [vmem:[#allocation55_spill] sm:$0xff]  ;;  %v2545_v47 = vld [vmem:[%s8751_s25 + $0x58] sm:$0xff]  ;;  %v10731_v30 = vld [vmem:[#allocation60_spill] sm:$0xff] }
 0x32b   : > { %v8836_v1 = vpop.permute.xlu1 %2972  ;;  %v2627_v15 = vmul.f32 %v10725_v51, %v10724_v52  ;;  %v10733_v52 = vld [vmem:[#allocation78_spill] sm:$0xff] }
 0x32c   : > { %10720 = vst [vmem:[#allocation39_spill] sm:$0xff] %v8836_v1  ;;  %v2701_v19 = vsub.f32 %v2547_v7, %v2624_v62  ;;  %v10726_v62 = vld [vmem:[#allocation37_spill] sm:$0xff]  ;;  %v10727_v7 = vld [vmem:[#allocation151_spill] sm:$0xff] }
 0x32d   : > { %3356 = vperm.xlu0 %4259, %v2698_v44   ;;  %v10721_v44 = vld [vmem:[#allocation41_spill] sm:$0xff] }
 0x32e   : > { %v2620_v22 = vmul.f32 %v10722_v4, %v10721_v44  ;;  %v2704_v4 = vsub.f32 %v2550_v33, %v2627_v15  ;;  %v10735_v15 = vld [vmem:[#allocation51_spill] sm:$0xff]  ;;  %v10736_v33 = vld [vmem:[#allocation154_spill] sm:$0xff] }
 0x32f   : > { %v8834_v26 = vpop.permute.xlu2 %3012 }
 0x330   : > { %10719 = vst [vmem:[#allocation149_spill] sm:$0xff] %v8834_v26  ;;  %v2622_v26 = vmul.f32 %v10727_v7, %v10726_v62  ;;  %v2553_v7 = vld [vmem:[%s8751_s25 + $0x98] sm:$0xff] }
 0x331   : > { %3331 = vperm.xlu2 %4258, %v2693_v42   ;;  %3336 = vperm.xlu1 %4257, %v2694_v36   ;;  %v8842_v42 = vpop.permute.xlu0 %3007  ;;  %v2697_v36 = vsub.f32 %v2543_v27, %v2620_v22  ;;  %v2546_v27 = vld [vmem:[%s8751_s25 + $0x60] sm:$0xff] }
 0x332   : > { %10723 = vst [vmem:[#allocation50_spill] sm:$0xff] %v8842_v42  ;;  %v2699_v51 = vsub.f32 %v2545_v47, %v2622_v26  ;;  %v10734_v42 = vld [vmem:[#allocation145_spill] sm:$0xff]  ;;  %v2548_v26 = vld [vmem:[%s8751_s25 + $0x70] sm:$0xff] }
 0x333   : > { %v2630_v62 = vmul.f32 %v10734_v42, %v10733_v52  ;;  %v10740_v47 = vld [vmem:[#allocation96_spill] sm:$0xff]  ;;  %v10742_v52 = vld [vmem:[#allocation74_spill] sm:$0xff] }
 0x335   : > { %3371 = vperm.xlu0 %4259, %v2701_v19   ;;  %v8851_v44 = vpop.permute.xlu1 %2987  ;;  %v10730_v19 = vld [vmem:[#allocation57_spill] sm:$0xff] }
 0x336   : > { %10729 = vst [vmem:[#allocation33_spill] sm:$0xff] %v8851_v44  ;;  %v2623_v22 = vmul.f32 %v10731_v30, %v10730_v19  ;;  %v2707_v30 = vsub.f32 %v2553_v7, %v2630_v62  ;;  %v10744_v62 = vld [vmem:[#allocation47_spill] sm:$0xff] }
 0x337   : > { %v10745_v7 = vld [vmem:[#allocation3_spill] sm:$0xff] }
 0x338   : > { %v8849_v1 = vpop.permute.xlu2 %3027 }
 0x339   : > { %3346 = vperm.xlu2 %4258, %v2696_v29   ;;  %3351 = vperm.xlu1 %4257, %v2697_v36   ;;  %10728 = vst [vmem:[#allocation25_spill] sm:$0xff] %v8849_v1  ;;  %v2700_v36 = vsub.f32 %v2546_v27, %v2623_v22  ;;  %v2625_v1 = vmul.f32 %v10736_v33, %v10735_v15  ;;  %v2549_v27 = vld [vmem:[%s8751_s25 + $0x78] sm:$0xff]  ;;  %v2556_v33 = vld [vmem:[%s8751_s25 + $0xb0] sm:$0xff] }
 0x33a   : > { %v8857_v29 = vpop.permute.xlu0 %3022 }
 0x33b   : > { %10732 = vst [vmem:[#allocation36_spill] sm:$0xff] %v8857_v29  ;;  %v2702_v42 = vsub.f32 %v2548_v26, %v2625_v1  ;;  %v10743_v29 = vld [vmem:[#allocation102_spill] sm:$0xff]  ;;  %v2551_v1 = vld [vmem:[%s8751_s25 + $0x88] sm:$0xff]  ;;  %v10749_v26 = vld [vmem:[#allocation152_spill] sm:$0xff] }
 0x33c   : > { %v2633_v15 = vmul.f32 %v10743_v29, %v10742_v52  ;;  %v10751_v52 = vld [vmem:[#allocation93_spill] sm:$0xff] }
 0x33d   : > { %3386 = vperm.xlu0 %4259, %v2704_v4   ;;  %v10739_v4 = vld [vmem:[#allocation75_spill] sm:$0xff] }
 0x33e   : > { %v8866_v19 = vpop.permute.xlu1 %3002  ;;  %v2626_v22 = vmul.f32 %v10740_v47, %v10739_v4  ;;  %v2710_v47 = vsub.f32 %v2556_v33, %v2633_v15  ;;  %v10753_v15 = vld [vmem:[#allocation65_spill] sm:$0xff]  ;;  %v10754_v33 = vld [vmem:[#allocation80_spill] sm:$0xff] }
 0x33f   : > { %10738 = vst [vmem:[#allocation34_spill] sm:$0xff] %v8866_v19 }
 0x341   : > { %3361 = vperm.xlu2 %4258, %v2699_v51   ;;  %3366 = vperm.xlu1 %4257, %v2700_v36   ;;  %v2703_v36 = vsub.f32 %v2549_v27, %v2626_v22  ;;  %v2552_v27 = vld [vmem:[%s8751_s25 + $0x90] sm:$0xff] }
 0x342   : > { %v8864_v44 = vpop.permute.xlu2 %3042 }
 0x343   : > { %10737 = vst [vmem:[#allocation66_spill] sm:$0xff] %v8864_v44  ;;  %v8872_v51 = vpop.permute.xlu0 %3037  ;;  %v2628_v44 = vmul.f32 %v10745_v7, %v10744_v62  ;;  %v2559_v7 = vld [vmem:[%s8751_s25 + $0xc8] sm:$0xff] }
 0x344   : > { %10741 = vst [vmem:[#allocation73_spill] sm:$0xff] %v8872_v51  ;;  %v10752_v51 = vld [vmem:[#allocation111_spill] sm:$0xff] }
 0x345   : > { %3401 = vperm.xlu0 %4259, %v2707_v30   ;;  %v10748_v30 = vld [vmem:[#allocation67_spill] sm:$0xff]  ;;  %v2705_v29 = vsub.f32 %v2551_v1, %v2628_v44  ;;  %v2636_v62 = vmul.f32 %v10752_v51, %v10751_v52  ;;  %v2554_v44 = vld [vmem:[%s8751_s25 + $0xa0] sm:$0xff]  ;;  %v10758_v1 = vld [vmem:[#allocation81_spill] sm:$0xff] }
 0x346   : > { %v2629_v22 = vmul.f32 %v10749_v26, %v10748_v30  ;;  %v10760_v52 = vld [vmem:[#allocation91_spill] sm:$0xff] }
 0x347   : > { %v2713_v26 = vsub.f32 %v2559_v7, %v2636_v62  ;;  %v10762_v62 = vld [vmem:[#allocation84_spill] sm:$0xff]  ;;  %v10763_v7 = vld [vmem:[#allocation27_spill] sm:$0xff] }
 0x348   : > { %v8881_v4 = vpop.permute.xlu1 %3017 }
 0x349   : > { %3376 = vperm.xlu2 %4258, %v2702_v42   ;;  %3381 = vperm.xlu1 %4257, %v2703_v36   ;;  %10747 = vst [vmem:[#allocation58_spill] sm:$0xff] %v8881_v4  ;;  %v2706_v36 = vsub.f32 %v2552_v27, %v2629_v22  ;;  %v2555_v27 = vld [vmem:[%s8751_s25 + $0xa8] sm:$0xff] }
 0x34a   : > { %v8879_v19 = vpop.permute.xlu2 %3057 }
 0x34b   : > { %10746 = vst [vmem:[#allocation26_spill] sm:$0xff] %v8879_v19  ;;  %v2631_v19 = vmul.f32 %v10754_v33, %v10753_v15  ;;  %v2562_v33 = vld [vmem:[%s8751_s25 + $0xe0] sm:$0xff] }
 0x34d   : > { %3416 = vperm.xlu0 %4259, %v2710_v47   ;;  %v8887_v42 = vpop.permute.xlu0 %3052  ;;  %v10757_v47 = vld [vmem:[#allocation87_spill] sm:$0xff]  ;;  %v2708_v51 = vsub.f32 %v2554_v44, %v2631_v19  ;;  %v2557_v19 = vld [vmem:[%s8751_s25 + $0xb8] sm:$0xff]  ;;  %v10767_v44 = vld [vmem:[#allocation100_spill] sm:$0xff] }
 0x34e   : > { %10750 = vst [vmem:[#allocation29_spill] sm:$0xff] %v8887_v42  ;;  %v2632_v22 = vmul.f32 %v10758_v1, %v10757_v47  ;;  %v10761_v42 = vld [vmem:[#allocation106_spill] sm:$0xff] }
 0x34f   : > { %v2639_v15 = vmul.f32 %v10761_v42, %v10760_v52  ;;  %v10769_v52 = vld [vmem:[#allocation103_spill] sm:$0xff] }
 0x351   : > { %3391 = vperm.xlu2 %4258, %v2705_v29   ;;  %3396 = vperm.xlu1 %4257, %v2706_v36   ;;  %v8896_v30 = vpop.permute.xlu1 %3032  ;;  %v2709_v36 = vsub.f32 %v2555_v27, %v2632_v22  ;;  %v2716_v1 = vsub.f32 %v2562_v33, %v2639_v15  ;;  %v2558_v27 = vld [vmem:[%s8751_s25 + $0xc0] sm:$0xff]  ;;  %v10771_v15 = vld [vmem:[#allocation77_spill] sm:$0xff] }
 0x352   : > { %10756 = vst [vmem:[#allocation38_spill] sm:$0xff] %v8896_v30  ;;  %v10772_v33 = vld [vmem:[#allocation30_spill] sm:$0xff] }
 0x353   : > { %v8894_v4 = vpop.permute.xlu2 %3072 }
 0x354   : > { %10755 = vst [vmem:[#allocation35_spill] sm:$0xff] %v8894_v4  ;;  %v2634_v4 = vmul.f32 %v10763_v7, %v10762_v62  ;;  %v2565_v7 = vld [vmem:[%s8751_s25 + $0xf8] sm:$0xff] }
 0x355   : > { %3431 = vperm.xlu0 %4259, %v2713_v26   ;;  %v10766_v26 = vld [vmem:[#allocation82_spill] sm:$0xff] }
 0x356   : > { %v8902_v29 = vpop.permute.xlu0 %3067  ;;  %v2635_v22 = vmul.f32 %v10767_v44, %v10766_v26  ;;  %v2711_v42 = vsub.f32 %v2557_v19, %v2634_v4  ;;  %v2560_v4 = vld [vmem:[%s8751_s25 + $0xd0] sm:$0xff] }
 0x357   : > { %10759 = vst [vmem:[#allocation86_spill] sm:$0xff] %v8902_v29  ;;  %v10770_v29 = vld [vmem:[#allocation118_spill] sm:$0xff]  ;;  %v10775_v19 = vld [vmem:[#allocation20_spill] sm:$0xff] }
 0x358   : > { %v2642_v62 = vmul.f32 %v10770_v29, %v10769_v52  ;;  %v10777_v52 = vld [vmem:[#allocation52_spill] sm:$0xff] }
 0x359   : > { %3406 = vperm.xlu2 %4258, %v2708_v51   ;;  %3411 = vperm.xlu1 %4257, %v2709_v36   ;;  %v2712_v36 = vsub.f32 %v2558_v27, %v2635_v22  ;;  %v2561_v27 = vld [vmem:[%s8751_s25 + $0xd8] sm:$0xff] }
 0x35a   : > { %v8911_v47 = vpop.permute.xlu1 %3047  ;;  %v2719_v44 = vsub.f32 %v2565_v7, %v2642_v62  ;;  %v10778_v62 = vld [vmem:[#allocation85_spill] sm:$0xff] }
 0x35b   : > { %v8909_v30 = vpop.permute.xlu2 %3087  ;;  %10765 = vst [vmem:[#allocation32_spill] sm:$0xff] %v8911_v47  ;;  %v10779_v7 = vld [vmem:[#allocation109_spill] sm:$0xff] }
 0x35c   : > { %10764 = vst [vmem:[#allocation28_spill] sm:$0xff] %v8909_v30  ;;  %v2637_v30 = vmul.f32 %v10772_v33, %v10771_v15  ;;  %v2645_v15 = vmul.f32 %v7746_v11, %v10777_v52  ;;  %v2568_v33 = vld [vmem:[%s8751_s25 + $0x110] sm:$0xff]  ;;  %v10785_v52 = vld [vmem:[#allocation62_spill] sm:$0xff] }
 0x35d   : > { %3446 = vperm.xlu0 %4259, %v2716_v1   ;;  %v10774_v1 = vld [vmem:[#allocation94_spill] sm:$0xff] }
 0x35e   : > { %v2638_v22 = vmul.f32 %v10775_v19, %v10774_v1  ;;  %v2714_v29 = vsub.f32 %v2560_v4, %v2637_v30  ;;  %v2722_v19 = vsub.f32 %v2568_v33, %v2645_v15  ;;  %v2563_v30 = vld [vmem:[%s8751_s25 + $0xe8] sm:$0xff]  ;;  %v10786_v15 = vld [vmem:[#allocation101_spill] sm:$0xff] }
 0x35f   : > { %v8917_v51 = vpop.permute.xlu0 %3082  ;;  %v10783_v4 = vld [vmem:[#allocation23_spill] sm:$0xff] }
 0x360   : > { %10768 = vst [vmem:[#allocation45_spill] sm:$0xff] %v8917_v51  ;;  %v2640_v51 = vmul.f32 %v10779_v7, %v10778_v62  ;;  %v2648_v62 = vmul.f32 %v7842_v46, %v10785_v52  ;;  %v2571_v7 = vld [vmem:[%s8751_s25 + $0x128] sm:$0xff]  ;;  %v10793_v52 = vld [vmem:[#allocation72_spill] sm:$0xff] }
 0x361   : > { %3421 = vperm.xlu2 %4258, %v2711_v42   ;;  %3426 = vperm.xlu1 %4257, %v2712_v36   ;;  %v2715_v36 = vsub.f32 %v2561_v27, %v2638_v22  ;;  %v2564_v27 = vld [vmem:[%s8751_s25 + $0xf0] sm:$0xff]  ;;  %v10787_v33 = vld [vmem:[#allocation123_spill] sm:$0xff] }
 0x362   : > { %v2717_v11 = vsub.f32 %v2563_v30, %v2640_v51  ;;  %v2566_v51 = vld [vmem:[%s8751_s25 + $0x100] sm:$0xff] }
 0x363   : > { %v8924_v47 = vpop.permute.xlu2 %3102  ;;  %v8926_v26 = vpop.permute.xlu1 %3062  ;;  %v10791_v30 = vld [vmem:[#allocation22_spill] sm:$0xff] }
 0x364   : > { %10773 = vst [vmem:[#allocation76_spill] sm:$0xff] %v8924_v47 }
 0x365   : > { %3461 = vperm.xlu0 %4259, %v2719_v44   ;;  %v10782_v44 = vld [vmem:[#allocation95_spill] sm:$0xff] }
 0x366   : > { %v2641_v22 = vmul.f32 %v10783_v4, %v10782_v44  ;;  %v2725_v4 = vsub.f32 %v2571_v7, %v2648_v62  ;;  %v10794_v62 = vld [vmem:[#allocation92_spill] sm:$0xff] }
 0x367   : > { %v8932_v42 = vpop.permute.xlu0 %3097  ;;  %v2646_v7 = vmul.f32 %v7756_v5, %v10794_v62  ;;  %v2577_v62 = vld [vmem:[%s8751_s25 + $0x158] sm:$0xff] }
 0x368   : > { %10776 = vst [vmem:[#allocation44_spill] sm:$0xff] %v8932_v42  ;;  %v2643_v42 = vmul.f32 %v10787_v33, %v10786_v15  ;;  %v2651_v15 = vmul.f32 %v7938_v8, %v10793_v52  ;;  %v2574_v33 = vld [vmem:[%s8751_s25 + $0x140] sm:$0xff] }
 0x369   : > { %3436 = vperm.xlu2 %4258, %v2714_v29   ;;  %3441 = vperm.xlu1 %4257, %v2715_v36   ;;  %v2718_v36 = vsub.f32 %v2564_v27, %v2641_v22  ;;  %v2567_v27 = vld [vmem:[%s8751_s25 + $0x108] sm:$0xff]  ;;  %v10800_v52 = vld [vmem:[#allocation90_spill] sm:$0xff] }
 0x36a   : > { %v2720_v46 = vsub.f32 %v2566_v51, %v2643_v42  ;;  %v2728_v42 = vsub.f32 %v2574_v33, %v2651_v15  ;;  %v10797_v51 = vld [vmem:[#allocation63_spill] sm:$0xff]  ;;  %v2654_v5 = vmul.f32 %v8036_v49, %v10800_v52  ;;  %v10805_v52 = vld [vmem:[#allocation128_spill] sm:$0xff] }
 0x36b   : > { %v8939_v47 = vpop.permute.xlu2 %3117  ;;  %v8941_v1 = vpop.permute.xlu1 %3077  ;;  %v4437_v33 = vld [vmem:[%s4635_s18 + $0x28] sm:$0xff] }
 0x36c   : > { %10780 = vst [vmem:[#allocation153_spill] sm:$0xff] %v8939_v47  ;;  %v2731_v49 = vsub.f32 %v2577_v62, %v2654_v5 }
 0x36d   : > { %10781 = vst [vmem:[#allocation31_spill] sm:$0xff] %v8941_v1  ;;  %3476 = vperm.xlu0 %4259, %v2722_v19   ;;  %v10790_v19 = vld [vmem:[#allocation53_spill] sm:$0xff] }
 0x36e   : > { %v2644_v22 = vmul.f32 %v10791_v30, %v10790_v19 }
 0x36f   : > { %v8947_v29 = vpop.permute.xlu0 %3112 }
 0x370   : > { %10784 = vst [vmem:[#allocation83_spill] sm:$0xff] %v8947_v29 }
 0x371   : > { %3451 = vperm.xlu2 %4258, %v2717_v11   ;;  %3456 = vperm.xlu1 %4257, %v2718_v36   ;;  %v2721_v36 = vsub.f32 %v2567_v27, %v2644_v22  ;;  %v10798_v22 = vld [vmem:[#allocation113_spill] sm:$0xff] }
 0x372   : > { %v2647_v27 = vmul.f32 %v10798_v22, %v10797_v51  ;;  %v3155_v51 = vmul.f32 %v4437_v33, %v7760_v50  ;;  %v10806_v33 = vld [vmem:[#allocation121_spill] sm:$0xff] }
 0x373   : > { %v8954_v47 = vpop.permute.xlu2 %3132  ;;  %v8956_v44 = vpop.permute.xlu1 %3092 }
 0x374   : > { %10788 = vst [vmem:[#allocation41_spill] sm:$0xff] %v8954_v47  ;;  %v2573_v47 = vld [vmem:[%s8751_s25 + $0x138] sm:$0xff] }
 0x375   : > { %10789 = vst [vmem:[#allocation68_spill] sm:$0xff] %v8956_v44  ;;  %3491 = vperm.xlu0 %4259, %v2725_v4   ;;  %v2569_v4 = vld [vmem:[%s8751_s25 + $0x118] sm:$0xff] }
 0x376   : > { %v2723_v8 = vsub.f32 %v2569_v4, %v2646_v7  ;;  %v10802_v7 = vld [vmem:[#allocation61_spill] sm:$0xff] }
 0x377   : > { %v8962_v11 = vpop.permute.xlu0 %3127 }
 0x378   : > { %10792 = vst [vmem:[#allocation55_spill] sm:$0xff] %v8962_v11  ;;  %v2570_v11 = vld [vmem:[%s8751_s25 + $0x120] sm:$0xff] }
 0x379   : > { %3466 = vperm.xlu2 %4258, %v2720_v46   ;;  %3471 = vperm.xlu1 %4257, %v2721_v36   ;;  %v2724_v36 = vsub.f32 %v2570_v11, %v2647_v27  ;;  %v2572_v27 = vld [vmem:[%s8751_s25 + $0x130] sm:$0xff] }
 0x37b   : > { %v8969_v19 = vpop.permute.xlu2 %3147  ;;  %v8971_v30 = vpop.permute.xlu1 %3107 }
 0x37c   : > { %10795 = vst [vmem:[#allocation10_spill] sm:$0xff] %v8969_v19  ;;  %v4436_v19 = vld [vmem:[%s4635_s18 + $0x20] sm:$0xff] }
 0x37d   : > { %10796 = vst [vmem:[#allocation37_spill] sm:$0xff] %v8971_v30  ;;  %3506 = vperm.xlu0 %4259, %v2728_v42   ;;  %v3154_v15 = vmul.f32 %v4436_v19, %v7760_v50  ;;  %v10801_v42 = vld [vmem:[#allocation54_spill] sm:$0xff] }
 0x37e   : > { %v2649_v4 = vmul.f32 %v10802_v7, %v10801_v42  ;;  %v4439_v7 = vld [vmem:[%s4635_s18 + $0x18] sm:$0xff] }
 0x37f   : > { %v8977_v46 = vpop.permute.xlu0 %3142 }
 0x380   : > { %10799 = vst [vmem:[#allocation151_spill] sm:$0xff] %v8977_v46  ;;  %v2726_v5 = vsub.f32 %v2572_v27, %v2649_v4  ;;  %v4441_v4 = vld [vmem:[%s4635_s18 + $0x58] sm:$0xff]  ;;  %v10810_v27 = vld [vmem:[#allocation11_spill] sm:$0xff] }
 0x381   : > { %3481 = vperm.xlu2 %4258, %v2723_v8   ;;  %3486 = vperm.xlu1 %4257, %v2724_v36   ;;  %v10804_v8 = vld [vmem:[#allocation88_spill] sm:$0xff] }
 0x382   : > { %v2650_v46 = vmul.f32 %v10805_v52, %v10804_v8  ;;  %v4438_v36 = vld [vmem:[%s4635_s18 + $0x10] sm:$0xff] }
 0x383   : > { %v3317_v11 = vpop.permute.xlu2 %3316  ;;  %v8988_v22 = vpop.permute.xlu1 %3122  ;;  %v3152_v42 = vmul.f32 %v4438_v36, %v10806_v33  ;;  %v2580_v8 = vld [vmem:[%s8751_s25 + $0x170] sm:$0xff] }
 0x384   : > { %10803 = vst [vmem:[#allocation57_spill] sm:$0xff] %v8988_v22  ;;  %v3693_v29 = vadd.f32 %v3317_v11, %v3154_v15  ;;  %v3694_v19 = vadd.f32 %v3317_v11, %v3155_v51  ;;  %v3153_v22 = vmul.f32 %v4439_v7, %v10806_v33  ;;  %v2727_v62 = vsub.f32 %v2573_v47, %v2650_v46  ;;  %v10807_v15 = vld [vmem:[#allocation108_spill] sm:$0xff]  ;;  %v10809_v46 = vld [vmem:[#allocation70_spill] sm:$0xff]  ;;  %v2575_v7 = vld [vmem:[%s8751_s25 + $0x148] sm:$0xff] }
 0x385   : > { %3521 = vperm.xlu0 %4259, %v2731_v49   ;;  %v2657_v51 = vmul.f32 %v8131_v61, %v10807_v15  ;;  %v4440_v52 = vld [vmem:[%s4635_s18 + $0x50] sm:$0xff] }
 0x386   : > { %v3847_v30 = vmax.f32 %v3693_v29, 0.0  ;;  %v3848_v50 = vmax.f32 %v3694_v19, 0.0  ;;  %v10808_v19 = vld [vmem:[#allocation132_spill] sm:$0xff] }
 0x387   : > { %v3312_v29 = vpop.permute.xlu0 %3311  ;;  %v3160_v36 = vmul.f32 %v4440_v52, %v10808_v19  ;;  %v3161_v47 = vmul.f32 %v4441_v4, %v10808_v19  ;;  %v4442_v19 = vld [vmem:[%s4635_s18 + $0x40] sm:$0xff]  ;;  %v10814_v4 = vld [vmem:[#allocation133_spill] sm:$0xff] }
 0x388   : > { %4001 = vst [vmem:[%s9003_s28 + $0x20] sm:$0xff] %v3847_v30  ;;  %v3691_v11 = vadd.f32 %v3312_v29, %v3152_v42  ;;  %v3692_v49 = vadd.f32 %v3312_v29, %v3153_v22  ;;  %v2652_v22 = vmul.f32 %v10810_v27, %v10809_v46  ;;  %v2734_v42 = vsub.f32 %v2580_v8, %v2657_v51  ;;  %v10813_v29 = vld [vmem:[#allocation21_spill] sm:$0xff]  ;;  %v4443_v8 = vld [vmem:[%s4635_s18 + $0x48] sm:$0xff] }
 0x389   : > { %3496 = vperm.xlu2 %4258, %v2726_v5   ;;  %4002 = vst.msk [vmem:[%s9003_s28 + $0x28] sm:$0xff] %vm377_vm0, %v3848_v50  ;;  %3501 = vperm.xlu1 %4257, %v2727_v62   ;;  %v10812_v5 = vld [vmem:[#allocation99_spill] sm:$0xff]  ;;  %v2576_v62 = vld [vmem:[%s8751_s25 + $0x150] sm:$0xff]  ;;  %v3158_v51 = vmul.f32 %v4442_v19, %v10814_v4  ;;  %v3159_v46 = vmul.f32 %v4443_v8, %v10814_v4  ;;  %v4445_v19 = vld [vmem:[%s4635_s18 + $0x80] sm:$0xff] }
 0x38a   : > { %v3845_v30 = vmax.f32 %v3691_v11, 0.0  ;;  %v3846_v61 = vmax.f32 %v3692_v49, 0.0  ;;  %v2653_v15 = vmul.f32 %v10813_v29, %v10812_v5  ;;  %v4444_v5 = vld [vmem:[%s4635_s18] sm:$0xff]  ;;  %v10816_v29 = vld [vmem:[#allocation155_spill] sm:$0xff]  ;;  %v10817_v4 = vld [vmem:[#allocation89_spill] sm:$0xff] }
 0x38b   : > { %v3332_v33 = vpop.permute.xlu2 %3331  ;;  %v9017_v50 = vpop.permute.xlu1 %3137 }
 0x38c   : > { %10811 = vst [vmem:[#allocation60_spill] sm:$0xff] %v9017_v50  ;;  %v3699_v52 = vadd.f32 %v3332_v33, %v3160_v36  ;;  %v3700_v44 = vadd.f32 %v3332_v33, %v3161_v47  ;;  %v2729_v36 = vsub.f32 %v2575_v7, %v2652_v22  ;;  %v3166_v22 = vmul.f32 %v4445_v19, %v8076_v2  ;;  %v4446_v7 = vld [vmem:[%s4635_s18 + $0x88] sm:$0xff]  ;;  %v10820_v19 = vld [vmem:[#allocation136_spill] sm:$0xff] }
 0x38d   : > { %3999 = vst [vmem:[%s9003_s28 + $0x10] sm:$0xff] %v3845_v30  ;;  %3536 = vperm.xlu0 %4259, %v2734_v42   ;;  %v2730_v30 = vsub.f32 %v2576_v62, %v2653_v15  ;;  %v3167_v15 = vmul.f32 %v4446_v7, %v8076_v2 }
 0x38e   : > { %4000 = vst.msk [vmem:[%s9003_s28 + $0x18] sm:$0xff] %vm377_vm0, %v3846_v61  ;;  %v3853_v11 = vmax.f32 %v3699_v52, 0.0  ;;  %v3854_v49 = vmax.f32 %v3700_v44, 0.0  ;;  %v10815_v61 = vld [vmem:[#allocation114_spill] sm:$0xff]  ;;  %v2583_v44 = vld [vmem:[%s8751_s25 + $0x188] sm:$0xff]  ;;  %v3150_v52 = vmul.f32 %v4444_v5, %v10816_v29 }
 0x38f   : > { %v3327_v47 = vpop.permute.xlu0 %3326  ;;  %v2660_v27 = vmul.f32 %v8222_v6, %v10815_v61  ;;  %v4447_v6 = vld [vmem:[%s4635_s18 + $0x8] sm:$0xff]  ;;  %v2578_v61 = vld [vmem:[%s8751_s25 + $0x160] sm:$0xff] }
 0x390   : > { %4007 = vst [vmem:[%s9003_s28 + $0x50] sm:$0xff] %v3853_v11  ;;  %v3697_v33 = vadd.f32 %v3327_v47, %v3158_v51  ;;  %v3698_v42 = vadd.f32 %v3327_v47, %v3159_v46  ;;  %v3151_v62 = vmul.f32 %v4447_v6, %v10816_v29  ;;  %v10818_v51 = vld [vmem:[#allocation8_spill] sm:$0xff]  ;;  %v10819_v5 = vld [vmem:[#allocation110_spill] sm:$0xff]  ;;  %v10821_v6 = vld [vmem:[#allocation79_spill] sm:$0xff] }
 0x391   : > { %3511 = vperm.xlu2 %4258, %v2729_v36   ;;  %4008 = vst.msk [vmem:[%s9003_s28 + $0x58] sm:$0xff] %vm377_vm0, %v3854_v49  ;;  %3516 = vperm.xlu1 %4257, %v2730_v30   ;;  %v2655_v8 = vmul.f32 %v10818_v51, %v10817_v4  ;;  %v2737_v47 = vsub.f32 %v2583_v44, %v2660_v27  ;;  %v4449_v4 = vld [vmem:[%s4635_s18 + $0x78] sm:$0xff] }
 0x392   : > { %v3851_v11 = vmax.f32 %v3697_v33, 0.0  ;;  %v3852_v49 = vmax.f32 %v3698_v42, 0.0  ;;  %v2656_v2 = vmul.f32 %v10820_v19, %v10819_v5  ;;  %v2579_v33 = vld [vmem:[%s8751_s25 + $0x168] sm:$0xff]  ;;  %v4448_v42 = vld [vmem:[%s4635_s18 + $0x70] sm:$0xff]  ;;  %v3165_v51 = vmul.f32 %v4449_v4, %v10821_v6 }
 0x393   : > { %v3347_v46 = vpop.permute.xlu2 %3346  ;;  %v3307_v36 = vpop.permute.xlu1 %3306  ;;  %v3164_v1 = vmul.f32 %v4448_v42, %v10821_v6  ;;  %v4450_v19 = vld [vmem:[%s4635_s18 + $0x30] sm:$0xff] }
 0x394   : > { %v3705_v30 = vadd.f32 %v3347_v46, %v3166_v22  ;;  %v3706_v7 = vadd.f32 %v3347_v46, %v3167_v15  ;;  %4005 = vst [vmem:[%s9003_s28 + $0x40] sm:$0xff] %v3851_v11  ;;  %v3689_v50 = vadd.f32 %v3307_v36, %v3150_v52  ;;  %v3690_v29 = vadd.f32 %v3307_v36, %v3151_v62  ;;  %v10822_v46 = vld [vmem:[#allocation117_spill] sm:$0xff]  ;;  %v10824_v42 = vld [vmem:[#allocation104_spill] sm:$0xff] }
 0x395   : > { %4006 = vst.msk [vmem:[%s9003_s28 + $0x48] sm:$0xff] %vm377_vm0, %v3852_v49  ;;  %3551 = vperm.xlu0 %4259, %v2737_v47   ;;  %v2732_v52 = vsub.f32 %v2578_v61, %v2655_v8  ;;  %v2733_v11 = vsub.f32 %v2579_v33, %v2656_v2  ;;  %v2663_v36 = vmul.f32 %v8316_v35, %v10822_v46  ;;  %v2586_v47 = vld [vmem:[%s8751_s25 + $0x1a0] sm:$0xff]  ;;  %v4451_v8 = vld [vmem:[%s4635_s18 + $0xb0] sm:$0xff]  ;;  %v4453_v35 = vld [vmem:[%s4635_s18 + $0x38] sm:$0xff] }
 0x396   : > { %v3859_v27 = vmax.f32 %v3705_v30, 0.0  ;;  %v3843_v44 = vmax.f32 %v3689_v50, 0.0  ;;  %v3844_v22 = vmax.f32 %v3690_v29, 0.0  ;;  %v3860_v15 = vmax.f32 %v3706_v7, 0.0  ;;  %v10823_v50 = vld [vmem:[#allocation134_spill] sm:$0xff]  ;;  %v4452_v7 = vld [vmem:[%s4635_s18 + $0xb8] sm:$0xff] }
 0x397   : > { %v3342_v62 = vpop.permute.xlu0 %3341  ;;  %v3156_v30 = vmul.f32 %v4450_v19, %v10823_v50  ;;  %v3172_v61 = vmul.f32 %v4451_v8, %v8200_v56  ;;  %v3173_v2 = vmul.f32 %v4452_v7, %v8200_v56  ;;  %v2658_v6 = vmul.f32 %v8146_v10, %v10824_v42  ;;  %v10827_v19 = vld [vmem:[#allocation137_spill] sm:$0xff]  ;;  %v4455_v10 = vld [vmem:[%s4635_s18 + $0xa8] sm:$0xff] }
 0x398   : > { %4013 = vst [vmem:[%s9003_s28 + $0x80] sm:$0xff] %v3859_v27  ;;  %v3703_v5 = vadd.f32 %v3342_v62, %v3164_v1  ;;  %v3704_v49 = vadd.f32 %v3342_v62, %v3165_v51  ;;  %v3157_v1 = vmul.f32 %v4453_v35, %v10823_v50  ;;  %v2740_v51 = vsub.f32 %v2586_v47, %v2663_v36  ;;  %v2581_v27 = vld [vmem:[%s8751_s25 + $0x178] sm:$0xff] }
 0x399   : > { %3997 = vst [vmem:[%s9003_s28] sm:$0xff] %v3843_v44  ;;  %3526 = vperm.xlu2 %4258, %v2732_v52   ;;  %3531 = vperm.xlu1 %4257, %v2733_v11   ;;  %v10825_v44 = vld [vmem:[#allocation115_spill] sm:$0xff]  ;;  %v3171_v8 = vmul.f32 %v4455_v10, %v10827_v19  ;;  %v10831_v10 = vld [vmem:[#allocation120_spill] sm:$0xff] }
 0x39a   : > { %3998 = vst.msk [vmem:[%s9003_s28 + $0x8] sm:$0xff] %vm377_vm0, %v3844_v22  ;;  %v3857_v29 = vmax.f32 %v3703_v5, 0.0  ;;  %v3858_v33 = vmax.f32 %v3704_v49, 0.0  ;;  %v10826_v22 = vld [vmem:[#allocation49_spill] sm:$0xff]  ;;  %v2582_v49 = vld [vmem:[%s8751_s25 + $0x180] sm:$0xff] }
 0x39b   : > { %4014 = vst.msk [vmem:[%s9003_s28 + $0x88] sm:$0xff] %vm377_vm0, %v3860_v15  ;;  %v3362_v4 = vpop.permute.xlu2 %3361  ;;  %v3322_v56 = vpop.permute.xlu1 %3321  ;;  %v2659_v52 = vmul.f32 %v10826_v22, %v10825_v44  ;;  %v4454_v15 = vld [vmem:[%s4635_s18 + $0xa0] sm:$0xff]  ;;  %v4458_v22 = vld [vmem:[%s4635_s18 + $0xe8] sm:$0xff] }
 0x39c   : > { %v3711_v62 = vadd.f32 %v3362_v4, %v3172_v61  ;;  %v3712_v11 = vadd.f32 %v3362_v4, %v3173_v2  ;;  %4011 = vst [vmem:[%s9003_s28 + $0x70] sm:$0xff] %v3857_v29  ;;  %v3695_v46 = vadd.f32 %v3322_v56, %v3156_v30  ;;  %v3696_v5 = vadd.f32 %v3322_v56, %v3157_v1  ;;  %v10828_v1 = vld [vmem:[#allocation124_spill] sm:$0xff]  ;;  %v2589_v4 = vld [vmem:[%s8751_s25 + $0x1b8] sm:$0xff]  ;;  %v4456_v56 = vld [vmem:[%s4635_s18 + $0x60] sm:$0xff] }
 0x39d   : > { %v3170_v50 = vmul.f32 %v4454_v15, %v10827_v19  ;;  %4012 = vst.msk [vmem:[%s9003_s28 + $0x78] sm:$0xff] %vm377_vm0, %v3858_v33  ;;  %3566 = vperm.xlu0 %4259, %v2740_v51   ;;  %v2735_v30 = vsub.f32 %v2581_v27, %v2658_v6  ;;  %v2736_v35 = vsub.f32 %v2582_v49, %v2659_v52  ;;  %v10829_v51 = vld [vmem:[#allocation71_spill] sm:$0xff]  ;;  %v4457_v6 = vld [vmem:[%s4635_s18 + $0xe0] sm:$0xff] }
 0x39e   : > { %v3865_v36 = vmax.f32 %v3711_v62, 0.0  ;;  %v3849_v47 = vmax.f32 %v3695_v46, 0.0  ;;  %v3850_v61 = vmax.f32 %v3696_v5, 0.0  ;;  %v3866_v7 = vmax.f32 %v3712_v11, 0.0  ;;  %v10830_v5 = vld [vmem:[#allocation112_spill] sm:$0xff] }
 0x39f   : > { %v3357_v2 = vpop.permute.xlu0 %3356  ;;  %v2666_v29 = vmul.f32 %v8411_v54, %v10828_v1  ;;  %v3162_v44 = vmul.f32 %v4456_v56, %v10829_v51  ;;  %v3178_v27 = vmul.f32 %v4457_v6, %v8309_v13  ;;  %v3179_v52 = vmul.f32 %v4458_v22, %v8309_v13  ;;  %v4459_v54 = vld [vmem:[%s4635_s18 + $0x68] sm:$0xff] }
 0x3a0   : > { %4019 = vst [vmem:[%s9003_s28 + $0xb0] sm:$0xff] %v3865_v36  ;;  %v3709_v42 = vadd.f32 %v3357_v2, %v3170_v50  ;;  %v3710_v33 = vadd.f32 %v3357_v2, %v3171_v8  ;;  %v3163_v62 = vmul.f32 %v4459_v54, %v10829_v51  ;;  %v2661_v49 = vmul.f32 %v8237_v37, %v10830_v5  ;;  %v2584_v50 = vld [vmem:[%s8751_s25 + $0x190] sm:$0xff]  ;;  %v2585_v2 = vld [vmem:[%s8751_s25 + $0x198] sm:$0xff]  ;;  %v10833_v6 = vld [vmem:[#allocation131_spill] sm:$0xff] }
 0x3a1   : > { %4003 = vst [vmem:[%s9003_s28 + $0x30] sm:$0xff] %v3849_v47  ;;  %3541 = vperm.xlu2 %4258, %v2735_v30   ;;  %3546 = vperm.xlu1 %4257, %v2736_v35   ;;  %v2743_v19 = vsub.f32 %v2589_v4, %v2666_v29  ;;  %v2662_v8 = vmul.f32 %v8100_v31, %v10831_v10  ;;  %v10832_v35 = vld [vmem:[#allocation19_spill] sm:$0xff]  ;;  %v4461_v37 = vld [vmem:[%s4635_s18 + $0xd8] sm:$0xff]  ;;  %v2592_v54 = vld [vmem:[%s8751_s25 + $0x1d0] sm:$0xff] }
 0x3a2   : > { %4004 = vst.msk [vmem:[%s9003_s28 + $0x38] sm:$0xff] %vm377_vm0, %v3850_v61  ;;  %v3863_v11 = vmax.f32 %v3709_v42, 0.0  ;;  %v3864_v46 = vmax.f32 %v3710_v33, 0.0  ;;  %v3177_v42 = vmul.f32 %v4461_v37, %v10832_v35  ;;  %v2738_v4 = vsub.f32 %v2584_v50, %v2661_v49  ;;  %v4463_v5 = vld [vmem:[%s4635_s18 + $0x110] sm:$0xff] }
 0x3a3   : > { %4020 = vst.msk [vmem:[%s9003_s28 + $0xb8] sm:$0xff] %vm377_vm0, %v3866_v7  ;;  %v3377_v15 = vpop.permute.xlu2 %3376  ;;  %v3337_v13 = vpop.permute.xlu1 %3336  ;;  %v4460_v7 = vld [vmem:[%s4635_s18 + $0xd0] sm:$0xff]  ;;  %v3184_v49 = vmul.f32 %v4463_v5, %v8429_v25 }
 0x3a4   : > { %v3717_v36 = vadd.f32 %v3377_v15, %v3178_v27  ;;  %v3718_v47 = vadd.f32 %v3377_v15, %v3179_v52  ;;  %4017 = vst [vmem:[%s9003_s28 + $0xa0] sm:$0xff] %v3863_v11  ;;  %v3701_v61 = vadd.f32 %v3337_v13, %v3162_v44  ;;  %v3702_v30 = vadd.f32 %v3337_v13, %v3163_v62  ;;  %v4462_v62 = vld [vmem:[%s4635_s18 + $0x90] sm:$0xff]  ;;  %v10834_v11 = vld [vmem:[#allocation14_spill] sm:$0xff]  ;;  %v4464_v15 = vld [vmem:[%s4635_s18 + $0x118] sm:$0xff] }
 0x3a5   : > { %v3176_v1 = vmul.f32 %v4460_v7, %v10832_v35  ;;  %4018 = vst.msk [vmem:[%s9003_s28 + $0xa8] sm:$0xff] %vm377_vm0, %v3864_v46  ;;  %3581 = vperm.xlu0 %4259, %v2743_v19   ;;  %v2739_v44 = vsub.f32 %v2585_v2, %v2662_v8  ;;  %v2669_v27 = vmul.f32 %v8504_v57, %v10833_v6  ;;  %v4465_v57 = vld [vmem:[%s4635_s18 + $0x98] sm:$0xff]  ;;  %v10835_v8 = vld [vmem:[#allocation116_spill] sm:$0xff] }
 0x3a6   : > { %v3871_v31 = vmax.f32 %v3717_v36, 0.0  ;;  %v3855_v29 = vmax.f32 %v3701_v61, 0.0  ;;  %v3856_v33 = vmax.f32 %v3702_v30, 0.0  ;;  %v3872_v56 = vmax.f32 %v3718_v47, 0.0  ;;  %v2587_v30 = vld [vmem:[%s8751_s25 + $0x1a8] sm:$0xff]  ;;  %v10836_v2 = vld [vmem:[#allocation125_spill] sm:$0xff] }
 0x3a7   : > { %v3372_v51 = vpop.permute.xlu0 %3371  ;;  %v3168_v46 = vmul.f32 %v4462_v62, %v10834_v11  ;;  %v3185_v13 = vmul.f32 %v4464_v15, %v8429_v25  ;;  %v3169_v19 = vmul.f32 %v4465_v57, %v10834_v11  ;;  %v2664_v36 = vmul.f32 %v8332_v32, %v10835_v8  ;;  %v10837_v7 = vld [vmem:[#allocation13_spill] sm:$0xff]  ;;  %v4467_v32 = vld [vmem:[%s4635_s18 + $0x108] sm:$0xff] }
 0x3a8   : > { %4025 = vst [vmem:[%s9003_s28 + $0xe0] sm:$0xff] %v3871_v31  ;;  %v3715_v22 = vadd.f32 %v3372_v51, %v3176_v1  ;;  %v3716_v52 = vadd.f32 %v3372_v51, %v3177_v42  ;;  %v2746_v61 = vsub.f32 %v2592_v54, %v2669_v27  ;;  %v2665_v35 = vmul.f32 %v10837_v7, %v10836_v2  ;;  %v10839_v11 = vld [vmem:[#allocation139_spill] sm:$0xff]  ;;  %v10840_v57 = vld [vmem:[#allocation97_spill] sm:$0xff]  ;;  %v10842_v2 = vld [vmem:[#allocation4_spill] sm:$0xff] }
 0x3a9   : > { %4009 = vst [vmem:[%s9003_s28 + $0x60] sm:$0xff] %v3855_v29  ;;  %3556 = vperm.xlu2 %4258, %v2738_v4   ;;  %3561 = vperm.xlu1 %4257, %v2739_v44   ;;  %v2588_v29 = vld [vmem:[%s8751_s25 + $0x1b0] sm:$0xff]  ;;  %v2595_v15 = vld [vmem:[%s8751_s25 + $0x1e8] sm:$0xff] }
 0x3aa   : > { %4010 = vst.msk [vmem:[%s9003_s28 + $0x68] sm:$0xff] %vm377_vm0, %v3856_v33  ;;  %v3869_v50 = vmax.f32 %v3715_v22, 0.0  ;;  %v3870_v10 = vmax.f32 %v3716_v52, 0.0  ;;  %v4466_v33 = vld [vmem:[%s4635_s18 + $0x100] sm:$0xff]  ;;  %v10838_v4 = vld [vmem:[#allocation12_spill] sm:$0xff]  ;;  %v2741_v22 = vsub.f32 %v2587_v30, %v2664_v36  ;;  %v2742_v62 = vsub.f32 %v2588_v29, %v2665_v35  ;;  %v4470_v8 = vld [vmem:[%s4635_s18 + $0x148] sm:$0xff] }
 0x3ab   : > { %4026 = vst.msk [vmem:[%s9003_s28 + $0xe8] sm:$0xff] %vm377_vm0, %v3872_v56  ;;  %v3392_v47 = vpop.permute.xlu2 %3391  ;;  %v3352_v25 = vpop.permute.xlu1 %3351  ;;  %v3182_v56 = vmul.f32 %v4466_v33, %v10838_v4  ;;  %v3183_v51 = vmul.f32 %v4467_v32, %v10838_v4  ;;  %v3191_v36 = vmul.f32 %v4470_v8, %v8532_v39  ;;  %v10841_v30 = vld [vmem:[#allocation122_spill] sm:$0xff]  ;;  %v4474_v8 = vld [vmem:[%s4635_s18 + $0xf0] sm:$0xff] }
 0x3ac   : > { %v3723_v1 = vadd.f32 %v3392_v47, %v3184_v49  ;;  %v3724_v37 = vadd.f32 %v3392_v47, %v3185_v13  ;;  %4023 = vst [vmem:[%s9003_s28 + $0xd0] sm:$0xff] %v3869_v50  ;;  %v3707_v42 = vadd.f32 %v3352_v25, %v3168_v46  ;;  %v3708_v31 = vadd.f32 %v3352_v25, %v3169_v19  ;;  %v4468_v13 = vld [vmem:[%s4635_s18 + $0xc0] sm:$0xff] }
 0x3ad   : > { %4024 = vst.msk [vmem:[%s9003_s28 + $0xd8] sm:$0xff] %vm377_vm0, %v3870_v10  ;;  %3596 = vperm.xlu0 %4259, %v2746_v61   ;;  %v2672_v46 = vmul.f32 %v8580_v53, %v10839_v11  ;;  %v3174_v19 = vmul.f32 %v4468_v13, %v10840_v57  ;;  %v4469_v50 = vld [vmem:[%s4635_s18 + $0x140] sm:$0xff]  ;;  %v4471_v53 = vld [vmem:[%s4635_s18 + $0xc8] sm:$0xff]  ;;  %v2667_v7 = vmul.f32 %v10842_v2, %v10841_v30 }
 0x3ae   : > { %v3877_v44 = vmax.f32 %v3723_v1, 0.0  ;;  %v3861_v6 = vmax.f32 %v3707_v42, 0.0  ;;  %v3862_v27 = vmax.f32 %v3708_v31, 0.0  ;;  %v3878_v52 = vmax.f32 %v3724_v37, 0.0  ;;  %v2590_v37 = vld [vmem:[%s8751_s25 + $0x1c0] sm:$0xff]  ;;  %v10843_v42 = vld [vmem:[#allocation135_spill] sm:$0xff] }
 0x3af   : > { %v3387_v54 = vpop.permute.xlu0 %3386  ;;  %v3190_v10 = vmul.f32 %v4469_v50, %v8532_v39  ;;  %v3175_v47 = vmul.f32 %v4471_v53, %v10840_v57  ;;  %v2749_v1 = vsub.f32 %v2595_v15, %v2672_v46  ;;  %v10844_v31 = vld [vmem:[#allocation105_spill] sm:$0xff]  ;;  %v2744_v46 = vsub.f32 %v2590_v37, %v2667_v7  ;;  %v10846_v13 = vld [vmem:[#allocation142_spill] sm:$0xff] }
 0x3b0   : > { %4031 = vst [vmem:[%s9003_s28 + $0x110] sm:$0xff] %v3877_v44  ;;  %v3721_v5 = vadd.f32 %v3387_v54, %v3182_v56  ;;  %v3722_v49 = vadd.f32 %v3387_v54, %v3183_v51  ;;  %v2668_v29 = vmul.f32 %v10844_v31, %v10843_v42  ;;  %v2591_v51 = vld [vmem:[%s8751_s25 + $0x1c8] sm:$0xff]  ;;  %v4472_v44 = vld [vmem:[%s4635_s18 + $0x130] sm:$0xff]  ;;  %v2675_v57 = vmul.f32 %v8645_v40, %v10846_v13  ;;  %v4477_v40 = vld [vmem:[%s4635_s18 + $0xf8] sm:$0xff] }
 0x3b1   : > { %4015 = vst [vmem:[%s9003_s28 + $0x90] sm:$0xff] %v3861_v6  ;;  %3571 = vperm.xlu2 %4258, %v2741_v22   ;;  %3576 = vperm.xlu1 %4257, %v2742_v62   ;;  %v10845_v6 = vld [vmem:[#allocation69_spill] sm:$0xff] }
 0x3b2   : > { %4016 = vst.msk [vmem:[%s9003_s28 + $0x98] sm:$0xff] %vm377_vm0, %v3862_v27  ;;  %v3875_v25 = vmax.f32 %v3721_v5, 0.0  ;;  %v3876_v61 = vmax.f32 %v3722_v49, 0.0  ;;  %v3188_v27 = vmul.f32 %v4472_v44, %v10845_v6  ;;  %v4473_v22 = vld [vmem:[%s4635_s18 + $0x138] sm:$0xff]  ;;  %v2745_v15 = vsub.f32 %v2591_v51, %v2668_v29  ;;  %v10849_v29 = vld [vmem:[#allocation140_spill] sm:$0xff] }
 0x3b3   : > { %4032 = vst.msk [vmem:[%s9003_s28 + $0x118] sm:$0xff] %vm377_vm0, %v3878_v52  ;;  %v3407_v35 = vpop.permute.xlu2 %3406  ;;  %v3367_v39 = vpop.permute.xlu1 %3366  ;;  %v3189_v52 = vmul.f32 %v4473_v22, %v10845_v6  ;;  %v2593_v31 = vld [vmem:[%s8751_s25 + $0x1d8] sm:$0xff]  ;;  %v2594_v6 = vld [vmem:[%s8751_s25 + $0x1e0] sm:$0xff]  ;;  %v10851_v22 = vld [vmem:[#allocation59_spill] sm:$0xff] }
 0x3b4   : > { %v3729_v33 = vadd.f32 %v3407_v35, %v3190_v10  ;;  %v3730_v4 = vadd.f32 %v3407_v35, %v3191_v36  ;;  %4029 = vst [vmem:[%s9003_s28 + $0x100] sm:$0xff] %v3875_v25  ;;  %v3713_v56 = vadd.f32 %v3367_v39, %v3174_v19  ;;  %v3714_v32 = vadd.f32 %v3367_v39, %v3175_v47  ;;  %v2598_v10 = vld [vmem:[%s8751_s25 + $0x200] sm:$0xff]  ;;  %v10847_v36 = vld [vmem:[#allocation40_spill] sm:$0xff] }
 0x3b5   : > { %4030 = vst.msk [vmem:[%s9003_s28 + $0x108] sm:$0xff] %vm377_vm0, %v3876_v61  ;;  %3611 = vperm.xlu0 %4259, %v2749_v1   ;;  %v3180_v53 = vmul.f32 %v4474_v8, %v10847_v36  ;;  %v4475_v47 = vld [vmem:[%s4635_s18 + $0x170] sm:$0xff]  ;;  %v4476_v61 = vld [vmem:[%s4635_s18 + $0x178] sm:$0xff]  ;;  %v3181_v2 = vmul.f32 %v4477_v40, %v10847_v36  ;;  %v10848_v39 = vld [vmem:[#allocation130_spill] sm:$0xff]  ;;  %v2752_v42 = vsub.f32 %v2598_v10, %v2675_v57 }
 0x3b6   : > { %v3883_v54 = vmax.f32 %v3729_v33, 0.0  ;;  %v3867_v62 = vmax.f32 %v3713_v56, 0.0  ;;  %v3868_v11 = vmax.f32 %v3714_v32, 0.0  ;;  %v3884_v5 = vmax.f32 %v3730_v4, 0.0  ;;  %v10850_v33 = vld [vmem:[#allocation144_spill] sm:$0xff]  ;;  %v10852_v57 = vld [vmem:[#allocation9_spill] sm:$0xff] }
 0x3b7   : > { %v3402_v49 = vpop.permute.xlu0 %3401  ;;  %v3196_v25 = vmul.f32 %v4475_v47, %v8628_v20  ;;  %v3197_v30 = vmul.f32 %v4476_v61, %v8628_v20  ;;  %v2670_v1 = vmul.f32 %v8515_v17, %v10848_v39  ;;  %v2671_v4 = vmul.f32 %v10850_v33, %v10849_v29  ;;  %v4479_v17 = vld [vmem:[%s4635_s18 + $0x168] sm:$0xff]  ;;  %v2601_v8 = vld [vmem:[%s8751_s25 + $0x218] sm:$0xff]  ;;  %v4480_v36 = vld [vmem:[%s4635_s18 + $0x120] sm:$0xff] }
 0x3b8   : > { %4037 = vst [vmem:[%s9003_s28 + $0x140] sm:$0xff] %v3883_v54  ;;  %v3727_v19 = vadd.f32 %v3402_v49, %v3188_v27  ;;  %v3728_v50 = vadd.f32 %v3402_v49, %v3189_v52  ;;  %v4478_v27 = vld [vmem:[%s4635_s18 + $0x160] sm:$0xff]  ;;  %v3195_v54 = vmul.f32 %v4479_v17, %v10851_v22  ;;  %v10856_v29 = vld [vmem:[#allocation148_spill] sm:$0xff] }
 0x3b9   : > { %4021 = vst [vmem:[%s9003_s28 + $0xc0] sm:$0xff] %v3867_v62  ;;  %3586 = vperm.xlu2 %4258, %v2744_v46   ;;  %3591 = vperm.xlu1 %4257, %v2745_v15   ;;  %v3194_v52 = vmul.f32 %v4478_v27, %v10851_v22  ;;  %v2748_v13 = vsub.f32 %v2594_v6, %v2671_v4  ;;  %v10854_v39 = vld [vmem:[#allocation138_spill] sm:$0xff]  ;;  %v4484_v6 = vld [vmem:[%s4635_s18 + $0x190] sm:$0xff]  ;;  %v10857_v27 = vld [vmem:[#allocation119_spill] sm:$0xff] }
 0x3ba   : > { %4022 = vst.msk [vmem:[%s9003_s28 + $0xc8] sm:$0xff] %vm377_vm0, %v3868_v11  ;;  %v3881_v7 = vmax.f32 %v3727_v19, 0.0  ;;  %v3882_v35 = vmax.f32 %v3728_v50, 0.0  ;;  %v2678_v19 = vmul.f32 %v8704_v38, %v10852_v57  ;;  %v4483_v38 = vld [vmem:[%s4635_s18 + $0x128] sm:$0xff]  ;;  %v3200_v22 = vmul.f32 %v4484_v6, %v10857_v27 }
 0x3bb   : > { %4038 = vst.msk [vmem:[%s9003_s28 + $0x148] sm:$0xff] %vm377_vm0, %v3884_v5  ;;  %v3422_v37 = vpop.permute.xlu2 %3421  ;;  %v3382_v20 = vpop.permute.xlu1 %3381  ;;  %v2747_v5 = vsub.f32 %v2593_v31, %v2670_v1  ;;  %v2673_v1 = vmul.f32 %v8593_v3, %v10854_v39  ;;  %v10855_v31 = vld [vmem:[#allocation2_spill] sm:$0xff]  ;;  %v4485_v3 = vld [vmem:[%s4635_s18 + $0x198] sm:$0xff] }
 0x3bc   : > { %v3735_v56 = vadd.f32 %v3422_v37, %v3196_v25  ;;  %v3736_v32 = vadd.f32 %v3422_v37, %v3197_v30  ;;  %4035 = vst [vmem:[%s9003_s28 + $0x130] sm:$0xff] %v3881_v7  ;;  %v3719_v51 = vadd.f32 %v3382_v20, %v3180_v53  ;;  %v3720_v44 = vadd.f32 %v3382_v20, %v3181_v2  ;;  %v10853_v53 = vld [vmem:[#allocation98_spill] sm:$0xff]  ;;  %v4482_v30 = vld [vmem:[%s4635_s18 + $0x1a8] sm:$0xff] }
 0x3bd   : > { %4036 = vst.msk [vmem:[%s9003_s28 + $0x138] sm:$0xff] %vm377_vm0, %v3882_v35  ;;  %3626 = vperm.xlu0 %4259, %v2752_v42   ;;  %v3186_v47 = vmul.f32 %v4480_v36, %v10853_v53  ;;  %v4481_v25 = vld [vmem:[%s4635_s18 + $0x1a0] sm:$0xff]  ;;  %v3203_v40 = vmul.f32 %v4482_v30, %v8700_v58  ;;  %v3187_v2 = vmul.f32 %v4483_v38, %v10853_v53  ;;  %v2596_v42 = vld [vmem:[%s8751_s25 + $0x1f0] sm:$0xff] }
 0x3be   : > { %v3889_v62 = vmax.f32 %v3735_v56, 0.0  ;;  %v3873_v11 = vmax.f32 %v3719_v51, 0.0  ;;  %v3874_v46 = vmax.f32 %v3720_v44, 0.0  ;;  %v3890_v49 = vmax.f32 %v3736_v32, 0.0  ;;  %v2597_v44 = vld [vmem:[%s8751_s25 + $0x1f8] sm:$0xff]  ;;  %v4487_v53 = vld [vmem:[%s4635_s18 + $0x1d0] sm:$0xff] }
 0x3bf   : > { %v3417_v15 = vpop.permute.xlu0 %3416  ;;  %v3202_v61 = vmul.f32 %v4481_v25, %v8700_v58  ;;  %v2755_v20 = vsub.f32 %v2601_v8, %v2678_v19  ;;  %v2674_v33 = vmul.f32 %v10856_v29, %v10855_v31  ;;  %v10859_v8 = vld [vmem:[#allocation143_spill] sm:$0xff]  ;;  %v4488_v25 = vld [vmem:[%s4635_s18 + $0x1d8] sm:$0xff] }
 0x3c0   : > { %4043 = vst [vmem:[%s9003_s28 + $0x170] sm:$0xff] %v3889_v62  ;;  %v3733_v50 = vadd.f32 %v3417_v15, %v3194_v52  ;;  %v3734_v10 = vadd.f32 %v3417_v15, %v3195_v54  ;;  %v3201_v52 = vmul.f32 %v4485_v3, %v10857_v27  ;;  %v10858_v15 = vld [vmem:[#allocation5_spill] sm:$0xff] }
 0x3c1   : > { %4027 = vst [vmem:[%s9003_s28 + $0xf0] sm:$0xff] %v3873_v11  ;;  %3601 = vperm.xlu2 %4258, %v2747_v5   ;;  %3606 = vperm.xlu1 %4257, %v2748_v13   ;;  %v2750_v11 = vsub.f32 %v2596_v42, %v2673_v1  ;;  %v2681_v13 = vmul.f32 %v8740_v0, %v10858_v15  ;;  %v4489_v0 = vld [vmem:[%s4635_s18 + $0x158] sm:$0xff]  ;;  %v2599_v1 = vld [vmem:[%s8751_s25 + $0x208] sm:$0xff] }
 0x3c2   : > { %4028 = vst.msk [vmem:[%s9003_s28 + $0xf8] sm:$0xff] %vm377_vm0, %v3874_v46  ;;  %v3887_v7 = vmax.f32 %v3733_v50, 0.0  ;;  %v3888_v35 = vmax.f32 %v3734_v10, 0.0  ;;  %v2604_v50 = vld [vmem:[%s8751_s25 + $0x230] sm:$0xff]  ;;  %v3193_v30 = vmul.f32 %v4489_v0, %v10859_v8 }
 0x3c3   : > { %4044 = vst.msk [vmem:[%s9003_s28 + $0x178] sm:$0xff] %vm377_vm0, %v3890_v49  ;;  %v3437_v37 = vpop.permute.xlu2 %3436  ;;  %v3397_v58 = vpop.permute.xlu1 %3396  ;;  %v2751_v49 = vsub.f32 %v2597_v44, %v2674_v33  ;;  %v4486_v10 = vld [vmem:[%s4635_s18 + $0x150] sm:$0xff]  ;;  %v2758_v39 = vsub.f32 %v2604_v50, %v2681_v13  ;;  %v4494_v13 = vld [vmem:[%s4635_s18 + $0x208] sm:$0xff] }
 0x3c4   : > { %v3741_v4 = vadd.f32 %v3437_v37, %v3202_v61  ;;  %v3742_v56 = vadd.f32 %v3437_v37, %v3203_v40  ;;  %4041 = vst [vmem:[%s9003_s28 + $0x160] sm:$0xff] %v3887_v7  ;;  %v3725_v32 = vadd.f32 %v3397_v58, %v3186_v47  ;;  %v3726_v51 = vadd.f32 %v3397_v58, %v3187_v2  ;;  %v10860_v2 = vld [vmem:[#allocation141_spill] sm:$0xff]  ;;  %v10861_v37 = vld [vmem:[#allocation48_spill] sm:$0xff] }
 0x3c5   : > { %4042 = vst.msk [vmem:[%s9003_s28 + $0x168] sm:$0xff] %vm377_vm0, %v3888_v35  ;;  %3641 = vperm.xlu0 %4259, %v2755_v20   ;;  %v3192_v36 = vmul.f32 %v4486_v10, %v10859_v8  ;;  %v3208_v47 = vmul.f32 %v4487_v53, %v8744_v16  ;;  %v3209_v61 = vmul.f32 %v4488_v25, %v8744_v16  ;;  %v2600_v33 = vld [vmem:[%s8751_s25 + $0x210] sm:$0xff]  ;;  %v10864_v8 = vld [vmem:[#allocation42_spill] sm:$0xff] }
 0x3c6   : > { %v3895_v17 = vmax.f32 %v3741_v4, 0.0  ;;  %v3879_v54 = vmax.f32 %v3725_v32, 0.0  ;;  %v3880_v62 = vmax.f32 %v3726_v51, 0.0  ;;  %v3896_v46 = vmax.f32 %v3742_v56, 0.0  ;;  %v4490_v4 = vld [vmem:[%s4635_s18 + $0x1c0] sm:$0xff] }
 0x3c7   : > { %v3432_v5 = vpop.permute.xlu0 %3431  ;;  %v2676_v7 = vmul.f32 %v8653_v60, %v10860_v2  ;;  %v2677_v58 = vmul.f32 %v8557_v48, %v10861_v37  ;;  %v3206_v56 = vmul.f32 %v4490_v4, %v8582_v18  ;;  %v4491_v60 = vld [vmem:[%s4635_s18 + $0x1c8] sm:$0xff]  ;;  %v2602_v25 = vld [vmem:[%s8751_s25 + $0x220] sm:$0xff] }
 0x3c8   : > { %4049 = vst [vmem:[%s9003_s28 + $0x1a0] sm:$0xff] %v3895_v17  ;;  %v3739_v57 = vadd.f32 %v3432_v5, %v3200_v22  ;;  %v3740_v19 = vadd.f32 %v3432_v5, %v3201_v52  ;;  %v3207_v32 = vmul.f32 %v4491_v60, %v8582_v18  ;;  %v10862_v52 = vld [vmem:[#allocation17_spill] sm:$0xff]  ;;  %v4498_v60 = vld [vmem:[%s4635_s18 + $0x1b0] sm:$0xff] }
 0x3c9   : > { %4033 = vst [vmem:[%s9003_s28 + $0x120] sm:$0xff] %v3879_v54  ;;  %3616 = vperm.xlu2 %4258, %v2750_v11   ;;  %3621 = vperm.xlu1 %4257, %v2751_v49   ;;  %v2753_v6 = vsub.f32 %v2599_v1, %v2676_v7  ;;  %v2754_v3 = vsub.f32 %v2600_v33, %v2677_v58  ;;  %v4492_v11 = vld [vmem:[%s4635_s18 + $0x180] sm:$0xff]  ;;  %v2603_v7 = vld [vmem:[%s8751_s25 + $0x228] sm:$0xff] }
 0x3ca   : > { %4034 = vst.msk [vmem:[%s9003_s28 + $0x128] sm:$0xff] %vm377_vm0, %v3880_v62  ;;  %v3893_v40 = vmax.f32 %v3739_v57, 0.0  ;;  %v3894_v38 = vmax.f32 %v3740_v19, 0.0  ;;  %v2684_v18 = vmul.f32 %v8773_v23, %v10862_v52  ;;  %v2607_v62 = vld [vmem:[%s8751_s25 + $0x248] sm:$0xff]  ;;  %v4493_v49 = vld [vmem:[%s4635_s18 + $0x200] sm:$0xff]  ;;  %v3215_v57 = vmul.f32 %v4494_v13, %v8785_v12  ;;  %v10867_v52 = vld [vmem:[#allocation16_spill] sm:$0xff] }
 0x3cb   : > { %4050 = vst.msk [vmem:[%s9003_s28 + $0x1a8] sm:$0xff] %vm377_vm0, %v3896_v46  ;;  %v3452_v35 = vpop.permute.xlu2 %3451  ;;  %v3412_v16 = vpop.permute.xlu1 %3411  ;;  %v10863_v46 = vld [vmem:[#allocation56_spill] sm:$0xff]  ;;  %v3214_v15 = vmul.f32 %v4493_v49, %v8785_v12  ;;  %v4495_v23 = vld [vmem:[%s4635_s18 + $0x188] sm:$0xff]  ;;  %v2606_v13 = vld [vmem:[%s8751_s25 + $0x240] sm:$0xff] }
 0x3cc   : > { %v3747_v20 = vadd.f32 %v3452_v35, %v3208_v47  ;;  %v3748_v42 = vadd.f32 %v3452_v35, %v3209_v61  ;;  %4047 = vst [vmem:[%s9003_s28 + $0x190] sm:$0xff] %v3893_v40  ;;  %v3731_v31 = vadd.f32 %v3412_v16, %v3192_v36  ;;  %v3732_v29 = vadd.f32 %v3412_v16, %v3193_v30  ;;  %v10865_v61 = vld [vmem:[#allocation6_spill] sm:$0xff]  ;;  %v4496_v35 = vld [vmem:[%s4635_s18 + $0x1f0] sm:$0xff] }
 0x3cd   : > { %4048 = vst.msk [vmem:[%s9003_s28 + $0x198] sm:$0xff] %vm377_vm0, %v3894_v38  ;;  %3656 = vperm.xlu0 %4259, %v2758_v39   ;;  %v3198_v5 = vmul.f32 %v4492_v11, %v10863_v46  ;;  %v3199_v19 = vmul.f32 %v4495_v23, %v10863_v46  ;;  %v2679_v36 = vmul.f32 %v8712_v55, %v10864_v8  ;;  %v4497_v55 = vld [vmem:[%s4635_s18 + $0x1f8] sm:$0xff]  ;;  %v10868_v11 = vld [vmem:[#allocation15_spill] sm:$0xff] }
 0x3ce   : > { %v3901_v48 = vmax.f32 %v3747_v20, 0.0  ;;  %v3885_v51 = vmax.f32 %v3731_v31, 0.0  ;;  %v3886_v44 = vmax.f32 %v3732_v29, 0.0  ;;  %v3902_v27 = vmax.f32 %v3748_v42, 0.0  ;;  %v10866_v29 = vld [vmem:[#allocation7_spill] sm:$0xff] }
 0x3cf   : > { %v3447_v22 = vpop.permute.xlu0 %3446  ;;  %v2761_v47 = vsub.f32 %v2607_v62, %v2684_v18  ;;  %v2680_v0 = vmul.f32 %v8622_v9, %v10865_v61  ;;  %v3212_v16 = vmul.f32 %v4496_v35, %v8666_v41  ;;  %v3213_v39 = vmul.f32 %v4497_v55, %v8666_v41  ;;  %v2605_v62 = vld [vmem:[%s8751_s25 + $0x238] sm:$0xff]  ;;  %v10869_v55 = vld [vmem:[#allocation24_spill] sm:$0xff] }
 0x3d0   : > { %4055 = vst [vmem:[%s9003_s28 + $0x1d0] sm:$0xff] %v3901_v48  ;;  %v3745_v17 = vadd.f32 %v3447_v22, %v3206_v56  ;;  %v3746_v54 = vadd.f32 %v3447_v22, %v3207_v32  ;;  %v2756_v58 = vsub.f32 %v2602_v25, %v2679_v36  ;;  %v2687_v41 = vmul.f32 %v8796_v24, %v10866_v29  ;;  %v2610_v56 = vld [vmem:[%s8751_s25 + $0x260] sm:$0xff]  ;;  %v4499_v48 = vld [vmem:[%s4635_s18 + $0x230] sm:$0xff]  ;;  %v4501_v24 = vld [vmem:[%s4635_s18 + $0x1b8] sm:$0xff] }
 0x3d1   : > { %4039 = vst [vmem:[%s9003_s28 + $0x150] sm:$0xff] %v3885_v51  ;;  %3631 = vperm.xlu2 %4258, %v2753_v6   ;;  %3636 = vperm.xlu1 %4257, %v2754_v3   ;;  %v2757_v31 = vsub.f32 %v2603_v7, %v2680_v0  ;;  %v3204_v32 = vmul.f32 %v4498_v60, %v8575_v28  ;;  %v4505_v0 = vld [vmem:[%s4635_s18 + $0x260] sm:$0xff]  ;;  %v4509_v60 = vld [vmem:[%s4635_s18 + $0x258] sm:$0xff] }
 0x3d2   : > { %4040 = vst.msk [vmem:[%s9003_s28 + $0x158] sm:$0xff] %vm377_vm0, %v3886_v44  ;;  %v3899_v50 = vmax.f32 %v3745_v17, 0.0  ;;  %v3900_v10 = vmax.f32 %v3746_v54, 0.0  ;;  %v3220_v51 = vmul.f32 %v4499_v48, %v8806_v34  ;;  %v4500_v44 = vld [vmem:[%s4635_s18 + $0x238] sm:$0xff]  ;;  %v2682_v18 = vmul.f32 %v8742_v14, %v10867_v52  ;;  %v4503_v14 = vld [vmem:[%s4635_s18 + $0x228] sm:$0xff]  ;;  %v4510_v52 = vld [vmem:[%s4635_s18 + $0x290] sm:$0xff] }
 0x3d3   : > { %4056 = vst.msk [vmem:[%s9003_s28 + $0x1d8] sm:$0xff] %vm377_vm0, %v3902_v27  ;;  %v3467_v53 = vpop.permute.xlu2 %3466  ;;  %v3427_v12 = vpop.permute.xlu1 %3426  ;;  %v3221_v6 = vmul.f32 %v4500_v44, %v8806_v34  ;;  %v3205_v27 = vmul.f32 %v4501_v24, %v8575_v28  ;;  %v2764_v54 = vsub.f32 %v2610_v56, %v2687_v41  ;;  %v2683_v46 = vmul.f32 %v8684_v43, %v10868_v11  ;;  %v2609_v41 = vld [vmem:[%s8751_s25 + $0x258] sm:$0xff]  ;;  %v10874_v11 = vld [vmem:[#allocation64_spill] sm:$0xff] }
 0x3d4   : > { %v3753_v30 = vadd.f32 %v3467_v53, %v3214_v15  ;;  %v3754_v40 = vadd.f32 %v3467_v53, %v3215_v57  ;;  %4053 = vst [vmem:[%s9003_s28 + $0x1c0] sm:$0xff] %v3899_v50  ;;  %v3737_v38 = vadd.f32 %v3427_v12, %v3198_v5  ;;  %v3738_v2 = vadd.f32 %v3427_v12, %v3199_v19  ;;  %v4502_v57 = vld [vmem:[%s4635_s18 + $0x220] sm:$0xff] }
 0x3d5   : > { %4054 = vst.msk [vmem:[%s9003_s28 + $0x1c8] sm:$0xff] %vm377_vm0, %v3900_v10  ;;  %3671 = vperm.xlu0 %4259, %v2761_v47   ;;  %v3218_v23 = vmul.f32 %v4502_v57, %v8729_v21  ;;  %v3219_v19 = vmul.f32 %v4503_v14, %v8729_v21  ;;  %v2759_v8 = vsub.f32 %v2605_v62, %v2682_v18  ;;  %v4504_v21 = vld [vmem:[%s4635_s18 + $0x1e0] sm:$0xff]  ;;  %v10873_v18 = vld [vmem:[#allocation39_spill] sm:$0xff]  ;;  %v4512_v62 = vld [vmem:[%s4635_s18 + $0x210] sm:$0xff] }
 0x3d6   : > { %v3907_v9 = vmax.f32 %v3753_v30, 0.0  ;;  %v3891_v1 = vmax.f32 %v3737_v38, 0.0  ;;  %v3892_v37 = vmax.f32 %v3738_v2, 0.0  ;;  %v3908_v20 = vmax.f32 %v3754_v40, 0.0  ;;  %v4506_v40 = vld [vmem:[%s4635_s18 + $0x268] sm:$0xff] }
 0x3d7   : > { %v3462_v42 = vpop.permute.xlu0 %3461  ;;  %v2760_v12 = vsub.f32 %v2606_v13, %v2683_v46  ;;  %v3210_v61 = vmul.f32 %v4504_v21, %v8655_v45  ;;  %v3226_v30 = vmul.f32 %v4505_v0, %v8821_v59  ;;  %v3227_v38 = vmul.f32 %v4506_v40, %v8821_v59  ;;  %v4507_v2 = vld [vmem:[%s4635_s18 + $0x1e8] sm:$0xff]  ;;  %v2608_v59 = vld [vmem:[%s8751_s25 + $0x250] sm:$0xff]  ;;  %v4516_v40 = vld [vmem:[%s4635_s18 + $0x2c0] sm:$0xff] }
 0x3d8   : > { %4061 = vst [vmem:[%s9003_s28 + $0x200] sm:$0xff] %v3907_v9  ;;  %v3751_v33 = vadd.f32 %v3462_v42, %v3212_v16  ;;  %v3752_v4 = vadd.f32 %v3462_v42, %v3213_v39  ;;  %v3211_v7 = vmul.f32 %v4507_v2, %v8655_v45  ;;  %v2685_v39 = vmul.f32 %v8776_v63, %v10869_v55  ;;  %v10877_v55 = vld [vmem:[#allocation43_spill] sm:$0xff] }
 0x3d9   : > { %4045 = vst [vmem:[%s9003_s28 + $0x180] sm:$0xff] %v3891_v1  ;;  %3646 = vperm.xlu2 %4258, %v2756_v58   ;;  %3651 = vperm.xlu1 %4257, %v2757_v31   ;;  %v10871_v58 = vld [vmem:[#allocation107_spill] sm:$0xff]  ;;  %v3216_v46 = vmul.f32 %v4512_v62, %v10874_v11  ;;  %v4525_v62 = vld [vmem:[%s4635_s18 + $0x278] sm:$0xff] }
 0x3da   : > { %4046 = vst.msk [vmem:[%s9003_s28 + $0x188] sm:$0xff] %vm377_vm0, %v3892_v37  ;;  %v3905_v22 = vmax.f32 %v3751_v33, 0.0  ;;  %v3906_v3 = vmax.f32 %v3752_v4, 0.0  ;;  %v10870_v37 = vld [vmem:[#allocation18_spill] sm:$0xff]  ;;  %v4508_v33 = vld [vmem:[%s4635_s18 + $0x250] sm:$0xff]  ;;  %v2762_v44 = vsub.f32 %v2608_v59, %v2685_v39 }
 0x3db   : > { %4062 = vst.msk [vmem:[%s9003_s28 + $0x208] sm:$0xff] %vm377_vm0, %v3908_v20  ;;  %v3482_v17 = vpop.permute.xlu2 %3481  ;;  %v3442_v34 = vpop.permute.xlu1 %3441  ;;  %v2686_v20 = vmul.f32 %v10871_v58, %v10870_v37  ;;  %v10872_v4 = vld [vmem:[#allocation150_spill] sm:$0xff] }
 0x3dc   : > { %v3759_v5 = vadd.f32 %v3482_v17, %v3220_v51  ;;  %v3760_v49 = vadd.f32 %v3482_v17, %v3221_v6  ;;  %4059 = vst [vmem:[%s9003_s28 + $0x1f0] sm:$0xff] %v3905_v22  ;;  %v3743_v28 = vadd.f32 %v3442_v34, %v3204_v32  ;;  %v3744_v15 = vadd.f32 %v3442_v34, %v3205_v27  ;;  %v4511_v34 = vld [vmem:[%s4635_s18 + $0x298] sm:$0xff] }
 0x3dd   : > { %4060 = vst.msk [vmem:[%s9003_s28 + $0x1f8] sm:$0xff] %vm377_vm0, %v3906_v3  ;;  %3686 = vperm.xlu0 %4259, %v2764_v54   ;;  %v3224_v56 = vmul.f32 %v4508_v33, %v10872_v4  ;;  %v3225_v63 = vmul.f32 %v4509_v60, %v10872_v4  ;;  %v2763_v27 = vsub.f32 %v2609_v41, %v2686_v20  ;;  %v4520_v41 = vld [vmem:[%s4635_s18 + $0x2b0] sm:$0xff]  ;;  %v10878_v33 = vld [vmem:[#allocation129_spill] sm:$0xff] }
 0x3de   : > { %v3913_v43 = vmax.f32 %v3759_v5, 0.0  ;;  %v3897_v50 = vmax.f32 %v3743_v28, 0.0  ;;  %v3898_v10 = vmax.f32 %v3744_v15, 0.0  ;;  %v3914_v36 = vmax.f32 %v3760_v49, 0.0  ;;  %v4513_v5 = vld [vmem:[%s4635_s18 + $0x218] sm:$0xff] }
 0x3df   : > { %v3477_v53 = vpop.permute.xlu0 %3476  ;;  %v3232_v17 = vmul.f32 %v4510_v52, %v10873_v18  ;;  %v3233_v54 = vmul.f32 %v4511_v34, %v10873_v18  ;;  %v3217_v49 = vmul.f32 %v4513_v5, %v10874_v11  ;;  %v3236_v4 = vmul.f32 %v4520_v41, %v10878_v33  ;;  %v4521_v60 = vld [vmem:[%s4635_s18 + $0x2b8] sm:$0xff]  ;;  %v10880_v34 = vld [vmem:[#allocation126_spill] sm:$0xff] }
 0x3e0   : > { %4067 = vst [vmem:[%s9003_s28 + $0x230] sm:$0xff] %v3913_v43  ;;  %v3757_v47 = vadd.f32 %v3477_v53, %v3218_v23  ;;  %v3758_v25 = vadd.f32 %v3477_v53, %v3219_v19  ;;  %v4515_v53 = vld [vmem:[%s4635_s18 + $0x288] sm:$0xff]  ;;  %v4523_v52 = vld [vmem:[%s4635_s18 + $0x2f8] sm:$0xff]  ;;  %v3229_v11 = vmul.f32 %v4525_v62, %v10880_v34 }
 0x3e1   : > { %4051 = vst [vmem:[%s9003_s28 + $0x1b0] sm:$0xff] %v3897_v50  ;;  %3661 = vperm.xlu2 %4258, %v2759_v8   ;;  %3666 = vperm.xlu1 %4257, %v2760_v12   ;;  %v4514_v50 = vld [vmem:[%s4635_s18 + $0x280] sm:$0xff] }
 0x3e2   : > { %4052 = vst.msk [vmem:[%s9003_s28 + $0x1b8] sm:$0xff] %vm377_vm0, %v3898_v10  ;;  %v3911_v35 = vmax.f32 %v3757_v47, 0.0  ;;  %v3912_v16 = vmax.f32 %v3758_v25, 0.0  ;;  %v10875_v10 = vld [vmem:[#allocation46_spill] sm:$0xff] }
 0x3e3   : > { %4068 = vst.msk [vmem:[%s9003_s28 + $0x238] sm:$0xff] %vm377_vm0, %v3914_v36  ;;  %v3497_v9 = vpop.permute.xlu2 %3496  ;;  %v3457_v1 = vpop.permute.xlu1 %3456  ;;  %v3230_v8 = vmul.f32 %v4514_v50, %v10875_v10  ;;  %v3231_v12 = vmul.f32 %v4515_v53, %v10875_v10  ;;  %v4527_v10 = vld [vmem:[%s4635_s18 + $0x2e8] sm:$0xff] }
 0x3e4   : > { %v3765_v42 = vadd.f32 %v3497_v9, %v3226_v30  ;;  %v3766_v31 = vadd.f32 %v3497_v9, %v3227_v38  ;;  %4065 = vst [vmem:[%s9003_s28 + $0x220] sm:$0xff] %v3911_v35  ;;  %v3749_v45 = vadd.f32 %v3457_v1, %v3210_v61  ;;  %v3750_v29 = vadd.f32 %v3457_v1, %v3211_v7  ;;  %v10876_v38 = vld [vmem:[#allocation33_spill] sm:$0xff]  ;;  %v4517_v7 = vld [vmem:[%s4635_s18 + $0x2c8] sm:$0xff] }
 0x3e5   : > { %4066 = vst.msk [vmem:[%s9003_s28 + $0x228] sm:$0xff] %vm377_vm0, %v3912_v16  ;;  %v3238_v2 = vmul.f32 %v4516_v40, %v10876_v38  ;;  %v3239_v35 = vmul.f32 %v4517_v7, %v10876_v38  ;;  %v4518_v16 = vld [vmem:[%s4635_s18 + $0x240] sm:$0xff]  ;;  %v4519_v9 = vld [vmem:[%s4635_s18 + $0x248] sm:$0xff] }
 0x3e6   : > { %v3919_v32 = vmax.f32 %v3765_v42, 0.0  ;;  %v3903_v48 = vmax.f32 %v3749_v45, 0.0  ;;  %v3904_v51 = vmax.f32 %v3750_v29, 0.0  ;;  %v3920_v6 = vmax.f32 %v3766_v31, 0.0  ;;  %v4529_v40 = vld [vmem:[%s4635_s18 + $0x328] sm:$0xff] }
 0x3e7   : > { %v3492_v24 = vpop.permute.xlu0 %3491  ;;  %v3222_v39 = vmul.f32 %v4518_v16, %v10877_v55  ;;  %v3223_v1 = vmul.f32 %v4519_v9, %v10877_v55  ;;  %v10883_v7 = vld [vmem:[#allocation147_spill] sm:$0xff] }
 0x3e8   : > { %4073 = vst [vmem:[%s9003_s28 + $0x260] sm:$0xff] %v3919_v32  ;;  %v3763_v22 = vadd.f32 %v3492_v24, %v3224_v56  ;;  %v3764_v3 = vadd.f32 %v3492_v24, %v3225_v63  ;;  %v3237_v63 = vmul.f32 %v4521_v60, %v10878_v33  ;;  %v4531_v16 = vld [vmem:[%s4635_s18 + $0x2a8] sm:$0xff]  ;;  %v4533_v33 = vld [vmem:[%s4635_s18 + $0x318] sm:$0xff] }
 0x3e9   : > { %4057 = vst [vmem:[%s9003_s28 + $0x1e0] sm:$0xff] %v3903_v48  ;;  %3676 = vperm.xlu2 %4258, %v2762_v44   ;;  %3681 = vperm.xlu1 %4257, %v2763_v27   ;;  %v4522_v27 = vld [vmem:[%s4635_s18 + $0x2f0] sm:$0xff]  ;;  %v3235_v55 = vmul.f32 %v4531_v16, %v10883_v7 }
 0x3ea   : > { %4058 = vst.msk [vmem:[%s9003_s28 + $0x1e8] sm:$0xff] %vm377_vm0, %v3904_v51  ;;  %v3917_v28 = vmax.f32 %v3763_v22, 0.0  ;;  %v3918_v15 = vmax.f32 %v3764_v3, 0.0  ;;  %v10879_v22 = vld [vmem:[#allocation34_spill] sm:$0xff] }
 0x3eb   : > { %4074 = vst.msk [vmem:[%s9003_s28 + $0x268] sm:$0xff] %vm377_vm0, %v3920_v6  ;;  %v3512_v13 = vpop.permute.xlu2 %3511  ;;  %v3472_v57 = vpop.permute.xlu1 %3471  ;;  %v3244_v3 = vmul.f32 %v4522_v27, %v10879_v22  ;;  %v3245_v18 = vmul.f32 %v4523_v52, %v10879_v22  ;;  %v4535_v27 = vld [vmem:[%s4635_s18 + $0x358] sm:$0xff]  ;;  %v10886_v52 = vld [vmem:[#allocation127_spill] sm:$0xff] }
 0x3ec   : > { %v3771_v23 = vadd.f32 %v3512_v13, %v3232_v17  ;;  %v3772_v14 = vadd.f32 %v3512_v13, %v3233_v54  ;;  %4071 = vst [vmem:[%s9003_s28 + $0x250] sm:$0xff] %v3917_v28  ;;  %v3755_v19 = vadd.f32 %v3472_v57, %v3216_v46  ;;  %v3756_v43 = vadd.f32 %v3472_v57, %v3217_v49  ;;  %v4524_v17 = vld [vmem:[%s4635_s18 + $0x270] sm:$0xff] }
 0x3ed   : > { %4072 = vst.msk [vmem:[%s9003_s28 + $0x258] sm:$0xff] %vm377_vm0, %v3918_v15  ;;  %v3228_v54 = vmul.f32 %v4524_v17, %v10880_v34  ;;  %v4537_v17 = vld [vmem:[%s4635_s18 + $0x2d8] sm:$0xff] }
 0x3ee   : > { %v3925_v36 = vmax.f32 %v3771_v23, 0.0  ;;  %v3909_v47 = vmax.f32 %v3755_v19, 0.0  ;;  %v3910_v25 = vmax.f32 %v3756_v43, 0.0  ;;  %v3926_v21 = vmax.f32 %v3772_v14, 0.0  ;;  %v4526_v14 = vld [vmem:[%s4635_s18 + $0x2e0] sm:$0xff] }
 0x3ef   : > { %v3507_v61 = vpop.permute.xlu0 %3506  ;;  %v10881_v19 = vld [vmem:[#allocation146_spill] sm:$0xff]  ;;  %v3241_v34 = vmul.f32 %v4537_v17, %v10886_v52 }
 0x3f0   : > { %4079 = vst [vmem:[%s9003_s28 + $0x290] sm:$0xff] %v3925_v36  ;;  %v3769_v0 = vadd.f32 %v3507_v61, %v3230_v8  ;;  %v3770_v30 = vadd.f32 %v3507_v61, %v3231_v12  ;;  %v3242_v43 = vmul.f32 %v4526_v14, %v10881_v19  ;;  %v3243_v8 = vmul.f32 %v4527_v10, %v10881_v19  ;;  %v4528_v61 = vld [vmem:[%s4635_s18 + $0x320] sm:$0xff]  ;;  %v4539_v19 = vld [vmem:[%s4635_s18 + $0x348] sm:$0xff] }
 0x3f1   : > { %4063 = vst [vmem:[%s9003_s28 + $0x210] sm:$0xff] %v3909_v47 }
 0x3f2   : > { %4064 = vst.msk [vmem:[%s9003_s28 + $0x218] sm:$0xff] %vm377_vm0, %v3910_v25  ;;  %v3923_v59 = vmax.f32 %v3769_v0, 0.0  ;;  %v3924_v37 = vmax.f32 %v3770_v30, 0.0  ;;  %v10882_v0 = vld [vmem:[#allocation58_spill] sm:$0xff] }
 0x3f3   : > { %4080 = vst.msk [vmem:[%s9003_s28 + $0x298] sm:$0xff] %vm377_vm0, %v3926_v21  ;;  %v3527_v58 = vpop.permute.xlu2 %3526  ;;  %v3487_v20 = vpop.permute.xlu1 %3486  ;;  %v3250_v30 = vmul.f32 %v4528_v61, %v10882_v0  ;;  %v3251_v38 = vmul.f32 %v4529_v40, %v10882_v0  ;;  %v4541_v61 = vld [vmem:[%s4635_s18 + $0x388] sm:$0xff]  ;;  %v10889_v40 = vld [vmem:[#allocation50_spill] sm:$0xff] }
 0x3f4   : > { %v3777_v42 = vadd.f32 %v3527_v58, %v3238_v2  ;;  %v3778_v31 = vadd.f32 %v3527_v58, %v3239_v35  ;;  %4077 = vst [vmem:[%s9003_s28 + $0x280] sm:$0xff] %v3923_v59  ;;  %v3761_v45 = vadd.f32 %v3487_v20, %v3222_v39  ;;  %v3762_v29 = vadd.f32 %v3487_v20, %v3223_v1  ;;  %v4530_v2 = vld [vmem:[%s4635_s18 + $0x2a0] sm:$0xff] }
 0x3f5   : > { %4078 = vst.msk [vmem:[%s9003_s28 + $0x288] sm:$0xff] %vm377_vm0, %v3924_v37  ;;  %v3234_v35 = vmul.f32 %v4530_v2, %v10883_v7  ;;  %v4543_v2 = vld [vmem:[%s4635_s18 + $0x308] sm:$0xff] }
 0x3f6   : > { %v3931_v56 = vmax.f32 %v3777_v42, 0.0  ;;  %v3915_v32 = vmax.f32 %v3761_v45, 0.0  ;;  %v3916_v48 = vmax.f32 %v3762_v29, 0.0  ;;  %v3932_v51 = vmax.f32 %v3778_v31, 0.0  ;;  %v4532_v31 = vld [vmem:[%s4635_s18 + $0x310] sm:$0xff]  ;;  %v10884_v45 = vld [vmem:[#allocation149_spill] sm:$0xff] }
 0x3f7   : > { %v3522_v44 = vpop.permute.xlu0 %3521  ;;  %v3248_v29 = vmul.f32 %v4532_v31, %v10884_v45  ;;  %v3247_v7 = vmul.f32 %v4543_v2, %v10889_v40 }
 0x3f8   : > { %4085 = vst [vmem:[%s9003_s28 + $0x2c0] sm:$0xff] %v3931_v56  ;;  %v3775_v6 = vadd.f32 %v3522_v44, %v3236_v4  ;;  %v3776_v24 = vadd.f32 %v3522_v44, %v3237_v63  ;;  %v3249_v4 = vmul.f32 %v4533_v33, %v10884_v45  ;;  %v4534_v44 = vld [vmem:[%s4635_s18 + $0x350] sm:$0xff]  ;;  %v4545_v45 = vld [vmem:[%s4635_s18 + $0x378] sm:$0xff] }
 0x3f9   : > { %4069 = vst [vmem:[%s9003_s28 + $0x240] sm:$0xff] %v3915_v32 }
 0x3fa   : > { %4070 = vst.msk [vmem:[%s9003_s28 + $0x248] sm:$0xff] %vm377_vm0, %v3916_v48  ;;  %v3929_v46 = vmax.f32 %v3775_v6, 0.0  ;;  %v3930_v5 = vmax.f32 %v3776_v24, 0.0  ;;  %v10885_v6 = vld [vmem:[#allocation38_spill] sm:$0xff] }
 0x3fb   : > { %4086 = vst.msk [vmem:[%s9003_s28 + $0x2c8] sm:$0xff] %vm377_vm0, %v3932_v51  ;;  %v3542_v49 = vpop.permute.xlu2 %3541  ;;  %v3502_v28 = vpop.permute.xlu1 %3501  ;;  %v3256_v24 = vmul.f32 %v4534_v44, %v10885_v6  ;;  %v3257_v22 = vmul.f32 %v4535_v27, %v10885_v6  ;;  %v4548_v6 = vld [vmem:[%s4635_s18 + $0x330] sm:$0xff] }
 0x3fc   : > { %v3783_v15 = vadd.f32 %v3542_v49, %v3244_v3  ;;  %v3784_v13 = vadd.f32 %v3542_v49, %v3245_v18  ;;  %4083 = vst [vmem:[%s9003_s28 + $0x2b0] sm:$0xff] %v3929_v46  ;;  %v3767_v57 = vadd.f32 %v3502_v28, %v3228_v54  ;;  %v3768_v23 = vadd.f32 %v3502_v28, %v3229_v11  ;;  %v4536_v3 = vld [vmem:[%s4635_s18 + $0x2d0] sm:$0xff] }
 0x3fd   : > { %4084 = vst.msk [vmem:[%s9003_s28 + $0x2b8] sm:$0xff] %vm377_vm0, %v3930_v5  ;;  %v3240_v18 = vmul.f32 %v4536_v3, %v10886_v52 }
 0x3fe   : > { %v3937_v50 = vmax.f32 %v3783_v15, 0.0  ;;  %v3921_v36 = vmax.f32 %v3767_v57, 0.0  ;;  %v3922_v53 = vmax.f32 %v3768_v23, 0.0  ;;  %v3938_v12 = vmax.f32 %v3784_v13, 0.0  ;;  %v4538_v13 = vld [vmem:[%s4635_s18 + $0x340] sm:$0xff]  ;;  %v10887_v57 = vld [vmem:[#allocation25_spill] sm:$0xff] }
 0x3ff   : > { %v3537_v47 = vpop.permute.xlu0 %3536  ;;  %v3254_v23 = vmul.f32 %v4538_v13, %v10887_v57 }
 0x400   : > { %4091 = vst [vmem:[%s9003_s28 + $0x2f0] sm:$0xff] %v3937_v50  ;;  %v3781_v25 = vadd.f32 %v3537_v47, %v3242_v43  ;;  %v3782_v21 = vadd.f32 %v3537_v47, %v3243_v8  ;;  %v3255_v43 = vmul.f32 %v4539_v19, %v10887_v57  ;;  %v4540_v47 = vld [vmem:[%s4635_s18 + $0x380] sm:$0xff] }
 0x401   : > { %4075 = vst [vmem:[%s9003_s28 + $0x270] sm:$0xff] %v3921_v36 }
 0x402   : > { %4076 = vst.msk [vmem:[%s9003_s28 + $0x278] sm:$0xff] %vm377_vm0, %v3922_v53  ;;  %v3935_v39 = vmax.f32 %v3781_v25, 0.0  ;;  %v3936_v9 = vmax.f32 %v3782_v21, 0.0  ;;  %v10888_v25 = vld [vmem:[#allocation32_spill] sm:$0xff] }
 0x403   : > { %4092 = vst.msk [vmem:[%s9003_s28 + $0x2f8] sm:$0xff] %vm377_vm0, %v3938_v12  ;;  %v3557_v1 = vpop.permute.xlu2 %3556  ;;  %v3517_v59 = vpop.permute.xlu1 %3516  ;;  %v3262_v21 = vmul.f32 %v4540_v47, %v10888_v25  ;;  %v3263_v0 = vmul.f32 %v4541_v61, %v10888_v25  ;;  %v4554_v47 = vld [vmem:[%s4635_s18 + $0x360] sm:$0xff]  ;;  %v10894_v25 = vld [vmem:[#allocation73_spill] sm:$0xff]  ;;  %v4555_v61 = vld [vmem:[%s4635_s18 + $0x368] sm:$0xff] }
 0x404   : > { %v3789_v37 = vadd.f32 %v3557_v1, %v3250_v30  ;;  %v3790_v58 = vadd.f32 %v3557_v1, %v3251_v38  ;;  %4089 = vst [vmem:[%s9003_s28 + $0x2e0] sm:$0xff] %v3935_v39  ;;  %v3773_v20 = vadd.f32 %v3517_v59, %v3234_v35  ;;  %v3774_v42 = vadd.f32 %v3517_v59, %v3235_v55  ;;  %v4542_v30 = vld [vmem:[%s4635_s18 + $0x300] sm:$0xff] }
 0x405   : > { %4090 = vst.msk [vmem:[%s9003_s28 + $0x2e8] sm:$0xff] %vm377_vm0, %v3936_v9  ;;  %v3246_v38 = vmul.f32 %v4542_v30, %v10889_v40 }
 0x406   : > { %v3943_v41 = vmax.f32 %v3789_v37, 0.0  ;;  %v3927_v56 = vmax.f32 %v3773_v20, 0.0  ;;  %v3928_v60 = vmax.f32 %v3774_v42, 0.0  ;;  %v3944_v63 = vmax.f32 %v3790_v58, 0.0  ;;  %v4544_v58 = vld [vmem:[%s4635_s18 + $0x370] sm:$0xff]  ;;  %v10890_v20 = vld [vmem:[#allocation66_spill] sm:$0xff] }
 0x407   : > { %v3552_v32 = vpop.permute.xlu0 %3551  ;;  %v3260_v42 = vmul.f32 %v4544_v58, %v10890_v20 }
 0x408   : > { %4097 = vst [vmem:[%s9003_s28 + $0x320] sm:$0xff] %v3943_v41  ;;  %v3787_v48 = vadd.f32 %v3552_v32, %v3248_v29  ;;  %v3788_v51 = vadd.f32 %v3552_v32, %v3249_v4  ;;  %v3261_v29 = vmul.f32 %v4545_v45, %v10890_v20  ;;  %v4546_v32 = vld [vmem:[%s4635_s18 + $0x3b0] sm:$0xff] }
 0x409   : > { %4081 = vst [vmem:[%s9003_s28 + $0x2a0] sm:$0xff] %v3927_v56 }
 0x40a   : > { %4082 = vst.msk [vmem:[%s9003_s28 + $0x2a8] sm:$0xff] %vm377_vm0, %v3928_v60  ;;  %v3941_v54 = vmax.f32 %v3787_v48, 0.0  ;;  %v3942_v62 = vmax.f32 %v3788_v51, 0.0  ;;  %v3268_v48 = vmul.f32 %v4546_v32, %v8926_v26  ;;  %v4547_v51 = vld [vmem:[%s4635_s18 + $0x3b8] sm:$0xff]  ;;  %v4560_v32 = vld [vmem:[%s4635_s18 + $0x390] sm:$0xff] }
 0x40b   : > { %4098 = vst.msk [vmem:[%s9003_s28 + $0x328] sm:$0xff] %vm377_vm0, %v3944_v63  ;;  %v3572_v11 = vpop.permute.xlu2 %3571  ;;  %v3532_v46 = vpop.permute.xlu1 %3531  ;;  %v3269_v44 = vmul.f32 %v4547_v51, %v8926_v26 }
 0x40c   : > { %v3795_v5 = vadd.f32 %v3572_v11, %v3256_v24  ;;  %v3796_v49 = vadd.f32 %v3572_v11, %v3257_v22  ;;  %4095 = vst [vmem:[%s9003_s28 + $0x310] sm:$0xff] %v3941_v54  ;;  %v3779_v28 = vadd.f32 %v3532_v46, %v3240_v18  ;;  %v3780_v15 = vadd.f32 %v3532_v46, %v3241_v34  ;;  %v10891_v24 = vld [vmem:[#allocation36_spill] sm:$0xff]  ;;  %v4549_v22 = vld [vmem:[%s4635_s18 + $0x338] sm:$0xff]  ;;  %v4550_v46 = vld [vmem:[%s4635_s18 + $0x3a0] sm:$0xff] }
 0x40d   : > { %4096 = vst.msk [vmem:[%s9003_s28 + $0x318] sm:$0xff] %vm377_vm0, %v3942_v62  ;;  %v3252_v27 = vmul.f32 %v4548_v6, %v10891_v24  ;;  %v3253_v3 = vmul.f32 %v4549_v22, %v10891_v24 }
 0x40e   : > { %v3949_v14 = vmax.f32 %v3795_v5, 0.0  ;;  %v3933_v50 = vmax.f32 %v3779_v28, 0.0  ;;  %v3934_v10 = vmax.f32 %v3780_v15, 0.0  ;;  %v3950_v8 = vmax.f32 %v3796_v49, 0.0  ;;  %v10892_v5 = vld [vmem:[#allocation26_spill] sm:$0xff]  ;;  %v4551_v15 = vld [vmem:[%s4635_s18 + $0x3a8] sm:$0xff] }
 0x40f   : > { %v3567_v36 = vpop.permute.xlu0 %3566  ;;  %v3266_v49 = vmul.f32 %v4550_v46, %v10892_v5  ;;  %v3267_v13 = vmul.f32 %v4551_v15, %v10892_v5  ;;  %v4563_v46 = vld [vmem:[%s4635_s18 + $0x408] sm:$0xff] }
 0x410   : > { %4103 = vst [vmem:[%s9003_s28 + $0x350] sm:$0xff] %v3949_v14  ;;  %v3793_v53 = vadd.f32 %v3567_v36, %v3254_v23  ;;  %v3794_v12 = vadd.f32 %v3567_v36, %v3255_v43 }
 0x411   : > { %4087 = vst [vmem:[%s9003_s28 + $0x2d0] sm:$0xff] %v3933_v50 }
 0x412   : > { %4088 = vst.msk [vmem:[%s9003_s28 + $0x2d8] sm:$0xff] %vm377_vm0, %v3934_v10  ;;  %v3947_v35 = vmax.f32 %v3793_v53, 0.0  ;;  %v3948_v16 = vmax.f32 %v3794_v12, 0.0  ;;  %v4552_v10 = vld [vmem:[%s4635_s18 + $0x3e0] sm:$0xff]  ;;  %v4553_v53 = vld [vmem:[%s4635_s18 + $0x3e8] sm:$0xff] }
 0x413   : > { %4104 = vst.msk [vmem:[%s9003_s28 + $0x358] sm:$0xff] %vm377_vm0, %v3950_v8  ;;  %v3587_v55 = vpop.permute.xlu2 %3586  ;;  %v3547_v39 = vpop.permute.xlu1 %3546  ;;  %v10893_v8 = vld [vmem:[#allocation31_spill] sm:$0xff] }
 0x414   : > { %v3801_v9 = vadd.f32 %v3587_v55, %v3262_v21  ;;  %v3802_v1 = vadd.f32 %v3587_v55, %v3263_v0  ;;  %4101 = vst [vmem:[%s9003_s28 + $0x340] sm:$0xff] %v3947_v35  ;;  %v3785_v59 = vadd.f32 %v3547_v39, %v3246_v38  ;;  %v3786_v37 = vadd.f32 %v3547_v39, %v3247_v7  ;;  %v4556_v39 = vld [vmem:[%s4635_s18 + $0x3d0] sm:$0xff] }
 0x415   : > { %4102 = vst.msk [vmem:[%s9003_s28 + $0x348] sm:$0xff] %vm377_vm0, %v3948_v16  ;;  %v3274_v36 = vmul.f32 %v4552_v10, %v10893_v8  ;;  %v3275_v12 = vmul.f32 %v4553_v53, %v10893_v8  ;;  %v3258_v21 = vmul.f32 %v4554_v47, %v10894_v25  ;;  %v3259_v0 = vmul.f32 %v4555_v61, %v10894_v25  ;;  %v4566_v8 = vld [vmem:[%s4635_s18 + $0x3c0] sm:$0xff] }
 0x416   : > { %v3955_v31 = vmax.f32 %v3801_v9, 0.0  ;;  %v3939_v41 = vmax.f32 %v3785_v59, 0.0  ;;  %v3940_v33 = vmax.f32 %v3786_v37, 0.0  ;;  %v3956_v4 = vmax.f32 %v3802_v1, 0.0  ;;  %v10895_v9 = vld [vmem:[#allocation35_spill] sm:$0xff]  ;;  %v4557_v37 = vld [vmem:[%s4635_s18 + $0x3d8] sm:$0xff] }
 0x417   : > { %v3582_v56 = vpop.permute.xlu0 %3581  ;;  %v3272_v1 = vmul.f32 %v4556_v39, %v10895_v9  ;;  %v3273_v58 = vmul.f32 %v4557_v37, %v10895_v9  ;;  %v4569_v39 = vld [vmem:[%s4635_s18 + $0x438] sm:$0xff] }
 0x418   : > { %4109 = vst [vmem:[%s9003_s28 + $0x380] sm:$0xff] %v3955_v31  ;;  %v3799_v60 = vadd.f32 %v3582_v56, %v3260_v42  ;;  %v3800_v63 = vadd.f32 %v3582_v56, %v3261_v29 }
 0x419   : > { %4093 = vst [vmem:[%s9003_s28 + $0x300] sm:$0xff] %v3939_v41 }
 0x41a   : > { %4094 = vst.msk [vmem:[%s9003_s28 + $0x308] sm:$0xff] %vm377_vm0, %v3940_v33  ;;  %v3953_v52 = vmax.f32 %v3799_v60, 0.0  ;;  %v3954_v18 = vmax.f32 %v3800_v63, 0.0  ;;  %v4558_v33 = vld [vmem:[%s4635_s18 + $0x410] sm:$0xff]  ;;  %v4559_v60 = vld [vmem:[%s4635_s18 + $0x418] sm:$0xff] }
 0x41b   : > { %4110 = vst.msk [vmem:[%s9003_s28 + $0x388] sm:$0xff] %vm377_vm0, %v3956_v4  ;;  %v3602_v17 = vpop.permute.xlu2 %3601  ;;  %v3562_v34 = vpop.permute.xlu1 %3561  ;;  %v10896_v4 = vld [vmem:[#allocation68_spill] sm:$0xff] }
 0x41c   : > { %v3807_v54 = vadd.f32 %v3602_v17, %v3268_v48  ;;  %v3808_v26 = vadd.f32 %v3602_v17, %v3269_v44  ;;  %4107 = vst [vmem:[%s9003_s28 + $0x370] sm:$0xff] %v3953_v52  ;;  %v3791_v62 = vadd.f32 %v3562_v34, %v3252_v27  ;;  %v3792_v11 = vadd.f32 %v3562_v34, %v3253_v3  ;;  %v10897_v48 = vld [vmem:[#allocation29_spill] sm:$0xff] }
 0x41d   : > { %4108 = vst.msk [vmem:[%s9003_s28 + $0x378] sm:$0xff] %vm377_vm0, %v3954_v18  ;;  %v3280_v56 = vmul.f32 %v4558_v33, %v10896_v4  ;;  %v3281_v63 = vmul.f32 %v4559_v60, %v10896_v4  ;;  %v3264_v51 = vmul.f32 %v4560_v32, %v10897_v48  ;;  %v4561_v44 = vld [vmem:[%s4635_s18 + $0x398] sm:$0xff]  ;;  %v4572_v4 = vld [vmem:[%s4635_s18 + $0x3f0] sm:$0xff] }
 0x41e   : > { %v3961_v28 = vmax.f32 %v3807_v54, 0.0  ;;  %v3945_v57 = vmax.f32 %v3791_v62, 0.0  ;;  %v3946_v23 = vmax.f32 %v3792_v11, 0.0  ;;  %v3962_v14 = vmax.f32 %v3808_v26, 0.0  ;;  %v4562_v54 = vld [vmem:[%s4635_s18 + $0x400] sm:$0xff]  ;;  %v10898_v26 = vld [vmem:[#allocation28_spill] sm:$0xff] }
 0x41f   : > { %v3597_v19 = vpop.permute.xlu0 %3596  ;;  %v3265_v6 = vmul.f32 %v4561_v44, %v10897_v48  ;;  %v3278_v62 = vmul.f32 %v4562_v54, %v10898_v26  ;;  %v3279_v5 = vmul.f32 %v4563_v46, %v10898_v26  ;;  %v4575_v54 = vld [vmem:[%s4635_s18 + $0x468] sm:$0xff] }
 0x420   : > { %4115 = vst [vmem:[%s9003_s28 + $0x3b0] sm:$0xff] %v3961_v28  ;;  %v3805_v43 = vadd.f32 %v3597_v19, %v3266_v49  ;;  %v3806_v50 = vadd.f32 %v3597_v19, %v3267_v13  ;;  %v10899_v19 = vld [vmem:[#allocation37_spill] sm:$0xff] }
 0x421   : > { %4099 = vst [vmem:[%s9003_s28 + $0x330] sm:$0xff] %v3945_v57 }
 0x422   : > { %4100 = vst.msk [vmem:[%s9003_s28 + $0x338] sm:$0xff] %vm377_vm0, %v3946_v23  ;;  %v3959_v30 = vmax.f32 %v3805_v43, 0.0  ;;  %v3960_v40 = vmax.f32 %v3806_v50, 0.0  ;;  %v4565_v50 = vld [vmem:[%s4635_s18 + $0x448] sm:$0xff] }
 0x423   : > { %4116 = vst.msk [vmem:[%s9003_s28 + $0x3b8] sm:$0xff] %vm377_vm0, %v3962_v14  ;;  %v3617_v38 = vpop.permute.xlu2 %3616  ;;  %v3577_v2 = vpop.permute.xlu1 %3576  ;;  %v4564_v14 = vld [vmem:[%s4635_s18 + $0x440] sm:$0xff]  ;;  %v3287_v10 = vmul.f32 %v4565_v50, %v10899_v19 }
 0x424   : > { %v3813_v7 = vadd.f32 %v3617_v38, %v3274_v36  ;;  %v3814_v35 = vadd.f32 %v3617_v38, %v3275_v12  ;;  %4113 = vst [vmem:[%s9003_s28 + $0x3a0] sm:$0xff] %v3959_v30  ;;  %v3797_v16 = vadd.f32 %v3577_v2, %v3258_v21  ;;  %v3798_v55 = vadd.f32 %v3577_v2, %v3259_v0  ;;  %v10900_v36 = vld [vmem:[#allocation86_spill] sm:$0xff]  ;;  %v4567_v12 = vld [vmem:[%s4635_s18 + $0x3c8] sm:$0xff] }
 0x425   : > { %4114 = vst.msk [vmem:[%s9003_s28 + $0x3a8] sm:$0xff] %vm377_vm0, %v3960_v40  ;;  %v3286_v43 = vmul.f32 %v4564_v14, %v10899_v19  ;;  %v3270_v53 = vmul.f32 %v4566_v8, %v10900_v36  ;;  %v3271_v47 = vmul.f32 %v4567_v12, %v10900_v36  ;;  %v4578_v19 = vld [vmem:[%s4635_s18 + $0x420] sm:$0xff] }
 0x426   : > { %v3967_v59 = vmax.f32 %v3813_v7, 0.0  ;;  %v3951_v20 = vmax.f32 %v3797_v16, 0.0  ;;  %v3952_v42 = vmax.f32 %v3798_v55, 0.0  ;;  %v3968_v31 = vmax.f32 %v3814_v35, 0.0  ;;  %v4568_v7 = vld [vmem:[%s4635_s18 + $0x430] sm:$0xff] }
 0x427   : > { %v3612_v45 = vpop.permute.xlu0 %3611  ;;  %v10901_v35 = vld [vmem:[#allocation76_spill] sm:$0xff] }
 0x428   : > { %4121 = vst [vmem:[%s9003_s28 + $0x3e0] sm:$0xff] %v3967_v59  ;;  %v3811_v29 = vadd.f32 %v3612_v45, %v3272_v1  ;;  %v3812_v41 = vadd.f32 %v3612_v45, %v3273_v58  ;;  %v3284_v16 = vmul.f32 %v4568_v7, %v10901_v35  ;;  %v3285_v9 = vmul.f32 %v4569_v39, %v10901_v35  ;;  %v10902_v45 = vld [vmem:[#allocation57_spill] sm:$0xff] }
 0x429   : > { %4105 = vst [vmem:[%s9003_s28 + $0x360] sm:$0xff] %v3951_v20  ;;  %v4581_v7 = vld [vmem:[%s4635_s18 + $0x498] sm:$0xff] }
 0x42a   : > { %4106 = vst.msk [vmem:[%s9003_s28 + $0x368] sm:$0xff] %vm377_vm0, %v3952_v42  ;;  %v3965_v24 = vmax.f32 %v3811_v29, 0.0  ;;  %v3966_v27 = vmax.f32 %v3812_v41, 0.0  ;;  %v4571_v41 = vld [vmem:[%s4635_s18 + $0x478] sm:$0xff] }
 0x42b   : > { %4122 = vst.msk [vmem:[%s9003_s28 + $0x3e8] sm:$0xff] %vm377_vm0, %v3968_v31  ;;  %v3632_v22 = vpop.permute.xlu2 %3631  ;;  %v3592_v3 = vpop.permute.xlu1 %3591  ;;  %v4570_v31 = vld [vmem:[%s4635_s18 + $0x470] sm:$0xff]  ;;  %v3293_v33 = vmul.f32 %v4571_v41, %v10902_v45 }
 0x42c   : > { %v3819_v52 = vadd.f32 %v3632_v22, %v3280_v56  ;;  %v3820_v18 = vadd.f32 %v3632_v22, %v3281_v63  ;;  %4119 = vst [vmem:[%s9003_s28 + $0x3d0] sm:$0xff] %v3965_v24  ;;  %v3803_v17 = vadd.f32 %v3592_v3, %v3264_v51  ;;  %v3804_v34 = vadd.f32 %v3592_v3, %v3265_v6  ;;  %v10903_v56 = vld [vmem:[#allocation45_spill] sm:$0xff] }
 0x42d   : > { %4120 = vst.msk [vmem:[%s9003_s28 + $0x3d8] sm:$0xff] %vm377_vm0, %v3966_v27  ;;  %v3292_v29 = vmul.f32 %v4570_v31, %v10902_v45  ;;  %v3276_v60 = vmul.f32 %v4572_v4, %v10903_v56  ;;  %v4573_v63 = vld [vmem:[%s4635_s18 + $0x3f8] sm:$0xff] }
 0x42e   : > { %v3973_v11 = vmax.f32 %v3819_v52, 0.0  ;;  %v3957_v49 = vmax.f32 %v3803_v17, 0.0  ;;  %v3958_v28 = vmax.f32 %v3804_v34, 0.0  ;;  %v3974_v15 = vmax.f32 %v3820_v18, 0.0  ;;  %v4574_v52 = vld [vmem:[%s4635_s18 + $0x460] sm:$0xff]  ;;  %v10904_v18 = vld [vmem:[#allocation153_spill] sm:$0xff] }
 0x42f   : > { %v3627_v13 = vpop.permute.xlu0 %3626  ;;  %v3277_v32 = vmul.f32 %v4573_v63, %v10903_v56  ;;  %v3290_v17 = vmul.f32 %v4574_v52, %v10904_v18  ;;  %v3291_v26 = vmul.f32 %v4575_v54, %v10904_v18  ;;  %v4584_v56 = vld [vmem:[%s4635_s18 + $0x4c0] sm:$0xff]  ;;  %v4587_v18 = vld [vmem:[%s4635_s18 + $0x488] sm:$0xff] }
 0x430   : > { %4127 = vst [vmem:[%s9003_s28 + $0x410] sm:$0xff] %v3973_v11  ;;  %v3817_v57 = vadd.f32 %v3627_v13, %v3278_v62  ;;  %v3818_v23 = vadd.f32 %v3627_v13, %v3279_v5  ;;  %v10905_v13 = vld [vmem:[#allocation60_spill] sm:$0xff] }
 0x431   : > { %4111 = vst [vmem:[%s9003_s28 + $0x390] sm:$0xff] %v3957_v49 }
 0x432   : > { %4112 = vst.msk [vmem:[%s9003_s28 + $0x398] sm:$0xff] %vm377_vm0, %v3958_v28  ;;  %v3971_v25 = vmax.f32 %v3817_v57, 0.0  ;;  %v3972_v21 = vmax.f32 %v3818_v23, 0.0  ;;  %v4577_v23 = vld [vmem:[%s4635_s18 + $0x4a8] sm:$0xff] }
 0x433   : > { %4128 = vst.msk [vmem:[%s9003_s28 + $0x418] sm:$0xff] %vm377_vm0, %v3974_v15  ;;  %v3647_v61 = vpop.permute.xlu2 %3646  ;;  %v3607_v0 = vpop.permute.xlu1 %3606  ;;  %v4576_v15 = vld [vmem:[%s4635_s18 + $0x4a0] sm:$0xff]  ;;  %v3299_v14 = vmul.f32 %v4577_v23, %v10905_v13 }
 0x434   : > { %v3825_v30 = vadd.f32 %v3647_v61, %v3286_v43  ;;  %v3826_v40 = vadd.f32 %v3647_v61, %v3287_v10  ;;  %4125 = vst [vmem:[%s9003_s28 + $0x400] sm:$0xff] %v3971_v25  ;;  %v3809_v38 = vadd.f32 %v3607_v0, %v3270_v53  ;;  %v3810_v2 = vadd.f32 %v3607_v0, %v3271_v47  ;;  %v10906_v43 = vld [vmem:[#allocation44_spill] sm:$0xff]  ;;  %v4579_v10 = vld [vmem:[%s4635_s18 + $0x428] sm:$0xff] }
 0x435   : > { %4126 = vst.msk [vmem:[%s9003_s28 + $0x408] sm:$0xff] %vm377_vm0, %v3972_v21  ;;  %v3298_v57 = vmul.f32 %v4576_v15, %v10905_v13  ;;  %v3282_v50 = vmul.f32 %v4578_v19, %v10906_v43  ;;  %v3283_v8 = vmul.f32 %v4579_v10, %v10906_v43  ;;  %v4589_v13 = vld [vmem:[%s4635_s18 + $0x4b8] sm:$0xff] }
 0x436   : > { %v3979_v55 = vmax.f32 %v3825_v30, 0.0  ;;  %v3963_v1 = vmax.f32 %v3809_v38, 0.0  ;;  %v3964_v59 = vmax.f32 %v3810_v2, 0.0  ;;  %v3980_v37 = vmax.f32 %v3826_v40, 0.0  ;;  %v4580_v30 = vld [vmem:[%s4635_s18 + $0x490] sm:$0xff]  ;;  %v10907_v40 = vld [vmem:[#allocation41_spill] sm:$0xff] }
 0x437   : > { %v3642_v58 = vpop.permute.xlu0 %3641  ;;  %v3296_v38 = vmul.f32 %v4580_v30, %v10907_v40  ;;  %v3297_v35 = vmul.f32 %v4581_v7, %v10907_v40 }
 0x438   : > { %4133 = vst [vmem:[%s9003_s28 + $0x440] sm:$0xff] %v3979_v55  ;;  %v3823_v20 = vadd.f32 %v3642_v58, %v3284_v16  ;;  %v3824_v42 = vadd.f32 %v3642_v58, %v3285_v9  ;;  %v10908_v58 = vld [vmem:[#allocation83_spill] sm:$0xff] }
 0x439   : > { %4117 = vst [vmem:[%s9003_s28 + $0x3c0] sm:$0xff] %v3963_v1 }
 0x43a   : > { %4118 = vst.msk [vmem:[%s9003_s28 + $0x3c8] sm:$0xff] %vm377_vm0, %v3964_v59  ;;  %v3977_v48 = vmax.f32 %v3823_v20, 0.0  ;;  %v3978_v51 = vmax.f32 %v3824_v42, 0.0  ;;  %v4583_v42 = vld [vmem:[%s4635_s18 + $0x458] sm:$0xff] }
 0x43b   : > { %4134 = vst.msk [vmem:[%s9003_s28 + $0x448] sm:$0xff] %vm377_vm0, %v3980_v37  ;;  %v3662_v44 = vpop.permute.xlu2 %3661  ;;  %v3622_v6 = vpop.permute.xlu1 %3621  ;;  %v4582_v37 = vld [vmem:[%s4635_s18 + $0x450] sm:$0xff]  ;;  %v3289_v31 = vmul.f32 %v4583_v42, %v10908_v58 }
 0x43c   : > { %v3831_v24 = vadd.f32 %v3662_v44, %v3292_v29  ;;  %v3832_v27 = vadd.f32 %v3662_v44, %v3293_v33  ;;  %4131 = vst [vmem:[%s9003_s28 + $0x430] sm:$0xff] %v3977_v48  ;;  %v3815_v22 = vadd.f32 %v3622_v6, %v3276_v60  ;;  %v3816_v3 = vadd.f32 %v3622_v6, %v3277_v32  ;;  %v10909_v60 = vld [vmem:[#allocation10_spill] sm:$0xff]  ;;  %v4585_v32 = vld [vmem:[%s4635_s18 + $0x4c8] sm:$0xff] }
 0x43d   : > { %4132 = vst.msk [vmem:[%s9003_s28 + $0x438] sm:$0xff] %vm377_vm0, %v3978_v51  ;;  %v3288_v20 = vmul.f32 %v4582_v37, %v10908_v58  ;;  %v3302_v63 = vmul.f32 %v4584_v56, %v10909_v60  ;;  %v3303_v48 = vmul.f32 %v4585_v32, %v10909_v60 }
 0x43e   : > { %v3985_v34 = vmax.f32 %v3831_v24, 0.0  ;;  %v3969_v62 = vmax.f32 %v3815_v22, 0.0  ;;  %v3970_v11 = vmax.f32 %v3816_v3, 0.0  ;;  %v3986_v46 = vmax.f32 %v3832_v27, 0.0  ;;  %v4586_v22 = vld [vmem:[%s4635_s18 + $0x480] sm:$0xff]  ;;  %v10910_v3 = vld [vmem:[#allocation55_spill] sm:$0xff] }
 0x43f   : > { %v3657_v5 = vpop.permute.xlu0 %3656  ;;  %v3294_v52 = vmul.f32 %v4586_v22, %v10910_v3 }
 0x440   : > { %4139 = vst [vmem:[%s9003_s28 + $0x470] sm:$0xff] %v3985_v34  ;;  %v3829_v49 = vadd.f32 %v3657_v5, %v3290_v17  ;;  %v3830_v28 = vadd.f32 %v3657_v5, %v3291_v26  ;;  %v3295_v17 = vmul.f32 %v4587_v18, %v10910_v3 }
 0x441   : > { %4123 = vst [vmem:[%s9003_s28 + $0x3f0] sm:$0xff] %v3969_v62 }
 0x442   : > { %4124 = vst.msk [vmem:[%s9003_s28 + $0x3f8] sm:$0xff] %vm377_vm0, %v3970_v11  ;;  %v3983_v36 = vmax.f32 %v3829_v49, 0.0  ;;  %v3984_v53 = vmax.f32 %v3830_v28, 0.0  ;;  %v4588_v49 = vld [vmem:[%s4635_s18 + $0x4b0] sm:$0xff]  ;;  %v10911_v28 = vld [vmem:[#allocation151_spill] sm:$0xff] }
 0x443   : > { %4140 = vst.msk [vmem:[%s9003_s28 + $0x478] sm:$0xff] %vm377_vm0, %v3986_v46  ;;  %v3677_v12 = vpop.permute.xlu2 %3676  ;;  %v3637_v47 = vpop.permute.xlu1 %3636  ;;  %v3300_v15 = vmul.f32 %v4588_v49, %v10911_v28 }
 0x444   : > { %v3837_v25 = vadd.f32 %v3677_v12, %v3298_v57  ;;  %v3838_v21 = vadd.f32 %v3677_v12, %v3299_v14  ;;  %4137 = vst [vmem:[%s9003_s28 + $0x460] sm:$0xff] %v3983_v36  ;;  %v3821_v61 = vadd.f32 %v3637_v47, %v3282_v50  ;;  %v3822_v0 = vadd.f32 %v3637_v47, %v3283_v8 }
 0x445   : > { %4138 = vst.msk [vmem:[%s9003_s28 + $0x468] sm:$0xff] %vm377_vm0, %v3984_v53  ;;  %v3301_v57 = vmul.f32 %v4589_v13, %v10911_v28 }
 0x446   : > { %v3991_v2 = vmax.f32 %v3837_v25, 0.0  ;;  %v3975_v16 = vmax.f32 %v3821_v61, 0.0  ;;  %v3976_v55 = vmax.f32 %v3822_v0, 0.0  ;;  %v3992_v39 = vmax.f32 %v3838_v21, 0.0 }
 0x447   : > { %v3672_v9 = vpop.permute.xlu0 %3671 }
 0x448   : > { %4145 = vst [vmem:[%s9003_s28 + $0x4a0] sm:$0xff] %v3991_v2  ;;  %v3835_v1 = vadd.f32 %v3672_v9, %v3296_v38  ;;  %v3836_v59 = vadd.f32 %v3672_v9, %v3297_v35 }
 0x449   : > { %4129 = vst [vmem:[%s9003_s28 + $0x420] sm:$0xff] %v3975_v16 }
 0x44a   : > { %4130 = vst.msk [vmem:[%s9003_s28 + $0x428] sm:$0xff] %vm377_vm0, %v3976_v55  ;;  %v3989_v45 = vmax.f32 %v3835_v1, 0.0  ;;  %v3990_v29 = vmax.f32 %v3836_v59, 0.0 }
 0x44b   : > { %4146 = vst.msk [vmem:[%s9003_s28 + $0x4a8] sm:$0xff] %vm377_vm0, %v3992_v39  ;;  %v3652_v41 = vpop.permute.xlu1 %3651 }
 0x44c   : > { %4143 = vst [vmem:[%s9003_s28 + $0x490] sm:$0xff] %v3989_v45  ;;  %v3827_v33 = vadd.f32 %v3652_v41, %v3288_v20  ;;  %v3828_v4 = vadd.f32 %v3652_v41, %v3289_v31 }
 0x44d   : > { %4144 = vst.msk [vmem:[%s9003_s28 + $0x498] sm:$0xff] %vm377_vm0, %v3990_v29 }
 0x44e   : > { %v3981_v51 = vmax.f32 %v3827_v33, 0.0  ;;  %v3982_v44 = vmax.f32 %v3828_v4, 0.0 }
 0x44f   : > { %v3687_v6 = vpop.permute.xlu0 %3686 }
 0x450   : > { %4135 = vst [vmem:[%s9003_s28 + $0x450] sm:$0xff] %v3981_v51  ;;  %v3841_v24 = vadd.f32 %v3687_v6, %v3302_v63  ;;  %v3842_v27 = vadd.f32 %v3687_v6, %v3303_v48 }
 0x451   : > { %4136 = vst.msk [vmem:[%s9003_s28 + $0x458] sm:$0xff] %vm377_vm0, %v3982_v44 }
 0x452   : > { %v3995_v34 = vmax.f32 %v3841_v24, 0.0  ;;  %v3996_v54 = vmax.f32 %v3842_v27, 0.0 }
 0x453   : > { %v3667_v26 = vpop.permute.xlu1 %3666 }
 0x454   : > { %4149 = vst [vmem:[%s9003_s28 + $0x4c0] sm:$0xff] %v3995_v34  ;;  %v3833_v62 = vadd.f32 %v3667_v26, %v3294_v52  ;;  %v3834_v11 = vadd.f32 %v3667_v26, %v3295_v17 }
 0x455   : > { %4150 = vst.msk [vmem:[%s9003_s28 + $0x4c8] sm:$0xff] %vm377_vm0, %v3996_v54 }
 0x456   : > { %v3987_v46 = vmax.f32 %v3833_v62, 0.0  ;;  %v3988_v5 = vmax.f32 %v3834_v11, 0.0 }
 0x458   : > { %4141 = vst [vmem:[%s9003_s28 + $0x480] sm:$0xff] %v3987_v46 }
 0x459   : > { %4142 = vst.msk [vmem:[%s9003_s28 + $0x488] sm:$0xff] %vm377_vm0, %v3988_v5 }
 0x45b   : > { %v3682_v23 = vpop.permute.xlu1 %3681 }
 0x45c   : > { %v3839_v14 = vadd.f32 %v3682_v23, %v3300_v15  ;;  %v3840_v19 = vadd.f32 %v3682_v23, %v3301_v57 }
 0x45e   : > { %v3993_v43 = vmax.f32 %v3839_v14, 0.0  ;;  %v3994_v50 = vmax.f32 %v3840_v19, 0.0 }
 0x460   : > { %4147 = vst [vmem:[%s9003_s28 + $0x4b0] sm:$0xff] %v3993_v43 }
 0x461   : > { %4148 = vst.msk [vmem:[%s9003_s28 + $0x4b8] sm:$0xff] %vm377_vm0, %v3994_v50 }
 0x462 PF: > { %s13_s12 = sadd.s32 1, %s4596_s12  }
 0x463   : > { %p10_p4 = scmp.ge.s32.totalorder %s13_s12, 4  }
 0x465   :  { %12 = sbr.rel (!%p10_p4) target bundleno = 1 (0x1), region = 68 }

</bundles_post_ra>
